<compile_context>
chip_gen: v5e
topology: v5e:2x2
jax: 0.10.0
libtpu: 0.0.40
codegen_flags: <defaults>
</compile_context>

<pallas_src>
import functools

import jax
import jax.numpy as jnp
from jax.experimental import pallas as pl
from jax.experimental.pallas import tpu as pltpu

# Module constants (QMixer)
N_HEROES = 5 * 2          # 10
N_NONHEROES = 16 * 2      # 32
N_TOWERS = 3 * 2          # 6
N_STATS = 80              # N_UNIT_BASIC_STATS
N_FILT = 32               # N_UNIT_BASIC_FILTER
N_FILT_PAD = 128          # per-unit filter width padded to a full lane tile
N_EMBED = 128             # N_EMBED_FILTER

_TILE_ROWS_MAX = 256      # sized to fit v7x's 64 MiB VMEM with double buffering


def _round_up(x, m):
    return (x + m - 1) // m * m


def qmix_kernel(num_agents, tile_rows,
                heroes_ref, nonheroes_ref, towers_ref, qs_ref,
                wb_ref, bb_ref,          # affine_unit_basic_stats (padded 32->128)
                weh_ref, beh_ref,        # affine_heros     (rows zero-padded)
                wenh_ref, benh_ref,      # affine_nonheros  (rows zero-padded)
                wet_ref, bet_ref,        # affine_towers    (rows zero-padded)
                wheads_ref, bheads_ref,  # fused [w1 | b1 | w2 | b2[0]]
                b2b_ref, b2bb_ref,       # b2[2] weight (as [1,128]) and bias
                out_ref):
    f32 = jnp.float32
    bf16 = jnp.bfloat16
    tr = tile_rows

    wb = wb_ref[...]          # [80, 128] bf16 (cols >= 32 are zero)
    bb = bb_ref[...]          # [1, 128]  f32  (cols >= 32 are zero)

    def group_embed(x_ref, n_units, we_ref, be_ref):
        # x_ref: [n_units, tr, 80] bf16 (unit-major).
        # Stage 1 (shared per-unit linear) as ONE matmul over n_units*tr rows.
        x2d = x_ref[...].reshape(n_units * tr, N_STATS)
        h = jnp.dot(x2d, wb, preferred_element_type=f32) + bb          # [U*tr, 128]
        h = jnp.maximum(h, 0.0).astype(bf16)                           # relu
        # Move units from rows into 128-aligned lane blocks (pure vreg placement).
        hcat = jnp.concatenate(
            [h[u * tr:(u + 1) * tr, :] for u in range(n_units)], axis=1)
        # Stage 2 (group embedding) as ONE matmul; we_ref is [U*128, 128] with
        # zero rows where hcat carries stage-1 lane padding.
        return jnp.dot(hcat, we_ref[...], preferred_element_type=f32) + be_ref[...]

    h_emb = group_embed(heroes_ref, N_HEROES, weh_ref, beh_ref)        # [tr,128] f32
    nh_emb = group_embed(nonheroes_ref, N_NONHEROES, wenh_ref, benh_ref)
    t_emb = group_embed(towers_ref, N_TOWERS, wet_ref, bet_ref)
    states = jnp.concatenate([h_emb, nh_emb, t_emb], axis=-1).astype(bf16)  # [tr,384]

    # All four hypernetwork heads in one MXU push: [tr,384] @ [384,(A+3)*128].
    heads = (jnp.dot(states, wheads_ref[...], preferred_element_type=f32)
             + bheads_ref[...])                                        # f32

    a128 = num_agents * N_EMBED
    w1 = jnp.abs(heads[:, :a128])                                      # [tr, A*128]
    b1 = heads[:, a128:a128 + N_EMBED]                                 # [tr, 128]
    w2 = jnp.abs(heads[:, a128 + N_EMBED:a128 + 2 * N_EMBED])          # [tr, 128]
    hid = jnp.maximum(heads[:, a128 + 2 * N_EMBED:a128 + 3 * N_EMBED], 0.0)

    # middle = elu(qs[1,A] @ w1[A,128] + b1), per row as a weighted sum (A is
    # far too small for the MXU; stays on the VPU with 128-aligned w1 slices).
    qs = qs_ref[...].astype(f32)                                       # [tr, A]
    mix = jnp.zeros((tr, N_EMBED), dtype=f32)
    for a in range(num_agents):
        mix = mix + qs[:, a:a + 1] * w1[:, a * N_EMBED:(a + 1) * N_EMBED]
    pre = mix + b1
    middle = jnp.where(pre > 0, pre, jnp.exp(jnp.minimum(pre, 0.0)) - 1.0)  # ELU

    b2 = jnp.sum(hid * b2b_ref[...], axis=-1, keepdims=True) + b2bb_ref[...]
    q_tot = jnp.sum(middle * w2, axis=-1, keepdims=True) + b2          # [tr, 1]
    # The [tr,1] column output uses masked stores; negligible vs. the matmuls.
    out_ref[...] = q_tot


def _pack_group_weight(we, n_units):
    """[n_units*32, 128] -> [n_units*128, 128] with zero rows for lane padding."""
    we3 = we.reshape(n_units, N_FILT, N_EMBED)
    we3 = jnp.pad(we3, ((0, 0), (0, N_FILT_PAD - N_FILT), (0, 0)))
    return we3.reshape(n_units * N_FILT_PAD, N_EMBED)


@functools.partial(jax.jit, static_argnums=(5,))
def qmixer_forward(params, heroes, nonheroes, towers, qs, num_agents):
    B, T = heroes.shape[:2]
    rows = B * T
    tile_rows = min(_TILE_ROWS_MAX, _round_up(rows, 32))
    rows_pad = _round_up(rows, tile_rows)
    pad = rows_pad - rows
    bf16 = jnp.bfloat16
    f32 = jnp.float32

    def prep(x, n_units):
        # [B,T,U,80] -> unit-major bf16 [U, rows_pad, 80] (pad+transpose+cast
        # fuse into a single XLA pass).
        x = x.reshape(rows, n_units, N_STATS)
        if pad:
            x = jnp.pad(x, ((0, pad), (0, 0), (0, 0)))
        return x.transpose(1, 0, 2).astype(bf16)

    h3 = prep(heroes, N_HEROES)
    nh3 = prep(nonheroes, N_NONHEROES)
    t3 = prep(towers, N_TOWERS)
    qs2 = qs.reshape(rows, num_agents).astype(f32)
    if pad:
        qs2 = jnp.pad(qs2, ((0, pad), (0, 0)))

    # Weight packing (tiny, host/XLA side, done once per call).
    wb_pad = jnp.pad(params["wb"], ((0, 0), (0, N_FILT_PAD - N_FILT))).astype(bf16)
    bb_pad = jnp.pad(params["bb"], ((0, 0), (0, N_FILT_PAD - N_FILT))).astype(f32)
    weh = _pack_group_weight(params["wh"], N_HEROES).astype(bf16)
    wenh = _pack_group_weight(params["wnh"], N_NONHEROES).astype(bf16)
    wet = _pack_group_weight(params["wt"], N_TOWERS).astype(bf16)
    w_heads = jnp.concatenate(
        [params["w1"], params["b1"], params["w2"], params["b2a"]], axis=1).astype(bf16)
    b_heads = jnp.concatenate(
        [params["w1b"], params["b1b"], params["w2b"], params["b2ab"]],
        axis=1).astype(f32)

    args = (h3, nh3, t3, qs2,
            wb_pad, bb_pad,
            weh, params["bh"].astype(f32),
            wenh, params["bnh"].astype(f32),
            wet, params["bt"].astype(f32),
            w_heads, b_heads,
            params["b2b"].astype(f32), params["b2bb"].astype(f32))

    tr = tile_rows
    rows_map = lambda i: (0, i, 0)        # unit-major inputs: tile the row axis
    const_map = lambda i: (0, 0)          # weights: resident, never re-fetched

    in_specs = [
        pl.BlockSpec((N_HEROES, tr, N_STATS), rows_map),
        pl.BlockSpec((N_NONHEROES, tr, N_STATS), rows_map),
        pl.BlockSpec((N_TOWERS, tr, N_STATS), rows_map),
        pl.BlockSpec((tr, num_agents), lambda i: (i, 0)),
    ] + [pl.BlockSpec(a.shape, const_map) for a in args[4:]]

    out = pl.pallas_call(
        functools.partial(qmix_kernel, num_agents, tr),
        out_shape=jax.ShapeDtypeStruct((rows_pad, 1), jnp.float32),
        grid=(rows_pad // tr,),
        in_specs=in_specs,
        out_specs=pl.BlockSpec((tr, 1), lambda i: (i, 0)),
        compiler_params=pltpu.CompilerParams(
            dimension_semantics=("parallel",),
            vmem_limit_bytes=48 * 1024 * 1024),
    )(*args)
    return out[:rows].reshape(B, T, 1, 1)


def init_params(key, num_agents):
    """PyTorch-nn.Linear-style deterministic init; weights stored transposed [in, out]."""
    def linear(k, fan_in, fan_out):
        kw, kb = jax.random.split(k)
        bound = float(fan_in) ** -0.5
        w = jax.random.uniform(kw, (fan_in, fan_out), jnp.float32, -bound, bound)
        b = jax.random.uniform(kb, (1, fan_out), jnp.float32, -bound, bound)
        return w, b

    keys = jax.random.split(key, 9)
    p = {}
    p["wb"], p["bb"] = linear(keys[0], N_STATS, N_FILT)
    p["wh"], p["bh"] = linear(keys[1], N_FILT * N_HEROES, N_EMBED)
    p["wnh"], p["bnh"] = linear(keys[2], N_FILT * N_NONHEROES, N_EMBED)
    p["wt"], p["bt"] = linear(keys[3], N_FILT * N_TOWERS, N_EMBED)
    p["w1"], p["w1b"] = linear(keys[4], N_EMBED * 3, N_EMBED * num_agents)
    p["b1"], p["b1b"] = linear(keys[5], N_EMBED * 3, N_EMBED)
    p["w2"], p["w2b"] = linear(keys[6], N_EMBED * 3, N_EMBED)
    p["b2a"], p["b2ab"] = linear(keys[7], N_EMBED * 3, N_EMBED)
    w_last, b_last = linear(keys[8], N_EMBED, 1)
    p["b2b"] = w_last.T            # [1, 128]
    p["b2bb"] = b_last             # [1, 1]
    return p


def reference_forward(params, heroes, nonheroes, towers, qs, num_agents):
    """Pure-JAX f32 mirror of the PyTorch forward (correctness check)."""
    B, T = heroes.shape[:2]

    def group(x, we, be):
        hb = jax.nn.relu(x @ params["wb"] + params["bb"])     # [B,T,U,32]
        hb = hb.reshape(B, T, -1)
        return hb @ we + be

    h = group(heroes, params["wh"], params["bh"])
    nh = group(nonheroes, params["wnh"], params["bnh"])
    t = group(towers, params["wt"], params["bt"])
    states = jnp.concatenate([h, nh, t], axis=-1)             # [B,T,384]

    w1 = jnp.abs(states @ params["w1"] + params["w1b"]).reshape(B, T, num_agents, N_EMBED)
    b1 = (states @ params["b1"] + params["b1b"]).reshape(B, T, 1, N_EMBED)
    middle = jax.nn.elu(qs.reshape(B, T, 1, num_agents) @ w1 + b1)

    w2 = jnp.abs(states @ params["w2"] + params["w2b"]).reshape(B, T, N_EMBED, 1)
    hid = jax.nn.relu(states @ params["b2a"] + params["b2ab"])
    b2 = (jnp.sum(hid * params["b2b"], axis=-1, keepdims=True)
          + params["b2bb"][0, 0]).reshape(B, T, 1, 1)
    return middle @ w2 + b2


if __name__ == "__main__":
    num_agents = 5
    B, T = 2, 8

    key = jax.random.PRNGKey(0)
    kp, kh, knh, kt, kq = jax.random.split(key, 5)
    params = init_params(kp, num_agents)

    heroes = jax.random.normal(kh, (B, T, N_HEROES, N_STATS), jnp.float32)
    nonheroes = jax.random.normal(knh, (B, T, N_NONHEROES, N_STATS), jnp.float32)
    towers = jax.random.normal(kt, (B, T, N_TOWERS, N_STATS), jnp.float32)
    qs = jax.random.normal(kq, (B, T, num_agents), jnp.float32)

    q_tot = qmixer_forward(params, heroes, nonheroes, towers, qs, num_agents)
    q_tot = jax.block_until_ready(q_tot)

    assert q_tot.shape == (B, T, 1, 1)

    ref = reference_forward(params, heroes, nonheroes, towers, qs, num_agents)
    # Kernel matmuls use bf16 operands (f32 accumulation) -> slightly looser
    # tolerance than the pure-f32 reference.
    if not jnp.allclose(q_tot, ref, rtol=5e-2, atol=5e-2):
        max_err = float(jnp.max(jnp.abs(q_tot - ref)))
        raise AssertionError(f"Pallas output mismatch vs reference, max abs err {max_err}")

    print("KERNEL_OK")
</pallas_src>

<mosaic_0001>
module attributes {stable_mosaic.version = 11 : i64} {
  func.func @qmix_kernel(%arg0: i32, %arg1: memref<10x32x80xbf16, #tpu.memory_space<vmem>>, %arg2: memref<32x32x80xbf16, #tpu.memory_space<vmem>>, %arg3: memref<6x32x80xbf16, #tpu.memory_space<vmem>>, %arg4: memref<32x5xf32, #tpu.memory_space<vmem>>, %arg5: memref<80x128xbf16, #tpu.memory_space<vmem>>, %arg6: memref<1x128xf32, #tpu.memory_space<vmem>>, %arg7: memref<1280x128xbf16, #tpu.memory_space<vmem>>, %arg8: memref<1x128xf32, #tpu.memory_space<vmem>>, %arg9: memref<4096x128xbf16, #tpu.memory_space<vmem>>, %arg10: memref<1x128xf32, #tpu.memory_space<vmem>>, %arg11: memref<768x128xbf16, #tpu.memory_space<vmem>>, %arg12: memref<1x128xf32, #tpu.memory_space<vmem>>, %arg13: memref<384x1024xbf16, #tpu.memory_space<vmem>>, %arg14: memref<1x1024xf32, #tpu.memory_space<vmem>>, %arg15: memref<1x128xf32, #tpu.memory_space<vmem>>, %arg16: memref<1x1xf32, #tpu.memory_space<vmem>>, %arg17: memref<32x1xf32, #tpu.memory_space<vmem>>) attributes {dimension_semantics = [#tpu.dimension_semantics<parallel>], iteration_bounds = array<i64: 1>, scalar_prefetch = 0 : i64, scratch_operands = 0 : i64, tpu.core_type = #tpu.core_type<tc>, window_params = [{transform_indices = @transform_0, window_bounds = array<i64: 10, 32, 80>}, {transform_indices = @transform_1, window_bounds = array<i64: 32, 32, 80>}, {transform_indices = @transform_2, window_bounds = array<i64: 6, 32, 80>}, {transform_indices = @transform_3, window_bounds = array<i64: 32, 5>}, {pipeline_mode = #tpu.pipeline_mode<synchronous>, transform_indices = @transform_4, window_bounds = array<i64: 80, 128>}, {pipeline_mode = #tpu.pipeline_mode<synchronous>, transform_indices = @transform_5, window_bounds = array<i64: 1, 128>}, {pipeline_mode = #tpu.pipeline_mode<synchronous>, transform_indices = @transform_6, window_bounds = array<i64: 1280, 128>}, {pipeline_mode = #tpu.pipeline_mode<synchronous>, transform_indices = @transform_7, window_bounds = array<i64: 1, 128>}, {pipeline_mode = #tpu.pipeline_mode<synchronous>, transform_indices = @transform_8, window_bounds = array<i64: 4096, 128>}, {pipeline_mode = #tpu.pipeline_mode<synchronous>, transform_indices = @transform_9, window_bounds = array<i64: 1, 128>}, {pipeline_mode = #tpu.pipeline_mode<synchronous>, transform_indices = @transform_10, window_bounds = array<i64: 768, 128>}, {pipeline_mode = #tpu.pipeline_mode<synchronous>, transform_indices = @transform_11, window_bounds = array<i64: 1, 128>}, {pipeline_mode = #tpu.pipeline_mode<synchronous>, transform_indices = @transform_12, window_bounds = array<i64: 384, 1024>}, {pipeline_mode = #tpu.pipeline_mode<synchronous>, transform_indices = @transform_13, window_bounds = array<i64: 1, 1024>}, {pipeline_mode = #tpu.pipeline_mode<synchronous>, transform_indices = @transform_14, window_bounds = array<i64: 1, 128>}, {pipeline_mode = #tpu.pipeline_mode<synchronous>, transform_indices = @transform_15, window_bounds = array<i64: 1, 1>}, {transform_indices = @transform_16, window_bounds = array<i64: 32, 1>}]} {
    %c0 = arith.constant 0 : index
    %c0_0 = arith.constant 0 : index
    %0 = vector.load %arg5[%c0, %c0_0] : memref<80x128xbf16, #tpu.memory_space<vmem>>, vector<80x128xbf16>
    %c0_1 = arith.constant 0 : index
    %c0_2 = arith.constant 0 : index
    %1 = vector.load %arg6[%c0_1, %c0_2] : memref<1x128xf32, #tpu.memory_space<vmem>>, vector<1x128xf32>
    %c0_3 = arith.constant 0 : index
    %c0_4 = arith.constant 0 : index
    %c0_5 = arith.constant 0 : index
    %2 = vector.load %arg1[%c0_3, %c0_4, %c0_5] : memref<10x32x80xbf16, #tpu.memory_space<vmem>>, vector<10x32x80xbf16>
    %3 = vector.shape_cast %2 : vector<10x32x80xbf16> to vector<320x80xbf16>
    %cst = arith.constant dense<0.000000e+00> : vector<320x128xf32>
    %4 = tpu.matmul %3, %0, %cst {dimension_numbers = #tpu.dot_dimension_numbers<[1], [0], [0], [1], [0, 0, 1, 1], [], []>} : vector<320x80xbf16>, vector<80x128xbf16>, vector<320x128xf32> -> vector<320x128xf32>
    %5 = vector.broadcast %1 : vector<1x128xf32> to vector<320x128xf32>
    %6 = arith.addf %4, %5 : vector<320x128xf32>
    %cst_6 = arith.constant 0.000000e+00 : f32
    %7 = vector.broadcast %cst_6 : f32 to vector<320x128xf32>
    %8 = arith.maximumf %6, %7 : vector<320x128xf32>
    %9 = arith.truncf %8 : vector<320x128xf32> to vector<320x128xbf16>
    %10 = vector.extract_strided_slice %9 {offsets = [0, 0], sizes = [32, 128], strides = [1, 1]} : vector<320x128xbf16> to vector<32x128xbf16>
    %11 = vector.extract_strided_slice %9 {offsets = [32, 0], sizes = [32, 128], strides = [1, 1]} : vector<320x128xbf16> to vector<32x128xbf16>
    %12 = vector.extract_strided_slice %9 {offsets = [64, 0], sizes = [32, 128], strides = [1, 1]} : vector<320x128xbf16> to vector<32x128xbf16>
    %13 = vector.extract_strided_slice %9 {offsets = [96, 0], sizes = [32, 128], strides = [1, 1]} : vector<320x128xbf16> to vector<32x128xbf16>
    %14 = vector.extract_strided_slice %9 {offsets = [128, 0], sizes = [32, 128], strides = [1, 1]} : vector<320x128xbf16> to vector<32x128xbf16>
    %15 = vector.extract_strided_slice %9 {offsets = [160, 0], sizes = [32, 128], strides = [1, 1]} : vector<320x128xbf16> to vector<32x128xbf16>
    %16 = vector.extract_strided_slice %9 {offsets = [192, 0], sizes = [32, 128], strides = [1, 1]} : vector<320x128xbf16> to vector<32x128xbf16>
    %17 = vector.extract_strided_slice %9 {offsets = [224, 0], sizes = [32, 128], strides = [1, 1]} : vector<320x128xbf16> to vector<32x128xbf16>
    %18 = vector.extract_strided_slice %9 {offsets = [256, 0], sizes = [32, 128], strides = [1, 1]} : vector<320x128xbf16> to vector<32x128xbf16>
    %19 = vector.extract_strided_slice %9 {offsets = [288, 0], sizes = [32, 128], strides = [1, 1]} : vector<320x128xbf16> to vector<32x128xbf16>
    %20 = tpu.concatenate %10, %11, %12, %13, %14, %15, %16, %17, %18, %19 in 1 : vector<32x128xbf16>, vector<32x128xbf16>, vector<32x128xbf16>, vector<32x128xbf16>, vector<32x128xbf16>, vector<32x128xbf16>, vector<32x128xbf16>, vector<32x128xbf16>, vector<32x128xbf16>, vector<32x128xbf16> -> vector<32x1280xbf16>
    %c0_7 = arith.constant 0 : index
    %c0_8 = arith.constant 0 : index
    %21 = vector.load %arg7[%c0_7, %c0_8] : memref<1280x128xbf16, #tpu.memory_space<vmem>>, vector<1280x128xbf16>
    %cst_9 = arith.constant dense<0.000000e+00> : vector<32x128xf32>
    %22 = tpu.matmul %20, %21, %cst_9 {dimension_numbers = #tpu.dot_dimension_numbers<[1], [0], [0], [1], [0, 0, 1, 1], [], []>} : vector<32x1280xbf16>, vector<1280x128xbf16>, vector<32x128xf32> -> vector<32x128xf32>
    %c0_10 = arith.constant 0 : index
    %c0_11 = arith.constant 0 : index
    %23 = vector.load %arg8[%c0_10, %c0_11] : memref<1x128xf32, #tpu.memory_space<vmem>>, vector<1x128xf32>
    %24 = vector.broadcast %23 : vector<1x128xf32> to vector<32x128xf32>
    %25 = arith.addf %22, %24 : vector<32x128xf32>
    %c0_12 = arith.constant 0 : index
    %c0_13 = arith.constant 0 : index
    %c0_14 = arith.constant 0 : index
    %26 = vector.load %arg2[%c0_12, %c0_13, %c0_14] : memref<32x32x80xbf16, #tpu.memory_space<vmem>>, vector<32x32x80xbf16>
    %27 = vector.shape_cast %26 : vector<32x32x80xbf16> to vector<1024x80xbf16>
    %cst_15 = arith.constant dense<0.000000e+00> : vector<1024x128xf32>
    %28 = tpu.matmul %27, %0, %cst_15 {dimension_numbers = #tpu.dot_dimension_numbers<[1], [0], [0], [1], [0, 0, 1, 1], [], []>} : vector<1024x80xbf16>, vector<80x128xbf16>, vector<1024x128xf32> -> vector<1024x128xf32>
    %29 = vector.broadcast %1 : vector<1x128xf32> to vector<1024x128xf32>
    %30 = arith.addf %28, %29 : vector<1024x128xf32>
    %cst_16 = arith.constant 0.000000e+00 : f32
    %31 = vector.broadcast %cst_16 : f32 to vector<1024x128xf32>
    %32 = arith.maximumf %30, %31 : vector<1024x128xf32>
    %33 = arith.truncf %32 : vector<1024x128xf32> to vector<1024x128xbf16>
    %34 = vector.extract_strided_slice %33 {offsets = [0, 0], sizes = [32, 128], strides = [1, 1]} : vector<1024x128xbf16> to vector<32x128xbf16>
    %35 = vector.extract_strided_slice %33 {offsets = [32, 0], sizes = [32, 128], strides = [1, 1]} : vector<1024x128xbf16> to vector<32x128xbf16>
    %36 = vector.extract_strided_slice %33 {offsets = [64, 0], sizes = [32, 128], strides = [1, 1]} : vector<1024x128xbf16> to vector<32x128xbf16>
    %37 = vector.extract_strided_slice %33 {offsets = [96, 0], sizes = [32, 128], strides = [1, 1]} : vector<1024x128xbf16> to vector<32x128xbf16>
    %38 = vector.extract_strided_slice %33 {offsets = [128, 0], sizes = [32, 128], strides = [1, 1]} : vector<1024x128xbf16> to vector<32x128xbf16>
    %39 = vector.extract_strided_slice %33 {offsets = [160, 0], sizes = [32, 128], strides = [1, 1]} : vector<1024x128xbf16> to vector<32x128xbf16>
    %40 = vector.extract_strided_slice %33 {offsets = [192, 0], sizes = [32, 128], strides = [1, 1]} : vector<1024x128xbf16> to vector<32x128xbf16>
    %41 = vector.extract_strided_slice %33 {offsets = [224, 0], sizes = [32, 128], strides = [1, 1]} : vector<1024x128xbf16> to vector<32x128xbf16>
    %42 = vector.extract_strided_slice %33 {offsets = [256, 0], sizes = [32, 128], strides = [1, 1]} : vector<1024x128xbf16> to vector<32x128xbf16>
    %43 = vector.extract_strided_slice %33 {offsets = [288, 0], sizes = [32, 128], strides = [1, 1]} : vector<1024x128xbf16> to vector<32x128xbf16>
    %44 = vector.extract_strided_slice %33 {offsets = [320, 0], sizes = [32, 128], strides = [1, 1]} : vector<1024x128xbf16> to vector<32x128xbf16>
    %45 = vector.extract_strided_slice %33 {offsets = [352, 0], sizes = [32, 128], strides = [1, 1]} : vector<1024x128xbf16> to vector<32x128xbf16>
    %46 = vector.extract_strided_slice %33 {offsets = [384, 0], sizes = [32, 128], strides = [1, 1]} : vector<1024x128xbf16> to vector<32x128xbf16>
    %47 = vector.extract_strided_slice %33 {offsets = [416, 0], sizes = [32, 128], strides = [1, 1]} : vector<1024x128xbf16> to vector<32x128xbf16>
    %48 = vector.extract_strided_slice %33 {offsets = [448, 0], sizes = [32, 128], strides = [1, 1]} : vector<1024x128xbf16> to vector<32x128xbf16>
    %49 = vector.extract_strided_slice %33 {offsets = [480, 0], sizes = [32, 128], strides = [1, 1]} : vector<1024x128xbf16> to vector<32x128xbf16>
    %50 = vector.extract_strided_slice %33 {offsets = [512, 0], sizes = [32, 128], strides = [1, 1]} : vector<1024x128xbf16> to vector<32x128xbf16>
    %51 = vector.extract_strided_slice %33 {offsets = [544, 0], sizes = [32, 128], strides = [1, 1]} : vector<1024x128xbf16> to vector<32x128xbf16>
    %52 = vector.extract_strided_slice %33 {offsets = [576, 0], sizes = [32, 128], strides = [1, 1]} : vector<1024x128xbf16> to vector<32x128xbf16>
    %53 = vector.extract_strided_slice %33 {offsets = [608, 0], sizes = [32, 128], strides = [1, 1]} : vector<1024x128xbf16> to vector<32x128xbf16>
    %54 = vector.extract_strided_slice %33 {offsets = [640, 0], sizes = [32, 128], strides = [1, 1]} : vector<1024x128xbf16> to vector<32x128xbf16>
    %55 = vector.extract_strided_slice %33 {offsets = [672, 0], sizes = [32, 128], strides = [1, 1]} : vector<1024x128xbf16> to vector<32x128xbf16>
    %56 = vector.extract_strided_slice %33 {offsets = [704, 0], sizes = [32, 128], strides = [1, 1]} : vector<1024x128xbf16> to vector<32x128xbf16>
    %57 = vector.extract_strided_slice %33 {offsets = [736, 0], sizes = [32, 128], strides = [1, 1]} : vector<1024x128xbf16> to vector<32x128xbf16>
    %58 = vector.extract_strided_slice %33 {offsets = [768, 0], sizes = [32, 128], strides = [1, 1]} : vector<1024x128xbf16> to vector<32x128xbf16>
    %59 = vector.extract_strided_slice %33 {offsets = [800, 0], sizes = [32, 128], strides = [1, 1]} : vector<1024x128xbf16> to vector<32x128xbf16>
    %60 = vector.extract_strided_slice %33 {offsets = [832, 0], sizes = [32, 128], strides = [1, 1]} : vector<1024x128xbf16> to vector<32x128xbf16>
    %61 = vector.extract_strided_slice %33 {offsets = [864, 0], sizes = [32, 128], strides = [1, 1]} : vector<1024x128xbf16> to vector<32x128xbf16>
    %62 = vector.extract_strided_slice %33 {offsets = [896, 0], sizes = [32, 128], strides = [1, 1]} : vector<1024x128xbf16> to vector<32x128xbf16>
    %63 = vector.extract_strided_slice %33 {offsets = [928, 0], sizes = [32, 128], strides = [1, 1]} : vector<1024x128xbf16> to vector<32x128xbf16>
    %64 = vector.extract_strided_slice %33 {offsets = [960, 0], sizes = [32, 128], strides = [1, 1]} : vector<1024x128xbf16> to vector<32x128xbf16>
    %65 = vector.extract_strided_slice %33 {offsets = [992, 0], sizes = [32, 128], strides = [1, 1]} : vector<1024x128xbf16> to vector<32x128xbf16>
    %66 = tpu.concatenate %34, %35, %36, %37, %38, %39, %40, %41, %42, %43, %44, %45, %46, %47, %48, %49 in 1 : vector<32x128xbf16>, vector<32x128xbf16>, vector<32x128xbf16>, vector<32x128xbf16>, vector<32x128xbf16>, vector<32x128xbf16>, vector<32x128xbf16>, vector<32x128xbf16>, vector<32x128xbf16>, vector<32x128xbf16>, vector<32x128xbf16>, vector<32x128xbf16>, vector<32x128xbf16>, vector<32x128xbf16>, vector<32x128xbf16>, vector<32x128xbf16> -> vector<32x2048xbf16>
    %67 = tpu.concatenate %50, %51, %52, %53, %54, %55, %56, %57, %58, %59, %60, %61, %62, %63, %64, %65 in 1 : vector<32x128xbf16>, vector<32x128xbf16>, vector<32x128xbf16>, vector<32x128xbf16>, vector<32x128xbf16>, vector<32x128xbf16>, vector<32x128xbf16>, vector<32x128xbf16>, vector<32x128xbf16>, vector<32x128xbf16>, vector<32x128xbf16>, vector<32x128xbf16>, vector<32x128xbf16>, vector<32x128xbf16>, vector<32x128xbf16>, vector<32x128xbf16> -> vector<32x2048xbf16>
    %68 = tpu.concatenate %66, %67 in 1 : vector<32x2048xbf16>, vector<32x2048xbf16> -> vector<32x4096xbf16>
    %c0_17 = arith.constant 0 : index
    %c0_18 = arith.constant 0 : index
    %69 = vector.load %arg9[%c0_17, %c0_18] : memref<4096x128xbf16, #tpu.memory_space<vmem>>, vector<4096x128xbf16>
    %cst_19 = arith.constant dense<0.000000e+00> : vector<32x128xf32>
    %70 = tpu.matmul %68, %69, %cst_19 {dimension_numbers = #tpu.dot_dimension_numbers<[1], [0], [0], [1], [0, 0, 1, 1], [], []>} : vector<32x4096xbf16>, vector<4096x128xbf16>, vector<32x128xf32> -> vector<32x128xf32>
    %c0_20 = arith.constant 0 : index
    %c0_21 = arith.constant 0 : index
    %71 = vector.load %arg10[%c0_20, %c0_21] : memref<1x128xf32, #tpu.memory_space<vmem>>, vector<1x128xf32>
    %72 = vector.broadcast %71 : vector<1x128xf32> to vector<32x128xf32>
    %73 = arith.addf %70, %72 : vector<32x128xf32>
    %c0_22 = arith.constant 0 : index
    %c0_23 = arith.constant 0 : index
    %c0_24 = arith.constant 0 : index
    %74 = vector.load %arg3[%c0_22, %c0_23, %c0_24] : memref<6x32x80xbf16, #tpu.memory_space<vmem>>, vector<6x32x80xbf16>
    %75 = vector.shape_cast %74 : vector<6x32x80xbf16> to vector<192x80xbf16>
    %cst_25 = arith.constant dense<0.000000e+00> : vector<192x128xf32>
    %76 = tpu.matmul %75, %0, %cst_25 {dimension_numbers = #tpu.dot_dimension_numbers<[1], [0], [0], [1], [0, 0, 1, 1], [], []>} : vector<192x80xbf16>, vector<80x128xbf16>, vector<192x128xf32> -> vector<192x128xf32>
    %77 = vector.broadcast %1 : vector<1x128xf32> to vector<192x128xf32>
    %78 = arith.addf %76, %77 : vector<192x128xf32>
    %cst_26 = arith.constant 0.000000e+00 : f32
    %79 = vector.broadcast %cst_26 : f32 to vector<192x128xf32>
    %80 = arith.maximumf %78, %79 : vector<192x128xf32>
    %81 = arith.truncf %80 : vector<192x128xf32> to vector<192x128xbf16>
    %82 = vector.extract_strided_slice %81 {offsets = [0, 0], sizes = [32, 128], strides = [1, 1]} : vector<192x128xbf16> to vector<32x128xbf16>
    %83 = vector.extract_strided_slice %81 {offsets = [32, 0], sizes = [32, 128], strides = [1, 1]} : vector<192x128xbf16> to vector<32x128xbf16>
    %84 = vector.extract_strided_slice %81 {offsets = [64, 0], sizes = [32, 128], strides = [1, 1]} : vector<192x128xbf16> to vector<32x128xbf16>
    %85 = vector.extract_strided_slice %81 {offsets = [96, 0], sizes = [32, 128], strides = [1, 1]} : vector<192x128xbf16> to vector<32x128xbf16>
    %86 = vector.extract_strided_slice %81 {offsets = [128, 0], sizes = [32, 128], strides = [1, 1]} : vector<192x128xbf16> to vector<32x128xbf16>
    %87 = vector.extract_strided_slice %81 {offsets = [160, 0], sizes = [32, 128], strides = [1, 1]} : vector<192x128xbf16> to vector<32x128xbf16>
    %88 = tpu.concatenate %82, %83, %84, %85, %86, %87 in 1 : vector<32x128xbf16>, vector<32x128xbf16>, vector<32x128xbf16>, vector<32x128xbf16>, vector<32x128xbf16>, vector<32x128xbf16> -> vector<32x768xbf16>
    %c0_27 = arith.constant 0 : index
    %c0_28 = arith.constant 0 : index
    %89 = vector.load %arg11[%c0_27, %c0_28] : memref<768x128xbf16, #tpu.memory_space<vmem>>, vector<768x128xbf16>
    %cst_29 = arith.constant dense<0.000000e+00> : vector<32x128xf32>
    %90 = tpu.matmul %88, %89, %cst_29 {dimension_numbers = #tpu.dot_dimension_numbers<[1], [0], [0], [1], [0, 0, 1, 1], [], []>} : vector<32x768xbf16>, vector<768x128xbf16>, vector<32x128xf32> -> vector<32x128xf32>
    %c0_30 = arith.constant 0 : index
    %c0_31 = arith.constant 0 : index
    %91 = vector.load %arg12[%c0_30, %c0_31] : memref<1x128xf32, #tpu.memory_space<vmem>>, vector<1x128xf32>
    %92 = vector.broadcast %91 : vector<1x128xf32> to vector<32x128xf32>
    %93 = arith.addf %90, %92 : vector<32x128xf32>
    %94 = tpu.concatenate %25, %73, %93 in 1 : vector<32x128xf32>, vector<32x128xf32>, vector<32x128xf32> -> vector<32x384xf32>
    %95 = arith.truncf %94 : vector<32x384xf32> to vector<32x384xbf16>
    %c0_32 = arith.constant 0 : index
    %c0_33 = arith.constant 0 : index
    %96 = vector.load %arg13[%c0_32, %c0_33] : memref<384x1024xbf16, #tpu.memory_space<vmem>>, vector<384x1024xbf16>
    %cst_34 = arith.constant dense<0.000000e+00> : vector<32x1024xf32>
    %97 = tpu.matmul %95, %96, %cst_34 {dimension_numbers = #tpu.dot_dimension_numbers<[1], [0], [0], [1], [0, 0, 1, 1], [], []>} : vector<32x384xbf16>, vector<384x1024xbf16>, vector<32x1024xf32> -> vector<32x1024xf32>
    %c0_35 = arith.constant 0 : index
    %c0_36 = arith.constant 0 : index
    %98 = vector.load %arg14[%c0_35, %c0_36] : memref<1x1024xf32, #tpu.memory_space<vmem>>, vector<1x1024xf32>
    %99 = vector.broadcast %98 : vector<1x1024xf32> to vector<32x1024xf32>
    %100 = arith.addf %97, %99 : vector<32x1024xf32>
    %101 = vector.extract_strided_slice %100 {offsets = [0, 0], sizes = [32, 640], strides = [1, 1]} : vector<32x1024xf32> to vector<32x640xf32>
    %102 = math.absf %101 : vector<32x640xf32>
    %103 = vector.extract_strided_slice %100 {offsets = [0, 640], sizes = [32, 128], strides = [1, 1]} : vector<32x1024xf32> to vector<32x128xf32>
    %104 = vector.extract_strided_slice %100 {offsets = [0, 768], sizes = [32, 128], strides = [1, 1]} : vector<32x1024xf32> to vector<32x128xf32>
    %105 = math.absf %104 : vector<32x128xf32>
    %106 = vector.extract_strided_slice %100 {offsets = [0, 896], sizes = [32, 128], strides = [1, 1]} : vector<32x1024xf32> to vector<32x128xf32>
    %cst_37 = arith.constant 0.000000e+00 : f32
    %107 = vector.broadcast %cst_37 : f32 to vector<32x128xf32>
    %108 = arith.maximumf %106, %107 : vector<32x128xf32>
    %c0_38 = arith.constant 0 : index
    %c0_39 = arith.constant 0 : index
    %109 = vector.load %arg4[%c0_38, %c0_39] : memref<32x5xf32, #tpu.memory_space<vmem>>, vector<32x5xf32>
    %cst_40 = arith.constant 0.000000e+00 : f32
    %110 = vector.broadcast %cst_40 : f32 to vector<32x128xf32>
    %111 = vector.extract_strided_slice %109 {offsets = [0, 0], sizes = [32, 1], strides = [1, 1]} : vector<32x5xf32> to vector<32x1xf32>
    %112 = vector.extract_strided_slice %102 {offsets = [0, 0], sizes = [32, 128], strides = [1, 1]} : vector<32x640xf32> to vector<32x128xf32>
    %113 = vector.broadcast %111 : vector<32x1xf32> to vector<32x128xf32>
    %114 = arith.mulf %113, %112 : vector<32x128xf32>
    %115 = arith.addf %110, %114 : vector<32x128xf32>
    %116 = vector.extract_strided_slice %109 {offsets = [0, 1], sizes = [32, 1], strides = [1, 1]} : vector<32x5xf32> to vector<32x1xf32>
    %117 = vector.extract_strided_slice %102 {offsets = [0, 128], sizes = [32, 128], strides = [1, 1]} : vector<32x640xf32> to vector<32x128xf32>
    %118 = vector.broadcast %116 : vector<32x1xf32> to vector<32x128xf32>
    %119 = arith.mulf %118, %117 : vector<32x128xf32>
    %120 = arith.addf %115, %119 : vector<32x128xf32>
    %121 = vector.extract_strided_slice %109 {offsets = [0, 2], sizes = [32, 1], strides = [1, 1]} : vector<32x5xf32> to vector<32x1xf32>
    %122 = vector.extract_strided_slice %102 {offsets = [0, 256], sizes = [32, 128], strides = [1, 1]} : vector<32x640xf32> to vector<32x128xf32>
    %123 = vector.broadcast %121 : vector<32x1xf32> to vector<32x128xf32>
    %124 = arith.mulf %123, %122 : vector<32x128xf32>
    %125 = arith.addf %120, %124 : vector<32x128xf32>
    %126 = vector.extract_strided_slice %109 {offsets = [0, 3], sizes = [32, 1], strides = [1, 1]} : vector<32x5xf32> to vector<32x1xf32>
    %127 = vector.extract_strided_slice %102 {offsets = [0, 384], sizes = [32, 128], strides = [1, 1]} : vector<32x640xf32> to vector<32x128xf32>
    %128 = vector.broadcast %126 : vector<32x1xf32> to vector<32x128xf32>
    %129 = arith.mulf %128, %127 : vector<32x128xf32>
    %130 = arith.addf %125, %129 : vector<32x128xf32>
    %131 = vector.extract_strided_slice %109 {offsets = [0, 4], sizes = [32, 1], strides = [1, 1]} : vector<32x5xf32> to vector<32x1xf32>
    %132 = vector.extract_strided_slice %102 {offsets = [0, 512], sizes = [32, 128], strides = [1, 1]} : vector<32x640xf32> to vector<32x128xf32>
    %133 = vector.broadcast %131 : vector<32x1xf32> to vector<32x128xf32>
    %134 = arith.mulf %133, %132 : vector<32x128xf32>
    %135 = arith.addf %130, %134 : vector<32x128xf32>
    %136 = arith.addf %135, %103 : vector<32x128xf32>
    %cst_41 = arith.constant 0.000000e+00 : f32
    %137 = vector.broadcast %cst_41 : f32 to vector<32x128xf32>
    %138 = arith.cmpf ogt, %136, %137 : vector<32x128xf32>
    %cst_42 = arith.constant 0.000000e+00 : f32
    %139 = vector.broadcast %cst_42 : f32 to vector<32x128xf32>
    %140 = arith.minimumf %136, %139 : vector<32x128xf32>
    %141 = math.exp %140 : vector<32x128xf32>
    %cst_43 = arith.constant 1.000000e+00 : f32
    %142 = vector.broadcast %cst_43 : f32 to vector<32x128xf32>
    %143 = arith.subf %141, %142 : vector<32x128xf32>
    %144 = arith.select %138, %136, %143 : vector<32x128xi1>, vector<32x128xf32>
    %c0_44 = arith.constant 0 : index
    %c0_45 = arith.constant 0 : index
    %145 = vector.load %arg15[%c0_44, %c0_45] : memref<1x128xf32, #tpu.memory_space<vmem>>, vector<1x128xf32>
    %146 = vector.broadcast %145 : vector<1x128xf32> to vector<32x128xf32>
    %147 = arith.mulf %108, %146 : vector<32x128xf32>
    %cst_46 = arith.constant dense<0.000000e+00> : vector<32xf32>
    %148 = vector.multi_reduction <add>, %147, %cst_46 [1] : vector<32x128xf32> to vector<32xf32>
    %149 = vector.shape_cast %148 : vector<32xf32> to vector<32x1xf32>
    %c0_47 = arith.constant 0 : index
    %c0_48 = arith.constant 0 : index
    %150 = vector.load %arg16[%c0_47, %c0_48] : memref<1x1xf32, #tpu.memory_space<vmem>>, vector<1x1xf32>
    %151 = vector.broadcast %150 : vector<1x1xf32> to vector<32x1xf32>
    %152 = arith.addf %149, %151 : vector<32x1xf32>
    %153 = arith.mulf %144, %105 : vector<32x128xf32>
    %cst_49 = arith.constant dense<0.000000e+00> : vector<32xf32>
    %154 = vector.multi_reduction <add>, %153, %cst_49 [1] : vector<32x128xf32> to vector<32xf32>
    %155 = vector.shape_cast %154 : vector<32xf32> to vector<32x1xf32>
    %156 = arith.addf %155, %152 : vector<32x1xf32>
    %c0_50 = arith.constant 0 : index
    %c0_51 = arith.constant 0 : index
    %157 = vector.load %arg17[%c0_50, %c0_51] : memref<32x1xf32, #tpu.memory_space<vmem>>, vector<32x1xf32>
    tpu.vector_store %arg17[%c0_50, %c0_51], %156 {strides = array<i32>} : memref<32x1xf32, #tpu.memory_space<vmem>>, vector<32x1xf32>,
    return
  }
  func.func @transform_0(%arg0: i32) -> (i32, i32, i32) {
    %c0_i32 = arith.constant 0 : i32
    %c0_i32_0 = arith.constant 0 : i32
    %c0_i32_1 = arith.constant 0 : i32
    return %c0_i32, %arg0, %c0_i32_0 : i32, i32, i32
  }
  func.func @transform_1(%arg0: i32) -> (i32, i32, i32) {
    %c0_i32 = arith.constant 0 : i32
    %c0_i32_0 = arith.constant 0 : i32
    %c0_i32_1 = arith.constant 0 : i32
    return %c0_i32, %arg0, %c0_i32_0 : i32, i32, i32
  }
  func.func @transform_2(%arg0: i32) -> (i32, i32, i32) {
    %c0_i32 = arith.constant 0 : i32
    %c0_i32_0 = arith.constant 0 : i32
    %c0_i32_1 = arith.constant 0 : i32
    return %c0_i32, %arg0, %c0_i32_0 : i32, i32, i32
  }
  func.func @transform_3(%arg0: i32) -> (i32, i32) {
    %c0_i32 = arith.constant 0 : i32
    %c0_i32_0 = arith.constant 0 : i32
    return %arg0, %c0_i32 : i32, i32
  }
  func.func @transform_4(%arg0: i32) -> (i32, i32) {
    %c0_i32 = arith.constant 0 : i32
    %c0_i32_0 = arith.constant 0 : i32
    %c0_i32_1 = arith.constant 0 : i32
    return %c0_i32, %c0_i32_0 : i32, i32
  }
  func.func @transform_5(%arg0: i32) -> (i32, i32) {
    %c0_i32 = arith.constant 0 : i32
    %c0_i32_0 = arith.constant 0 : i32
    %c0_i32_1 = arith.constant 0 : i32
    return %c0_i32, %c0_i32_0 : i32, i32
  }
  func.func @transform_6(%arg0: i32) -> (i32, i32) {
    %c0_i32 = arith.constant 0 : i32
    %c0_i32_0 = arith.constant 0 : i32
    %c0_i32_1 = arith.constant 0 : i32
    return %c0_i32, %c0_i32_0 : i32, i32
  }
  func.func @transform_7(%arg0: i32) -> (i32, i32) {
    %c0_i32 = arith.constant 0 : i32
    %c0_i32_0 = arith.constant 0 : i32
    %c0_i32_1 = arith.constant 0 : i32
    return %c0_i32, %c0_i32_0 : i32, i32
  }
  func.func @transform_8(%arg0: i32) -> (i32, i32) {
    %c0_i32 = arith.constant 0 : i32
    %c0_i32_0 = arith.constant 0 : i32
    %c0_i32_1 = arith.constant 0 : i32
    return %c0_i32, %c0_i32_0 : i32, i32
  }
  func.func @transform_9(%arg0: i32) -> (i32, i32) {
    %c0_i32 = arith.constant 0 : i32
    %c0_i32_0 = arith.constant 0 : i32
    %c0_i32_1 = arith.constant 0 : i32
    return %c0_i32, %c0_i32_0 : i32, i32
  }
  func.func @transform_10(%arg0: i32) -> (i32, i32) {
    %c0_i32 = arith.constant 0 : i32
    %c0_i32_0 = arith.constant 0 : i32
    %c0_i32_1 = arith.constant 0 : i32
    return %c0_i32, %c0_i32_0 : i32, i32
  }
  func.func @transform_11(%arg0: i32) -> (i32, i32) {
    %c0_i32 = arith.constant 0 : i32
    %c0_i32_0 = arith.constant 0 : i32
    %c0_i32_1 = arith.constant 0 : i32
    return %c0_i32, %c0_i32_0 : i32, i32
  }
  func.func @transform_12(%arg0: i32) -> (i32, i32) {
    %c0_i32 = arith.constant 0 : i32
    %c0_i32_0 = arith.constant 0 : i32
    %c0_i32_1 = arith.constant 0 : i32
    return %c0_i32, %c0_i32_0 : i32, i32
  }
  func.func @transform_13(%arg0: i32) -> (i32, i32) {
    %c0_i32 = arith.constant 0 : i32
    %c0_i32_0 = arith.constant 0 : i32
    %c0_i32_1 = arith.constant 0 : i32
    return %c0_i32, %c0_i32_0 : i32, i32
  }
  func.func @transform_14(%arg0: i32) -> (i32, i32) {
    %c0_i32 = arith.constant 0 : i32
    %c0_i32_0 = arith.constant 0 : i32
    %c0_i32_1 = arith.constant 0 : i32
    return %c0_i32, %c0_i32_0 : i32, i32
  }
  func.func @transform_15(%arg0: i32) -> (i32, i32) {
    %c0_i32 = arith.constant 0 : i32
    %c0_i32_0 = arith.constant 0 : i32
    %c0_i32_1 = arith.constant 0 : i32
    return %c0_i32, %c0_i32_0 : i32, i32
  }
  func.func @transform_16(%arg0: i32) -> (i32, i32) {
    %c0_i32 = arith.constant 0 : i32
    %c0_i32_0 = arith.constant 0 : i32
    return %arg0, %c0_i32 : i32, i32
  }
}

</mosaic_0001>

<bundles_post_ra>
// kernel: qmixer_forward.1
= control target key start
LH: loop header
LB: loop body
LE: loop exit
PB: predicated region body
PF: predicated region fallthrough
CT: control target
= control target key end

     0   :  { %vm240_vm0 = vcmask 654336   ;;  %vm8380_vm5 = vcmask 7168   ;;  %s15707_s4 = inlined_call_operand.vmem [shape: bf16[80,128], index: 4, kind: input, shape index: {}]   ;;  %s15708_s5 = inlined_call_operand.vmem [shape: f32[1,128], index: 5, kind: input, shape index: {}]   ;;  %s15709_s0 = inlined_call_operand.vmem [shape: bf16[10,32,80], index: 0, kind: input, shape index: {}]   ;;  %s15710_s6 = inlined_call_operand.vmem [shape: bf16[1280,128], index: 6, kind: input, shape index: {}]   ;;  %s15711_s7 = inlined_call_operand.vmem [shape: f32[1,128], index: 7, kind: input, shape index: {}]   ;;  %s15712_s1 = inlined_call_operand.vmem [shape: bf16[32,32,80], index: 1, kind: input, shape index: {}]   ;;  %s15713_s8 = inlined_call_operand.vmem [shape: bf16[4096,128], index: 8, kind: input, shape index: {}]   ;;  %s15714_s9 = inlined_call_operand.vmem [shape: f32[1,128], index: 9, kind: input, shape index: {}]   ;;  %s15715_s2 = inlined_call_operand.vmem [shape: bf16[6,32,80], index: 2, kind: input, shape index: {}]   ;;  %s15716_s10 = inlined_call_operand.vmem [shape: bf16[768,128], index: 10, kind: input, shape index: {}]   ;;  %s15717_s12 = inlined_call_operand.vmem [shape: bf16[384,1024], index: 12, kind: input, shape index: {}]   ;;  %s15718_s11 = inlined_call_operand.vmem [shape: f32[1,128], index: 11, kind: input, shape index: {}]   ;;  %s15719_s13 = inlined_call_operand.vmem [shape: f32[1,1024], index: 13, kind: input, shape index: {}]   ;;  %s15720_s3 = inlined_call_operand.vmem [shape: f32[32,5], index: 3, kind: input, shape index: {}]   ;;  %s15721_s14 = inlined_call_operand.vmem [shape: f32[1,128], index: 14, kind: input, shape index: {}]   ;;  %s15722_s15 = inlined_call_operand.<no memory space> [shape: f32[1,1], index: 15, kind: input, shape index: {}]   ;;  %s15723_s16 = inlined_call_operand.vmem [shape: f32[32,1], index: 16, kind: output, shape index: {}]  }
   0x1   :  { %15727 = sst [smem:[#allocation14_spill]] %s15707_s4  ;;  %v11202_v5 = vld [vmem:[%s15709_s0] sm:$0xff]  ;;  %v11203_v6 = vld [vmem:[%s15709_s0 + $0x8] sm:$0xff]  ;;  %v11204_v7 = vld [vmem:[%s15709_s0 + $0x10] sm:$0xff] }
   0x2   :  { %s15728_s23 = sld [smem:[#allocation14_spill]]  ;;  %v11205_v8 = vld [vmem:[%s15709_s0 + $0x18] sm:$0xff]  ;;  %v11206_v9 = vld [vmem:[%s15709_s0 + $0x20] sm:$0xff]  ;;  %v11207_v10 = vld [vmem:[%s15709_s0 + $0x28] sm:$0xff] }
   0x3   :  { %v11229_v11 = vld [vmem:[%s15710_s6 + $0x38] sm:$0xff]  ;;  %v11228_v12 = vld [vmem:[%s15710_s6 + $0x30] sm:$0xff]  ;;  %v11227_v13 = vld [vmem:[%s15710_s6 + $0x28] sm:$0xff] }
   0x4   :  { %1254 = vmatpush.bf16.msra.mxu1 %v11229_v11  ;;  %v11226_v14 = vld [vmem:[%s15710_s6 + $0x20] sm:$0xff]  ;;  %v11208_v15 = vld [vmem:[%s15709_s0 + $0x30] sm:$0xff]  ;;  %v11225_v16 = vld [vmem:[%s15710_s6 + $0x18] sm:$0xff] }
   0x5   :  { %v11224_v17 = vld [vmem:[%s15710_s6 + $0x10] sm:$0xff]  ;;  %v11223_v18 = vld [vmem:[%s15710_s6 + $0x8] sm:$0xff]  ;;  %v11222_v19 = vld [vmem:[%s15710_s6] sm:$0xff] }
   0x6   :  { %v11209_v20 = vld [vmem:[%s15709_s0 + $0x38] sm:$0xff]  ;;  %v11236_v22 = vld [vmem:[%s15710_s6 + $0x70] sm:$0xff]  ;;  %v11235_v23 = vld [vmem:[%s15710_s6 + $0x68] sm:$0xff] }
   0x7   :  { %v11237_v21 = vld [vmem:[%s15710_s6 + $0x78] sm:$0xff]  ;;  %v11234_v24 = vld [vmem:[%s15710_s6 + $0x60] sm:$0xff]  ;;  %v11232_v30 = vld [vmem:[%s15710_s6 + $0x50] sm:$0xff] }
   0x8   :  { %v12021_v0 = vld [vmem:[%s15728_s23 + $0x20] sm:$0xff]  ;;  %v12027_v1 = vld [vmem:[%s15728_s23 + $0x18] sm:$0xff]  ;;  %v12033_v2 = vld [vmem:[%s15728_s23 + $0x10] sm:$0xff]  ;;  %1255 = vmatpush.bf16.msra.mxu1 %v11228_v12  ;;  %1273 = vmatpush.bf16.msra.mxu2 %v11237_v21 }
   0x9   :  { %304 = vmatpush.bf16.msra.mxu0 %v12021_v0  ;;  %v12039_v3 = vld [vmem:[%s15728_s23 + $0x8] sm:$0xff]  ;;  %v12045_v4 = vld [vmem:[%s15728_s23] sm:$0xff]  ;;  %v11233_v28 = vld [vmem:[%s15710_s6 + $0x58] sm:$0xff] }
   0xa   :  { %v12119_v25 = vld [vmem:[%s15708_s5] ss:$0 sm:$0xff]  ;;  %v11231_v34 = vld [vmem:[%s15710_s6 + $0x48] sm:$0xff]  ;;  %v11212_v53 = vld [vmem:[%s15709_s0 + $0x50] sm:$0xff] }
   0xb   :  { %v11210_v26 = vld [vmem:[%s15709_s0 + $0x40] sm:$0xff]  ;;  %v11211_v41 = vld [vmem:[%s15709_s0 + $0x48] sm:$0xff]  ;;  %v11252_v11 = vld [vmem:[%s15710_s6 + $0xf0] sm:$0xff] }
   0xc   :  { %1256 = vmatpush.bf16.msra.mxu1 %v11227_v13  ;;  %1274 = vmatpush.bf16.msra.mxu2 %v11236_v22  ;;  %v11230_v38 = vld [vmem:[%s15710_s6 + $0x40] sm:$0xff] }
   0xd   :  { %305 = vmatpush.bf16.msra.mxu0 %v12027_v1  ;;  %v11214_v22 = vld [vmem:[%s15709_s0 + $0x60] sm:$0xff] }
  0x10   :  { %1257 = vmatpush.bf16.msra.mxu1 %v11226_v14  ;;  %1275 = vmatpush.bf16.msra.mxu2 %v11235_v23 }
  0x11   :  { %306 = vmatpush.bf16.msra.mxu0 %v12033_v2 }
  0x14   :  { %1258 = vmatpush.bf16.msra.mxu1 %v11225_v16  ;;  %1276 = vmatpush.bf16.msra.mxu2 %v11234_v24 }
  0x15   :  { %307 = vmatpush.bf16.msra.mxu0 %v12039_v3 }
  0x18   :  { %1259 = vmatpush.bf16.msra.mxu1 %v11224_v17  ;;  %1277 = vmatpush.bf16.msra.mxu2 %v11233_v28  ;;  %v11248_v28 = vld [vmem:[%s15710_s6 + $0xd0] sm:$0xff] }
  0x19   :  { %308 = vmatpush.bf16.msra.mxu0 %v12045_v4 }
  0x1c   :  { %8489 = vmatmul.msk.bf16.vlgmr.msra.gmra.mxu0 %vm240_vm0, %v11202_v5  ;;  %1260 = vmatpush.bf16.msra.mxu1 %v11223_v18 }
  0x1d   :  { %1278 = vmatpush.bf16.msra.mxu2 %v11232_v30 }
  0x20   :  { %1261 = vmatpush.bf16.msra.mxu1 %v11222_v19  ;;  %v11250_v19 = vld [vmem:[%s15710_s6 + $0xe0] sm:$0xff] }
  0x21   :  { %1279 = vmatpush.bf16.msra.mxu2 %v11231_v34 }
  0x25   :  { %1280 = vmatpush.bf16.msra.mxu2 %v11230_v38 }
  0x2c   :  { %8490 = vmatmul.msk.bf16.gmra.mxu0 %vm240_vm0, %v11203_v6  ;;  %v11213_v6 = vld [vmem:[%s15709_s0 + $0x58] sm:$0xff] }
  0x3c   :  { %8491 = vmatmul.msk.bf16.gmra.mxu0 %vm240_vm0, %v11204_v7 }
  0x4c   :  { %8492 = vmatmul.msk.bf16.gmra.mxu0 %vm240_vm0, %v11205_v8 }
  0x5c   :  { %8493 = vmatmul.msk.bf16.gmra.mxu0 %vm240_vm0, %v11206_v9  ;;  %v11253_v9 = vld [vmem:[%s15710_s6 + $0xf8] sm:$0xff] }
  0x5d   :  { %1311 = vmatpush.bf16.msrb.mxu1 %v11253_v9  ;;  %v11254_v9 = vld [vmem:[%s15710_s6 + $0x100] sm:$0xff] }
  0x61   :  { %1312 = vmatpush.bf16.msrb.mxu1 %v11252_v11 }
  0x6c   :  { %8494 = vmatmul.msk.bf16.gmra.mxu0 %vm240_vm0, %v11207_v10 }
  0x7c   :  { %8495 = vmatmul.msk.bf16.gmra.mxu0 %vm240_vm0, %v11208_v15  ;;  %v11251_v15 = vld [vmem:[%s15710_s6 + $0xe8] sm:$0xff] }
  0x7d   :  { %1313 = vmatpush.bf16.msrb.mxu1 %v11251_v15  ;;  %v11269_v15 = vld [vmem:[%s15710_s6 + $0x178] sm:$0xff] }
  0x7e   :  { %1349 = vmatpush.bf16.msra.mxu3 %v11269_v15  ;;  %v11273_v15 = vld [vmem:[%s15710_s6 + $0x198] sm:$0xff] }
  0x81   :  { %1314 = vmatpush.bf16.msrb.mxu1 %v11250_v19 }
  0x8c   :  { %8496 = vmatmul.msk.bf16.gmra.mxu0 %vm240_vm0, %v11209_v20 }
  0x99   :  { %v310_v27 = vpop.f32.mrf.mxu0 }
  0x9a   :  { %v311_v29 = vadd.f32 %v12119_v25, %v310_v27 }
  0x9c   :  { %8497 = vmatmul.msk.bf16.gmra.mxu0 %vm240_vm0, %v11210_v26  ;;  %v410_v31 = vmax.f32 %v311_v29, 0.0  ;;  %v11249_v26 = vld [vmem:[%s15710_s6 + $0xd8] sm:$0xff] }
  0x9d   :  { %1315 = vmatpush.bf16.msrb.mxu1 %v11249_v26  ;;  %v11266_v26 = vld [vmem:[%s15710_s6 + $0x160] sm:$0xff] }
  0x9e   :  { %v450_v35 = vpack.c.bf16 %v410_v31, %v410_v31 }
  0xa0   :  { %v494_v39 = vunpack.c.l.b16 %v450_v35 }
  0xa1   :  { %v312_v32 = vpop.f32.mrf.mxu0  ;;  %1316 = vmatpush.bf16.msrb.mxu1 %v11248_v28 }
  0xa2   :  { %v313_v33 = vadd.f32 %v12119_v25, %v312_v32  ;;  %v11247_v32 = vld [vmem:[%s15710_s6 + $0xc8] sm:$0xff] }
  0xa4   :  { %v411_v36 = vmax.f32 %v313_v33, 0.0 }
  0xa5   :  { %1317 = vmatpush.bf16.msrb.mxu1 %v11247_v32  ;;  %v11245_v32 = vld [vmem:[%s15710_s6 + $0xb8] sm:$0xff] }
  0xa6   :  { %v451_v37 = vpack.c.bf16 %v411_v36, %v411_v36  ;;  %v11246_v36 = vld [vmem:[%s15710_s6 + $0xc0] sm:$0xff]  ;;  %1292 = vmatpush.bf16.msrb.mxu0 %v11245_v32 }
  0xa7   :  { %v12329_v32 = vld [vmem:[%s15711_s7] ss:$0 sm:$0xff] }
  0xa8   :  { %v495_v40 = vunpack.c.l.b16 %v451_v37 }
  0xa9   :  { %v315_v42 = vpop.f32.mrf.mxu0  ;;  %1318 = vmatpush.bf16.msrb.mxu1 %v11246_v36  ;;  %v11264_v36 = vld [vmem:[%s15710_s6 + $0x150] sm:$0xff] }
  0xaa   :  { %v498_v43 = vpack.c.b16 %v495_v40, %v494_v39  ;;  %v316_v44 = vadd.f32 %v12119_v25, %v315_v42  ;;  %v11215_v39 = vld [vmem:[%s15709_s0 + $0x68] sm:$0xff]  ;;  %v11261_v42 = vld [vmem:[%s15710_s6 + $0x138] sm:$0xff] }
  0xab   :  { %1330 = vmatpush.bf16.msrb.mxu2 %v11261_v42  ;;  %v11263_v42 = vld [vmem:[%s15710_s6 + $0x148] sm:$0xff] }
  0xac   :  { %8498 = vmatmul.msk.bf16.gmra.mxu0 %vm240_vm0, %v11211_v41  ;;  %1262 = vmatmul.bf16.vlgmr.msra.gmra.mxu1 %v498_v43  ;;  %v412_v45 = vmax.f32 %v316_v44, 0.0  ;;  %v11260_v44 = vld [vmem:[%s15710_s6 + $0x130] sm:$0xff] }
  0xae   :  { %v452_v48 = vpack.c.bf16 %v412_v45, %v412_v45 }
  0xaf   :  { %1331 = vmatpush.bf16.msrb.mxu2 %v11260_v44 }
  0xb0   :  { %v496_v51 = vunpack.c.l.b16 %v452_v48  ;;  %v11259_v48 = vld [vmem:[%s15710_s6 + $0x128] sm:$0xff] }
  0xb1   :  { %v317_v46 = vpop.f32.mrf.mxu0 }
  0xb2   :  { %v318_v47 = vadd.f32 %v12119_v25, %v317_v46 }
  0xb3   :  { %1332 = vmatpush.bf16.msrb.mxu2 %v11259_v48 }
  0xb4   :  { %v413_v49 = vmax.f32 %v318_v47, 0.0 }
  0xb6   :  { %v453_v50 = vpack.c.bf16 %v413_v49, %v413_v49 }
  0xb8   :  { %v497_v52 = vunpack.c.l.b16 %v453_v50 }
  0xb9   :  { %v320_v54 = vpop.f32.mrf.mxu0 }
  0xba   :  { %v499_v55 = vpack.c.b16 %v497_v52, %v496_v51  ;;  %v321_v56 = vadd.f32 %v12119_v25, %v320_v54  ;;  %v11258_v52 = vld [vmem:[%s15710_s6 + $0x120] sm:$0xff] }
  0xbb   :  { %1333 = vmatpush.bf16.msrb.mxu2 %v11258_v52 }
  0xbc   :  { %8499 = vmatmul.msk.bf16.gmra.mxu0 %vm240_vm0, %v11212_v53  ;;  %1267 = vmatmul.bf16.gmra.mxu1 %v499_v55  ;;  %v414_v57 = vmax.f32 %v321_v56, 0.0  ;;  %v11216_v55 = vld [vmem:[%s15709_s0 + $0x70] sm:$0xff] }
  0xbe   :  { %v454_v60 = vpack.c.bf16 %v414_v57, %v414_v57 }
  0xc0   :  { %v506_v63 = vunpack.c.l.b16 %v454_v60  ;;  %v11256_v60 = vld [vmem:[%s15710_s6 + $0x110] sm:$0xff] }
  0xc1   :  { %v322_v58 = vpop.f32.mrf.mxu0 }
  0xc2   :  { %v323_v59 = vadd.f32 %v12119_v25, %v322_v58  ;;  %v11257_v58 = vld [vmem:[%s15710_s6 + $0x118] sm:$0xff] }
  0xc3   :  { %1334 = vmatpush.bf16.msrb.mxu2 %v11257_v58  ;;  %v11276_v58 = vld [vmem:[%s15710_s6 + $0x1b0] sm:$0xff] }
  0xc4   :  { %v415_v61 = vmax.f32 %v323_v59, 0.0 }
  0xc6   :  { %v455_v62 = vpack.c.bf16 %v415_v61, %v415_v61 }
  0xc7   :  { %1335 = vmatpush.bf16.msrb.mxu2 %v11256_v60 }
  0xc8   :  { %v507_v5 = vunpack.c.l.b16 %v455_v62 }
  0xc9   :  { %v325_v7 = vpop.f32.mrf.mxu0 }
  0xca   :  { %v510_v8 = vpack.c.b16 %v507_v5, %v506_v63  ;;  %v326_v10 = vadd.f32 %v12119_v25, %v325_v7  ;;  %v11255_v5 = vld [vmem:[%s15710_s6 + $0x108] sm:$0xff] }
  0xcb   :  { %1336 = vmatpush.bf16.msrb.mxu2 %v11255_v5 }
  0xcc   :  { %8500 = vmatmul.msk.bf16.gmra.mxu0 %vm240_vm0, %v11213_v6  ;;  %1281 = vmatmul.bf16.vlgmr.msra.gmra.mxu2 %v510_v8  ;;  %v416_v12 = vmax.f32 %v326_v10, 0.0 }
  0xce   :  { %v456_v16 = vpack.c.bf16 %v416_v12, %v416_v12  ;;  %v11217_v12 = vld [vmem:[%s15709_s0 + $0x78] sm:$0xff] }
  0xcf   :  { %1337 = vmatpush.bf16.msrb.mxu2 %v11254_v9  ;;  %v11274_v9 = vld [vmem:[%s15710_s6 + $0x1a0] sm:$0xff] }
  0xd0   :  { %v508_v20 = vunpack.c.l.b16 %v456_v16 }
  0xd1   :  { %v327_v13 = vpop.f32.mrf.mxu0 }
  0xd2   :  { %v328_v14 = vadd.f32 %v12119_v25, %v327_v13 }
  0xd4   :  { %v417_v17 = vmax.f32 %v328_v14, 0.0 }
  0xd6   :  { %v457_v18 = vpack.c.bf16 %v417_v17, %v417_v17  ;;  %v11268_v17 = vld [vmem:[%s15710_s6 + $0x170] sm:$0xff] }
  0xd7   :  { %1350 = vmatpush.bf16.msra.mxu3 %v11268_v17  ;;  %v11272_v17 = vld [vmem:[%s15710_s6 + $0x190] sm:$0xff] }
  0xd8   :  { %v509_v21 = vunpack.c.l.b16 %v457_v18 }
  0xd9   :  { %v330_v23 = vpop.f32.mrf.mxu0 }
  0xda   :  { %v511_v24 = vpack.c.b16 %v509_v21, %v508_v20  ;;  %v331_v27 = vadd.f32 %v12119_v25, %v330_v23  ;;  %v11267_v21 = vld [vmem:[%s15710_s6 + $0x168] sm:$0xff] }
  0xdb   :  { %1351 = vmatpush.bf16.msra.mxu3 %v11267_v21  ;;  %v11271_v21 = vld [vmem:[%s15710_s6 + $0x188] sm:$0xff] }
  0xdc   :  { %8501 = vmatmul.msk.bf16.gmra.mxu0 %vm240_vm0, %v11214_v22  ;;  %1286 = vmatmul.bf16.gmra.mxu2 %v511_v24  ;;  %v418_v29 = vmax.f32 %v331_v27, 0.0 }
  0xde   :  { %v458_v33 = vpack.c.bf16 %v418_v29, %v418_v29  ;;  %v11218_v29 = vld [vmem:[%s15709_s0 + $0x80] sm:$0xff] }
  0xdf   :  { %1352 = vmatpush.bf16.msra.mxu3 %v11266_v26 }
  0xe0   :  { %v518_v37 = vunpack.c.l.b16 %v458_v33  ;;  %v11265_v33 = vld [vmem:[%s15710_s6 + $0x158] sm:$0xff] }
  0xe1   :  { %v332_v30 = vpop.f32.mrf.mxu0 }
  0xe2   :  { %v333_v31 = vadd.f32 %v12119_v25, %v332_v30 }
  0xe3   :  { %1353 = vmatpush.bf16.msra.mxu3 %v11265_v33 }
  0xe4   :  { %v419_v34 = vmax.f32 %v333_v31, 0.0 }
  0xe6   :  { %v459_v35 = vpack.c.bf16 %v419_v34, %v419_v34 }
  0xe7   :  { %1354 = vmatpush.bf16.msra.mxu3 %v11264_v36 }
  0xe8   :  { %v519_v38 = vunpack.c.l.b16 %v459_v35  ;;  %v11244_v35 = vld [vmem:[%s15710_s6 + $0xb0] sm:$0xff] }
  0xe9   :  { %v335_v40 = vpop.f32.mrf.mxu0  ;;  %1293 = vmatpush.bf16.msrb.mxu0 %v11244_v35 }
  0xea   :  { %v12190_v41 = vpack.c.b16 %v519_v38, %v518_v37  ;;  %v336_v43 = vadd.f32 %v12119_v25, %v335_v40  ;;  %v11243_v40 = vld [vmem:[%s15710_s6 + $0xa8] sm:$0xff] }
  0xeb   :  { %1355 = vmatpush.bf16.msra.mxu3 %v11263_v42 }
  0xec   :  { %8502 = vmatmul.msk.bf16.gmra.mxu0 %vm240_vm0, %v11215_v39  ;;  %v420_v45 = vmax.f32 %v336_v43, 0.0 }
  0xed   :  { %1294 = vmatpush.bf16.msrb.mxu0 %v11243_v40 }
  0xee   :  { %v460_v49 = vpack.c.bf16 %v420_v45, %v420_v45 }
  0xf0   :  { %v520_v53 = vunpack.c.l.b16 %v460_v49 }
  0xf1   :  { %v337_v46 = vpop.f32.mrf.mxu0 }
  0xf2   :  { %v338_v47 = vadd.f32 %v12119_v25, %v337_v46  ;;  %v11242_v46 = vld [vmem:[%s15710_s6 + $0xa0] sm:$0xff] }
  0xf3   :  { %1295 = vmatpush.bf16.msrb.mxu0 %v11242_v46 }
  0xf4   :  { %v421_v50 = vmax.f32 %v338_v47, 0.0  ;;  %v11262_v47 = vld [vmem:[%s15710_s6 + $0x140] sm:$0xff] }
  0xf5   :  { %1356 = vmatpush.bf16.msra.mxu3 %v11262_v47 }
  0xf6   :  { %v461_v51 = vpack.c.bf16 %v421_v50, %v421_v50  ;;  %v11219_v50 = vld [vmem:[%s15709_s0 + $0x88] sm:$0xff] }
  0xf8   :  { %v521_v54 = vunpack.c.l.b16 %v461_v51 }
  0xf9   :  { %v340_v56 = vpop.f32.mrf.mxu0 }
  0xfa   :  { %v12210_v57 = vpack.c.b16 %v521_v54, %v520_v53  ;;  %v341_v59 = vadd.f32 %v12119_v25, %v340_v56  ;;  %v11241_v53 = vld [vmem:[%s15710_s6 + $0x98] sm:$0xff]  ;;  %v11240_v56 = vld [vmem:[%s15710_s6 + $0x90] sm:$0xff] }
  0xfb   :  { %v11277_v54 = vld [vmem:[%s15710_s6 + $0x1b8] sm:$0xff]  ;;  %1296 = vmatpush.bf16.msrb.mxu0 %v11241_v53 }
  0xfc   :  { %8503 = vmatmul.msk.bf16.gmra.mxu0 %vm240_vm0, %v11216_v55  ;;  %v422_v61 = vmax.f32 %v341_v59, 0.0  ;;  %1368 = vmatpush.bf16.msra.mxu1 %v11277_v54 }
  0xfe   :  { %v462_v6 = vpack.c.bf16 %v422_v61, %v422_v61 }
  0xff   :  { %1297 = vmatpush.bf16.msrb.mxu0 %v11240_v56  ;;  %v11281_v56 = vld [vmem:[%s15710_s6 + $0x1d8] sm:$0xff] }
 0x100   :  { %v530_v10 = vunpack.c.l.b16 %v462_v6  ;;  %1369 = vmatpush.bf16.msra.mxu1 %v11276_v58 }
 0x101   :  { %v342_v62 = vpop.f32.mrf.mxu0 }
 0x102   :  { %v343_v63 = vadd.f32 %v12119_v25, %v342_v62  ;;  %v11239_v62 = vld [vmem:[%s15710_s6 + $0x88] sm:$0xff] }
 0x103   :  { %1298 = vmatpush.bf16.msrb.mxu0 %v11239_v62 }
 0x104   :  { %v423_v7 = vmax.f32 %v343_v63, 0.0  ;;  %v11275_v63 = vld [vmem:[%s15710_s6 + $0x1a8] sm:$0xff] }
 0x105   :  { %1370 = vmatpush.bf16.msra.mxu1 %v11275_v63 }
 0x106   :  { %v463_v8 = vpack.c.bf16 %v423_v7, %v423_v7 }
 0x108   :  { %v531_v11 = vunpack.c.l.b16 %v463_v8  ;;  %v11238_v8 = vld [vmem:[%s15710_s6 + $0x80] sm:$0xff] }
 0x109   :  { %v345_v13 = vpop.f32.mrf.mxu0  ;;  %1299 = vmatpush.bf16.msrb.mxu0 %v11238_v8  ;;  %1371 = vmatpush.bf16.msra.mxu1 %v11274_v9 }
 0x10a   :  { %v534_v14 = vpack.c.b16 %v531_v11, %v530_v10  ;;  %v346_v16 = vadd.f32 %v12119_v25, %v345_v13 }
 0x10c   :  { %8504 = vmatmul.msk.bf16.gmra.mxu0 %vm240_vm0, %v11217_v12  ;;  %1319 = vmatmul.bf16.vlgmr.msrb.gmra.mxu1 %v534_v14  ;;  %v424_v18 = vmax.f32 %v346_v16, 0.0  ;;  %v11220_v12 = vld [vmem:[%s15709_s0 + $0x90] sm:$0xff] }
 0x10d   :  { %1372 = vmatpush.bf16.msra.mxu1 %v11273_v15  ;;  %v11293_v15 = vld [vmem:[%s15710_s6 + $0x238] sm:$0xff] }
 0x10e   :  { %v464_v22 = vpack.c.bf16 %v424_v18, %v424_v18  ;;  %1406 = vmatpush.bf16.msrb.mxu3 %v11293_v15 }
 0x110   :  { %v532_v27 = vunpack.c.l.b16 %v464_v22 }
 0x111   :  { %v347_v19 = vpop.f32.mrf.mxu0  ;;  %1373 = vmatpush.bf16.msra.mxu1 %v11272_v17  ;;  %v11292_v17 = vld [vmem:[%s15710_s6 + $0x230] sm:$0xff] }
 0x112   :  { %v348_v20 = vadd.f32 %v12119_v25, %v347_v19  ;;  %1407 = vmatpush.bf16.msrb.mxu3 %v11292_v17 }
 0x114   :  { %v425_v23 = vmax.f32 %v348_v20, 0.0 }
 0x115   :  { %1374 = vmatpush.bf16.msra.mxu1 %v11271_v21  ;;  %v11291_v21 = vld [vmem:[%s15710_s6 + $0x228] sm:$0xff] }
 0x116   :  { %v465_v24 = vpack.c.bf16 %v425_v23, %v425_v23  ;;  %1408 = vmatpush.bf16.msrb.mxu3 %v11291_v21 }
 0x118   :  { %v533_v28 = vunpack.c.l.b16 %v465_v24 }
 0x119   :  { %v350_v30 = vpop.f32.mrf.mxu0 }
 0x11a   :  { %v535_v31 = vpack.c.b16 %v533_v28, %v532_v27  ;;  %v351_v34 = vadd.f32 %v12119_v25, %v350_v30  ;;  %v11270_v27 = vld [vmem:[%s15710_s6 + $0x180] sm:$0xff]  ;;  %v11221_v30 = vld [vmem:[%s15709_s0 + $0x98] sm:$0xff] }
 0x11b   :  { %1375 = vmatpush.bf16.msra.mxu1 %v11270_v27 }
 0x11c   :  { %8505 = vmatmul.msk.bf16.gmra.mxu0 %vm240_vm0, %v11218_v29  ;;  %1324 = vmatmul.bf16.gmra.mxu1 %v535_v31  ;;  %v426_v37 = vmax.f32 %v351_v34, 0.0  ;;  %v11285_v34 = vld [vmem:[%s15710_s6 + $0x1f8] sm:$0xff] }
 0x11d   :  { %1387 = vmatpush.bf16.msra.mxu2 %v11285_v34 }
 0x11e   :  { %v466_v43 = vpack.c.bf16 %v426_v37, %v426_v37 }
 0x120   :  { %v542_v48 = vunpack.c.l.b16 %v466_v43 }
 0x121   :  { %v352_v38 = vpop.f32.mrf.mxu0 }
 0x122   :  { %v353_v39 = vadd.f32 %v12119_v25, %v352_v38  ;;  %v11284_v38 = vld [vmem:[%s15710_s6 + $0x1f0] sm:$0xff] }
 0x123   :  { %1388 = vmatpush.bf16.msra.mxu2 %v11284_v38 }
 0x124   :  { %v427_v44 = vmax.f32 %v353_v39, 0.0 }
 0x126   :  { %v467_v45 = vpack.c.bf16 %v427_v44, %v427_v44 }
 0x128   :  { %v543_v49 = vunpack.c.l.b16 %v467_v45  ;;  %v11283_v45 = vld [vmem:[%s15710_s6 + $0x1e8] sm:$0xff] }
 0x129   :  { %v355_v51 = vpop.f32.mrf.mxu0  ;;  %v1263_v26 = vpop.f32.mrf.mxu1  ;;  %1389 = vmatpush.bf16.msra.mxu2 %v11283_v45 }
 0x12a   :  { %v546_v52 = vpack.c.b16 %v543_v49, %v542_v48  ;;  %v356_v55 = vadd.f32 %v12119_v25, %v355_v51  ;;  %v1264_v36 = vadd.f32 %v12329_v32, %v1263_v26 }
 0x12c   :  { %8506 = vmatmul.msk.bf16.gmra.mxu0 %vm240_vm0, %v11219_v50  ;;  %1338 = vmatmul.bf16.vlgmr.msrb.gmra.mxu2 %v546_v52  ;;  %v428_v59 = vmax.f32 %v356_v55, 0.0  ;;  %v11282_v50 = vld [vmem:[%s15710_s6 + $0x1e0] sm:$0xff] }
 0x12d   :  { %1390 = vmatpush.bf16.msra.mxu2 %v11282_v50  ;;  %v11301_v50 = vld [vmem:[%s15710_s6 + $0x278] sm:$0xff] }
 0x12e   :  { %v468_v5 = vpack.c.bf16 %v428_v59, %v428_v59  ;;  %1425 = vmatpush.bf16.msrb.mxu1 %v11301_v50 }
 0x130   :  { %v544_v10 = vunpack.c.l.b16 %v468_v5 }
 0x131   :  { %v357_v60 = vpop.f32.mrf.mxu0  ;;  %v12342_v42 = vpop.f32.mrf.mxu1  ;;  %1391 = vmatpush.bf16.msra.mxu2 %v11281_v56  ;;  %v11299_v56 = vld [vmem:[%s15710_s6 + $0x268] sm:$0xff] }
 0x132   :  { %v358_v61 = vadd.f32 %v12119_v25, %v357_v60 }
 0x134   :  { %v429_v6 = vmax.f32 %v358_v61, 0.0  ;;  %v11280_v61 = vld [vmem:[%s15710_s6 + $0x1d0] sm:$0xff] }
 0x135   :  { %1392 = vmatpush.bf16.msra.mxu2 %v11280_v61  ;;  %v11298_v61 = vld [vmem:[%s15710_s6 + $0x260] sm:$0xff] }
 0x136   :  { %v469_v7 = vpack.c.bf16 %v429_v6, %v429_v6 }
 0x138   :  { %v545_v11 = vunpack.c.l.b16 %v469_v7 }
 0x139   :  { %v360_v13 = vpop.f32.mrf.mxu0  ;;  %v1268_v55 = vpop.f32.mrf.mxu1 }
 0x13a   :  { %v547_v14 = vpack.c.b16 %v545_v11, %v544_v10  ;;  %v361_v16 = vadd.f32 %v12119_v25, %v360_v13  ;;  %v1269_v59 = vadd.f32 %v12329_v32, %v1268_v55  ;;  %v11278_v10 = vld [vmem:[%s15710_s6 + $0x1c0] sm:$0xff] }
 0x13c   :  { %8507 = vmatmul.msk.bf16.gmra.mxu0 %vm240_vm0, %v11220_v12  ;;  %1343 = vmatmul.bf16.gmra.mxu2 %v547_v14  ;;  %v430_v18 = vmax.f32 %v361_v16, 0.0 }
 0x13e   :  { %v470_v22 = vpack.c.bf16 %v430_v18, %v430_v18 }
 0x140   :  { %v554_v28 = vunpack.c.l.b16 %v470_v22 }
 0x141   :  { %v362_v19 = vpop.f32.mrf.mxu0 }
 0x142   :  { %v363_v20 = vadd.f32 %v12119_v25, %v362_v19 }
 0x144   :  { %v431_v23 = vmax.f32 %v363_v20, 0.0 }
 0x146   :  { %v471_v24 = vpack.c.bf16 %v431_v23, %v431_v23 }
 0x148   :  { %v555_v29 = vunpack.c.l.b16 %v471_v24  ;;  %v11290_v24 = vld [vmem:[%s15710_s6 + $0x220] sm:$0xff] }
 0x149   :  { %v365_v31 = vpop.f32.mrf.mxu0  ;;  %1409 = vmatpush.bf16.msrb.mxu3 %v11290_v24 }
 0x14a   :  { %v558_v33 = vpack.c.b16 %v555_v29, %v554_v28  ;;  %v366_v35 = vadd.f32 %v12119_v25, %v365_v31 }
 0x14c   :  { %8508 = vmatmul.msk.bf16.gmra.mxu0 %vm240_vm0, %v11221_v30  ;;  %1357 = vmatmul.bf16.vlgmr.msra.gmra.mxu3 %v558_v33  ;;  %v432_v39 = vmax.f32 %v366_v35, 0.0  ;;  %v11289_v30 = vld [vmem:[%s15710_s6 + $0x218] sm:$0xff]  ;;  %v11288_v33 = vld [vmem:[%s15710_s6 + $0x210] sm:$0xff] }
 0x14d   :  { %1410 = vmatpush.bf16.msrb.mxu3 %v11289_v30 }
 0x14e   :  { %v472_v46 = vpack.c.bf16 %v432_v39, %v432_v39 }
 0x14f   :  { %v1282_v37 = vpop.f32.mrf.mxu2 }
 0x150   :  { %v12340_v40 = vadd.f32 %v1282_v37, %v1264_v36  ;;  %v556_v51 = vunpack.c.l.b16 %v472_v46  ;;  %v11287_v37 = vld [vmem:[%s15710_s6 + $0x208] sm:$0xff] }
 0x151   :  { %v367_v43 = vpop.f32.mrf.mxu0  ;;  %1411 = vmatpush.bf16.msrb.mxu3 %v11288_v33 }
 0x152   :  { %v368_v44 = vadd.f32 %v12119_v25, %v367_v43 }
 0x154   :  { %v433_v47 = vmax.f32 %v368_v44, 0.0  ;;  %v11286_v44 = vld [vmem:[%s15710_s6 + $0x200] sm:$0xff] }
 0x155   :  { %1412 = vmatpush.bf16.msrb.mxu3 %v11287_v37 }
 0x156   :  { %v473_v48 = vpack.c.bf16 %v433_v47, %v433_v47 }
 0x157   :  { %v12348_v49 = vpop.f32.mrf.mxu2 }
 0x158   :  { %v557_v52 = vunpack.c.l.b16 %v473_v48 }
 0x159   :  { %v370_v53 = vpop.f32.mrf.mxu0  ;;  %1413 = vmatpush.bf16.msrb.mxu3 %v11286_v44 }
 0x15a   :  { %v559_v54 = vpack.c.b16 %v557_v52, %v556_v51  ;;  %v371_v58 = vadd.f32 %v12119_v25, %v370_v53  ;;  %v11300_v52 = vld [vmem:[%s15710_s6 + $0x270] sm:$0xff] }
 0x15b   :  { %1426 = vmatpush.bf16.msrb.mxu1 %v11300_v52 }
 0x15c   :  { %1300 = vmatmul.bf16.vlgmr.msrb.gmra.mxu0 %v12190_v41  ;;  %1362 = vmatmul.bf16.gmra.mxu3 %v559_v54  ;;  %v434_v62 = vmax.f32 %v371_v58, 0.0  ;;  %v11279_v41 = vld [vmem:[%s15710_s6 + $0x1c8] sm:$0xff] }
 0x15d   :  { %1393 = vmatpush.bf16.msra.mxu2 %v11279_v41  ;;  %11875 = vmatpush.bf16.msra.mxu3 %v12021_v0 }
 0x15e   :  { %v474_v7 = vpack.c.bf16 %v434_v62, %v434_v62 }
 0x15f   :  { %v1287_v60 = vpop.f32.mrf.mxu2  ;;  %1427 = vmatpush.bf16.msrb.mxu1 %v11299_v56 }
 0x160   :  { %v12362_v63 = vadd.f32 %v1287_v60, %v1269_v59  ;;  %v566_v11 = vunpack.c.l.b16 %v474_v7 }
 0x161   :  { %v372_v5 = vpop.f32.mrf.mxu0  ;;  %1394 = vmatpush.bf16.msra.mxu2 %v11278_v10  ;;  %11877 = vmatpush.bf16.msra.mxu3 %v12027_v1  ;;  %v11296_v10 = vld [vmem:[%s15710_s6 + $0x250] sm:$0xff] }
 0x162   :  { %v373_v6 = vadd.f32 %v12119_v25, %v372_v5 }
 0x163   :  { %1428 = vmatpush.bf16.msrb.mxu1 %v11298_v61 }
 0x164   :  { %v435_v8 = vmax.f32 %v373_v6, 0.0 }
 0x165   :  { %11874 = vmatpush.bf16.msrb.mxu2 %v12021_v0  ;;  %11879 = vmatpush.bf16.msra.mxu3 %v12033_v2 }
 0x166   :  { %v475_v9 = vpack.c.bf16 %v435_v8, %v435_v8  ;;  %v11297_v8 = vld [vmem:[%s15710_s6 + $0x258] sm:$0xff] }
 0x167   :  { %1429 = vmatpush.bf16.msrb.mxu1 %v11297_v8  ;;  %v12464_v52 = vpop.f32.mrf.mxu2 }
 0x168   :  { %v567_v12 = vunpack.c.l.b16 %v475_v9 }
 0x169   :  { %v375_v13 = vpop.f32.mrf.mxu0  ;;  %11876 = vmatpush.bf16.msrb.mxu2 %v12027_v1  ;;  %11881 = vmatpush.bf16.msra.mxu3 %v12039_v3 }
 0x16a   :  { %v570_v14 = vpack.c.b16 %v567_v12, %v566_v11  ;;  %v376_v16 = vadd.f32 %v12119_v25, %v375_v13 }
 0x16b   :  { %1430 = vmatpush.bf16.msrb.mxu1 %v11296_v10 }
 0x16c   :  { %1305 = vmatmul.bf16.gmra.mxu0 %v12210_v57  ;;  %1376 = vmatmul.bf16.vlgmr.msra.gmra.mxu1 %v570_v14  ;;  %v436_v18 = vmax.f32 %v376_v16, 0.0  ;;  %v11295_v14 = vld [vmem:[%s15710_s6 + $0x248] sm:$0xff] }
 0x16d   :  { %11878 = vmatpush.bf16.msrb.mxu2 %v12033_v2  ;;  %11883 = vmatpush.bf16.msra.mxu3 %v12045_v4 }
 0x16e   :  { %v476_v57 = vpack.c.bf16 %v436_v18, %v436_v18  ;;  %v11294_v18 = vld [vmem:[%s15710_s6 + $0x240] sm:$0xff] }
 0x16f   :  { %1431 = vmatpush.bf16.msrb.mxu1 %v11295_v14 }
 0x170   :  { %v568_v26 = vunpack.c.l.b16 %v476_v57 }
 0x171   :  { %v377_v19 = vpop.f32.mrf.mxu0  ;;  %11880 = vmatpush.bf16.msrb.mxu2 %v12039_v3 }
 0x172   :  { %v378_v20 = vadd.f32 %v12119_v25, %v377_v19 }
 0x173   :  { %1432 = vmatpush.bf16.msrb.mxu1 %v11294_v18 }
 0x174   :  { %v437_v22 = vmax.f32 %v378_v20, 0.0  ;;  %v11306_v20 = vld [vmem:[%s15712_s1 + $0x20] sm:$0xff] }
 0x175   :  { %11882 = vmatpush.bf16.msrb.mxu2 %v12045_v4 }
 0x176   :  { %v477_v23 = vpack.c.bf16 %v437_v22, %v437_v22 }
 0x177   :  { %2087 = vmatpush.bf16.msra.mxu1 %v12021_v0  ;;  %v11307_v0 = vld [vmem:[%s15712_s1 + $0x28] sm:$0xff] }
 0x178   :  { %v569_v27 = vunpack.c.l.b16 %v477_v23 }
 0x179   :  { %v380_v28 = vpop.f32.mrf.mxu0 }
 0x17a   :  { %v571_v29 = vpack.c.b16 %v569_v27, %v568_v26  ;;  %v381_v31 = vadd.f32 %v12119_v25, %v380_v28 }
 0x17b   :  { %2088 = vmatpush.bf16.msra.mxu1 %v12027_v1 }
 0x17c   :  { %1381 = vmatmul.bf16.gmra.mxu1 %v571_v29  ;;  %v438_v34 = vmax.f32 %v381_v31, 0.0 }
 0x17e   :  { %v478_v38 = vpack.c.bf16 %v438_v34, %v438_v34 }
 0x17f   :  { %2089 = vmatpush.bf16.msra.mxu1 %v12033_v2 }
 0x180   :  { %v578_v45 = vunpack.c.l.b16 %v478_v38 }
 0x181   :  { %v382_v35 = vpop.f32.mrf.mxu0 }
 0x182   :  { %v383_v36 = vadd.f32 %v12119_v25, %v382_v35  ;;  %v12453_v35 = vpop.f32.mrf.mxu1 }
 0x183   :  { %2090 = vmatpush.bf16.msra.mxu1 %v12039_v3 }
 0x184   :  { %v439_v39 = vmax.f32 %v383_v36, 0.0 }
 0x186   :  { %v479_v43 = vpack.c.bf16 %v439_v39, %v439_v39 }
 0x187   :  { %2091 = vmatpush.bf16.msra.mxu1 %v12045_v4 }
 0x188   :  { %v579_v46 = vunpack.c.l.b16 %v479_v43 }
 0x189   :  { %v385_v47 = vpop.f32.mrf.mxu0 }
 0x18a   :  { %v582_v48 = vpack.c.b16 %v579_v46, %v578_v45  ;;  %v386_v51 = vadd.f32 %v12119_v25, %v385_v47  ;;  %v1320_v38 = vpop.f32.mrf.mxu1  ;;  %v11308_v46 = vld [vmem:[%s15712_s1 + $0x30] sm:$0xff] }
 0x18c   :  { %1395 = vmatmul.bf16.vlgmr.msra.gmra.mxu2 %v582_v48  ;;  %v440_v53 = vmax.f32 %v386_v51, 0.0 }
 0x18e   :  { %v480_v58 = vpack.c.bf16 %v440_v53, %v440_v53 }
 0x190   :  { %v580_v62 = vunpack.c.l.b16 %v480_v58 }
 0x191   :  { %v387_v54 = vpop.f32.mrf.mxu0 }
 0x192   :  { %v388_v55 = vadd.f32 %v12119_v25, %v387_v54  ;;  %v12462_v50 = vpop.f32.mrf.mxu1 }
 0x194   :  { %v441_v59 = vmax.f32 %v388_v55, 0.0 }
 0x196   :  { %v481_v60 = vpack.c.bf16 %v441_v59, %v441_v59 }
 0x198   :  { %v581_v5 = vunpack.c.l.b16 %v481_v60 }
 0x199   :  { %v390_v6 = vpop.f32.mrf.mxu0 }
 0x19a   :  { %v391_v41 = vadd.f32 %v12119_v25, %v390_v6  ;;  %v583_v7 = vpack.c.b16 %v581_v5, %v580_v62  ;;  %v1325_v60 = vpop.f32.mrf.mxu1  ;;  %v11309_v62 = vld [vmem:[%s15712_s1 + $0x38] sm:$0xff] }
 0x19c   :  { %1400 = vmatmul.bf16.gmra.mxu2 %v583_v7  ;;  %v442_v9 = vmax.f32 %v391_v41, 0.0 }
 0x19e   :  { %v482_v12 = vpack.c.bf16 %v442_v9, %v442_v9 }
 0x1a0   :  { %v590_v16 = vunpack.c.l.b16 %v482_v12 }
 0x1a1   :  { %v392_v11 = vpop.f32.mrf.mxu0 }
 0x1a2   :  { %v393_v13 = vadd.f32 %v12119_v25, %v392_v11  ;;  %v12472_v12 = vpop.f32.mrf.mxu1 }
 0x1a4   :  { %v443_v15 = vmax.f32 %v393_v13, 0.0 }
 0x1a6   :  { %v483_v17 = vpack.c.bf16 %v443_v15, %v443_v15 }
 0x1a8   :  { %v591_v19 = vunpack.c.l.b16 %v483_v17 }
 0x1a9   :  { %v395_v21 = vpop.f32.mrf.mxu0 }
 0x1aa   :  { %v396_v57 = vadd.f32 %v12119_v25, %v395_v21  ;;  %v594_v22 = vpack.c.b16 %v591_v19, %v590_v16  ;;  %v11310_v16 = vld [vmem:[%s15712_s1 + $0x40] sm:$0xff] }
 0x1ac   :  { %1414 = vmatmul.bf16.vlgmr.msrb.gmra.mxu3 %v594_v22  ;;  %9089 = vmatmul.msk.bf16.vlgmr.msrb.gmra.mxu2 %vm240_vm0, %v11306_v20  ;;  %v444_v23 = vmax.f32 %v396_v57, 0.0 }
 0x1ae   :  { %v484_v26 = vpack.c.bf16 %v444_v23, %v444_v23 }
 0x1af   :  { %v1339_v5 = vpop.f32.mrf.mxu2 }
 0x1b0   :  { %v592_v29 = vunpack.c.l.b16 %v484_v26 }
 0x1b1   :  { %v397_v24 = vpop.f32.mrf.mxu0 }
 0x1b2   :  { %v398_v27 = vadd.f32 %v12119_v25, %v397_v24 }
 0x1b4   :  { %v445_v28 = vmax.f32 %v398_v27, 0.0  ;;  %v11303_v27 = vld [vmem:[%s15712_s1 + $0x8] sm:$0xff] }
 0x1b6   :  { %v485_v30 = vpack.c.bf16 %v445_v28, %v445_v28 }
 0x1b7   :  { %v12476_v14 = vpop.f32.mrf.mxu2 }
 0x1b8   :  { %v593_v31 = vunpack.c.l.b16 %v485_v30  ;;  %v11360_v30 = vld [vmem:[%s15712_s1 + $0x1d0] sm:$0xff] }
 0x1b9   :  { %v400_v33 = vpop.f32.mrf.mxu0 }
 0x1ba   :  { %v401_v34 = vadd.f32 %v12119_v25, %v400_v33  ;;  %v595_v1 = vpack.c.b16 %v593_v31, %v592_v29  ;;  %v11312_v33 = vld [vmem:[%s15712_s1 + $0x50] sm:$0xff] }
 0x1bc   :  { %1419 = vmatmul.bf16.gmra.mxu3 %v595_v1  ;;  %9090 = vmatmul.msk.bf16.gmra.mxu2 %vm240_vm0, %v11307_v0  ;;  %v446_v2 = vmax.f32 %v401_v34, 0.0  ;;  %v11304_v0 = vld [vmem:[%s15712_s1 + $0x10] sm:$0xff]  ;;  %v11361_v34 = vld [vmem:[%s15712_s1 + $0x1d8] sm:$0xff] }
 0x1be   :  { %v486_v37 = vpack.c.bf16 %v446_v2, %v446_v2 }
 0x1bf   :  { %v1344_v57 = vpop.f32.mrf.mxu2 }
 0x1c0   :  { %v602_v43 = vunpack.c.l.b16 %v486_v37  ;;  %v11305_v37 = vld [vmem:[%s15712_s1 + $0x18] sm:$0xff] }
 0x1c1   :  { %v402_v36 = vpop.f32.mrf.mxu0 }
 0x1c2   :  { %v403_v3 = vadd.f32 %v12119_v25, %v402_v36 }
 0x1c4   :  { %v447_v39 = vmax.f32 %v403_v3, 0.0  ;;  %v11313_v3 = vld [vmem:[%s15712_s1 + $0x58] sm:$0xff] }
 0x1c6   :  { %v487_v44 = vpack.c.bf16 %v447_v39, %v447_v39 }
 0x1c7   :  { %v12503_v31 = vpop.f32.mrf.mxu2 }
 0x1c8   :  { %v603_v45 = vunpack.c.l.b16 %v487_v44 }
 0x1c9   :  { %v405_v4 = vpop.f32.mrf.mxu0 }
 0x1ca   :  { %v606_v47 = vpack.c.b16 %v603_v45, %v602_v43  ;;  %v406_v48 = vadd.f32 %v12119_v25, %v405_v4  ;;  %v11363_v4 = vld [vmem:[%s15712_s1 + $0x1e8] sm:$0xff] }
 0x1cc   :  { %1433 = vmatmul.bf16.vlgmr.msrb.gmra.mxu1 %v606_v47  ;;  %9091 = vmatmul.msk.bf16.gmra.mxu2 %vm240_vm0, %v11308_v46  ;;  %v448_v51 = vmax.f32 %v406_v48, 0.0  ;;  %v11314_v46 = vld [vmem:[%s15712_s1 + $0x60] sm:$0xff] }
 0x1cd   :  { %9143 = vmatmul.msk.bf16.vlgmr.msra.gmra.mxu3 %vm240_vm0, %v11360_v30  ;;  %v11365_v30 = vld [vmem:[%s15712_s1 + $0x1f8] sm:$0xff] }
 0x1ce   :  { %v488_v54 = vpack.c.bf16 %v448_v51, %v448_v51 }
 0x1cf   :  { %v1358_v8 = vpop.f32.mrf.mxu3 }
 0x1d0   :  { %v604_v58 = vunpack.c.l.b16 %v488_v54 }
 0x1d1   :  { %v407_v53 = vpop.f32.mrf.mxu0 }
 0x1d2   :  { %v408_v55 = vadd.f32 %v12119_v25, %v407_v53 }
 0x1d4   :  { %v449_v56 = vmax.f32 %v408_v55, 0.0 }
 0x1d6   :  { %v489_v59 = vpack.c.bf16 %v449_v56, %v449_v56 }
 0x1d7   :  { %v12478_v15 = vpop.f32.mrf.mxu3 }
 0x1d8   :  { %v605_v61 = vunpack.c.l.b16 %v489_v59  ;;  %v11315_v59 = vld [vmem:[%s15712_s1 + $0x68] sm:$0xff] }
 0x1d9   :  { %v1301_v6 = vpop.f32.mrf.mxu0 }
 0x1da   :  { %v1302_v41 = vadd.f32 %v1301_v6, %v12340_v40  ;;  %v607_v7 = vpack.c.b16 %v605_v61, %v604_v58  ;;  %v11302_v40 = vld [vmem:[%s15712_s1] sm:$0xff]  ;;  %v11373_v6 = vld [vmem:[%s15713_s8 + $0x38] sm:$0xff] }
 0x1db   :  { %5105 = vmatpush.bf16.msrb.mxu3 %v11373_v6 }
 0x1dc   :  { %v1321_v9 = vadd.f32 %v1320_v38, %v1302_v41  ;;  %1438 = vmatmul.bf16.gmra.mxu1 %v607_v7  ;;  %9092 = vmatmul.msk.bf16.gmra.mxu2 %vm240_vm0, %v11309_v62  ;;  %v11362_v38 = vld [vmem:[%s15712_s1 + $0x1e0] sm:$0xff] }
 0x1dd   :  { %9144 = vmatmul.msk.bf16.gmra.mxu3 %vm240_vm0, %v11361_v34 }
 0x1de   :  { %v1340_v10 = vadd.f32 %v1339_v5, %v1321_v9  ;;  %v11364_v5 = vld [vmem:[%s15712_s1 + $0x1f0] sm:$0xff] }
 0x1df   :  { %v1363_v23 = vpop.f32.mrf.mxu3 }
 0x1e0   :  { %v1359_v11 = vadd.f32 %v1358_v8, %v1340_v10 }
 0x1e1   :  { %v12474_v13 = vpop.f32.mrf.mxu0 }
 0x1e7   :  { %v12531_v44 = vpop.f32.mrf.mxu3 }
 0x1e9   :  { %v1306_v17 = vpop.f32.mrf.mxu0  ;;  %v1377_v18 = vpop.f32.mrf.mxu1 }
 0x1ea   :  { %v1307_v19 = vadd.f32 %v1306_v17, %v12362_v63  ;;  %v1378_v20 = vadd.f32 %v1377_v18, %v1359_v11  ;;  %v11311_v63 = vld [vmem:[%s15712_s1 + $0x48] sm:$0xff]  ;;  %v11372_v11 = vld [vmem:[%s15713_s8 + $0x30] sm:$0xff]  ;;  %v12569_v18 = vld [vmem:[%s15708_s5] ss:$0 sm:$0xff] }
 0x1eb   :  { %5106 = vmatpush.bf16.msrb.mxu3 %v11372_v11 }
 0x1ec   :  { %v1326_v21 = vadd.f32 %v1325_v60, %v1307_v19  ;;  %9085 = vmatmul.msk.bf16.vlgmr.msra.gmra.mxu1 %vm240_vm0, %v11302_v40  ;;  %9093 = vmatmul.msk.bf16.gmra.mxu2 %vm240_vm0, %v11310_v16  ;;  %v1266_v60 = vadd.f32 %v12329_v32, %v12342_v42  ;;  %v11371_v19 = vld [vmem:[%s15713_s8 + $0x28] sm:$0xff] }
 0x1ed   :  { %9145 = vmatmul.msk.bf16.gmra.mxu3 %vm240_vm0, %v11362_v38  ;;  %v11368_v38 = vld [vmem:[%s15713_s8 + $0x10] sm:$0xff] }
 0x1ee   :  { %v1345_v22 = vadd.f32 %v1344_v57, %v1326_v21  ;;  %v1285_v41 = vadd.f32 %v12348_v49, %v1266_v60 }
 0x1ef   :  { %5107 = vmatpush.bf16.msrb.mxu3 %v11371_v19 }
 0x1f0   :  { %v1364_v24 = vadd.f32 %v1363_v23, %v1345_v22  ;;  %v1304_v7 = vadd.f32 %v12474_v13, %v1285_v41  ;;  %v11316_v23 = vld [vmem:[%s15712_s1 + $0x70] sm:$0xff] }
 0x1f1   :  { %v12489_v26 = vpop.f32.mrf.mxu1 }
 0x1f2   :  { %v1323_v17 = vadd.f32 %v12462_v50, %v1304_v7  ;;  %v11370_v50 = vld [vmem:[%s15713_s8 + $0x20] sm:$0xff] }
 0x1f3   :  { %5108 = vmatpush.bf16.msrb.mxu3 %v11370_v50  ;;  %v11386_v50 = vld [vmem:[%s15713_s8 + $0xa0] sm:$0xff] }
 0x1f9   :  { %v1382_v28 = vpop.f32.mrf.mxu1 }
 0x1fa   :  { %v1383_v29 = vadd.f32 %v1382_v28, %v1364_v24  ;;  %v1271_v24 = vadd.f32 %v12329_v32, %v12453_v35 }
 0x1fc   :  { %9086 = vmatmul.msk.bf16.gmra.mxu1 %vm240_vm0, %v11303_v27  ;;  %9094 = vmatmul.msk.bf16.gmra.mxu2 %vm240_vm0, %v11311_v63  ;;  %v1290_v34 = vadd.f32 %v12464_v52, %v1271_v24 }
 0x1fd   :  { %9146 = vmatmul.msk.bf16.gmra.mxu3 %vm240_vm0, %v11363_v4 }
 0x201   :  { %v1384_v49 = vpop.f32.mrf.mxu1 }
 0x20c   :  { %9087 = vmatmul.msk.bf16.gmra.mxu1 %vm240_vm0, %v11304_v0  ;;  %9095 = vmatmul.msk.bf16.gmra.mxu2 %vm240_vm0, %v11312_v33  ;;  %v1308_v0 = vpop.f32.mrf.mxu0  ;;  %v11369_v33 = vld [vmem:[%s15713_s8 + $0x18] sm:$0xff] }
 0x20d   :  { %9147 = vmatmul.msk.bf16.gmra.mxu3 %vm240_vm0, %v11364_v5 }
 0x20e   :  { %5109 = vmatpush.bf16.msrb.mxu3 %v11369_v33 }
 0x20f   :  { %v1396_v1 = vpop.f32.mrf.mxu2 }
 0x210   :  { %v1397_v2 = vadd.f32 %v1396_v1, %v1378_v20  ;;  %v1342_v20 = vadd.f32 %v12476_v14, %v1323_v17  ;;  %v11379_v17 = vld [vmem:[%s15713_s8 + $0x68] sm:$0xff] }
 0x212   :  { %v1361_v63 = vadd.f32 %v12478_v15, %v1342_v20  ;;  %v1309_v15 = vadd.f32 %v1308_v0, %v1290_v34  ;;  %5110 = vmatpush.bf16.msrb.mxu3 %v11368_v38  ;;  %v11375_v38 = vld [vmem:[%s15713_s8 + $0x48] sm:$0xff] }
 0x214   :  { %v1380_v32 = vadd.f32 %v12489_v26, %v1361_v63 }
 0x217   :  { %v12517_v36 = vpop.f32.mrf.mxu2 }
 0x218   :  { %v1399_v1 = vadd.f32 %v12517_v36, %v1380_v32  ;;  %v11367_v36 = vld [vmem:[%s15713_s8 + $0x8] sm:$0xff] }
 0x219   :  { %5111 = vmatpush.bf16.msrb.mxu3 %v11367_v36  ;;  %v11374_v36 = vld [vmem:[%s15713_s8 + $0x40] sm:$0xff] }
 0x21c   :  { %9088 = vmatmul.msk.bf16.gmra.mxu1 %vm240_vm0, %v11305_v37  ;;  %9096 = vmatmul.msk.bf16.gmra.mxu2 %vm240_vm0, %v11313_v3 }
 0x21d   :  { %9148 = vmatmul.msk.bf16.gmra.mxu3 %vm240_vm0, %v11365_v30 }
 0x21f   :  { %v1401_v39 = vpop.f32.mrf.mxu2 }
 0x220   :  { %v1402_v43 = vadd.f32 %v1401_v39, %v1383_v29 }
 0x227   :  { %v12533_v45 = vpop.f32.mrf.mxu2 }
 0x22c   :  { %9097 = vmatmul.msk.bf16.gmra.mxu2 %vm240_vm0, %v11314_v46 }
 0x22f   :  { %v1415_v47 = vpop.f32.mrf.mxu3  ;;  %v2113_v48 = vpop.f32.mrf.mxu2 }
 0x230   :  { %v1416_v51 = vadd.f32 %v1415_v47, %v1397_v2  ;;  %v2114_v53 = vadd.f32 %v12119_v25, %v2113_v48 }
 0x232   :  { %v2421_v54 = vmax.f32 %v2114_v53, 0.0 }
 0x234   :  { %v2549_v61 = vpack.c.bf16 %v2421_v54, %v2421_v54  ;;  %v11366_v54 = vld [vmem:[%s15713_s8] sm:$0xff] }
 0x235   :  { %5112 = vmatpush.bf16.msrb.mxu3 %v11366_v54 }
 0x236   :  { %v2697_v42 = vunpack.c.l.b16 %v2549_v61 }
 0x237   :  { %v1417_v55 = vpop.f32.mrf.mxu3  ;;  %v2115_v56 = vpop.f32.mrf.mxu2 }
 0x238   :  { %v2116_v58 = vadd.f32 %v12119_v25, %v2115_v56  ;;  %v1418_v39 = vadd.f32 %v1417_v55, %v1399_v1  ;;  %v11317_v55 = vld [vmem:[%s15712_s1 + $0x78] sm:$0xff] }
 0x23a   :  { %v2422_v62 = vmax.f32 %v2116_v58, 0.0 }
 0x23c   :  { %v2550_v25 = vpack.c.bf16 %v2422_v62, %v2422_v62  ;;  %9098 = vmatmul.msk.bf16.gmra.mxu2 %vm240_vm0, %v11315_v59  ;;  %v11389_v62 = vld [vmem:[%s15713_s8 + $0xb8] sm:$0xff] }
 0x23d   :  { %5143 = vmatpush.bf16.msra.mxu3 %v11389_v62 }
 0x23e   :  { %v2698_v8 = vunpack.c.l.b16 %v2550_v25 }
 0x23f   :  { %v1420_v9 = vpop.f32.mrf.mxu3  ;;  %v2118_v10 = vpop.f32.mrf.mxu2 }
 0x240   :  { %v12563_v40 = vpack.c.b16 %v2698_v8, %v2697_v42  ;;  %v1421_v16 = vadd.f32 %v1420_v9, %v1402_v43  ;;  %v2119_v13 = vadd.f32 %v12569_v18, %v2118_v10  ;;  %v1328_v43 = vadd.f32 %v12472_v12, %v1309_v15  ;;  %v11380_v8 = vld [vmem:[%s15713_s8 + $0x70] sm:$0xff] }
 0x241   :  { %v11388_v9 = vld [vmem:[%s15713_s8 + $0xb0] sm:$0xff] }
 0x242   :  { %v2423_v21 = vmax.f32 %v2119_v13, 0.0  ;;  %v1347_v48 = vadd.f32 %v12503_v31, %v1328_v43  ;;  %v11381_v31 = vld [vmem:[%s15713_s8 + $0x78] sm:$0xff]  ;;  %5144 = vmatpush.bf16.msra.mxu3 %v11388_v9  ;;  %v11387_v13 = vld [vmem:[%s15713_s8 + $0xa8] sm:$0xff]  ;;  %v11384_v15 = vld [vmem:[%s15713_s8 + $0x90] sm:$0xff] }
 0x243   :  { %5124 = vmatpush.bf16.msrb.mxu1 %v11381_v31  ;;  %v11404_v31 = vld [vmem:[%s15713_s8 + $0x130] sm:$0xff] }
 0x244   :  { %v2551_v14 = vpack.c.bf16 %v2423_v21, %v2423_v21  ;;  %v1366_v58 = vadd.f32 %v12531_v44, %v1347_v48  ;;  %v11382_v48 = vld [vmem:[%s15713_s8 + $0x80] sm:$0xff] }
 0x246   :  { %v2699_v2 = vunpack.c.l.b16 %v2551_v14  ;;  %v1385_v5 = vadd.f32 %v1384_v49, %v1366_v58  ;;  %5145 = vmatpush.bf16.msra.mxu3 %v11387_v13  ;;  %v11405_v58 = vld [vmem:[%s15713_s8 + $0x138] sm:$0xff] }
 0x247   :  { %v2120_v57 = vpop.f32.mrf.mxu2  ;;  %v1422_v41 = vpop.f32.mrf.mxu3  ;;  %5125 = vmatpush.bf16.msrb.mxu1 %v11380_v8 }
 0x248   :  { %v2121_v22 = vadd.f32 %v12569_v18, %v2120_v57  ;;  %v1404_v44 = vadd.f32 %v12533_v45, %v1385_v5  ;;  %v11378_v57 = vld [vmem:[%s15713_s8 + $0x60] sm:$0xff] }
 0x249   :  { %v1434_v27 = vpop.f32.mrf.mxu1 }
 0x24a   :  { %v2424_v28 = vmax.f32 %v2121_v22, 0.0  ;;  %v1435_v29 = vadd.f32 %v1434_v27, %v1416_v51  ;;  %v1423_v10 = vadd.f32 %v1422_v41, %v1404_v44  ;;  %5146 = vmatpush.bf16.msra.mxu3 %v11386_v50  ;;  %v11395_v44 = vld [vmem:[%s15713_s8 + $0xe8] sm:$0xff] }
 0x24b   :  { %5126 = vmatpush.bf16.msrb.mxu1 %v11379_v17 }
 0x24c   :  { %v2552_v35 = vpack.c.bf16 %v2424_v28, %v2424_v28  ;;  %9099 = vmatmul.msk.bf16.gmra.mxu2 %vm240_vm0, %v11316_v23  ;;  %v11318_v23 = vld [vmem:[%s15712_s1 + $0x80] sm:$0xff]  ;;  %v11377_v28 = vld [vmem:[%s15713_s8 + $0x58] sm:$0xff] }
 0x24e   :  { %v2700_v37 = vunpack.c.l.b16 %v2552_v35  ;;  %v11376_v35 = vld [vmem:[%s15713_s8 + $0x50] sm:$0xff] }
 0x24f   :  { %v2123_v3 = vpop.f32.mrf.mxu2  ;;  %5127 = vmatpush.bf16.msrb.mxu1 %v11378_v57  ;;  %v11401_v57 = vld [vmem:[%s15713_s8 + $0x118] sm:$0xff] }
 0x250   :  { %v12600_v52 = vpack.c.b16 %v2700_v37, %v2699_v2  ;;  %v2124_v46 = vadd.f32 %v12569_v18, %v2123_v3  ;;  %v12714_v9 = vpop.f32.mrf.mxu3 }
 0x251   :  { %v1436_v26 = vpop.f32.mrf.mxu1 }
 0x252   :  { %v1437_v4 = vadd.f32 %v1436_v26, %v1418_v39  ;;  %v2425_v51 = vmax.f32 %v2124_v46, 0.0  ;;  %v11383_v39 = vld [vmem:[%s15713_s8 + $0x88] sm:$0xff] }
 0x253   :  { %5128 = vmatpush.bf16.msrb.mxu1 %v11377_v28 }
 0x254   :  { %v12607_v47 = vpack.c.bf16 %v1437_v4, %v1435_v29  ;;  %v2553_v59 = vpack.c.bf16 %v2425_v51, %v2425_v51  ;;  %v11385_v29 = vld [vmem:[%s15713_s8 + $0x98] sm:$0xff] }
 0x255   :  { %5147 = vmatpush.bf16.msra.mxu3 %v11385_v29 }
 0x256   :  { %15729 = vst [vmem:[#allocation3_spill] sm:$0xff] %v12607_v47  ;;  %v2709_v25 = vunpack.c.l.b16 %v2553_v59 }
 0x257   :  { %v2125_v53 = vpop.f32.mrf.mxu2  ;;  %5129 = vmatpush.bf16.msrb.mxu1 %v11376_v35 }
 0x258   :  { %v2126_v12 = vadd.f32 %v12569_v18, %v2125_v53  ;;  %v11319_v53 = vld [vmem:[%s15712_s1 + $0x88] sm:$0xff] }
 0x259   :  { %v1439_v56 = vpop.f32.mrf.mxu1  ;;  %5148 = vmatpush.bf16.msra.mxu3 %v11384_v15 }
 0x25a   :  { %v2426_v60 = vmax.f32 %v2126_v12, 0.0  ;;  %v1440_v61 = vadd.f32 %v1439_v56, %v1421_v16  ;;  %v11397_v56 = vld [vmem:[%s15713_s8 + $0xf8] sm:$0xff] }
 0x25b   :  { %5130 = vmatpush.bf16.msrb.mxu1 %v11375_v38 }
 0x25c   :  { %v2554_v6 = vpack.c.bf16 %v2426_v60, %v2426_v60  ;;  %9100 = vmatmul.msk.bf16.gmra.mxu2 %vm240_vm0, %v11317_v55 }
 0x25d   :  { %5149 = vmatpush.bf16.msra.mxu3 %v11383_v39 }
 0x25e   :  { %v2710_v7 = vunpack.c.l.b16 %v2554_v6 }
 0x25f   :  { %v2128_v42 = vpop.f32.mrf.mxu2  ;;  %5131 = vmatpush.bf16.msrb.mxu1 %v11374_v36  ;;  %v11421_v36 = vld [vmem:[%s15713_s8 + $0x1b8] sm:$0xff] }
 0x260   :  { %v12632_v11 = vpack.c.b16 %v2710_v7, %v2709_v25  ;;  %v2129_v49 = vadd.f32 %v12569_v18, %v2128_v42  ;;  %v11403_v25 = vld [vmem:[%s15713_s8 + $0x128] sm:$0xff] }
 0x261   :  { %v1441_v16 = vpop.f32.mrf.mxu1  ;;  %5150 = vmatpush.bf16.msra.mxu3 %v11382_v48 }
 0x262   :  { %v1442_v45 = vadd.f32 %v1441_v16, %v1423_v10  ;;  %v2427_v20 = vmax.f32 %v2129_v49, 0.0  ;;  %v11320_v16 = vld [vmem:[%s15712_s1 + $0x90] sm:$0xff]  ;;  %v11394_v49 = vld [vmem:[%s15713_s8 + $0xe0] sm:$0xff] }
 0x263   :  { %5162 = vmatpush.bf16.msra.mxu1 %v11397_v56 }
 0x264   :  { %v12641_v19 = vpack.c.bf16 %v1442_v45, %v1440_v61  ;;  %v2555_v27 = vpack.c.bf16 %v2427_v20, %v2427_v20  ;;  %v11396_v61 = vld [vmem:[%s15713_s8 + $0xf0] sm:$0xff]  ;;  %v11402_v45 = vld [vmem:[%s15713_s8 + $0x120] sm:$0xff] }
 0x266   :  { %15730 = vst [vmem:[#allocation4_spill] sm:$0xff] %v12641_v19  ;;  %v2711_v0 = vunpack.c.l.b16 %v2555_v27 }
 0x267   :  { %v2130_v21 = vpop.f32.mrf.mxu2  ;;  %5163 = vmatpush.bf16.msra.mxu1 %v11396_v61 }
 0x268   :  { %v2131_v22 = vadd.f32 %v12569_v18, %v2130_v21  ;;  %v11393_v21 = vld [vmem:[%s15713_s8 + $0xd8] sm:$0xff] }
 0x269   :  { %v2093_v24 = vpop.f32.mrf.mxu1 }
 0x26a   :  { %v2428_v63 = vmax.f32 %v2131_v22, 0.0  ;;  %v2094_v14 = vadd.f32 %v12569_v18, %v2093_v24  ;;  %v11400_v24 = vld [vmem:[%s15713_s8 + $0x110] sm:$0xff] }
 0x26b   :  { %5164 = vmatpush.bf16.msra.mxu1 %v11395_v44  ;;  %v11410_v44 = vld [vmem:[%s15713_s8 + $0x160] sm:$0xff] }
 0x26c   :  { %v2556_v30 = vpack.c.bf16 %v2428_v63, %v2428_v63  ;;  %9101 = vmatmul.msk.bf16.gmra.mxu2 %vm240_vm0, %v11318_v23  ;;  %v2413_v34 = vmax.f32 %v2094_v14, 0.0  ;;  %v11392_v23 = vld [vmem:[%s15713_s8 + $0xd0] sm:$0xff]  ;;  %v12741_v63 = vpop.f32.mrf.mxu3 }
 0x26e   :  { %v2712_v33 = vunpack.c.l.b16 %v2556_v30  ;;  %v2541_v37 = vpack.c.bf16 %v2413_v34, %v2413_v34  ;;  %v11391_v30 = vld [vmem:[%s15713_s8 + $0xc8] sm:$0xff] }
 0x26f   :  { %v12661_v32 = vpop.f32.mrf.mxu2  ;;  %5165 = vmatpush.bf16.msra.mxu1 %v11394_v49 }
 0x270   :  { %v12669_v1 = vpack.c.b16 %v2712_v33, %v2711_v0  ;;  %v2673_v43 = vunpack.c.l.b16 %v2541_v37  ;;  %v11399_v0 = vld [vmem:[%s15713_s8 + $0x108] sm:$0xff]  ;;  %v11390_v37 = vld [vmem:[%s15713_s8 + $0xc0] sm:$0xff]  ;;  %v2134_v49 = vadd.f32 %v12569_v18, %v12661_v32 }
 0x271   :  { %v2095_v2 = vpop.f32.mrf.mxu1 }
 0x272   :  { %v2096_v3 = vadd.f32 %v12569_v18, %v2095_v2  ;;  %v11321_v2 = vld [vmem:[%s15712_s1 + $0x98] sm:$0xff] }
 0x273   :  { %5166 = vmatpush.bf16.msra.mxu1 %v11393_v21  ;;  %v2429_v21 = vmax.f32 %v2134_v49, 0.0 }
 0x274   :  { %v2414_v26 = vmax.f32 %v2096_v3, 0.0  ;;  %v11398_v3 = vld [vmem:[%s15713_s8 + $0x100] sm:$0xff] }
 0x276   :  { %v2542_v46 = vpack.c.bf16 %v2414_v26, %v2414_v26 }
 0x277   :  { %v12678_v4 = vpop.f32.mrf.mxu2  ;;  %5167 = vmatpush.bf16.msra.mxu1 %v11392_v23 }
 0x278   :  { %v2674_v51 = vunpack.c.l.b16 %v2542_v46  ;;  %v11413_v46 = vld [vmem:[%s15713_s8 + $0x178] sm:$0xff] }
 0x279   :  { %v2098_v54 = vpop.f32.mrf.mxu1 }
 0x27a   :  { %v2677_v12 = vpack.c.b16 %v2674_v51, %v2673_v43  ;;  %v2099_v55 = vadd.f32 %v12569_v18, %v2098_v54  ;;  %v12762_v43 = vpop.f32.mrf.mxu3  ;;  %v11420_v54 = vld [vmem:[%s15713_s8 + $0x1b0] sm:$0xff] }
 0x27b   :  { %5168 = vmatpush.bf16.msra.mxu1 %v11391_v30 }
 0x27c   :  { %9102 = vmatmul.msk.bf16.gmra.mxu2 %vm240_vm0, %v11319_v53  ;;  %5113 = vmatmul.bf16.vlgmr.msrb.gmra.mxu3 %v2677_v12  ;;  %v2415_v59 = vmax.f32 %v2099_v55, 0.0  ;;  %v11412_v53 = vld [vmem:[%s15713_s8 + $0x170] sm:$0xff] }
 0x27d   :  { %5181 = vmatpush.bf16.msrb.mxu3 %v11405_v58  ;;  %v11411_v58 = vld [vmem:[%s15713_s8 + $0x168] sm:$0xff] }
 0x27e   :  { %v2543_v5 = vpack.c.bf16 %v2415_v59, %v2415_v59  ;;  %v11419_v59 = vld [vmem:[%s15713_s8 + $0x1a8] sm:$0xff] }
 0x27f   :  { %v12697_v60 = vpop.f32.mrf.mxu2  ;;  %5169 = vmatpush.bf16.msra.mxu1 %v11390_v37 }
 0x280   :  { %v2675_v7 = vunpack.c.l.b16 %v2543_v5 }
 0x281   :  { %v2100_v62 = vpop.f32.mrf.mxu1  ;;  %5182 = vmatpush.bf16.msrb.mxu3 %v11404_v31 }
 0x282   :  { %v2101_v6 = vadd.f32 %v12569_v18, %v2100_v62  ;;  %v12787_v61 = vpop.f32.mrf.mxu3 }
 0x284   :  { %v2416_v41 = vmax.f32 %v2101_v6, 0.0 }
 0x285   :  { %5183 = vmatpush.bf16.msrb.mxu3 %v11403_v25  ;;  %v11418_v25 = vld [vmem:[%s15713_s8 + $0x1a0] sm:$0xff] }
 0x286   :  { %v2544_v42 = vpack.c.bf16 %v2416_v41, %v2416_v41  ;;  %v11322_v41 = vld [vmem:[%s15712_s1 + $0xa0] sm:$0xff] }
 0x287   :  { %v12712_v8 = vpop.f32.mrf.mxu2 }
 0x288   :  { %v2676_v10 = vunpack.c.l.b16 %v2544_v42  ;;  %v2136_v42 = vadd.f32 %v12569_v18, %v12678_v4 }
 0x289   :  { %v2103_v17 = vpop.f32.mrf.mxu1  ;;  %5184 = vmatpush.bf16.msrb.mxu3 %v11402_v45 }
 0x28a   :  { %v2104_v13 = vadd.f32 %v12569_v18, %v2103_v17  ;;  %v2678_v20 = vpack.c.b16 %v2676_v10, %v2675_v7  ;;  %v11409_v10 = vld [vmem:[%s15713_s8 + $0x158] sm:$0xff]  ;;  %v2430_v45 = vmax.f32 %v2136_v42, 0.0  ;;  %v12812_v17 = vpop.f32.mrf.mxu3 }
 0x28c   :  { %9103 = vmatmul.msk.bf16.gmra.mxu2 %vm240_vm0, %v11320_v16  ;;  %5118 = vmatmul.bf16.gmra.mxu3 %v2678_v20  ;;  %v2417_v50 = vmax.f32 %v2104_v13, 0.0  ;;  %v11417_v16 = vld [vmem:[%s15713_s8 + $0x198] sm:$0xff]  ;;  %v11408_v13 = vld [vmem:[%s15713_s8 + $0x150] sm:$0xff]  ;;  %v2558_v32 = vpack.c.bf16 %v2430_v45, %v2430_v45  ;;  %v11423_v45 = vld [vmem:[%s15713_s8 + $0x1c8] sm:$0xff] }
 0x28d   :  { %5185 = vmatpush.bf16.msrb.mxu3 %v11401_v57  ;;  %v11416_v20 = vld [vmem:[%s15713_s8 + $0x190] sm:$0xff]  ;;  %v11415_v57 = vld [vmem:[%s15713_s8 + $0x188] sm:$0xff] }
 0x28e   :  { %v2545_v14 = vpack.c.bf16 %v2417_v50, %v2417_v50  ;;  %v2557_v50 = vpack.c.bf16 %v2429_v21, %v2429_v21  ;;  %v2722_v23 = vunpack.c.l.b16 %v2558_v32 }
 0x28f   :  { %v12733_v22 = vpop.f32.mrf.mxu2 }
 0x290   :  { %v2685_v33 = vunpack.c.l.b16 %v2545_v14  ;;  %v11406_v14 = vld [vmem:[%s15713_s8 + $0x140] sm:$0xff] }
 0x291   :  { %v2105_v27 = vpop.f32.mrf.mxu1  ;;  %5186 = vmatpush.bf16.msrb.mxu3 %v11400_v24 }
 0x292   :  { %v2106_v28 = vadd.f32 %v12569_v18, %v2105_v27  ;;  %v11323_v27 = vld [vmem:[%s15712_s1 + $0xa8] sm:$0xff]  ;;  %v12835_v30 = vpop.f32.mrf.mxu3 }
 0x294   :  { %v2418_v29 = vmax.f32 %v2106_v28, 0.0  ;;  %v11414_v28 = vld [vmem:[%s15713_s8 + $0x180] sm:$0xff] }
 0x295   :  { %5187 = vmatpush.bf16.msrb.mxu3 %v11399_v0 }
 0x296   :  { %v2546_v34 = vpack.c.bf16 %v2418_v29, %v2418_v29  ;;  %v2721_v29 = vunpack.c.l.b16 %v2557_v50  ;;  %v11325_v50 = vld [vmem:[%s15712_s1 + $0xb8] sm:$0xff] }
 0x297   :  { %v12750_v35 = vpop.f32.mrf.mxu2 }
 0x298   :  { %v2686_v15 = vunpack.c.l.b16 %v2546_v34  ;;  %v2725_v0 = vpack.c.b16 %v2722_v23, %v2721_v29  ;;  %v11429_v34 = vld [vmem:[%s15713_s8 + $0x1f8] sm:$0xff]  ;;  %v11422_v23 = vld [vmem:[%s15713_s8 + $0x1c0] sm:$0xff] }
 0x299   :  { %v2108_v38 = vpop.f32.mrf.mxu1  ;;  %5188 = vmatpush.bf16.msrb.mxu3 %v11398_v3 }
 0x29a   :  { %v2689_v39 = vpack.c.b16 %v2686_v15, %v2685_v33  ;;  %v2109_v26 = vadd.f32 %v12569_v18, %v2108_v38  ;;  %v2141_v33 = vadd.f32 %v12569_v18, %v12712_v8  ;;  %v2139_v15 = vadd.f32 %v12569_v18, %v12697_v60  ;;  %v11428_v8 = vld [vmem:[%s15713_s8 + $0x1f0] sm:$0xff]  ;;  %v11427_v60 = vld [vmem:[%s15713_s8 + $0x1e8] sm:$0xff] }
 0x29c   :  { %9104 = vmatmul.msk.bf16.gmra.mxu2 %vm240_vm0, %v11321_v2  ;;  %5132 = vmatmul.bf16.vlgmr.msrb.gmra.mxu1 %v2689_v39  ;;  %v2419_v48 = vmax.f32 %v2109_v26, 0.0  ;;  %v2432_v2 = vmax.f32 %v2141_v33, 0.0  ;;  %v2431_v3 = vmax.f32 %v2139_v15, 0.0  ;;  %v12854_v39 = vpop.f32.mrf.mxu3  ;;  %v11430_v15 = vld [vmem:[%s15713_s8 + $0x200] sm:$0xff] }
 0x29d   :  { %5151 = vmatmul.bf16.vlgmr.msra.gmra.mxu3 %v12563_v40  ;;  %5200 = vmatpush.bf16.msrb.mxu1 %v11413_v46  ;;  %v11436_v46 = vld [vmem:[%s15713_s8 + $0x230] sm:$0xff] }
 0x29e   :  { %5219 = vmatpush.bf16.msra.mxu3 %v11421_v36  ;;  %v2547_v55 = vpack.c.bf16 %v2419_v48, %v2419_v48  ;;  %v2560_v38 = vpack.c.bf16 %v2432_v2, %v2432_v2  ;;  %v2559_v26 = vpack.c.bf16 %v2431_v3, %v2431_v3 }
 0x29f   :  { %v12772_v51 = vpop.f32.mrf.mxu2 }
 0x2a0   :  { %v2687_v31 = vunpack.c.l.b16 %v2547_v55  ;;  %v2724_v36 = vunpack.c.l.b16 %v2560_v38  ;;  %v2146_v55 = vadd.f32 %v12569_v18, %v12750_v35  ;;  %v2149_v33 = vadd.f32 %v12569_v18, %v12772_v51 }
 0x2a1   :  { %v2110_v12 = vpop.f32.mrf.mxu1  ;;  %5201 = vmatpush.bf16.msrb.mxu1 %v11412_v53  ;;  %v11324_v53 = vld [vmem:[%s15712_s1 + $0xb0] sm:$0xff] }
 0x2a2   :  { %v2111_v56 = vadd.f32 %v12569_v18, %v2110_v12  ;;  %5220 = vmatpush.bf16.msra.mxu3 %v11420_v54  ;;  %v11426_v54 = vld [vmem:[%s15713_s8 + $0x1e0] sm:$0xff]  ;;  %v2723_v12 = vunpack.c.l.b16 %v2559_v26  ;;  %v2435_v3 = vmax.f32 %v2149_v33, 0.0 }
 0x2a4   :  { %v2420_v40 = vmax.f32 %v2111_v56, 0.0  ;;  %v11435_v56 = vld [vmem:[%s15713_s8 + $0x228] sm:$0xff]  ;;  %v2563_v26 = vpack.c.bf16 %v2435_v3, %v2435_v3 }
 0x2a5   :  { %5202 = vmatpush.bf16.msrb.mxu1 %v11411_v58  ;;  %v2726_v58 = vpack.c.b16 %v2724_v36, %v2723_v12 }
 0x2a6   :  { %v2548_v62 = vpack.c.bf16 %v2420_v40, %v2420_v40  ;;  %5221 = vmatpush.bf16.msra.mxu3 %v11419_v59  ;;  %v2144_v59 = vadd.f32 %v12569_v18, %v12733_v22  ;;  %v11434_v22 = vld [vmem:[%s15713_s8 + $0x220] sm:$0xff]  ;;  %v2735_v12 = vunpack.c.l.b16 %v2563_v26 }
 0x2a7   :  { %v12789_v5 = vpop.f32.mrf.mxu2 }
 0x2a8   :  { %v2688_v6 = vunpack.c.l.b16 %v2548_v62  ;;  %v12882_v62 = vpop.f32.mrf.mxu3 }
 0x2a9   :  { %5203 = vmatpush.bf16.msrb.mxu1 %v11410_v44 }
 0x2aa   :  { %v2690_v7 = vpack.c.b16 %v2688_v6, %v2687_v31  ;;  %5222 = vmatpush.bf16.msra.mxu3 %v11418_v25  ;;  %v11425_v31 = vld [vmem:[%s15713_s8 + $0x1d8] sm:$0xff]  ;;  %v2434_v6 = vmax.f32 %v2146_v55, 0.0  ;;  %v11424_v25 = vld [vmem:[%s15713_s8 + $0x1d0] sm:$0xff]  ;;  %v11326_v55 = vld [vmem:[%s15712_s1 + $0xc0] sm:$0xff] }
 0x2ac   :  { %9105 = vmatmul.msk.bf16.gmra.mxu2 %vm240_vm0, %v11322_v41  ;;  %5137 = vmatmul.bf16.gmra.mxu1 %v2690_v7  ;;  %v2562_v42 = vpack.c.bf16 %v2434_v6, %v2434_v6 }
 0x2ad   :  { %5156 = vmatmul.bf16.gmra.mxu3 %v12600_v52  ;;  %5204 = vmatpush.bf16.msrb.mxu1 %v11409_v10  ;;  %v11407_v52 = vld [vmem:[%s15713_s8 + $0x148] sm:$0xff]  ;;  %v11433_v10 = vld [vmem:[%s15713_s8 + $0x218] sm:$0xff] }
 0x2ae   :  { %5223 = vmatpush.bf16.msra.mxu3 %v11417_v16 }
 0x2af   :  { %v2153_v4 = vpop.f32.mrf.mxu2 }
 0x2b0   :  { %v2154_v35 = vadd.f32 %v12569_v18, %v2153_v4 }
 0x2b1   :  { %5205 = vmatpush.bf16.msrb.mxu1 %v11408_v13  ;;  %v2734_v13 = vunpack.c.l.b16 %v2562_v42 }
 0x2b2   :  { %5224 = vmatpush.bf16.msra.mxu3 %v11416_v20  ;;  %v2437_v7 = vmax.f32 %v2154_v35, 0.0  ;;  %v11432_v20 = vld [vmem:[%s15713_s8 + $0x210] sm:$0xff] }
 0x2b4   :  { %v2565_v4 = vpack.c.bf16 %v2437_v7, %v2437_v7 }
 0x2b5   :  { %5206 = vmatpush.bf16.msrb.mxu1 %v11407_v52  ;;  %v12901_v52 = vpop.f32.mrf.mxu3 }
 0x2b6   :  { %5225 = vmatpush.bf16.msra.mxu3 %v11415_v57 }
 0x2b7   :  { %v2155_v24 = vpop.f32.mrf.mxu2 }
 0x2b8   :  { %v2156_v40 = vadd.f32 %v12569_v18, %v2155_v24  ;;  %v2745_v24 = vunpack.c.l.b16 %v2565_v4  ;;  %v11440_v4 = vld [vmem:[%s15713_s8 + $0x250] sm:$0xff] }
 0x2b9   :  { %5207 = vmatpush.bf16.msrb.mxu1 %v11406_v14  ;;  %v2151_v14 = vadd.f32 %v12569_v18, %v12789_v5 }
 0x2ba   :  { %5226 = vmatpush.bf16.msra.mxu3 %v11414_v28  ;;  %v2438_v41 = vmax.f32 %v2156_v40, 0.0  ;;  %v11431_v28 = vld [vmem:[%s15713_s8 + $0x208] sm:$0xff] }
 0x2bb   :  { %v2436_v5 = vmax.f32 %v2151_v14, 0.0 }
 0x2bc   :  { %9106 = vmatmul.msk.bf16.gmra.mxu2 %vm240_vm0, %v11323_v27  ;;  %5170 = vmatmul.bf16.vlgmr.msra.gmra.mxu1 %v12632_v11  ;;  %v11437_v11 = vld [vmem:[%s15713_s8 + $0x238] sm:$0xff]  ;;  %v2566_v16 = vpack.c.bf16 %v2438_v41, %v2438_v41  ;;  %v11442_v41 = vld [vmem:[%s15713_s8 + $0x260] sm:$0xff] }
 0x2bd   :  { %5189 = vmatmul.bf16.vlgmr.msrb.gmra.mxu3 %v2725_v0  ;;  %5238 = vmatpush.bf16.msra.mxu1 %v11429_v34  ;;  %v12923_v38 = vpop.f32.mrf.mxu3  ;;  %v2564_v51 = vpack.c.bf16 %v2436_v5, %v2436_v5 }
 0x2be   :  { %5257 = vmatpush.bf16.msrb.mxu3 %v11437_v11  ;;  %v2746_v21 = vunpack.c.l.b16 %v2566_v16 }
 0x2bf   :  { %v12846_v37 = vpop.f32.mrf.mxu2  ;;  %v2736_v36 = vunpack.c.l.b16 %v2564_v51  ;;  %v11453_v51 = vld [vmem:[%s15713_s8 + $0x2b8] sm:$0xff] }
 0x2c0   :  { %v2749_v29 = vpack.c.b16 %v2746_v21, %v2745_v24  ;;  %v2159_v34 = vadd.f32 %v12569_v18, %v12846_v37 }
 0x2c1   :  { %5239 = vmatpush.bf16.msra.mxu1 %v11428_v8 }
 0x2c2   :  { %5258 = vmatpush.bf16.msrb.mxu3 %v11436_v46  ;;  %v2439_v11 = vmax.f32 %v2159_v34, 0.0  ;;  %v11438_v34 = vld [vmem:[%s15713_s8 + $0x240] sm:$0xff] }
 0x2c4   :  { %v2567_v46 = vpack.c.bf16 %v2439_v11, %v2439_v11 }
 0x2c5   :  { %5240 = vmatpush.bf16.msra.mxu1 %v11427_v60  ;;  %v11445_v60 = vld [vmem:[%s15713_s8 + $0x278] sm:$0xff]  ;;  %v12938_v35 = vpop.f32.mrf.mxu3 }
 0x2c6   :  { %5259 = vmatpush.bf16.msrb.mxu3 %v11435_v56  ;;  %v2747_v56 = vunpack.c.l.b16 %v2567_v46  ;;  %v11452_v46 = vld [vmem:[%s15713_s8 + $0x2b0] sm:$0xff] }
 0x2c7   :  { %v2160_v48 = vpop.f32.mrf.mxu2 }
 0x2c8   :  { %v2161_v0 = vadd.f32 %v12569_v18, %v2160_v48  ;;  %v11444_v48 = vld [vmem:[%s15713_s8 + $0x270] sm:$0xff] }
 0x2c9   :  { %5241 = vmatpush.bf16.msra.mxu1 %v11426_v54 }
 0x2ca   :  { %5260 = vmatpush.bf16.msrb.mxu3 %v11434_v22  ;;  %v2440_v2 = vmax.f32 %v2161_v0, 0.0 }
 0x2cc   :  { %9107 = vmatmul.msk.bf16.gmra.mxu2 %vm240_vm0, %v11324_v53  ;;  %5175 = vmatmul.bf16.gmra.mxu1 %v12669_v1  ;;  %v2433_v1 = vmax.f32 %v2144_v59, 0.0  ;;  %v2568_v37 = vpack.c.bf16 %v2440_v2, %v2440_v2  ;;  %v11443_v59 = vld [vmem:[%s15713_s8 + $0x268] sm:$0xff] }
 0x2cd   :  { %5194 = vmatmul.bf16.gmra.mxu3 %v2726_v58  ;;  %5242 = vmatpush.bf16.msra.mxu1 %v11425_v31  ;;  %v2738_v58 = vpack.c.b16 %v2736_v36, %v2735_v12  ;;  %v12950_v16 = vpop.f32.mrf.mxu3  ;;  %v11328_v12 = vld [vmem:[%s15712_s1 + $0xd0] sm:$0xff] }
 0x2ce   :  { %v2561_v49 = vpack.c.bf16 %v2433_v1, %v2433_v1  ;;  %5261 = vmatpush.bf16.msrb.mxu3 %v11433_v10  ;;  %v2748_v53 = vunpack.c.l.b16 %v2568_v37 }
 0x2cf   :  { %v12887_v44 = vpop.f32.mrf.mxu2 }
 0x2d0   :  { %v2733_v57 = vunpack.c.l.b16 %v2561_v49  ;;  %v2750_v31 = vpack.c.b16 %v2748_v53, %v2747_v56  ;;  %v2164_v6 = vadd.f32 %v12569_v18, %v12887_v44  ;;  %v11441_v44 = vld [vmem:[%s15713_s8 + $0x258] sm:$0xff] }
 0x2d1   :  { %5243 = vmatpush.bf16.msra.mxu1 %v11424_v25 }
 0x2d2   :  { %v2737_v27 = vpack.c.b16 %v2734_v13, %v2733_v57  ;;  %5262 = vmatpush.bf16.msrb.mxu3 %v11432_v20  ;;  %v2441_v25 = vmax.f32 %v2164_v6, 0.0 }
 0x2d4   :  { %v2569_v10 = vpack.c.bf16 %v2441_v25, %v2441_v25 }
 0x2d5   :  { %5244 = vmatpush.bf16.msra.mxu1 %v11423_v45 }
 0x2d6   :  { %5263 = vmatpush.bf16.msrb.mxu3 %v11431_v28  ;;  %v2757_v20 = vunpack.c.l.b16 %v2569_v10 }
 0x2d7   :  { %v2165_v32 = vpop.f32.mrf.mxu2 }
 0x2d8   :  { %v2166_v40 = vadd.f32 %v12569_v18, %v2165_v32  ;;  %v11327_v32 = vld [vmem:[%s15712_s1 + $0xc8] sm:$0xff] }
 0x2d9   :  { %5245 = vmatpush.bf16.msra.mxu1 %v11422_v23 }
 0x2da   :  { %5264 = vmatpush.bf16.msrb.mxu3 %v11430_v15  ;;  %v2442_v22 = vmax.f32 %v2166_v40, 0.0 }
 0x2dc   :  { %9108 = vmatmul.msk.bf16.gmra.mxu2 %vm240_vm0, %v11325_v50  ;;  %5208 = vmatmul.bf16.vlgmr.msrb.gmra.mxu1 %v2737_v27  ;;  %v2570_v7 = vpack.c.bf16 %v2442_v22, %v2442_v22  ;;  %v11439_v27 = vld [vmem:[%s15713_s8 + $0x248] sm:$0xff]  ;;  %v11450_v22 = vld [vmem:[%s15713_s8 + $0x2a0] sm:$0xff] }
 0x2dd   :  { %5227 = vmatmul.bf16.vlgmr.msra.gmra.mxu3 %v2749_v29  ;;  %5276 = vmatpush.bf16.msrb.mxu1 %v11445_v60 }
 0x2de   :  { %v2758_v49 = vunpack.c.l.b16 %v2570_v7  ;;  %5295 = vmatpush.bf16.msra.mxu3 %v11453_v51  ;;  %v11904_v7 = vld [vmem:[%s15714_s9] ss:$0 sm:$0xff]  ;;  %v11460_v51 = vld [vmem:[%s15713_s8 + $0x2f0] sm:$0xff] }
 0x2df   :  { %v2168_v8 = vpop.f32.mrf.mxu2 }
 0x2e0   :  { %v2761_v57 = vpack.c.b16 %v2758_v49, %v2757_v20  ;;  %v2169_v14 = vadd.f32 %v12569_v18, %v2168_v8 }
 0x2e1   :  { %5277 = vmatpush.bf16.msrb.mxu1 %v11444_v48 }
 0x2e2   :  { %v2443_v2 = vmax.f32 %v2169_v14, 0.0  ;;  %5296 = vmatpush.bf16.msra.mxu3 %v11452_v46  ;;  %v11330_v46 = vld [vmem:[%s15712_s1 + $0xe0] sm:$0xff] }
 0x2e4   :  { %v2571_v60 = vpack.c.bf16 %v2443_v2, %v2443_v2 }
 0x2e5   :  { %5278 = vmatpush.bf16.msrb.mxu1 %v11443_v59 }
 0x2e6   :  { %v2759_v53 = vunpack.c.l.b16 %v2571_v60 }
 0x2e7   :  { %v2170_v54 = vpop.f32.mrf.mxu2 }
 0x2e8   :  { %v2171_v50 = vadd.f32 %v12569_v18, %v2170_v54 }
 0x2e9   :  { %5279 = vmatpush.bf16.msrb.mxu1 %v11442_v41 }
 0x2ea   :  { %v2444_v29 = vmax.f32 %v2171_v50, 0.0 }
 0x2ec   :  { %9109 = vmatmul.msk.bf16.gmra.mxu2 %vm240_vm0, %v11326_v55  ;;  %5213 = vmatmul.bf16.gmra.mxu1 %v2738_v58  ;;  %v2572_v11 = vpack.c.bf16 %v2444_v29, %v2444_v29  ;;  %v11451_v58 = vld [vmem:[%s15713_s8 + $0x2a8] sm:$0xff]  ;;  %v11446_v29 = vld [vmem:[%s15713_s8 + $0x280] sm:$0xff] }
 0x2ed   :  { %5232 = vmatmul.bf16.gmra.mxu3 %v2750_v31  ;;  %5280 = vmatpush.bf16.msrb.mxu1 %v11441_v44  ;;  %v11449_v44 = vld [vmem:[%s15713_s8 + $0x298] sm:$0xff] }
 0x2ee   :  { %v2760_v37 = vunpack.c.l.b16 %v2572_v11  ;;  %5297 = vmatpush.bf16.msra.mxu3 %v11451_v58 }
 0x2ef   :  { %v2173_v1 = vpop.f32.mrf.mxu2 }
 0x2f0   :  { %v2174_v42 = vadd.f32 %v12569_v18, %v2173_v1  ;;  %v2762_v40 = vpack.c.b16 %v2760_v37, %v2759_v53 }
 0x2f1   :  { %5281 = vmatpush.bf16.msrb.mxu1 %v11440_v4 }
 0x2f2   :  { %v2445_v45 = vmax.f32 %v2174_v42, 0.0  ;;  %5298 = vmatpush.bf16.msra.mxu3 %v11450_v22 }
 0x2f4   :  { %v2573_v23 = vpack.c.bf16 %v2445_v45, %v2445_v45  ;;  %v11448_v45 = vld [vmem:[%s15713_s8 + $0x290] sm:$0xff] }
 0x2f5   :  { %5282 = vmatpush.bf16.msrb.mxu1 %v11439_v27 }
 0x2f6   :  { %v2769_v0 = vunpack.c.l.b16 %v2573_v23  ;;  %5299 = vmatpush.bf16.msra.mxu3 %v11449_v44  ;;  %v11456_v44 = vld [vmem:[%s15713_s8 + $0x2d0] sm:$0xff] }
 0x2f7   :  { %v2175_v13 = vpop.f32.mrf.mxu2 }
 0x2f8   :  { %v2176_v21 = vadd.f32 %v12569_v18, %v2175_v13 }
 0x2f9   :  { %5283 = vmatpush.bf16.msrb.mxu1 %v11438_v34 }
 0x2fa   :  { %v2446_v24 = vmax.f32 %v2176_v21, 0.0  ;;  %v11329_v21 = vld [vmem:[%s15712_s1 + $0xd8] sm:$0xff]  ;;  %5300 = vmatpush.bf16.msra.mxu3 %v11448_v45 }
 0x2fc   :  { %v2574_v28 = vpack.c.bf16 %v2446_v24, %v2446_v24  ;;  %9110 = vmatmul.msk.bf16.gmra.mxu2 %vm240_vm0, %v11327_v32  ;;  %5246 = vmatmul.bf16.vlgmr.msra.gmra.mxu1 %v2761_v57  ;;  %v11447_v24 = vld [vmem:[%s15713_s8 + $0x288] sm:$0xff] }
 0x2fe   :  { %v2770_v33 = vunpack.c.l.b16 %v2574_v28  ;;  %5301 = vmatpush.bf16.msra.mxu3 %v11447_v24 }
 0x2ff   :  { %v2178_v5 = vpop.f32.mrf.mxu2  ;;  %v5114_v15 = vpop.f32.mrf.mxu3 }
 0x300   :  { %v2773_v3 = vpack.c.b16 %v2770_v33, %v2769_v0  ;;  %v2179_v8 = vadd.f32 %v12569_v18, %v2178_v5  ;;  %v5115_v10 = vadd.f32 %v11904_v7, %v5114_v15 }
 0x302   :  { %5265 = vmatmul.bf16.vlgmr.msrb.gmra.mxu3 %v2773_v3  ;;  %v2447_v26 = vmax.f32 %v2179_v8, 0.0  ;;  %v11461_v3 = vld [vmem:[%s15713_s8 + $0x2f8] sm:$0xff] }
 0x303   :  { %5302 = vmatpush.bf16.msra.mxu3 %v11446_v29  ;;  %5314 = vmatpush.bf16.msra.mxu1 %v11461_v3 }
 0x304   :  { %v2575_v55 = vpack.c.bf16 %v2447_v26, %v2447_v26 }
 0x306   :  { %v2771_v31 = vunpack.c.l.b16 %v2575_v55  ;;  %v11459_v55 = vld [vmem:[%s15713_s8 + $0x2e8] sm:$0xff] }
 0x307   :  { %v2180_v36 = vpop.f32.mrf.mxu2  ;;  %v12975_v48 = vpop.f32.mrf.mxu3  ;;  %5315 = vmatpush.bf16.msra.mxu1 %v11460_v51 }
 0x308   :  { %v2181_v54 = vadd.f32 %v12569_v18, %v2180_v36 }
 0x30a   :  { %v2448_v56 = vmax.f32 %v2181_v54, 0.0 }
 0x30b   :  { %5316 = vmatpush.bf16.msra.mxu1 %v11459_v55 }
 0x30c   :  { %v2576_v59 = vpack.c.bf16 %v2448_v56, %v2448_v56  ;;  %9111 = vmatmul.msk.bf16.gmra.mxu2 %vm240_vm0, %v11328_v12  ;;  %5251 = vmatmul.bf16.gmra.mxu1 %v2762_v40 }
 0x30e   :  { %v2772_v6 = vunpack.c.l.b16 %v2576_v59  ;;  %v11458_v59 = vld [vmem:[%s15713_s8 + $0x2e0] sm:$0xff] }
 0x30f   :  { %v2183_v41 = vpop.f32.mrf.mxu2  ;;  %v5119_v1 = vpop.f32.mrf.mxu3  ;;  %5317 = vmatpush.bf16.msra.mxu1 %v11458_v59 }
 0x310   :  { %v2774_v25 = vpack.c.b16 %v2772_v6, %v2771_v31  ;;  %v2184_v42 = vadd.f32 %v12569_v18, %v2183_v41  ;;  %v5120_v11 = vadd.f32 %v11904_v7, %v5119_v1  ;;  %v11457_v7 = vld [vmem:[%s15713_s8 + $0x2d8] sm:$0xff] }
 0x312   :  { %5270 = vmatmul.bf16.gmra.mxu3 %v2774_v25  ;;  %v2449_v49 = vmax.f32 %v2184_v42, 0.0 }
 0x313   :  { %5318 = vmatpush.bf16.msra.mxu1 %v11457_v7  ;;  %v11465_v7 = vld [vmem:[%s15713_s8 + $0x318] sm:$0xff] }
 0x314   :  { %v2577_v57 = vpack.c.bf16 %v2449_v49, %v2449_v49 }
 0x316   :  { %v2781_v14 = vunpack.c.l.b16 %v2577_v57 }
 0x317   :  { %v2185_v4 = vpop.f32.mrf.mxu2  ;;  %v12998_v13 = vpop.f32.mrf.mxu3  ;;  %5319 = vmatpush.bf16.msra.mxu1 %v11456_v44  ;;  %v11464_v44 = vld [vmem:[%s15713_s8 + $0x310] sm:$0xff] }
 0x318   :  { %v2186_v20 = vadd.f32 %v12569_v18, %v2185_v4  ;;  %v11331_v4 = vld [vmem:[%s15712_s1 + $0xe8] sm:$0xff] }
 0x319   :  { %v5133_v32 = vpop.f32.mrf.mxu1 }
 0x31a   :  { %v2450_v50 = vmax.f32 %v2186_v20, 0.0  ;;  %v5134_v23 = vadd.f32 %v5133_v32, %v5115_v10 }
 0x31c   :  { %v2578_v27 = vpack.c.bf16 %v2450_v50, %v2450_v50  ;;  %9112 = vmatmul.msk.bf16.gmra.mxu2 %vm240_vm0, %v11329_v21  ;;  %v11455_v50 = vld [vmem:[%s15713_s8 + $0x2c8] sm:$0xff] }
 0x31d   :  { %5320 = vmatpush.bf16.msra.mxu1 %v11455_v50 }
 0x31e   :  { %v2782_v28 = vunpack.c.l.b16 %v2578_v27  ;;  %v11454_v27 = vld [vmem:[%s15713_s8 + $0x2c0] sm:$0xff] }
 0x31f   :  { %v2188_v0 = vpop.f32.mrf.mxu2 }
 0x320   :  { %v2785_v33 = vpack.c.b16 %v2782_v28, %v2781_v14  ;;  %v5152_v34 = vpop.f32.mrf.mxu3  ;;  %v2189_v2 = vadd.f32 %v12569_v18, %v2188_v0 }
 0x321   :  { %v5153_v5 = vadd.f32 %v5152_v34, %v5134_v23  ;;  %v13011_v15 = vpop.f32.mrf.mxu1  ;;  %5321 = vmatpush.bf16.msra.mxu1 %v11454_v27  ;;  %v13060_v34 = vld [vmem:[%s15708_s5] ss:$0 sm:$0xff] }
 0x322   :  { %5284 = vmatmul.bf16.vlgmr.msrb.gmra.mxu1 %v2785_v33  ;;  %v2451_v8 = vmax.f32 %v2189_v2, 0.0  ;;  %v11469_v2 = vld [vmem:[%s15713_s8 + $0x338] sm:$0xff] }
 0x323   :  { %5333 = vmatpush.bf16.msrb.mxu3 %v11469_v2 }
 0x324   :  { %v2579_v53 = vpack.c.bf16 %v2451_v8, %v2451_v8 }
 0x326   :  { %v2783_v40 = vunpack.c.l.b16 %v2579_v53 }
 0x327   :  { %v2190_v60 = vpop.f32.mrf.mxu2 }
 0x328   :  { %v2191_v37 = vadd.f32 %v12569_v18, %v2190_v60  ;;  %v13021_v26 = vpop.f32.mrf.mxu3 }
 0x329   :  { %v5138_v36 = vpop.f32.mrf.mxu1 }
 0x32a   :  { %v2452_v54 = vmax.f32 %v2191_v37, 0.0  ;;  %v5139_v12 = vadd.f32 %v5138_v36, %v5120_v11  ;;  %v11468_v11 = vld [vmem:[%s15713_s8 + $0x330] sm:$0xff] }
 0x32b   :  { %v11332_v37 = vld [vmem:[%s15712_s1 + $0xf0] sm:$0xff]  ;;  %5334 = vmatpush.bf16.msrb.mxu3 %v11468_v11  ;;  %v11477_v11 = vld [vmem:[%s15713_s8 + $0x378] sm:$0xff] }
 0x32c   :  { %v2580_v56 = vpack.c.bf16 %v2452_v54, %v2452_v54  ;;  %9113 = vmatmul.msk.bf16.gmra.mxu2 %vm240_vm0, %v11330_v46  ;;  %5352 = vmatpush.bf16.msra.mxu0 %v11477_v11  ;;  %v11470_v11 = vld [vmem:[%s15713_s8 + $0x340] sm:$0xff] }
 0x32e   :  { %v2784_v58 = vunpack.c.l.b16 %v2580_v56 }
 0x32f   :  { %v2193_v31 = vpop.f32.mrf.mxu2 }
 0x330   :  { %v5157_v6 = vpop.f32.mrf.mxu3  ;;  %v2786_v22 = vpack.c.b16 %v2784_v58, %v2783_v40  ;;  %v2194_v25 = vadd.f32 %v12569_v18, %v2193_v31  ;;  %v11466_v58 = vld [vmem:[%s15713_s8 + $0x320] sm:$0xff] }
 0x331   :  { %v5158_v41 = vadd.f32 %v5157_v6, %v5139_v12  ;;  %v13033_v1 = vpop.f32.mrf.mxu1  ;;  %v11467_v12 = vld [vmem:[%s15713_s8 + $0x328] sm:$0xff] }
 0x332   :  { %5289 = vmatmul.bf16.gmra.mxu1 %v2786_v22  ;;  %v2453_v42 = vmax.f32 %v2194_v25, 0.0  ;;  %5335 = vmatpush.bf16.msrb.mxu3 %v11467_v12 }
 0x334   :  { %v2581_v21 = vpack.c.bf16 %v2453_v42, %v2453_v42 }
 0x336   :  { %5336 = vmatpush.bf16.msrb.mxu3 %v11466_v58 }
 0x337   :  { %v2195_v10 = vpop.f32.mrf.mxu2 }
 0x338   :  { %v2196_v49 = vadd.f32 %v12569_v18, %v2195_v10  ;;  %v13043_v45 = vpop.f32.mrf.mxu3  ;;  %v2793_v18 = vunpack.c.l.b16 %v2581_v21 }
 0x339   :  { %v5171_v20 = vpop.f32.mrf.mxu1 }
 0x33a   :  { %v2454_v32 = vmax.f32 %v2196_v49, 0.0  ;;  %v5172_v57 = vadd.f32 %v5171_v20, %v5153_v5  ;;  %5337 = vmatpush.bf16.msrb.mxu3 %v11465_v7  ;;  %v11333_v20 = vld [vmem:[%s15712_s1 + $0xf8] sm:$0xff] }
 0x33c   :  { %v2582_v23 = vpack.c.bf16 %v2454_v32, %v2454_v32  ;;  %9114 = vmatmul.msk.bf16.gmra.mxu2 %vm240_vm0, %v11331_v4 }
 0x33e   :  { %v2794_v24 = vunpack.c.l.b16 %v2582_v23  ;;  %5338 = vmatpush.bf16.msrb.mxu3 %v11464_v44  ;;  %v11463_v23 = vld [vmem:[%s15713_s8 + $0x308] sm:$0xff] }
 0x33f   :  { %v2198_v14 = vpop.f32.mrf.mxu2 }
 0x340   :  { %v2797_v28 = vpack.c.b16 %v2794_v24, %v2793_v18  ;;  %v5190_v29 = vpop.f32.mrf.mxu3  ;;  %v2199_v5 = vadd.f32 %v13060_v34, %v2198_v14  ;;  %v11462_v14 = vld [vmem:[%s15713_s8 + $0x300] sm:$0xff] }
 0x341   :  { %v5191_v0 = vadd.f32 %v5190_v29, %v5172_v57  ;;  %v13055_v33 = vpop.f32.mrf.mxu1 }
 0x342   :  { %5303 = vmatmul.bf16.vlgmr.msra.gmra.mxu3 %v2797_v28  ;;  %v2455_v3 = vmax.f32 %v2199_v5, 0.0 }
 0x343   :  { %5339 = vmatpush.bf16.msrb.mxu3 %v11463_v23 }
 0x344   :  { %v2583_v36 = vpack.c.bf16 %v2455_v3, %v2455_v3 }
 0x346   :  { %v2795_v56 = vunpack.c.l.b16 %v2583_v36 }
 0x347   :  { %v2200_v8 = vpop.f32.mrf.mxu2  ;;  %5340 = vmatpush.bf16.msrb.mxu3 %v11462_v14  ;;  %v11471_v14 = vld [vmem:[%s15713_s8 + $0x348] sm:$0xff] }
 0x348   :  { %v2201_v51 = vadd.f32 %v13060_v34, %v2200_v8  ;;  %v13070_v60 = vpop.f32.mrf.mxu3 }
 0x349   :  { %v5176_v46 = vpop.f32.mrf.mxu1 }
 0x34a   :  { %v2456_v53 = vmax.f32 %v2201_v51, 0.0  ;;  %v5177_v54 = vadd.f32 %v5176_v46, %v5158_v41  ;;  %v11476_v51 = vld [vmem:[%s15713_s8 + $0x370] sm:$0xff] }
 0x34b   :  { %5353 = vmatpush.bf16.msra.mxu0 %v11476_v51 }
 0x34c   :  { %v2584_v55 = vpack.c.bf16 %v2456_v53, %v2456_v53  ;;  %9115 = vmatmul.msk.bf16.gmra.mxu2 %vm240_vm0, %v11332_v37  ;;  %v11334_v53 = vld [vmem:[%s15712_s1 + $0x100] sm:$0xff] }
 0x34e   :  { %v2796_v40 = vunpack.c.l.b16 %v2584_v55 }
 0x34f   :  { %v2203_v59 = vpop.f32.mrf.mxu2 }
 0x350   :  { %v5195_v31 = vpop.f32.mrf.mxu3  ;;  %v2798_v6 = vpack.c.b16 %v2796_v40, %v2795_v56  ;;  %v2204_v25 = vadd.f32 %v13060_v34, %v2203_v59  ;;  %v11475_v40 = vld [vmem:[%s15713_s8 + $0x368] sm:$0xff] }
 0x351   :  { %v5196_v22 = vadd.f32 %v5195_v31, %v5177_v54  ;;  %v13082_v41 = vpop.f32.mrf.mxu1  ;;  %5354 = vmatpush.bf16.msra.mxu0 %v11475_v40 }
 0x352   :  { %5308 = vmatmul.bf16.gmra.mxu3 %v2798_v6  ;;  %v2457_v42 = vmax.f32 %v2204_v25, 0.0  ;;  %v11474_v6 = vld [vmem:[%s15713_s8 + $0x360] sm:$0xff] }
 0x354   :  { %v2585_v32 = vpack.c.bf16 %v2457_v42, %v2457_v42 }
 0x355   :  { %5355 = vmatpush.bf16.msra.mxu0 %v11474_v6 }
 0x356   :  { %v2805_v24 = vunpack.c.l.b16 %v2585_v32 }
 0x357   :  { %v2205_v10 = vpop.f32.mrf.mxu2 }
 0x358   :  { %v2206_v49 = vadd.f32 %v13060_v34, %v2205_v10  ;;  %v13092_v4 = vpop.f32.mrf.mxu3 }
 0x359   :  { %v5209_v21 = vpop.f32.mrf.mxu1 }
 0x35a   :  { %v2458_v57 = vmax.f32 %v2206_v49, 0.0  ;;  %v5210_v50 = vadd.f32 %v5209_v21, %v5191_v0  ;;  %v11473_v49 = vld [vmem:[%s15713_s8 + $0x358] sm:$0xff]  ;;  %v11472_v21 = vld [vmem:[%s15713_s8 + $0x350] sm:$0xff] }
 0x35b   :  { %5356 = vmatpush.bf16.msra.mxu0 %v11473_v49 }
 0x35c   :  { %v2586_v18 = vpack.c.bf16 %v2458_v57, %v2458_v57  ;;  %9116 = vmatmul.msk.bf16.gmra.mxu2 %vm240_vm0, %v11333_v20 }
 0x35e   :  { %v2806_v27 = vunpack.c.l.b16 %v2586_v18 }
 0x35f   :  { %v2208_v28 = vpop.f32.mrf.mxu2  ;;  %5357 = vmatpush.bf16.msra.mxu0 %v11472_v21  ;;  %v11482_v21 = vld [vmem:[%s15713_s8 + $0x3a0] sm:$0xff] }
 0x360   :  { %v2809_v29 = vpack.c.b16 %v2806_v27, %v2805_v24  ;;  %v5228_v5 = vpop.f32.mrf.mxu3  ;;  %v2209_v3 = vadd.f32 %v13060_v34, %v2208_v28 }
 0x361   :  { %v5229_v2 = vadd.f32 %v5228_v5, %v5210_v50  ;;  %v13104_v0 = vpop.f32.mrf.mxu1  ;;  %v11335_v50 = vld [vmem:[%s15712_s1 + $0x108] sm:$0xff] }
 0x362   :  { %5322 = vmatmul.bf16.vlgmr.msra.gmra.mxu1 %v2809_v29  ;;  %v2459_v8 = vmax.f32 %v2209_v3, 0.0 }
 0x363   :  { %5358 = vmatpush.bf16.msra.mxu0 %v11471_v14 }
 0x364   :  { %v2587_v12 = vpack.c.bf16 %v2459_v8, %v2459_v8 }
 0x366   :  { %v2807_v59 = vunpack.c.l.b16 %v2587_v12 }
 0x367   :  { %v2210_v37 = vpop.f32.mrf.mxu2  ;;  %5359 = vmatpush.bf16.msra.mxu0 %v11470_v11 }
 0x368   :  { %v2211_v46 = vadd.f32 %v13060_v34, %v2210_v37  ;;  %v13114_v36 = vpop.f32.mrf.mxu3 }
 0x369   :  { %v5214_v54 = vpop.f32.mrf.mxu1 }
 0x36a   :  { %v2460_v55 = vmax.f32 %v2211_v46, 0.0  ;;  %v5215_v56 = vadd.f32 %v5214_v54, %v5196_v22  ;;  %v11485_v46 = vld [vmem:[%s15713_s8 + $0x3b8] sm:$0xff] }
 0x36b   :  { %5371 = vmatpush.bf16.msrb.mxu1 %v11485_v46 }
 0x36c   :  { %v2588_v58 = vpack.c.bf16 %v2460_v55, %v2460_v55  ;;  %9117 = vmatmul.msk.bf16.gmra.mxu2 %vm240_vm0, %v11334_v53  ;;  %v11484_v55 = vld [vmem:[%s15713_s8 + $0x3b0] sm:$0xff] }
 0x36e   :  { %v2808_v31 = vunpack.c.l.b16 %v2588_v58  ;;  %v11336_v58 = vld [vmem:[%s15712_s1 + $0x110] sm:$0xff] }
 0x36f   :  { %v2213_v25 = vpop.f32.mrf.mxu2  ;;  %5372 = vmatpush.bf16.msrb.mxu1 %v11484_v55 }
 0x370   :  { %v5233_v7 = vpop.f32.mrf.mxu3  ;;  %v2810_v42 = vpack.c.b16 %v2808_v31, %v2807_v59  ;;  %v2214_v10 = vadd.f32 %v13060_v34, %v2213_v25 }
 0x371   :  { %v5234_v44 = vadd.f32 %v5233_v7, %v5215_v56  ;;  %v13126_v22 = vpop.f32.mrf.mxu1  ;;  %v11483_v7 = vld [vmem:[%s15713_s8 + $0x3a8] sm:$0xff] }
 0x372   :  { %5327 = vmatmul.bf16.gmra.mxu1 %v2810_v42  ;;  %v2461_v20 = vmax.f32 %v2214_v10, 0.0 }
 0x373   :  { %5373 = vmatpush.bf16.msrb.mxu1 %v11483_v7 }
 0x374   :  { %v2589_v18 = vpack.c.bf16 %v2461_v20, %v2461_v20 }
 0x376   :  { %v2817_v5 = vunpack.c.l.b16 %v2589_v18 }
 0x377   :  { %v2215_v32 = vpop.f32.mrf.mxu2  ;;  %5374 = vmatpush.bf16.msrb.mxu1 %v11482_v21 }
 0x378   :  { %v2216_v57 = vadd.f32 %v13060_v34, %v2215_v32  ;;  %v13143_v29 = vpop.f32.mrf.mxu3 }
 0x379   :  { %v5247_v23 = vpop.f32.mrf.mxu1 }
 0x37a   :  { %v2462_v24 = vmax.f32 %v2216_v57, 0.0  ;;  %v5248_v27 = vadd.f32 %v5247_v23, %v5229_v2 }
 0x37c   :  { %v2590_v28 = vpack.c.bf16 %v2462_v24, %v2462_v24  ;;  %9118 = vmatmul.msk.bf16.gmra.mxu2 %vm240_vm0, %v11335_v50  ;;  %v11481_v50 = vld [vmem:[%s15713_s8 + $0x398] sm:$0xff] }
 0x37d   :  { %5375 = vmatpush.bf16.msrb.mxu1 %v11481_v50 }
 0x37e   :  { %v2818_v3 = vunpack.c.l.b16 %v2590_v28 }
 0x37f   :  { %v2218_v8 = vpop.f32.mrf.mxu2 }
 0x380   :  { %v2821_v51 = vpack.c.b16 %v2818_v3, %v2817_v5  ;;  %v2219_v37 = vadd.f32 %v13060_v34, %v2218_v8  ;;  %v11337_v3 = vld [vmem:[%s15712_s1 + $0x118] sm:$0xff] }
 0x381   :  { %v13148_v2 = vpop.f32.mrf.mxu1 }
 0x382   :  { %5341 = vmatmul.bf16.vlgmr.msrb.gmra.mxu3 %v2821_v51  ;;  %v2463_v54 = vmax.f32 %v2219_v37, 0.0  ;;  %v11479_v51 = vld [vmem:[%s15713_s8 + $0x388] sm:$0xff] }
 0x384   :  { %v2591_v31 = vpack.c.bf16 %v2463_v54, %v2463_v54  ;;  %v11478_v54 = vld [vmem:[%s15713_s8 + $0x380] sm:$0xff] }
 0x385   :  { %v5266_v53 = vpop.f32.mrf.mxu3 }
 0x386   :  { %v5267_v12 = vadd.f32 %v5266_v53, %v5248_v27  ;;  %v2819_v49 = vunpack.c.l.b16 %v2591_v31  ;;  %v11480_v27 = vld [vmem:[%s15713_s8 + $0x390] sm:$0xff]  ;;  %v11493_v31 = vld [vmem:[%s15713_s8 + $0x3f8] sm:$0xff] }
 0x387   :  { %v2220_v56 = vpop.f32.mrf.mxu2  ;;  %5376 = vmatpush.bf16.msrb.mxu1 %v11480_v27  ;;  %5390 = vmatpush.bf16.msra.mxu3 %v11493_v31 }
 0x388   :  { %v2221_v40 = vadd.f32 %v13060_v34, %v2220_v56 }
 0x389   :  { %v5252_v59 = vpop.f32.mrf.mxu1 }
 0x38a   :  { %v2464_v6 = vmax.f32 %v2221_v40, 0.0  ;;  %v5253_v25 = vadd.f32 %v5252_v59, %v5234_v44 }
 0x38b   :  { %5377 = vmatpush.bf16.msrb.mxu1 %v11479_v51  ;;  %v11488_v51 = vld [vmem:[%s15713_s8 + $0x3d0] sm:$0xff] }
 0x38c   :  { %v2592_v42 = vpack.c.bf16 %v2464_v6, %v2464_v6  ;;  %9119 = vmatmul.msk.bf16.gmra.mxu2 %vm240_vm0, %v11336_v58 }
 0x38d   :  { %v13165_v10 = vpop.f32.mrf.mxu3 }
 0x38e   :  { %v2820_v20 = vunpack.c.l.b16 %v2592_v42 }
 0x38f   :  { %v2223_v32 = vpop.f32.mrf.mxu2  ;;  %5378 = vmatpush.bf16.msrb.mxu1 %v11478_v54 }
 0x390   :  { %v2822_v57 = vpack.c.b16 %v2820_v20, %v2819_v49  ;;  %v2224_v44 = vadd.f32 %v13060_v34, %v2223_v32  ;;  %v11491_v32 = vld [vmem:[%s15713_s8 + $0x3e8] sm:$0xff] }
 0x391   :  { %v13177_v14 = vpop.f32.mrf.mxu1 }
 0x392   :  { %5346 = vmatmul.bf16.gmra.mxu3 %v2822_v57  ;;  %v2465_v18 = vmax.f32 %v2224_v44, 0.0 }
 0x394   :  { %v2593_v11 = vpack.c.bf16 %v2465_v18, %v2465_v18 }
 0x395   :  { %v5271_v23 = vpop.f32.mrf.mxu3 }
 0x396   :  { %v5272_v24 = vadd.f32 %v5271_v23, %v5253_v25  ;;  %v2829_v46 = vunpack.c.l.b16 %v2593_v11  ;;  %v11492_v25 = vld [vmem:[%s15713_s8 + $0x3f0] sm:$0xff]  ;;  %v11490_v23 = vld [vmem:[%s15713_s8 + $0x3e0] sm:$0xff]  ;;  %v11489_v11 = vld [vmem:[%s15713_s8 + $0x3d8] sm:$0xff] }
 0x397   :  { %v2225_v28 = vpop.f32.mrf.mxu2  ;;  %5391 = vmatpush.bf16.msra.mxu3 %v11492_v25 }
 0x398   :  { %v2226_v5 = vadd.f32 %v13060_v34, %v2225_v28 }
 0x39a   :  { %v2466_v8 = vmax.f32 %v2226_v5, 0.0 }
 0x39b   :  { %5392 = vmatpush.bf16.msra.mxu3 %v11491_v32 }
 0x39c   :  { %v2594_v37 = vpack.c.bf16 %v2466_v8, %v2466_v8  ;;  %9120 = vmatmul.msk.bf16.gmra.mxu2 %vm240_vm0, %v11337_v3 }
 0x39e   :  { %v2830_v53 = vunpack.c.l.b16 %v2594_v37 }
 0x39f   :  { %v2228_v55 = vpop.f32.mrf.mxu2  ;;  %v5285_v56 = vpop.f32.mrf.mxu1  ;;  %5393 = vmatpush.bf16.msra.mxu3 %v11490_v23  ;;  %v11340_v23 = vld [vmem:[%s15712_s1 + $0x130] sm:$0xff] }
 0x3a0   :  { %v2833_v40 = vpack.c.b16 %v2830_v53, %v2829_v46  ;;  %v5286_v58 = vadd.f32 %v5285_v56, %v5267_v12  ;;  %v2229_v59 = vadd.f32 %v13060_v34, %v2228_v55  ;;  %v11338_v12 = vld [vmem:[%s15712_s1 + $0x120] sm:$0xff]  ;;  %v11487_v55 = vld [vmem:[%s15713_s8 + $0x3c8] sm:$0xff] }
 0x3a2   :  { %5360 = vmatmul.bf16.vlgmr.msra.gmra.mxu0 %v2833_v40  ;;  %v2467_v6 = vmax.f32 %v2229_v59, 0.0  ;;  %v13225_v40 = vpop.f32.mrf.mxu3 }
 0x3a3   :  { %5394 = vmatpush.bf16.msra.mxu3 %v11489_v11 }
 0x3a4   :  { %v2595_v20 = vpack.c.bf16 %v2467_v6, %v2467_v6  ;;  %v11486_v6 = vld [vmem:[%s15713_s8 + $0x3c0] sm:$0xff] }
 0x3a6   :  { %v2831_v44 = vunpack.c.l.b16 %v2595_v20 }
 0x3a7   :  { %v2230_v7 = vpop.f32.mrf.mxu2  ;;  %v13197_v42 = vpop.f32.mrf.mxu1  ;;  %5395 = vmatpush.bf16.msra.mxu3 %v11488_v51  ;;  %v11498_v51 = vld [vmem:[%s15713_s8 + $0x420] sm:$0xff] }
 0x3a8   :  { %v2231_v49 = vadd.f32 %v13060_v34, %v2230_v7 }
 0x3aa   :  { %v2468_v21 = vmax.f32 %v2231_v49, 0.0 }
 0x3ab   :  { %5396 = vmatpush.bf16.msra.mxu3 %v11487_v55 }
 0x3ac   :  { %v2596_v57 = vpack.c.bf16 %v2468_v21, %v2468_v21  ;;  %9121 = vmatmul.msk.bf16.gmra.mxu2 %vm240_vm0, %v11338_v12  ;;  %v11501_v12 = vld [vmem:[%s15713_s8 + $0x438] sm:$0xff] }
 0x3ad   :  { %5409 = vmatpush.bf16.msrb.mxu0 %v11501_v12 }
 0x3ae   :  { %v2832_v50 = vunpack.c.l.b16 %v2596_v57  ;;  %v11500_v57 = vld [vmem:[%s15713_s8 + $0x430] sm:$0xff] }
 0x3af   :  { %v2233_v18 = vpop.f32.mrf.mxu2  ;;  %v5290_v27 = vpop.f32.mrf.mxu1  ;;  %5397 = vmatpush.bf16.msra.mxu3 %v11486_v6 }
 0x3b0   :  { %v5291_v28 = vadd.f32 %v5290_v27, %v5272_v24  ;;  %v2834_v5 = vpack.c.b16 %v2832_v50, %v2831_v44  ;;  %v2234_v3 = vadd.f32 %v13060_v34, %v2233_v18  ;;  %v11339_v24 = vld [vmem:[%s15712_s1 + $0x128] sm:$0xff] }
 0x3b1   :  { %5410 = vmatpush.bf16.msrb.mxu0 %v11500_v57 }
 0x3b2   :  { %5365 = vmatmul.bf16.gmra.mxu0 %v2834_v5  ;;  %v2469_v8 = vmax.f32 %v2234_v3, 0.0  ;;  %v11499_v5 = vld [vmem:[%s15713_s8 + $0x428] sm:$0xff] }
 0x3b4   :  { %v2597_v53 = vpack.c.bf16 %v2469_v8, %v2469_v8 }
 0x3b5   :  { %5411 = vmatpush.bf16.msrb.mxu0 %v11499_v5 }
 0x3b6   :  { %v2841_v59 = vunpack.c.l.b16 %v2597_v53  ;;  %v11497_v53 = vld [vmem:[%s15713_s8 + $0x418] sm:$0xff] }
 0x3b7   :  { %v2235_v37 = vpop.f32.mrf.mxu2 }
 0x3b8   :  { %v2236_v46 = vadd.f32 %v13060_v34, %v2235_v37 }
 0x3b9   :  { %5412 = vmatpush.bf16.msrb.mxu0 %v11498_v51 }
 0x3ba   :  { %v2470_v54 = vmax.f32 %v2236_v46, 0.0 }
 0x3bc   :  { %v2598_v56 = vpack.c.bf16 %v2470_v54, %v2470_v54  ;;  %9122 = vmatmul.msk.bf16.gmra.mxu2 %vm240_vm0, %v11339_v24 }
 0x3bd   :  { %5413 = vmatpush.bf16.msrb.mxu0 %v11497_v53 }
 0x3be   :  { %v2842_v31 = vunpack.c.l.b16 %v2598_v56 }
 0x3bf   :  { %v2238_v25 = vpop.f32.mrf.mxu2 }
 0x3c0   :  { %v2845_v7 = vpack.c.b16 %v2842_v31, %v2841_v59  ;;  %v2239_v49 = vadd.f32 %v13060_v34, %v2238_v25  ;;  %v11496_v59 = vld [vmem:[%s15713_s8 + $0x410] sm:$0xff]  ;;  %v13257_v31 = vpop.f32.mrf.mxu1 }
 0x3c1   :  { %5414 = vmatpush.bf16.msrb.mxu0 %v11496_v59 }
 0x3c2   :  { %5379 = vmatmul.bf16.vlgmr.msrb.gmra.mxu1 %v2845_v7  ;;  %v2471_v21 = vmax.f32 %v2239_v49, 0.0  ;;  %v11341_v7 = vld [vmem:[%s15712_s1 + $0x138] sm:$0xff] }
 0x3c4   :  { %v2599_v18 = vpack.c.bf16 %v2471_v21, %v2471_v21 }
 0x3c5   :  { %v5304_v20 = vpop.f32.mrf.mxu3 }
 0x3c6   :  { %v5305_v32 = vadd.f32 %v5304_v20, %v5286_v58  ;;  %v2843_v11 = vunpack.c.l.b16 %v2599_v18 }
 0x3c7   :  { %v2240_v44 = vpop.f32.mrf.mxu2 }
 0x3c8   :  { %v2241_v50 = vadd.f32 %v13060_v34, %v2240_v44  ;;  %v11494_v44 = vld [vmem:[%s15713_s8 + $0x400] sm:$0xff] }
 0x3ca   :  { %v2472_v27 = vmax.f32 %v2241_v50, 0.0 }
 0x3cc   :  { %v2600_v3 = vpack.c.bf16 %v2472_v27, %v2472_v27  ;;  %9123 = vmatmul.msk.bf16.gmra.mxu2 %vm240_vm0, %v11340_v23 }
 0x3cd   :  { %v13245_v58 = vpop.f32.mrf.mxu3 }
 0x3ce   :  { %v2844_v8 = vunpack.c.l.b16 %v2600_v3  ;;  %v11509_v3 = vld [vmem:[%s15713_s8 + $0x478] sm:$0xff] }
 0x3cf   :  { %v2243_v37 = vpop.f32.mrf.mxu2  ;;  %5428 = vmatpush.bf16.msra.mxu1 %v11509_v3  ;;  %v11503_v3 = vld [vmem:[%s15713_s8 + $0x448] sm:$0xff] }
 0x3d0   :  { %v2846_v46 = vpack.c.b16 %v2844_v8, %v2843_v11  ;;  %v2244_v24 = vadd.f32 %v13060_v34, %v2243_v37  ;;  %v11508_v8 = vld [vmem:[%s15713_s8 + $0x470] sm:$0xff] }
 0x3d2   :  { %5384 = vmatmul.bf16.gmra.mxu1 %v2846_v46  ;;  %v2473_v55 = vmax.f32 %v2244_v24, 0.0 }
 0x3d3   :  { %5429 = vmatpush.bf16.msra.mxu1 %v11508_v8 }
 0x3d4   :  { %v2601_v49 = vpack.c.bf16 %v2473_v55, %v2473_v55 }
 0x3d5   :  { %v5309_v54 = vpop.f32.mrf.mxu3 }
 0x3d6   :  { %v5310_v56 = vadd.f32 %v5309_v54, %v5291_v28  ;;  %v11495_v28 = vld [vmem:[%s15713_s8 + $0x408] sm:$0xff]  ;;  %v2853_v21 = vunpack.c.l.b16 %v2601_v49 }
 0x3d7   :  { %v2245_v6 = vpop.f32.mrf.mxu2  ;;  %5415 = vmatpush.bf16.msrb.mxu0 %v11495_v28  ;;  %v11507_v54 = vld [vmem:[%s15713_s8 + $0x468] sm:$0xff] }
 0x3d8   :  { %v2246_v25 = vadd.f32 %v13060_v34, %v2245_v6  ;;  %5430 = vmatpush.bf16.msra.mxu1 %v11507_v54 }
 0x3da   :  { %v2474_v12 = vmax.f32 %v2246_v25, 0.0  ;;  %v11506_v25 = vld [vmem:[%s15713_s8 + $0x460] sm:$0xff] }
 0x3db   :  { %5416 = vmatpush.bf16.msrb.mxu0 %v11494_v44  ;;  %v11504_v44 = vld [vmem:[%s15713_s8 + $0x450] sm:$0xff] }
 0x3dc   :  { %v2602_v20 = vpack.c.bf16 %v2474_v12, %v2474_v12  ;;  %9124 = vmatmul.msk.bf16.gmra.mxu2 %vm240_vm0, %v11341_v7  ;;  %5431 = vmatpush.bf16.msra.mxu1 %v11506_v25 }
 0x3dd   :  { %v13305_v8 = vpop.f32.mrf.mxu3 }
 0x3de   :  { %v2854_v57 = vunpack.c.l.b16 %v2602_v20 }
 0x3df   :  { %v2248_v50 = vpop.f32.mrf.mxu2  ;;  %v5323_v23 = vpop.f32.mrf.mxu1 }
 0x3e0   :  { %v2857_v18 = vpack.c.b16 %v2854_v57, %v2853_v21  ;;  %v5324_v27 = vadd.f32 %v5323_v23, %v5305_v32  ;;  %v2249_v5 = vadd.f32 %v13060_v34, %v2248_v50  ;;  %v11342_v32 = vld [vmem:[%s15712_s1 + $0x140] sm:$0xff]  ;;  %v11505_v21 = vld [vmem:[%s15713_s8 + $0x458] sm:$0xff] }
 0x3e1   :  { %5432 = vmatpush.bf16.msra.mxu1 %v11505_v21 }
 0x3e2   :  { %5398 = vmatmul.bf16.vlgmr.msra.gmra.mxu3 %v2857_v18  ;;  %v2475_v11 = vmax.f32 %v2249_v5, 0.0 }
 0x3e4   :  { %v2603_v24 = vpack.c.bf16 %v2475_v11, %v2475_v11 }
 0x3e5   :  { %5433 = vmatpush.bf16.msra.mxu1 %v11504_v44  ;;  %v11515_v44 = vld [vmem:[%s15713_s8 + $0x4a8] sm:$0xff] }
 0x3e6   :  { %v2855_v59 = vunpack.c.l.b16 %v2603_v24 }
 0x3e7   :  { %v2250_v51 = vpop.f32.mrf.mxu2  ;;  %v13277_v37 = vpop.f32.mrf.mxu1 }
 0x3e8   :  { %v2251_v46 = vadd.f32 %v13060_v34, %v2250_v51 }
 0x3e9   :  { %5434 = vmatpush.bf16.msra.mxu1 %v11503_v3 }
 0x3ea   :  { %v2476_v53 = vmax.f32 %v2251_v46, 0.0 }
 0x3ec   :  { %v2604_v55 = vpack.c.bf16 %v2476_v53, %v2476_v53  ;;  %9125 = vmatmul.msk.bf16.gmra.mxu2 %vm240_vm0, %v11342_v32  ;;  %v11502_v32 = vld [vmem:[%s15713_s8 + $0x440] sm:$0xff] }
 0x3ed   :  { %5435 = vmatpush.bf16.msra.mxu1 %v11502_v32 }
 0x3ee   :  { %v2856_v6 = vunpack.c.l.b16 %v2604_v55  ;;  %v11517_v55 = vld [vmem:[%s15713_s8 + $0x4b8] sm:$0xff] }
 0x3ef   :  { %v2253_v7 = vpop.f32.mrf.mxu2  ;;  %v5328_v49 = vpop.f32.mrf.mxu1  ;;  %5447 = vmatpush.bf16.msrb.mxu3 %v11517_v55 }
 0x3f0   :  { %v5329_v12 = vadd.f32 %v5328_v49, %v5310_v56  ;;  %v2858_v28 = vpack.c.b16 %v2856_v6, %v2855_v59  ;;  %v2254_v20 = vadd.f32 %v13060_v34, %v2253_v7  ;;  %v11343_v56 = vld [vmem:[%s15712_s1 + $0x148] sm:$0xff]  ;;  %v11516_v7 = vld [vmem:[%s15713_s8 + $0x4b0] sm:$0xff] }
 0x3f2   :  { %5403 = vmatmul.bf16.gmra.mxu3 %v2858_v28  ;;  %v2477_v57 = vmax.f32 %v2254_v20, 0.0  ;;  %v11344_v20 = vld [vmem:[%s15712_s1 + $0x150] sm:$0xff] }
 0x3f3   :  { %5448 = vmatpush.bf16.msrb.mxu3 %v11516_v7 }
 0x3f4   :  { %v2605_v18 = vpack.c.bf16 %v2477_v57, %v2477_v57 }
 0x3f6   :  { %v2865_v51 = vunpack.c.l.b16 %v2605_v18  ;;  %v11514_v18 = vld [vmem:[%s15713_s8 + $0x4a0] sm:$0xff] }
 0x3f7   :  { %v2255_v50 = vpop.f32.mrf.mxu2  ;;  %5449 = vmatpush.bf16.msrb.mxu3 %v11515_v44 }
 0x3f8   :  { %v2256_v23 = vadd.f32 %v13060_v34, %v2255_v50 }
 0x3fa   :  { %v2478_v5 = vmax.f32 %v2256_v23, 0.0 }
 0x3fb   :  { %5450 = vmatpush.bf16.msrb.mxu3 %v11514_v18  ;;  %v11525_v18 = vld [vmem:[%s15713_s8 + $0x4f8] sm:$0xff] }
 0x3fc   :  { %v2606_v11 = vpack.c.bf16 %v2478_v5, %v2478_v5  ;;  %9126 = vmatmul.msk.bf16.gmra.mxu2 %vm240_vm0, %v11343_v56  ;;  %5466 = vmatpush.bf16.msra.mxu0 %v11525_v18 }
 0x3fe   :  { %v2866_v46 = vunpack.c.l.b16 %v2606_v11 }
 0x3ff   :  { %v2258_v24 = vpop.f32.mrf.mxu2 }
 0x400   :  { %v2869_v53 = vpack.c.b16 %v2866_v46, %v2865_v51  ;;  %v2259_v54 = vadd.f32 %v13060_v34, %v2258_v24  ;;  %v11513_v51 = vld [vmem:[%s15713_s8 + $0x498] sm:$0xff] }
 0x401   :  { %5451 = vmatpush.bf16.msrb.mxu3 %v11513_v51 }
 0x402   :  { %5417 = vmatmul.bf16.vlgmr.msrb.gmra.mxu0 %v2869_v53  ;;  %v2479_v6 = vmax.f32 %v2259_v54, 0.0  ;;  %v11512_v53 = vld [vmem:[%s15713_s8 + $0x490] sm:$0xff] }
 0x404   :  { %v2607_v21 = vpack.c.bf16 %v2479_v6, %v2479_v6 }
 0x405   :  { %v5342_v59 = vpop.f32.mrf.mxu3  ;;  %5452 = vmatpush.bf16.msrb.mxu3 %v11512_v53 }
 0x406   :  { %v5343_v25 = vadd.f32 %v5342_v59, %v5324_v27  ;;  %v2867_v23 = vunpack.c.l.b16 %v2607_v21  ;;  %v11345_v59 = vld [vmem:[%s15712_s1 + $0x158] sm:$0xff]  ;;  %v11510_v21 = vld [vmem:[%s15713_s8 + $0x480] sm:$0xff] }
 0x407   :  { %v2260_v49 = vpop.f32.mrf.mxu2 }
 0x408   :  { %v2261_v28 = vadd.f32 %v13060_v34, %v2260_v49  ;;  %v11511_v49 = vld [vmem:[%s15713_s8 + $0x488] sm:$0xff] }
 0x409   :  { %5453 = vmatpush.bf16.msrb.mxu3 %v11511_v49 }
 0x40a   :  { %v2480_v57 = vmax.f32 %v2261_v28, 0.0 }
 0x40c   :  { %v2608_v50 = vpack.c.bf16 %v2480_v57, %v2480_v57  ;;  %9127 = vmatmul.msk.bf16.gmra.mxu2 %vm240_vm0, %v11344_v20 }
 0x40d   :  { %v13325_v27 = vpop.f32.mrf.mxu3  ;;  %5454 = vmatpush.bf16.msrb.mxu3 %v11510_v21 }
 0x40e   :  { %v2868_v56 = vunpack.c.l.b16 %v2608_v50 }
 0x40f   :  { %v2263_v5 = vpop.f32.mrf.mxu2 }
 0x410   :  { %v2870_v3 = vpack.c.b16 %v2868_v56, %v2867_v23  ;;  %v2264_v11 = vadd.f32 %v13060_v34, %v2263_v5 }
 0x412   :  { %5422 = vmatmul.bf16.gmra.mxu0 %v2870_v3  ;;  %v2481_v32 = vmax.f32 %v2264_v11, 0.0  ;;  %v11524_v3 = vld [vmem:[%s15713_s8 + $0x4f0] sm:$0xff] }
 0x413   :  { %5467 = vmatpush.bf16.msra.mxu0 %v11524_v3 }
 0x414   :  { %v2609_v6 = vpack.c.bf16 %v2481_v32, %v2481_v32 }
 0x415   :  { %v5347_v46 = vpop.f32.mrf.mxu3 }
 0x416   :  { %v5348_v24 = vadd.f32 %v5347_v46, %v5329_v12  ;;  %v2877_v12 = vunpack.c.l.b16 %v2609_v6 }
 0x417   :  { %v2265_v54 = vpop.f32.mrf.mxu2 }
 0x418   :  { %v2266_v55 = vadd.f32 %v13060_v34, %v2265_v54  ;;  %v11523_v54 = vld [vmem:[%s15713_s8 + $0x4e8] sm:$0xff] }
 0x419   :  { %5468 = vmatpush.bf16.msra.mxu0 %v11523_v54  ;;  %v11518_v54 = vld [vmem:[%s15713_s8 + $0x4c0] sm:$0xff] }
 0x41a   :  { %v2482_v7 = vmax.f32 %v2266_v55, 0.0 }
 0x41c   :  { %v2610_v28 = vpack.c.bf16 %v2482_v7, %v2482_v7  ;;  %9128 = vmatmul.msk.bf16.gmra.mxu2 %vm240_vm0, %v11345_v59  ;;  %v11522_v7 = vld [vmem:[%s15713_s8 + $0x4e0] sm:$0xff] }
 0x41d   :  { %5469 = vmatpush.bf16.msra.mxu0 %v11522_v7 }
 0x41e   :  { %v2878_v20 = vunpack.c.l.b16 %v2610_v28 }
 0x41f   :  { %v2268_v57 = vpop.f32.mrf.mxu2  ;;  %v5361_v44 = vpop.f32.mrf.mxu0 }
 0x420   :  { %v2881_v50 = vpack.c.b16 %v2878_v20, %v2877_v12  ;;  %v5362_v23 = vadd.f32 %v5361_v44, %v5343_v25  ;;  %v2269_v56 = vadd.f32 %v13060_v34, %v2268_v57  ;;  %v11346_v25 = vld [vmem:[%s15712_s1 + $0x160] sm:$0xff]  ;;  %v11521_v57 = vld [vmem:[%s15713_s8 + $0x4d8] sm:$0xff] }
 0x421   :  { %5470 = vmatpush.bf16.msra.mxu0 %v11521_v57 }
 0x422   :  { %5436 = vmatmul.bf16.vlgmr.msra.gmra.mxu1 %v2881_v50  ;;  %v2483_v5 = vmax.f32 %v2269_v56, 0.0  ;;  %v11520_v50 = vld [vmem:[%s15713_s8 + $0x4d0] sm:$0xff]  ;;  %v13375_v56 = vpop.f32.mrf.mxu1 }
 0x424   :  { %v2611_v32 = vpack.c.bf16 %v2483_v5, %v2483_v5  ;;  %v11347_v5 = vld [vmem:[%s15712_s1 + $0x168] sm:$0xff] }
 0x425   :  { %5471 = vmatpush.bf16.msra.mxu0 %v11520_v50 }
 0x426   :  { %v2879_v59 = vunpack.c.l.b16 %v2611_v32 }
 0x427   :  { %v2270_v11 = vpop.f32.mrf.mxu2  ;;  %v13355_v51 = vpop.f32.mrf.mxu0 }
 0x428   :  { %v2271_v46 = vadd.f32 %v13060_v34, %v2270_v11 }
 0x42a   :  { %v2484_v53 = vmax.f32 %v2271_v46, 0.0  ;;  %v11519_v46 = vld [vmem:[%s15713_s8 + $0x4c8] sm:$0xff] }
 0x42b   :  { %5472 = vmatpush.bf16.msra.mxu0 %v11519_v46 }
 0x42c   :  { %v2612_v55 = vpack.c.bf16 %v2484_v53, %v2484_v53  ;;  %9129 = vmatmul.msk.bf16.gmra.mxu2 %vm240_vm0, %v11346_v25 }
 0x42e   :  { %v2880_v6 = vunpack.c.l.b16 %v2612_v55 }
 0x42f   :  { %v2273_v49 = vpop.f32.mrf.mxu2  ;;  %v5366_v28 = vpop.f32.mrf.mxu0  ;;  %5473 = vmatpush.bf16.msra.mxu0 %v11518_v54 }
 0x430   :  { %v5367_v12 = vadd.f32 %v5366_v28, %v5348_v24  ;;  %v2882_v20 = vpack.c.b16 %v2880_v6, %v2879_v59  ;;  %v2274_v21 = vadd.f32 %v13060_v34, %v2273_v49  ;;  %v11533_v28 = vld [vmem:[%s15713_s8 + $0x538] sm:$0xff] }
 0x431   :  { %5485 = vmatpush.bf16.msrb.mxu1 %v11533_v28  ;;  %v11528_v28 = vld [vmem:[%s15713_s8 + $0x510] sm:$0xff] }
 0x432   :  { %5441 = vmatmul.bf16.gmra.mxu1 %v2882_v20  ;;  %v2485_v44 = vmax.f32 %v2274_v21, 0.0  ;;  %v11532_v21 = vld [vmem:[%s15713_s8 + $0x530] sm:$0xff] }
 0x434   :  { %v2613_v3 = vpack.c.bf16 %v2485_v44, %v2485_v44 }
 0x435   :  { %5486 = vmatpush.bf16.msrb.mxu1 %v11532_v21 }
 0x436   :  { %v2889_v32 = vunpack.c.l.b16 %v2613_v3 }
 0x437   :  { %v2275_v18 = vpop.f32.mrf.mxu2 }
 0x438   :  { %v2276_v24 = vadd.f32 %v13060_v34, %v2275_v18 }
 0x43a   :  { %v2486_v11 = vmax.f32 %v2276_v24, 0.0 }
 0x43c   :  { %v2614_v25 = vpack.c.bf16 %v2486_v11, %v2486_v11  ;;  %9130 = vmatmul.msk.bf16.gmra.mxu2 %vm240_vm0, %v11347_v5  ;;  %v11531_v5 = vld [vmem:[%s15713_s8 + $0x528] sm:$0xff] }
 0x43d   :  { %5487 = vmatpush.bf16.msrb.mxu1 %v11531_v5 }
 0x43e   :  { %v2890_v53 = vunpack.c.l.b16 %v2614_v25  ;;  %v11530_v25 = vld [vmem:[%s15713_s8 + $0x520] sm:$0xff] }
 0x43f   :  { %v2278_v55 = vpop.f32.mrf.mxu2  ;;  %v5380_v59 = vpop.f32.mrf.mxu1 }
 0x440   :  { %v2893_v6 = vpack.c.b16 %v2890_v53, %v2889_v32  ;;  %v5381_v7 = vadd.f32 %v5380_v59, %v5362_v23  ;;  %v2279_v49 = vadd.f32 %v13060_v34, %v2278_v55  ;;  %v11348_v23 = vld [vmem:[%s15712_s1 + $0x170] sm:$0xff] }
 0x441   :  { %5488 = vmatpush.bf16.msrb.mxu1 %v11530_v25 }
 0x442   :  { %5455 = vmatmul.bf16.vlgmr.msrb.gmra.mxu3 %v2893_v6  ;;  %v2487_v20 = vmax.f32 %v2279_v49, 0.0  ;;  %v11529_v6 = vld [vmem:[%s15713_s8 + $0x518] sm:$0xff] }
 0x444   :  { %v2615_v18 = vpack.c.bf16 %v2487_v20, %v2487_v20 }
 0x445   :  { %5489 = vmatpush.bf16.msrb.mxu1 %v11529_v6 }
 0x446   :  { %v2891_v11 = vunpack.c.l.b16 %v2615_v18 }
 0x447   :  { %v2280_v57 = vpop.f32.mrf.mxu2  ;;  %v13395_v44 = vpop.f32.mrf.mxu1 }
 0x448   :  { %v2281_v50 = vadd.f32 %v13060_v34, %v2280_v57 }
 0x449   :  { %5490 = vmatpush.bf16.msrb.mxu1 %v11528_v28 }
 0x44a   :  { %v2488_v24 = vmax.f32 %v2281_v50, 0.0 }
 0x44c   :  { %v2616_v3 = vpack.c.bf16 %v2488_v24, %v2488_v24  ;;  %9131 = vmatmul.msk.bf16.gmra.mxu2 %vm240_vm0, %v11348_v23  ;;  %v11527_v23 = vld [vmem:[%s15713_s8 + $0x508] sm:$0xff]  ;;  %v13423_v24 = vpop.f32.mrf.mxu3 }
 0x44d   :  { %5491 = vmatpush.bf16.msrb.mxu1 %v11527_v23 }
 0x44e   :  { %v2892_v46 = vunpack.c.l.b16 %v2616_v3 }
 0x44f   :  { %v2283_v32 = vpop.f32.mrf.mxu2  ;;  %v5385_v53 = vpop.f32.mrf.mxu1 }
 0x450   :  { %v5386_v54 = vadd.f32 %v5385_v53, %v5367_v12  ;;  %v2894_v55 = vpack.c.b16 %v2892_v46, %v2891_v11  ;;  %v2284_v59 = vadd.f32 %v13060_v34, %v2283_v32  ;;  %v11349_v12 = vld [vmem:[%s15712_s1 + $0x178] sm:$0xff]  ;;  %v11526_v11 = vld [vmem:[%s15713_s8 + $0x500] sm:$0xff] }
 0x451   :  { %5492 = vmatpush.bf16.msrb.mxu1 %v11526_v11  ;;  %v11541_v53 = vld [vmem:[%s15713_s8 + $0x578] sm:$0xff] }
 0x452   :  { %5460 = vmatmul.bf16.gmra.mxu3 %v2894_v55  ;;  %v2489_v49 = vmax.f32 %v2284_v59, 0.0 }
 0x453   :  { %5504 = vmatpush.bf16.msra.mxu3 %v11541_v53 }
 0x454   :  { %v2617_v57 = vpack.c.bf16 %v2489_v49, %v2489_v49  ;;  %v11540_v49 = vld [vmem:[%s15713_s8 + $0x570] sm:$0xff] }
 0x456   :  { %v2901_v5 = vunpack.c.l.b16 %v2617_v57 }
 0x457   :  { %v2285_v20 = vpop.f32.mrf.mxu2  ;;  %5505 = vmatpush.bf16.msra.mxu3 %v11540_v49  ;;  %v11536_v49 = vld [vmem:[%s15713_s8 + $0x550] sm:$0xff] }
 0x458   :  { %v2286_v21 = vadd.f32 %v13060_v34, %v2285_v20 }
 0x45a   :  { %v2490_v50 = vmax.f32 %v2286_v21, 0.0  ;;  %v11350_v21 = vld [vmem:[%s15712_s1 + $0x180] sm:$0xff] }
 0x45c   :  { %v2618_v18 = vpack.c.bf16 %v2490_v50, %v2490_v50  ;;  %9132 = vmatmul.msk.bf16.gmra.mxu2 %vm240_vm0, %v11349_v12  ;;  %v11539_v50 = vld [vmem:[%s15713_s8 + $0x568] sm:$0xff] }
 0x45d   :  { %5506 = vmatpush.bf16.msra.mxu3 %v11539_v50 }
 0x45e   :  { %v2902_v3 = vunpack.c.l.b16 %v2618_v18 }
 0x45f   :  { %v2288_v46 = vpop.f32.mrf.mxu2 }
 0x460   :  { %v2905_v25 = vpack.c.b16 %v2902_v3, %v2901_v5  ;;  %v2289_v32 = vadd.f32 %v13060_v34, %v2288_v46  ;;  %v11538_v3 = vld [vmem:[%s15713_s8 + $0x560] sm:$0xff] }
 0x461   :  { %5507 = vmatpush.bf16.msra.mxu3 %v11538_v3 }
 0x462   :  { %5474 = vmatmul.bf16.vlgmr.msra.gmra.mxu0 %v2905_v25  ;;  %v2491_v59 = vmax.f32 %v2289_v32, 0.0  ;;  %v11537_v32 = vld [vmem:[%s15713_s8 + $0x558] sm:$0xff] }
 0x464   :  { %v2619_v12 = vpack.c.bf16 %v2491_v59, %v2491_v59 }
 0x465   :  { %v5399_v55 = vpop.f32.mrf.mxu3  ;;  %5508 = vmatpush.bf16.msra.mxu3 %v11537_v32  ;;  %v13471_v32 = vld [vmem:[%s15708_s5] ss:$0 sm:$0xff] }
 0x466   :  { %v5400_v6 = vadd.f32 %v5399_v55, %v5381_v7  ;;  %v2903_v18 = vunpack.c.l.b16 %v2619_v12  ;;  %v11351_v12 = vld [vmem:[%s15712_s1 + $0x188] sm:$0xff] }
 0x467   :  { %v2290_v28 = vpop.f32.mrf.mxu2 }
 0x468   :  { %v2291_v20 = vadd.f32 %v13060_v34, %v2290_v28  ;;  %v13455_v28 = vpop.f32.mrf.mxu0 }
 0x469   :  { %5509 = vmatpush.bf16.msra.mxu3 %v11536_v49 }
 0x46a   :  { %v2492_v57 = vmax.f32 %v2291_v20, 0.0 }
 0x46c   :  { %v2620_v23 = vpack.c.bf16 %v2492_v57, %v2492_v57  ;;  %9133 = vmatmul.msk.bf16.gmra.mxu2 %vm240_vm0, %v11350_v21 }
 0x46d   :  { %v13443_v7 = vpop.f32.mrf.mxu3 }
 0x46e   :  { %v2904_v5 = vunpack.c.l.b16 %v2620_v23 }
 0x46f   :  { %v2293_v11 = vpop.f32.mrf.mxu2 }
 0x470   :  { %v2906_v46 = vpack.c.b16 %v2904_v5, %v2903_v18  ;;  %v2294_v25 = vadd.f32 %v13060_v34, %v2293_v11 }
 0x472   :  { %5479 = vmatmul.bf16.gmra.mxu0 %v2906_v46  ;;  %v2493_v55 = vmax.f32 %v2294_v25, 0.0 }
 0x474   :  { %v2621_v57 = vpack.c.bf16 %v2493_v55, %v2493_v55  ;;  %v11549_v55 = vld [vmem:[%s15713_s8 + $0x5b8] sm:$0xff] }
 0x475   :  { %v5404_v53 = vpop.f32.mrf.mxu3  ;;  %5523 = vmatpush.bf16.msrb.mxu0 %v11549_v55 }
 0x476   :  { %v5405_v59 = vadd.f32 %v5404_v53, %v5386_v54  ;;  %v11535_v54 = vld [vmem:[%s15713_s8 + $0x548] sm:$0xff]  ;;  %v2913_v18 = vunpack.c.l.b16 %v2621_v57  ;;  %v11352_v57 = vld [vmem:[%s15712_s1 + $0x190] sm:$0xff] }
 0x477   :  { %v2295_v20 = vpop.f32.mrf.mxu2  ;;  %5510 = vmatpush.bf16.msra.mxu3 %v11535_v54 }
 0x478   :  { %v2296_v21 = vadd.f32 %v13060_v34, %v2295_v20  ;;  %v11534_v34 = vld [vmem:[%s15713_s8 + $0x540] sm:$0xff]  ;;  %v11548_v20 = vld [vmem:[%s15713_s8 + $0x5b0] sm:$0xff] }
 0x479   :  { %5524 = vmatpush.bf16.msrb.mxu0 %v11548_v20  ;;  %v11545_v20 = vld [vmem:[%s15713_s8 + $0x598] sm:$0xff] }
 0x47a   :  { %v2494_v50 = vmax.f32 %v2296_v21, 0.0 }
 0x47b   :  { %5511 = vmatpush.bf16.msra.mxu3 %v11534_v34 }
 0x47c   :  { %v2622_v23 = vpack.c.bf16 %v2494_v50, %v2494_v50  ;;  %9134 = vmatmul.msk.bf16.gmra.mxu2 %vm240_vm0, %v11351_v12 }
 0x47e   :  { %v2914_v5 = vunpack.c.l.b16 %v2622_v23  ;;  %v11547_v23 = vld [vmem:[%s15713_s8 + $0x5a8] sm:$0xff] }
 0x47f   :  { %v2298_v3 = vpop.f32.mrf.mxu2  ;;  %v5418_v11 = vpop.f32.mrf.mxu0  ;;  %5525 = vmatpush.bf16.msrb.mxu0 %v11547_v23 }
 0x480   :  { %v2917_v46 = vpack.c.b16 %v2914_v5, %v2913_v18  ;;  %v5419_v25 = vadd.f32 %v5418_v11, %v5400_v6  ;;  %v2299_v53 = vadd.f32 %v13471_v32, %v2298_v3  ;;  %v11546_v3 = vld [vmem:[%s15713_s8 + $0x5a0] sm:$0xff] }
 0x482   :  { %5493 = vmatmul.bf16.vlgmr.msrb.gmra.mxu1 %v2917_v46  ;;  %v2495_v49 = vmax.f32 %v2299_v53, 0.0 }
 0x483   :  { %5526 = vmatpush.bf16.msrb.mxu0 %v11546_v3 }
 0x484   :  { %v2623_v50 = vpack.c.bf16 %v2495_v49, %v2495_v49 }
 0x486   :  { %v2915_v5 = vunpack.c.l.b16 %v2623_v50 }
 0x487   :  { %v2300_v6 = vpop.f32.mrf.mxu2  ;;  %v13480_v21 = vpop.f32.mrf.mxu0  ;;  %5527 = vmatpush.bf16.msrb.mxu0 %v11545_v20 }
 0x488   :  { %v2301_v12 = vadd.f32 %v13471_v32, %v2300_v6 }
 0x48a   :  { %v2496_v54 = vmax.f32 %v2301_v12, 0.0  ;;  %v11544_v12 = vld [vmem:[%s15713_s8 + $0x590] sm:$0xff] }
 0x48b   :  { %5528 = vmatpush.bf16.msrb.mxu0 %v11544_v12 }
 0x48c   :  { %v2624_v18 = vpack.c.bf16 %v2496_v54, %v2496_v54  ;;  %9135 = vmatmul.msk.bf16.gmra.mxu2 %vm240_vm0, %v11352_v57  ;;  %v13500_v57 = vpop.f32.mrf.mxu1  ;;  %v11353_v54 = vld [vmem:[%s15712_s1 + $0x198] sm:$0xff] }
 0x48d   :  { %15731 = vst [vmem:[#allocation5_spill] sm:$0xff] %v13500_v57 }
 0x48e   :  { %v2916_v34 = vunpack.c.l.b16 %v2624_v18 }
 0x48f   :  { %v2303_v11 = vpop.f32.mrf.mxu2  ;;  %v5423_v46 = vpop.f32.mrf.mxu0 }
 0x490   :  { %v5424_v53 = vadd.f32 %v5423_v46, %v5405_v59  ;;  %v2918_v55 = vpack.c.b16 %v2916_v34, %v2915_v5  ;;  %v2304_v49 = vadd.f32 %v13471_v32, %v2303_v11  ;;  %v11543_v5 = vld [vmem:[%s15713_s8 + $0x588] sm:$0xff]  ;;  %v11542_v46 = vld [vmem:[%s15713_s8 + $0x580] sm:$0xff] }
 0x491   :  { %5529 = vmatpush.bf16.msrb.mxu0 %v11543_v5 }
 0x492   :  { %5498 = vmatmul.bf16.gmra.mxu1 %v2918_v55  ;;  %v2497_v6 = vmax.f32 %v2304_v49, 0.0 }
 0x494   :  { %v2625_v23 = vpack.c.bf16 %v2497_v6, %v2497_v6 }
 0x495   :  { %5530 = vmatpush.bf16.msrb.mxu0 %v11542_v46 }
 0x496   :  { %v2925_v3 = vunpack.c.l.b16 %v2625_v23 }
 0x497   :  { %v2305_v50 = vpop.f32.mrf.mxu2 }
 0x498   :  { %v2306_v59 = vadd.f32 %v13471_v32, %v2305_v50  ;;  %v11557_v50 = vld [vmem:[%s15713_s8 + $0x5f8] sm:$0xff] }
 0x499   :  { %5542 = vmatpush.bf16.msra.mxu1 %v11557_v50 }
 0x49a   :  { %v2498_v18 = vmax.f32 %v2306_v59, 0.0 }
 0x49c   :  { %v2626_v34 = vpack.c.bf16 %v2498_v18, %v2498_v18  ;;  %9136 = vmatmul.msk.bf16.gmra.mxu2 %vm240_vm0, %v11353_v54  ;;  %v11556_v54 = vld [vmem:[%s15713_s8 + $0x5f0] sm:$0xff] }
 0x49d   :  { %5543 = vmatpush.bf16.msra.mxu1 %v11556_v54 }
 0x49e   :  { %v2926_v11 = vunpack.c.l.b16 %v2626_v34 }
 0x49f   :  { %v2308_v55 = vpop.f32.mrf.mxu2  ;;  %v5437_v49 = vpop.f32.mrf.mxu1 }
 0x4a0   :  { %v2929_v20 = vpack.c.b16 %v2926_v11, %v2925_v3  ;;  %v5438_v12 = vadd.f32 %v5437_v49, %v5419_v25  ;;  %v2309_v6 = vadd.f32 %v13471_v32, %v2308_v55  ;;  %v11354_v25 = vld [vmem:[%s15712_s1 + $0x1a0] sm:$0xff]  ;;  %v11555_v11 = vld [vmem:[%s15713_s8 + $0x5e8] sm:$0xff] }
 0x4a1   :  { %5544 = vmatpush.bf16.msra.mxu1 %v11555_v11 }
 0x4a2   :  { %5512 = vmatmul.bf16.vlgmr.msra.gmra.mxu3 %v2929_v20  ;;  %v2499_v59 = vmax.f32 %v2309_v6, 0.0  ;;  %v11554_v20 = vld [vmem:[%s15713_s8 + $0x5e0] sm:$0xff] }
 0x4a4   :  { %v2627_v34 = vpack.c.bf16 %v2499_v59, %v2499_v59 }
 0x4a5   :  { %5545 = vmatpush.bf16.msra.mxu1 %v11554_v20 }
 0x4a6   :  { %v2927_v55 = vunpack.c.l.b16 %v2627_v34  ;;  %v11552_v34 = vld [vmem:[%s15713_s8 + $0x5d0] sm:$0xff] }
 0x4a7   :  { %v2310_v23 = vpop.f32.mrf.mxu2  ;;  %v13520_v18 = vpop.f32.mrf.mxu1 }
 0x4a8   :  { %v2311_v5 = vadd.f32 %v13471_v32, %v2310_v23 }
 0x4aa   :  { %v2500_v3 = vmax.f32 %v2311_v5, 0.0  ;;  %v11553_v5 = vld [vmem:[%s15713_s8 + $0x5d8] sm:$0xff] }
 0x4ab   :  { %5546 = vmatpush.bf16.msra.mxu1 %v11553_v5 }
 0x4ac   :  { %v2628_v46 = vpack.c.bf16 %v2500_v3, %v2500_v3  ;;  %9137 = vmatmul.msk.bf16.gmra.mxu2 %vm240_vm0, %v11354_v25 }
 0x4ae   :  { %v2928_v49 = vunpack.c.l.b16 %v2628_v46 }
 0x4af   :  { %v2313_v6 = vpop.f32.mrf.mxu2  ;;  %v5442_v50 = vpop.f32.mrf.mxu1  ;;  %5547 = vmatpush.bf16.msra.mxu1 %v11552_v34 }
 0x4b0   :  { %v5443_v23 = vadd.f32 %v5442_v50, %v5424_v53  ;;  %v2930_v54 = vpack.c.b16 %v2928_v49, %v2927_v55  ;;  %v2314_v59 = vadd.f32 %v13471_v32, %v2313_v6  ;;  %v11355_v53 = vld [vmem:[%s15712_s1 + $0x1a8] sm:$0xff]  ;;  %v13548_v6 = vpop.f32.mrf.mxu3 }
 0x4b1   :  { %v11551_v49 = vld [vmem:[%s15713_s8 + $0x5c8] sm:$0xff]  ;;  %15732 = vst [vmem:[#allocation6_spill] sm:$0xff] %v13548_v6 }
 0x4b2   :  { %5517 = vmatmul.bf16.gmra.mxu3 %v2930_v54  ;;  %v2501_v25 = vmax.f32 %v2314_v59, 0.0  ;;  %v11550_v59 = vld [vmem:[%s15713_s8 + $0x5c0] sm:$0xff] }
 0x4b3   :  { %5548 = vmatpush.bf16.msra.mxu1 %v11551_v49 }
 0x4b4   :  { %v2629_v46 = vpack.c.bf16 %v2501_v25, %v2501_v25 }
 0x4b6   :  { %v2937_v50 = vunpack.c.l.b16 %v2629_v46  ;;  %v11564_v46 = vld [vmem:[%s15713_s8 + $0x630] sm:$0xff] }
 0x4b7   :  { %v2315_v3 = vpop.f32.mrf.mxu2  ;;  %5549 = vmatpush.bf16.msra.mxu1 %v11550_v59 }
 0x4b8   :  { %v2316_v11 = vadd.f32 %v13471_v32, %v2315_v3  ;;  %v11565_v3 = vld [vmem:[%s15713_s8 + $0x638] sm:$0xff] }
 0x4b9   :  { %5561 = vmatpush.bf16.msrb.mxu3 %v11565_v3 }
 0x4ba   :  { %v2502_v55 = vmax.f32 %v2316_v11, 0.0 }
 0x4bc   :  { %v2630_v20 = vpack.c.bf16 %v2502_v55, %v2502_v55  ;;  %9138 = vmatmul.msk.bf16.gmra.mxu2 %vm240_vm0, %v11355_v53 }
 0x4bd   :  { %5562 = vmatpush.bf16.msrb.mxu3 %v11564_v46 }
 0x4be   :  { %v2938_v54 = vunpack.c.l.b16 %v2630_v20 }
 0x4bf   :  { %v2318_v5 = vpop.f32.mrf.mxu2 }
 0x4c0   :  { %v2941_v34 = vpack.c.b16 %v2938_v54, %v2937_v50  ;;  %v2319_v25 = vadd.f32 %v13471_v32, %v2318_v5  ;;  %v11356_v50 = vld [vmem:[%s15712_s1 + $0x1b0] sm:$0xff]  ;;  %v11563_v5 = vld [vmem:[%s15713_s8 + $0x628] sm:$0xff] }
 0x4c1   :  { %5563 = vmatpush.bf16.msrb.mxu3 %v11563_v5 }
 0x4c2   :  { %5531 = vmatmul.bf16.vlgmr.msrb.gmra.mxu0 %v2941_v34  ;;  %v2503_v53 = vmax.f32 %v2319_v25, 0.0 }
 0x4c4   :  { %v2631_v54 = vpack.c.bf16 %v2503_v53, %v2503_v53 }
 0x4c5   :  { %v5456_v11 = vpop.f32.mrf.mxu3 }
 0x4c6   :  { %v5457_v55 = vadd.f32 %v5456_v11, %v5438_v12  ;;  %v2939_v25 = vunpack.c.l.b16 %v2631_v54  ;;  %v11562_v11 = vld [vmem:[%s15713_s8 + $0x620] sm:$0xff]  ;;  %v11560_v54 = vld [vmem:[%s15713_s8 + $0x610] sm:$0xff] }
 0x4c7   :  { %v2320_v49 = vpop.f32.mrf.mxu2  ;;  %5564 = vmatpush.bf16.msrb.mxu3 %v11562_v11 }
 0x4c8   :  { %v2321_v20 = vadd.f32 %v13471_v32, %v2320_v49 }
 0x4ca   :  { %v2504_v59 = vmax.f32 %v2321_v20, 0.0  ;;  %v11561_v20 = vld [vmem:[%s15713_s8 + $0x618] sm:$0xff] }
 0x4cb   :  { %5565 = vmatpush.bf16.msrb.mxu3 %v11561_v20 }
 0x4cc   :  { %v2632_v34 = vpack.c.bf16 %v2504_v59, %v2504_v59  ;;  %9139 = vmatmul.msk.bf16.gmra.mxu2 %vm240_vm0, %v11356_v50 }
 0x4cd   :  { %v13568_v12 = vpop.f32.mrf.mxu3 }
 0x4ce   :  { %v2940_v3 = vunpack.c.l.b16 %v2632_v34  ;;  %v13580_v34 = vpop.f32.mrf.mxu0 }
 0x4cf   :  { %v2323_v49 = vpop.f32.mrf.mxu2  ;;  %15733 = vst [vmem:[#allocation7_spill] sm:$0xff] %v13580_v34  ;;  %5566 = vmatpush.bf16.msrb.mxu3 %v11560_v54 }
 0x4d0   :  { %v2942_v46 = vpack.c.b16 %v2940_v3, %v2939_v25  ;;  %v2324_v53 = vadd.f32 %v13471_v32, %v2323_v49  ;;  %v11357_v3 = vld [vmem:[%s15712_s1 + $0x1b8] sm:$0xff] }
 0x4d2   :  { %5536 = vmatmul.bf16.gmra.mxu0 %v2942_v46  ;;  %v2505_v59 = vmax.f32 %v2324_v53, 0.0 }
 0x4d4   :  { %v2633_v11 = vpack.c.bf16 %v2505_v59, %v2505_v59 }
 0x4d5   :  { %v5461_v50 = vpop.f32.mrf.mxu3 }
 0x4d6   :  { %v5462_v5 = vadd.f32 %v5461_v50, %v5443_v23  ;;  %v11559_v23 = vld [vmem:[%s15713_s8 + $0x608] sm:$0xff]  ;;  %v2949_v53 = vunpack.c.l.b16 %v2633_v11  ;;  %v11572_v11 = vld [vmem:[%s15713_s8 + $0x670] sm:$0xff] }
 0x4d7   :  { %v2325_v19 = vpop.f32.mrf.mxu2  ;;  %5567 = vmatpush.bf16.msrb.mxu3 %v11559_v23 }
 0x4d8   :  { %v2326_v25 = vadd.f32 %v13471_v32, %v2325_v19  ;;  %v11558_v19 = vld [vmem:[%s15713_s8 + $0x600] sm:$0xff] }
 0x4da   :  { %v2506_v49 = vmax.f32 %v2326_v25, 0.0  ;;  %v11573_v25 = vld [vmem:[%s15713_s8 + $0x678] sm:$0xff] }
 0x4db   :  { %5568 = vmatpush.bf16.msrb.mxu3 %v11558_v19  ;;  %5580 = vmatpush.bf16.msra.mxu0 %v11573_v25 }
 0x4dc   :  { %v2634_v46 = vpack.c.bf16 %v2506_v49, %v2506_v49  ;;  %9140 = vmatmul.msk.bf16.gmra.mxu2 %vm240_vm0, %v11357_v3 }
 0x4de   :  { %v2950_v20 = vunpack.c.l.b16 %v2634_v46 }
 0x4df   :  { %v2328_v50 = vpop.f32.mrf.mxu2  ;;  %v5475_v47 = vpop.f32.mrf.mxu0  ;;  %5581 = vmatpush.bf16.msra.mxu0 %v11572_v11 }
 0x4e0   :  { %v2953_v34 = vpack.c.b16 %v2950_v20, %v2949_v53  ;;  %v5476_v54 = vadd.f32 %v5475_v47, %v5457_v55  ;;  %v2329_v59 = vadd.f32 %v13471_v32, %v2328_v50  ;;  %v11358_v47 = vld [vmem:[%s15712_s1 + $0x1c0] sm:$0xff]  ;;  %v11571_v53 = vld [vmem:[%s15713_s8 + $0x668] sm:$0xff] }
 0x4e2   :  { %5550 = vmatmul.bf16.vlgmr.msra.gmra.mxu1 %v2953_v34  ;;  %v2507_v3 = vmax.f32 %v2329_v59, 0.0  ;;  %v11570_v59 = vld [vmem:[%s15713_s8 + $0x660] sm:$0xff] }
 0x4e3   :  { %5582 = vmatpush.bf16.msra.mxu0 %v11571_v53 }
 0x4e4   :  { %v2635_v55 = vpack.c.bf16 %v2507_v3, %v2507_v3 }
 0x4e6   :  { %v2951_v19 = vunpack.c.l.b16 %v2635_v55  ;;  %v11568_v55 = vld [vmem:[%s15713_s8 + $0x650] sm:$0xff] }
 0x4e7   :  { %v2330_v49 = vpop.f32.mrf.mxu2  ;;  %v13600_v23 = vpop.f32.mrf.mxu0  ;;  %5583 = vmatpush.bf16.msra.mxu0 %v11570_v59  ;;  %v11567_v59 = vld [vmem:[%s15713_s8 + $0x648] sm:$0xff] }
 0x4e8   :  { %v2331_v46 = vadd.f32 %v13471_v32, %v2330_v49 }
 0x4ea   :  { %v2508_v34 = vmax.f32 %v2331_v46, 0.0  ;;  %v11569_v46 = vld [vmem:[%s15713_s8 + $0x658] sm:$0xff] }
 0x4eb   :  { %5584 = vmatpush.bf16.msra.mxu0 %v11569_v46 }
 0x4ec   :  { %v2636_v20 = vpack.c.bf16 %v2508_v34, %v2508_v34  ;;  %9141 = vmatmul.msk.bf16.gmra.mxu2 %vm240_vm0, %v11358_v47  ;;  %v13620_v34 = vpop.f32.mrf.mxu1 }
 0x4ed   :  { %15734 = vst [vmem:[#allocation8_spill] sm:$0xff] %v13620_v34 }
 0x4ee   :  { %v2952_v50 = vunpack.c.l.b16 %v2636_v20  ;;  %v11359_v20 = vld [vmem:[%s15712_s1 + $0x1c8] sm:$0xff] }
 0x4ef   :  { %v2333_v25 = vpop.f32.mrf.mxu2  ;;  %v5480_v49 = vpop.f32.mrf.mxu0  ;;  %5585 = vmatpush.bf16.msra.mxu0 %v11568_v55 }
 0x4f0   :  { %v5481_v6 = vadd.f32 %v5480_v49, %v5462_v5  ;;  %v2954_v11 = vpack.c.b16 %v2952_v50, %v2951_v19  ;;  %v2334_v3 = vadd.f32 %v13471_v32, %v2333_v25 }
 0x4f2   :  { %5555 = vmatmul.bf16.gmra.mxu1 %v2954_v11  ;;  %v2509_v47 = vmax.f32 %v2334_v3, 0.0  ;;  %v11566_v3 = vld [vmem:[%s15713_s8 + $0x640] sm:$0xff] }
 0x4f3   :  { %5586 = vmatpush.bf16.msra.mxu0 %v11567_v59 }
 0x4f4   :  { %v2637_v19 = vpack.c.bf16 %v2509_v47, %v2509_v47 }
 0x4f6   :  { %v2961_v49 = vunpack.c.l.b16 %v2637_v19  ;;  %v11580_v19 = vld [vmem:[%s15713_s8 + $0x6b0] sm:$0xff] }
 0x4f7   :  { %v2335_v53 = vpop.f32.mrf.mxu2  ;;  %5587 = vmatpush.bf16.msra.mxu0 %v11566_v3 }
 0x4f8   :  { %v2336_v5 = vadd.f32 %v13471_v32, %v2335_v53 }
 0x4fa   :  { %v2510_v50 = vmax.f32 %v2336_v5, 0.0  ;;  %v11581_v5 = vld [vmem:[%s15713_s8 + $0x6b8] sm:$0xff] }
 0x4fb   :  { %5599 = vmatpush.bf16.msrb.mxu1 %v11581_v5 }
 0x4fc   :  { %v2638_v25 = vpack.c.bf16 %v2510_v50, %v2510_v50  ;;  %9142 = vmatmul.msk.bf16.gmra.mxu2 %vm240_vm0, %v11359_v20 }
 0x4fe   :  { %v2962_v11 = vunpack.c.l.b16 %v2638_v25 }
 0x4ff   :  { %v2338_v46 = vpop.f32.mrf.mxu2  ;;  %v5494_v53 = vpop.f32.mrf.mxu1  ;;  %5600 = vmatpush.bf16.msrb.mxu1 %v11580_v19  ;;  %v11577_v19 = vld [vmem:[%s15713_s8 + $0x698] sm:$0xff] }
 0x500   :  { %v2965_v34 = vpack.c.b16 %v2962_v11, %v2961_v49  ;;  %v5495_v55 = vadd.f32 %v5494_v53, %v5476_v54  ;;  %v2339_v47 = vadd.f32 %v13471_v32, %v2338_v46  ;;  %v11578_v53 = vld [vmem:[%s15713_s8 + $0x6a0] sm:$0xff] }
 0x502   :  { %5569 = vmatmul.bf16.vlgmr.msrb.gmra.mxu3 %v2965_v34  ;;  %v2511_v20 = vmax.f32 %v2339_v47, 0.0  ;;  %v11579_v34 = vld [vmem:[%s15713_s8 + $0x6a8] sm:$0xff] }
 0x503   :  { %5601 = vmatpush.bf16.msrb.mxu1 %v11579_v34 }
 0x504   :  { %v2639_v54 = vpack.c.bf16 %v2511_v20, %v2511_v20 }
 0x506   :  { %v2963_v3 = vunpack.c.l.b16 %v2639_v54  ;;  %v11576_v54 = vld [vmem:[%s15713_s8 + $0x690] sm:$0xff] }
 0x507   :  { %v2340_v50 = vpop.f32.mrf.mxu2  ;;  %v13640_v59 = vpop.f32.mrf.mxu1  ;;  %5602 = vmatpush.bf16.msrb.mxu1 %v11578_v53 }
 0x508   :  { %v2341_v25 = vadd.f32 %v13471_v32, %v2340_v50  ;;  %v13662_v53 = vpop.f32.mrf.mxu3 }
 0x509   :  { %15735 = vst [vmem:[#allocation9_spill] sm:$0xff] %v13662_v53 }
 0x50a   :  { %v2512_v49 = vmax.f32 %v2341_v25, 0.0 }
 0x50b   :  { %5603 = vmatpush.bf16.msrb.mxu1 %v11577_v19 }
 0x50c   :  { %v2640_v11 = vpack.c.bf16 %v2512_v49, %v2512_v49 }
 0x50e   :  { %v2964_v46 = vunpack.c.l.b16 %v2640_v11 }
 0x50f   :  { %v2343_v47 = vpop.f32.mrf.mxu2  ;;  %v5499_v5 = vpop.f32.mrf.mxu1  ;;  %5604 = vmatpush.bf16.msrb.mxu1 %v11576_v54  ;;  %v11605_v54 = vld [vmem:[%s15713_s8 + $0x778] sm:$0xff] }
 0x510   :  { %v13649_v57 = vadd.f32 %v5499_v5, %v5481_v6  ;;  %v2966_v50 = vpack.c.b16 %v2964_v46, %v2963_v3  ;;  %v2344_v20 = vadd.f32 %v13471_v32, %v2343_v47  ;;  %v11575_v3 = vld [vmem:[%s15713_s8 + $0x688] sm:$0xff] }
 0x512   :  { %5574 = vmatmul.bf16.gmra.mxu3 %v2966_v50  ;;  %v2513_v25 = vmax.f32 %v2344_v20, 0.0  ;;  %v11574_v50 = vld [vmem:[%s15713_s8 + $0x680] sm:$0xff] }
 0x513   :  { %5605 = vmatpush.bf16.msrb.mxu1 %v11575_v3  ;;  %v11604_v3 = vld [vmem:[%s15713_s8 + $0x770] sm:$0xff] }
 0x514   :  { %v2641_v6 = vpack.c.bf16 %v2513_v25, %v2513_v25 }
 0x516   :  { %v2973_v47 = vunpack.c.l.b16 %v2641_v6 }
 0x517   :  { %v2345_v49 = vpop.f32.mrf.mxu2  ;;  %5606 = vmatpush.bf16.msrb.mxu1 %v11574_v50 }
 0x518   :  { %v2346_v34 = vadd.f32 %v13471_v32, %v2345_v49  ;;  %v11589_v49 = vld [vmem:[%s15713_s8 + $0x6f8] sm:$0xff] }
 0x519   :  { %5618 = vmatpush.bf16.msra.mxu3 %v11589_v49 }
 0x51a   :  { %v2514_v11 = vmax.f32 %v2346_v34, 0.0 }
 0x51b   :  { %5656 = vmatpush.bf16.msra.mxu1 %v11605_v54 }
 0x51c   :  { %v2642_v46 = vpack.c.bf16 %v2514_v11, %v2514_v11 }
 0x51e   :  { %v2974_v5 = vunpack.c.l.b16 %v2642_v46  ;;  %v11588_v46 = vld [vmem:[%s15713_s8 + $0x6f0] sm:$0xff] }
 0x51f   :  { %v2348_v20 = vpop.f32.mrf.mxu2  ;;  %5657 = vmatpush.bf16.msra.mxu1 %v11604_v3  ;;  %5619 = vmatpush.bf16.msra.mxu3 %v11588_v46  ;;  %v11586_v3 = vld [vmem:[%s15713_s8 + $0x6e0] sm:$0xff] }
 0x520   :  { %v2977_v19 = vpack.c.b16 %v2974_v5, %v2973_v47  ;;  %v2349_v25 = vadd.f32 %v13471_v32, %v2348_v20 }
 0x522   :  { %5588 = vmatmul.bf16.vlgmr.msra.gmra.mxu0 %v2977_v19  ;;  %v2515_v6 = vmax.f32 %v2349_v25, 0.0  ;;  %v11603_v19 = vld [vmem:[%s15713_s8 + $0x768] sm:$0xff] }
 0x523   :  { %5658 = vmatpush.bf16.msra.mxu1 %v11603_v19 }
 0x524   :  { %v2643_v50 = vpack.c.bf16 %v2515_v6, %v2515_v6  ;;  %v11602_v6 = vld [vmem:[%s15713_s8 + $0x760] sm:$0xff] }
 0x525   :  { %v5513_v34 = vpop.f32.mrf.mxu3 }
 0x526   :  { %v5514_v11 = vadd.f32 %v5513_v34, %v5495_v55  ;;  %v11587_v55 = vld [vmem:[%s15713_s8 + $0x6e8] sm:$0xff]  ;;  %v2975_v49 = vunpack.c.l.b16 %v2643_v50  ;;  %v11601_v50 = vld [vmem:[%s15713_s8 + $0x758] sm:$0xff] }
 0x527   :  { %v2350_v47 = vpop.f32.mrf.mxu2  ;;  %5620 = vmatpush.bf16.msra.mxu3 %v11587_v55  ;;  %5659 = vmatpush.bf16.msra.mxu1 %v11602_v6  ;;  %v13711_v6 = vpop.f32.mrf.mxu0 }
 0x528   :  { %v2351_v5 = vadd.f32 %v13471_v32, %v2350_v47  ;;  %15737 = vst [vmem:[#allocation11_spill] sm:$0xff] %v13711_v6 }
 0x52a   :  { %v2516_v20 = vmax.f32 %v2351_v5, 0.0 }
 0x52b   :  { %5621 = vmatpush.bf16.msra.mxu3 %v11586_v3  ;;  %5660 = vmatpush.bf16.msra.mxu1 %v11601_v50  ;;  %v11583_v50 = vld [vmem:[%s15713_s8 + $0x6c8] sm:$0xff] }
 0x52c   :  { %v2644_v25 = vpack.c.bf16 %v2516_v20, %v2516_v20  ;;  %v11585_v20 = vld [vmem:[%s15713_s8 + $0x6d8] sm:$0xff] }
 0x52d   :  { %v13687_v54 = vpop.f32.mrf.mxu3 }
 0x52e   :  { %15736 = vst [vmem:[#allocation10_spill] sm:$0xff] %v13687_v54  ;;  %v2976_v34 = vunpack.c.l.b16 %v2644_v25 }
 0x52f   :  { %v2353_v46 = vpop.f32.mrf.mxu2  ;;  %5622 = vmatpush.bf16.msra.mxu3 %v11585_v20 }
 0x530   :  { %v2978_v47 = vpack.c.b16 %v2976_v34, %v2975_v49  ;;  %v2354_v5 = vadd.f32 %v13471_v32, %v2353_v46  ;;  %v11600_v49 = vld [vmem:[%s15713_s8 + $0x750] sm:$0xff] }
 0x531   :  { %v11584_v34 = vld [vmem:[%s15713_s8 + $0x6d0] sm:$0xff]  ;;  %5661 = vmatpush.bf16.msra.mxu1 %v11600_v49  ;;  %v11598_v49 = vld [vmem:[%s15713_s8 + $0x740] sm:$0xff] }
 0x532   :  { %5593 = vmatmul.bf16.gmra.mxu0 %v2978_v47  ;;  %v2517_v55 = vmax.f32 %v2354_v5, 0.0 }
 0x533   :  { %5623 = vmatpush.bf16.msra.mxu3 %v11584_v34 }
 0x534   :  { %v2645_v47 = vpack.c.bf16 %v2517_v55, %v2517_v55  ;;  %v11582_v55 = vld [vmem:[%s15713_s8 + $0x6c0] sm:$0xff] }
 0x535   :  { %v5518_v19 = vpop.f32.mrf.mxu3 }
 0x536   :  { %v13703_v25 = vadd.f32 %v5518_v19, %v13649_v57  ;;  %v11599_v57 = vld [vmem:[%s15713_s8 + $0x748] sm:$0xff]  ;;  %v2985_v19 = vunpack.c.l.b16 %v2645_v47  ;;  %v11597_v47 = vld [vmem:[%s15713_s8 + $0x738] sm:$0xff] }
 0x537   :  { %v2355_v3 = vpop.f32.mrf.mxu2  ;;  %5662 = vmatpush.bf16.msra.mxu1 %v11599_v57  ;;  %5624 = vmatpush.bf16.msra.mxu3 %v11583_v50  ;;  %v11613_v57 = vld [vmem:[%s15713_s8 + $0x7b8] sm:$0xff]  ;;  %v11919_v50 = vld [vmem:[%s15728_s23 + $0x20] sm:$0xff] }
 0x538   :  { %v2356_v46 = vadd.f32 %v13471_v32, %v2355_v3  ;;  %5637 = vmatpush.bf16.msrb.mxu0 %v11597_v47  ;;  %v11611_v47 = vld [vmem:[%s15713_s8 + $0x7a8] sm:$0xff] }
 0x53a   :  { %v2518_v5 = vmax.f32 %v2356_v46, 0.0 }
 0x53b   :  { %5663 = vmatpush.bf16.msra.mxu1 %v11598_v49  ;;  %5625 = vmatpush.bf16.msra.mxu3 %v11582_v55  ;;  %v11920_v55 = vld [vmem:[%s15728_s23 + $0x18] sm:$0xff] }
 0x53c   :  { %v2646_v20 = vpack.c.bf16 %v2518_v5, %v2518_v5 }
 0x53e   :  { %v2986_v6 = vunpack.c.l.b16 %v2646_v20  ;;  %v11612_v20 = vld [vmem:[%s15713_s8 + $0x7b0] sm:$0xff] }
 0x53f   :  { %v2358_v34 = vpop.f32.mrf.mxu2  ;;  %v5532_v3 = vpop.f32.mrf.mxu0  ;;  %5675 = vmatpush.bf16.msrb.mxu3 %v11613_v57  ;;  %v11921_v57 = vld [vmem:[%s15728_s23 + $0x10] sm:$0xff] }
 0x540   :  { %v2989_v46 = vpack.c.b16 %v2986_v6, %v2985_v19  ;;  %v13726_v53 = vadd.f32 %v5532_v3, %v5514_v11  ;;  %v2359_v5 = vadd.f32 %v13471_v32, %v2358_v34  ;;  %v11596_v6 = vld [vmem:[%s15713_s8 + $0x730] sm:$0xff] }
 0x541   :  { %5638 = vmatpush.bf16.msrb.mxu0 %v11596_v6 }
 0x542   :  { %5607 = vmatmul.bf16.vlgmr.msrb.gmra.mxu1 %v2989_v46  ;;  %v2519_v11 = vmax.f32 %v2359_v5, 0.0  ;;  %v11595_v5 = vld [vmem:[%s15713_s8 + $0x728] sm:$0xff] }
 0x543   :  { %5836 = vmatpush.bf16.msrb.mxu1 %v11919_v50  ;;  %5676 = vmatpush.bf16.msrb.mxu3 %v11612_v20 }
 0x544   :  { %v2647_v3 = vpack.c.bf16 %v2519_v11, %v2519_v11  ;;  %v11594_v11 = vld [vmem:[%s15713_s8 + $0x720] sm:$0xff] }
 0x545   :  { %5639 = vmatpush.bf16.msrb.mxu0 %v11595_v5 }
 0x546   :  { %v2987_v6 = vunpack.c.l.b16 %v2647_v3  ;;  %v11922_v3 = vld [vmem:[%s15728_s23 + $0x8] sm:$0xff] }
 0x547   :  { %v2360_v19 = vpop.f32.mrf.mxu2  ;;  %v13744_v49 = vpop.f32.mrf.mxu0  ;;  %5837 = vmatpush.bf16.msrb.mxu1 %v11920_v55  ;;  %5677 = vmatpush.bf16.msrb.mxu3 %v11611_v47  ;;  %v2384_v55 = vadd.f32 %v13471_v32, %v12714_v9  ;;  %v11593_v9 = vld [vmem:[%s15713_s8 + $0x718] sm:$0xff] }
 0x548   :  { %15738 = vst [vmem:[#allocation12_spill] sm:$0xff] %v13744_v49  ;;  %v2361_v34 = vadd.f32 %v13471_v32, %v2360_v19  ;;  %v11610_v19 = vld [vmem:[%s15713_s8 + $0x7a0] sm:$0xff] }
 0x549   :  { %5640 = vmatpush.bf16.msrb.mxu0 %v11594_v11  ;;  %v2529_v49 = vmax.f32 %v2384_v55, 0.0  ;;  %v13791_v55 = vpop.f32.mrf.mxu1 }
 0x54a   :  { %v2520_v46 = vmax.f32 %v2361_v34, 0.0  ;;  %v2386_v34 = vadd.f32 %v13471_v32, %v12741_v63  ;;  %v11609_v63 = vld [vmem:[%s15713_s8 + $0x798] sm:$0xff]  ;;  %15739 = vst [vmem:[#allocation13_spill] sm:$0xff] %v13791_v55 }
 0x54b   :  { %5838 = vmatpush.bf16.msrb.mxu1 %v11921_v57  ;;  %5678 = vmatpush.bf16.msrb.mxu3 %v11610_v19  ;;  %v2657_v11 = vpack.c.bf16 %v2529_v49, %v2529_v49 }
 0x54c   :  { %v2648_v50 = vpack.c.bf16 %v2520_v46, %v2520_v46  ;;  %v2530_v54 = vmax.f32 %v2386_v34, 0.0 }
 0x54d   :  { %5641 = vmatpush.bf16.msrb.mxu0 %v11593_v9  ;;  %v11607_v9 = vld [vmem:[%s15713_s8 + $0x788] sm:$0xff] }
 0x54e   :  { %v2988_v20 = vunpack.c.l.b16 %v2648_v50  ;;  %v2658_v19 = vpack.c.bf16 %v2530_v54, %v2530_v54 }
 0x54f   :  { %v2363_v57 = vpop.f32.mrf.mxu2  ;;  %v5537_v46 = vpop.f32.mrf.mxu0  ;;  %5839 = vmatpush.bf16.msrb.mxu1 %v11922_v3  ;;  %5679 = vmatpush.bf16.msrb.mxu3 %v11609_v63  ;;  %v3021_v63 = vunpack.c.l.b16 %v2657_v11  ;;  %v2391_v11 = vadd.f32 %v13471_v32, %v12787_v61  ;;  %v11620_v61 = vld [vmem:[%s15713_s8 + $0x7f0] sm:$0xff] }
 0x550   :  { %v2364_v5 = vadd.f32 %v13471_v32, %v2363_v57  ;;  %v13774_v47 = vadd.f32 %v5537_v46, %v13703_v25  ;;  %v2990_v50 = vpack.c.b16 %v2988_v20, %v2987_v6  ;;  %v11923_v57 = vld [vmem:[%s15728_s23] sm:$0xff]  ;;  %v11592_v6 = vld [vmem:[%s15713_s8 + $0x710] sm:$0xff]  ;;  %v3022_v49 = vunpack.c.l.b16 %v2658_v19 }
 0x551   :  { %v11608_v20 = vld [vmem:[%s15713_s8 + $0x790] sm:$0xff]  ;;  %5642 = vmatpush.bf16.msrb.mxu0 %v11592_v6  ;;  %v11590_v6 = vld [vmem:[%s15713_s8 + $0x700] sm:$0xff] }
 0x552   :  { %5612 = vmatmul.bf16.gmra.mxu1 %v2990_v50  ;;  %v2521_v25 = vmax.f32 %v2364_v5, 0.0  ;;  %v11591_v50 = vld [vmem:[%s15713_s8 + $0x708] sm:$0xff] }
 0x553   :  { %5840 = vmatpush.bf16.msrb.mxu1 %v11923_v57  ;;  %5680 = vmatpush.bf16.msrb.mxu3 %v11608_v20  ;;  %v11606_v20 = vld [vmem:[%s15713_s8 + $0x780] sm:$0xff] }
 0x554   :  { %v2649_v46 = vpack.c.bf16 %v2521_v25, %v2521_v25 }
 0x555   :  { %5643 = vmatpush.bf16.msrb.mxu0 %v11591_v50 }
 0x556   :  { %v2997_v54 = vunpack.c.l.b16 %v2649_v46 }
 0x557   :  { %v2365_v34 = vpop.f32.mrf.mxu2  ;;  %5681 = vmatpush.bf16.msrb.mxu3 %v11607_v9 }
 0x558   :  { %v2366_v3 = vadd.f32 %v13471_v32, %v2365_v34  ;;  %v3025_v34 = vpack.c.b16 %v3022_v49, %v3021_v63  ;;  %v11621_v63 = vld [vmem:[%s15713_s8 + $0x7f8] sm:$0xff]  ;;  %v2532_v49 = vmax.f32 %v2391_v11, 0.0 }
 0x559   :  { %5644 = vmatpush.bf16.msrb.mxu0 %v11590_v6 }
 0x55a   :  { %v2522_v5 = vmax.f32 %v2366_v3, 0.0  ;;  %v2389_v3 = vadd.f32 %v13471_v32, %v12762_v43  ;;  %v2660_v6 = vpack.c.bf16 %v2532_v49, %v2532_v49  ;;  %v2394_v49 = vadd.f32 %v13471_v32, %v12812_v17 }
 0x55b   :  { %5682 = vmatpush.bf16.msrb.mxu3 %v11606_v20 }
 0x55c   :  { %v2650_v57 = vpack.c.bf16 %v2522_v5, %v2522_v5  ;;  %v2531_v43 = vmax.f32 %v2389_v3, 0.0  ;;  %v11619_v3 = vld [vmem:[%s15713_s8 + $0x7e8] sm:$0xff]  ;;  %v2533_v17 = vmax.f32 %v2394_v49, 0.0 }
 0x55d   :  { %5694 = vmatpush.bf16.msra.mxu0 %v11621_v63 }
 0x55e   :  { %v2998_v25 = vunpack.c.l.b16 %v2650_v57 }
 0x55f   :  { %v2368_v19 = vpop.f32.mrf.mxu2  ;;  %v5551_v46 = vpop.f32.mrf.mxu1 }
 0x560   :  { %v3001_v5 = vpack.c.b16 %v2998_v25, %v2997_v54  ;;  %v2369_v50 = vadd.f32 %v13471_v32, %v2368_v19  ;;  %v13812_v9 = vadd.f32 %v5551_v46, %v13726_v53  ;;  %v2659_v53 = vpack.c.bf16 %v2531_v43, %v2531_v43  ;;  %v11618_v43 = vld [vmem:[%s15713_s8 + $0x7e0] sm:$0xff] }
 0x561   :  { %5695 = vmatpush.bf16.msra.mxu0 %v11620_v61  ;;  %v3024_v46 = vunpack.c.l.b16 %v2660_v6 }
 0x562   :  { %5626 = vmatmul.bf16.vlgmr.msra.gmra.mxu3 %v3001_v5  ;;  %5664 = vmatmul.bf16.vlgmr.msra.gmra.mxu1 %v3025_v34  ;;  %v2523_v57 = vmax.f32 %v2369_v50, 0.0  ;;  %v3023_v11 = vunpack.c.l.b16 %v2659_v53 }
 0x564   :  { %v2651_v20 = vpack.c.bf16 %v2523_v57, %v2523_v57  ;;  %v2396_v57 = vadd.f32 %v13471_v32, %v12835_v30  ;;  %v11616_v30 = vld [vmem:[%s15713_s8 + $0x7d0] sm:$0xff] }
 0x565   :  { %5696 = vmatpush.bf16.msra.mxu0 %v11619_v3 }
 0x566   :  { %v2999_v5 = vunpack.c.l.b16 %v2651_v20  ;;  %v3026_v20 = vpack.c.b16 %v3024_v46, %v3023_v11  ;;  %v2534_v3 = vmax.f32 %v2396_v57, 0.0  ;;  %v11615_v46 = vld [vmem:[%s15713_s8 + $0x7c8] sm:$0xff] }
 0x567   :  { %v2370_v54 = vpop.f32.mrf.mxu2  ;;  %v13820_v25 = vpop.f32.mrf.mxu1 }
 0x568   :  { %v2371_v34 = vadd.f32 %v13471_v32, %v2370_v54 }
 0x569   :  { %5697 = vmatpush.bf16.msra.mxu0 %v11618_v43 }
 0x56a   :  { %v2524_v19 = vmax.f32 %v2371_v34, 0.0 }
 0x56c   :  { %v2652_v50 = vpack.c.bf16 %v2524_v19, %v2524_v19  ;;  %v11617_v19 = vld [vmem:[%s15713_s8 + $0x7d8] sm:$0xff] }
 0x56d   :  { %5698 = vmatpush.bf16.msra.mxu0 %v11617_v19 }
 0x56e   :  { %v3000_v63 = vunpack.c.l.b16 %v2652_v50 }
 0x56f   :  { %v2373_v61 = vpop.f32.mrf.mxu2  ;;  %v5556_v54 = vpop.f32.mrf.mxu1 }
 0x570   :  { %v2374_v34 = vadd.f32 %v13471_v32, %v2373_v61  ;;  %v13835_v53 = vadd.f32 %v5556_v54, %v13774_v47  ;;  %v3002_v6 = vpack.c.b16 %v3000_v63, %v2999_v5  ;;  %v2661_v61 = vpack.c.bf16 %v2533_v17, %v2533_v17 }
 0x571   :  { %v2662_v47 = vpack.c.bf16 %v2534_v3, %v2534_v3  ;;  %5699 = vmatpush.bf16.msra.mxu0 %v11616_v30  ;;  %v11622_v3 = vld [vmem:[%s15715_s2] sm:$0xff]  ;;  %v2401_v30 = vadd.f32 %v13471_v32, %v12882_v62 }
 0x572   :  { %5631 = vmatmul.bf16.gmra.mxu3 %v3002_v6  ;;  %5669 = vmatmul.bf16.gmra.mxu1 %v3026_v20  ;;  %v2525_v50 = vmax.f32 %v2374_v34, 0.0  ;;  %v3033_v43 = vunpack.c.l.b16 %v2661_v61  ;;  %v11614_v20 = vld [vmem:[%s15713_s8 + $0x7c0] sm:$0xff] }
 0x573   :  { %v3034_v49 = vunpack.c.l.b16 %v2662_v47 }
 0x574   :  { %v2653_v5 = vpack.c.bf16 %v2525_v50, %v2525_v50  ;;  %v2399_v50 = vadd.f32 %v13471_v32, %v12854_v39 }
 0x575   :  { %5700 = vmatpush.bf16.msra.mxu0 %v11615_v46  ;;  %v3037_v19 = vpack.c.b16 %v3034_v49, %v3033_v43 }
 0x576   :  { %v3009_v57 = vunpack.c.l.b16 %v2653_v5  ;;  %v2536_v5 = vmax.f32 %v2401_v30, 0.0 }
 0x577   :  { %v2375_v54 = vpop.f32.mrf.mxu2 }
 0x578   :  { %v2376_v11 = vadd.f32 %v13471_v32, %v2375_v54  ;;  %v2535_v54 = vmax.f32 %v2399_v50, 0.0  ;;  %v2664_v43 = vpack.c.bf16 %v2536_v5, %v2536_v5 }
 0x579   :  { %5701 = vmatpush.bf16.msra.mxu0 %v11614_v20  ;;  %v11623_v20 = vld [vmem:[%s15715_s2 + $0x8] sm:$0xff] }
 0x57a   :  { %v2526_v63 = vmax.f32 %v2376_v11, 0.0  ;;  %v3036_v62 = vunpack.c.l.b16 %v2664_v43 }
 0x57c   :  { %v2654_v34 = vpack.c.bf16 %v2526_v63, %v2526_v63  ;;  %v2663_v63 = vpack.c.bf16 %v2535_v54, %v2535_v54 }
 0x57e   :  { %v3010_v6 = vunpack.c.l.b16 %v2654_v34  ;;  %v3035_v55 = vunpack.c.l.b16 %v2663_v63  ;;  %v11624_v63 = vld [vmem:[%s15715_s2 + $0x10] sm:$0xff] }
 0x57f   :  { %v2378_v17 = vpop.f32.mrf.mxu2 }
 0x580   :  { %v3013_v61 = vpack.c.b16 %v3010_v6, %v3009_v57  ;;  %v2379_v47 = vadd.f32 %v13471_v32, %v2378_v17  ;;  %v3038_v30 = vpack.c.b16 %v3036_v62, %v3035_v55  ;;  %v2411_v55 = vadd.f32 %v13471_v32, %v12950_v16 }
 0x582   :  { %5645 = vmatmul.bf16.vlgmr.msrb.gmra.mxu0 %v3013_v61  ;;  %5683 = vmatmul.bf16.vlgmr.msrb.gmra.mxu3 %v3037_v19  ;;  %v2527_v11 = vmax.f32 %v2379_v47, 0.0  ;;  %v2404_v19 = vadd.f32 %v13471_v32, %v12901_v52 }
 0x583   :  { %10221 = vmatmul.msk.bf16.vlgmr.msrb.gmra.mxu1 %vm240_vm0, %v11622_v3  ;;  %v2406_v3 = vadd.f32 %v13471_v32, %v12923_v38  ;;  %v2409_v38 = vadd.f32 %v13471_v32, %v12938_v35  ;;  %v11625_v35 = vld [vmem:[%s15715_s2 + $0x18] sm:$0xff] }
 0x584   :  { %v2655_v49 = vpack.c.bf16 %v2527_v11, %v2527_v11  ;;  %v2537_v61 = vmax.f32 %v2404_v19, 0.0 }
 0x585   :  { %v2538_v47 = vmax.f32 %v2406_v3, 0.0  ;;  %v2539_v43 = vmax.f32 %v2409_v38, 0.0 }
 0x586   :  { %v3011_v57 = vunpack.c.l.b16 %v2655_v49  ;;  %v2665_v54 = vpack.c.bf16 %v2537_v61, %v2537_v61  ;;  %v2540_v49 = vmax.f32 %v2411_v55, 0.0 }
 0x587   :  { %v2380_v46 = vpop.f32.mrf.mxu2  ;;  %v2666_v5 = vpack.c.bf16 %v2538_v47, %v2538_v47  ;;  %v11626_v47 = vld [vmem:[%s15715_s2 + $0x20] sm:$0xff] }
 0x588   :  { %v2381_v39 = vadd.f32 %v13471_v32, %v2380_v46  ;;  %v3045_v11 = vunpack.c.l.b16 %v2665_v54  ;;  %v13884_v32 = vpop.f32.mrf.mxu1 }
 0x589   :  { %v3046_v46 = vunpack.c.l.b16 %v2666_v5 }
 0x58a   :  { %v2528_v34 = vmax.f32 %v2381_v39, 0.0  ;;  %v2667_v39 = vpack.c.bf16 %v2539_v43, %v2539_v43 }
 0x58b   :  { %v3049_v52 = vpack.c.b16 %v3046_v46, %v3045_v11 }
 0x58c   :  { %v2656_v6 = vpack.c.bf16 %v2528_v34, %v2528_v34  ;;  %v2668_v34 = vpack.c.bf16 %v2540_v49, %v2540_v49  ;;  %v3047_v62 = vunpack.c.l.b16 %v2667_v39  ;;  %v11627_v49 = vld [vmem:[%s15715_s2 + $0x28] sm:$0xff] }
 0x58e   :  { %v3012_v17 = vunpack.c.l.b16 %v2656_v6  ;;  %v13876_v6 = vpop.f32.mrf.mxu3 }
 0x590   :  { %v3014_v50 = vpack.c.b16 %v3012_v17, %v3011_v57  ;;  %v3048_v57 = vunpack.c.l.b16 %v2668_v34  ;;  %v13878_v17 = vpop.f32.mrf.mxu0 }
 0x592   :  { %5650 = vmatmul.bf16.gmra.mxu0 %v3014_v50  ;;  %5688 = vmatmul.bf16.gmra.mxu3 %v3038_v30 }
 0x593   :  { %10222 = vmatmul.msk.bf16.gmra.mxu1 %vm240_vm0, %v11623_v20  ;;  %v3050_v20 = vpack.c.b16 %v3048_v57, %v3047_v62  ;;  %v11641_v62 = vld [vmem:[%s15716_s10 + $0x38] sm:$0xff]  ;;  %v11640_v57 = vld [vmem:[%s15716_s10 + $0x30] sm:$0xff] }
 0x594   :  { %6410 = vmatpush.bf16.msra.mxu3 %v11641_v62 }
 0x596   :  { %v5570_v16 = vpop.f32.mrf.mxu3 }
 0x597   :  { %v5571_v3 = vadd.f32 %v5570_v16, %v13812_v9  ;;  %v11924_v9 = vld [vmem:[%s15714_s9] ss:$0 sm:$0xff] }
 0x598   :  { %6411 = vmatpush.bf16.msra.mxu3 %v11640_v57 }
 0x59e   :  { %v13887_v30 = vpop.f32.mrf.mxu3 }
 0x59f   :  { %v5589_v19 = vpop.f32.mrf.mxu0 }
 0x5a0   :  { %v5590_v50 = vadd.f32 %v5589_v19, %v5571_v3  ;;  %v11638_v3 = vld [vmem:[%s15716_s10 + $0x20] sm:$0xff] }
 0x5a2   :  { %5702 = vmatmul.bf16.vlgmr.msra.gmra.mxu0 %v3049_v52  ;;  %v5117_v52 = vadd.f32 %v11924_v9, %v12975_v48 }
 0x5a3   :  { %10223 = vmatmul.msk.bf16.gmra.mxu1 %vm240_vm0, %v11624_v63 }
 0x5a4   :  { %v5136_v39 = vadd.f32 %v13011_v15, %v5117_v52 }
 0x5a6   :  { %v5575_v46 = vpop.f32.mrf.mxu3  ;;  %v5155_v48 = vadd.f32 %v13021_v26, %v5136_v39  ;;  %v5122_v26 = vadd.f32 %v11924_v9, %v12998_v13 }
 0x5a7   :  { %v13894_v5 = vpop.f32.mrf.mxu0  ;;  %v5576_v38 = vadd.f32 %v5575_v46, %v13835_v53 }
 0x5a8   :  { %v5174_v53 = vadd.f32 %v13055_v33, %v5155_v48 }
 0x5aa   :  { %v5193_v15 = vadd.f32 %v13070_v60, %v5174_v53  ;;  %v11628_v60 = vld [vmem:[%s15715_s2 + $0x30] sm:$0xff] }
 0x5ac   :  { %v5212_v16 = vadd.f32 %v13104_v0, %v5193_v15  ;;  %v15740_v15 = vld [vmem:[#allocation10_spill] sm:$0xff] }
 0x5ae   :  { %v5231_v19 = vadd.f32 %v13114_v36, %v5212_v16  ;;  %v11637_v36 = vld [vmem:[%s15716_s10 + $0x18] sm:$0xff]  ;;  %v13946_v46 = vpop.f32.mrf.mxu3 }
 0x5af   :  { %v5594_v63 = vpop.f32.mrf.mxu0 }
 0x5b0   :  { %v5595_v55 = vadd.f32 %v5594_v63, %v5576_v38  ;;  %v5250_v33 = vadd.f32 %v13148_v2, %v5231_v19 }
 0x5b2   :  { %5707 = vmatmul.bf16.gmra.mxu0 %v3050_v20  ;;  %v11639_v20 = vld [vmem:[%s15716_s10 + $0x28] sm:$0xff]  ;;  %v5269_v0 = vadd.f32 %v13165_v10, %v5250_v33  ;;  %v15743_v33 = vld [vmem:[#allocation6_spill] sm:$0xff] }
 0x5b3   :  { %10224 = vmatmul.msk.bf16.gmra.mxu1 %vm240_vm0, %v11625_v35  ;;  %6412 = vmatpush.bf16.msra.mxu3 %v11639_v20  ;;  %v15741_v20 = vld [vmem:[#allocation5_spill] sm:$0xff] }
 0x5b4   :  { %v5288_v13 = vadd.f32 %v13197_v42, %v5269_v0  ;;  %v11636_v42 = vld [vmem:[%s15716_s10 + $0x10] sm:$0xff]  ;;  %v15744_v0 = vld [vmem:[#allocation7_spill] sm:$0xff] }
 0x5b7   :  { %6413 = vmatpush.bf16.msra.mxu3 %v11638_v3  ;;  %v13986_v48 = vpop.f32.mrf.mxu0 }
 0x5bb   :  { %6414 = vmatpush.bf16.msra.mxu3 %v11637_v36 }
 0x5bf   :  { %v5608_v61 = vpop.f32.mrf.mxu1  ;;  %6415 = vmatpush.bf16.msra.mxu3 %v11636_v42 }
 0x5c0   :  { %v13892_v54 = vadd.f32 %v5608_v61, %v5590_v50  ;;  %v5141_v61 = vadd.f32 %v13033_v1, %v5122_v26  ;;  %v15742_v26 = vld [vmem:[#allocation12_spill] sm:$0xff] }
 0x5c2   :  { %v5160_v2 = vadd.f32 %v13043_v45, %v5141_v61  ;;  %v11630_v61 = vld [vmem:[%s15715_s2 + $0x40] sm:$0xff] }
 0x5c3   :  { %10225 = vmatmul.msk.bf16.gmra.mxu1 %vm240_vm0, %v11626_v47  ;;  %v5307_v47 = vadd.f32 %v13245_v58, %v5288_v13 }
 0x5c4   :  { %v5179_v1 = vadd.f32 %v13082_v41, %v5160_v2  ;;  %v11635_v41 = vld [vmem:[%s15716_s10 + $0x8] sm:$0xff] }
 0x5c5   :  { %v5326_v10 = vadd.f32 %v13277_v37, %v5307_v47  ;;  %6416 = vmatpush.bf16.msra.mxu3 %v11635_v41 }
 0x5c6   :  { %v5198_v9 = vadd.f32 %v13092_v4, %v5179_v1 }
 0x5c7   :  { %v13897_v11 = vpop.f32.mrf.mxu1  ;;  %v5345_v52 = vadd.f32 %v13325_v27, %v5326_v10  ;;  %v15745_v10 = vld [vmem:[#allocation8_spill] sm:$0xff] }
 0x5c8   :  { %v5217_v45 = vadd.f32 %v13126_v22, %v5198_v9  ;;  %v11634_v22 = vld [vmem:[%s15716_s10] sm:$0xff] }
 0x5c9   :  { %v5364_v58 = vadd.f32 %v13355_v51, %v5345_v52  ;;  %v11629_v51 = vld [vmem:[%s15715_s2 + $0x38] sm:$0xff]  ;;  %6417 = vmatpush.bf16.msra.mxu3 %v11634_v22 }
 0x5ca   :  { %v5236_v37 = vadd.f32 %v13143_v29, %v5217_v45 }
 0x5cb   :  { %v5383_v38 = vadd.f32 %v13395_v44, %v5364_v58  ;;  %v14030_v58 = vld [vmem:[%s15708_s5] ss:$0 sm:$0xff] }
 0x5cd   :  { %v5402_v4 = vadd.f32 %v13443_v7, %v5383_v38  ;;  %v11649_v7 = vld [vmem:[%s15716_s10 + $0x78] sm:$0xff] }
 0x5ce   :  { %6429 = vmatpush.bf16.msrb.mxu0 %v11649_v7 }
 0x5cf   :  { %v5613_v43 = vpop.f32.mrf.mxu1  ;;  %v5421_v44 = vadd.f32 %v13480_v21, %v5402_v4 }
 0x5d0   :  { %v13908_v34 = vadd.f32 %v5613_v43, %v5595_v55  ;;  %v5255_v43 = vadd.f32 %v13177_v14, %v5236_v37  ;;  %v15746_v37 = vld [vmem:[#allocation9_spill] sm:$0xff] }
 0x5d1   :  { %v5440_v14 = vadd.f32 %v13520_v18, %v5421_v44 }
 0x5d2   :  { %v5274_v29 = vadd.f32 %v13225_v40, %v5255_v43  ;;  %v15747_v43 = vld [vmem:[#allocation11_spill] sm:$0xff] }
 0x5d3   :  { %10226 = vmatmul.msk.bf16.gmra.mxu1 %vm240_vm0, %v11627_v49  ;;  %v5459_v62 = vadd.f32 %v13568_v12, %v5440_v14 }
 0x5d4   :  { %v5293_v49 = vadd.f32 %v13257_v31, %v5274_v29  ;;  %v11648_v31 = vld [vmem:[%s15716_s10 + $0x70] sm:$0xff] }
 0x5d5   :  { %v5478_v21 = vadd.f32 %v13600_v23, %v5459_v62  ;;  %6430 = vmatpush.bf16.msrb.mxu0 %v11648_v31  ;;  %v11647_v23 = vld [vmem:[%s15716_s10 + $0x68] sm:$0xff] }
 0x5d6   :  { %v5312_v39 = vadd.f32 %v13305_v8, %v5293_v49  ;;  %v15748_v49 = vld [vmem:[#allocation13_spill] sm:$0xff] }
 0x5d7   :  { %v13919_v35 = vpop.f32.mrf.mxu1  ;;  %v5497_v8 = vadd.f32 %v13640_v59, %v5478_v21  ;;  %v11727_v21 = vld [vmem:[%s15717_s12 + $0x164] sm:$0xf0] }
 0x5d8   :  { %v5331_v40 = vadd.f32 %v13375_v56, %v5312_v39 }
 0x5d9   :  { %v5516_v56 = vadd.f32 %v15740_v15, %v5497_v8  ;;  %6431 = vmatpush.bf16.msrb.mxu0 %v11647_v23 }
 0x5da   :  { %v5350_v57 = vadd.f32 %v13423_v24, %v5331_v40  ;;  %v10595_v40 = vld [vmem:[%s15717_s12 + $0x148] sm:$0xf] }
 0x5db   :  { %v5535_v19 = vadd.f32 %v15742_v26, %v5516_v56  ;;  %v10596_v8 = vor.u32 %v11727_v21, %v10595_v40  ;;  %v11739_v21 = vld [vmem:[%s15717_s12 + $0x1cc] sm:$0xf] }
 0x5dc   :  { %v5369_v12 = vadd.f32 %v13455_v28, %v5350_v57  ;;  %v11646_v28 = vld [vmem:[%s15716_s10 + $0x60] sm:$0xff]  ;;  %v11643_v57 = vld [vmem:[%s15716_s10 + $0x48] sm:$0xff] }
 0x5dd   :  { %v5554_v24 = vadd.f32 %v13820_v25, %v5535_v19  ;;  %6432 = vmatpush.bf16.msrb.mxu0 %v11646_v28  ;;  %v10659_v25 = vld [vmem:[%s15717_s12 + $0x1c8] sm:$0xf]  ;;  %v11642_v19 = vld [vmem:[%s15716_s10 + $0x40] sm:$0xff] }
 0x5de   :  { %v5388_v16 = vadd.f32 %v15741_v20, %v5369_v12 }
 0x5df   :  { %v13932_v50 = vpop.f32.mrf.mxu1  ;;  %v5573_v36 = vadd.f32 %v13887_v30, %v5554_v24  ;;  %v11645_v30 = vld [vmem:[%s15716_s10 + $0x58] sm:$0xff] }
 0x5e0   :  { %v5407_v3 = vadd.f32 %v15743_v33, %v5388_v16 }
 0x5e1   :  { %v5592_v9 = vadd.f32 %v13894_v5, %v5573_v36  ;;  %6433 = vmatpush.bf16.msrb.mxu0 %v11645_v30 }
 0x5e2   :  { %v5426_v13 = vadd.f32 %v15744_v0, %v5407_v3  ;;  %v11711_v0 = vld [vmem:[%s15717_s12 + $0xe4] sm:$0xf0] }
 0x5e3   :  { %10227 = vmatmul.msk.bf16.gmra.mxu1 %vm240_vm0, %v11628_v60  ;;  %v5611_v5 = vadd.f32 %v13897_v11, %v5592_v9 }
 0x5e4   :  { %v5445_v42 = vadd.f32 %v15745_v10, %v5426_v13  ;;  %v11656_v10 = vld [vmem:[%s15716_s10 + $0xb0] sm:$0xff] }
 0x5e5   :  { %v5627_v55 = vpop.f32.mrf.mxu3 }
 0x5e6   :  { %v5628_v59 = vadd.f32 %v5627_v55, %v13892_v54  ;;  %v11743_v54 = vld [vmem:[%s15717_s12 + $0x1e4] sm:$0xf0]  ;;  %v5464_v38 = vadd.f32 %v15746_v37, %v5445_v42 }
 0x5e7   :  { %v13953_v63 = vpop.f32.mrf.mxu1  ;;  %v10660_v45 = vor.u32 %v11743_v54, %v10659_v25  ;;  %v11735_v55 = vld [vmem:[%s15717_s12 + $0x1a4] sm:$0xf0] }
 0x5e8   :  { %v5483_v4 = vadd.f32 %v15747_v43, %v5464_v38  ;;  %v10467_v37 = vld [vmem:[%s15717_s12 + $0x48] sm:$0xf] }
 0x5e9   :  { %7814 = vmatpush.bf16.msra.mxu1 %v10660_v45  ;;  %v11695_v38 = vld [vmem:[%s15717_s12 + $0x64] sm:$0xf0] }
 0x5ea   :  { %v5502_v14 = vadd.f32 %v15748_v49, %v5483_v4 }
 0x5ec   :  { %v5521_v31 = vadd.f32 %v13876_v6, %v5502_v14  ;;  %v10563_v6 = vld [vmem:[%s15717_s12 + $0x108] sm:$0xf] }
 0x5ed   :  { %v5629_v18 = vpop.f32.mrf.mxu3 }
 0x5ee   :  { %v5630_v22 = vadd.f32 %v5629_v18, %v5611_v5  ;;  %v5540_v23 = vadd.f32 %v13878_v17, %v5521_v31  ;;  %v10661_v31 = vld [vmem:[%s15717_s12 + $0x1e8] sm:$0xf0] }
 0x5ef   :  { %v13969_v27 = vpop.f32.mrf.mxu1 }
 0x5f0   :  { %v5559_v16 = vadd.f32 %v13884_v32, %v5540_v23 }
 0x5f2   :  { %v5578_v28 = vadd.f32 %v13946_v46, %v5559_v16  ;;  %v11657_v46 = vld [vmem:[%s15716_s10 + $0xb8] sm:$0xff] }
 0x5f3   :  { %10228 = vmatmul.msk.bf16.gmra.mxu1 %vm240_vm0, %v11629_v51  ;;  %v11644_v51 = vld [vmem:[%s15716_s10 + $0x50] sm:$0xff]  ;;  %6448 = vmatpush.bf16.msrb.mxu3 %v11657_v46  ;;  %v11650_v46 = vld [vmem:[%s15716_s10 + $0x80] sm:$0xff] }
 0x5f4   :  { %6434 = vmatpush.bf16.msrb.mxu0 %v11644_v51  ;;  %v5597_v13 = vadd.f32 %v13986_v48, %v5578_v28  ;;  %v11703_v48 = vld [vmem:[%s15717_s12 + $0xa4] sm:$0xf0] }
 0x5f5   :  { %v5632_v1 = vpop.f32.mrf.mxu3  ;;  %v10435_v51 = vld [vmem:[%s15717_s12 + $0x8] sm:$0xf] }
 0x5f6   :  { %v5633_v26 = vadd.f32 %v5632_v1, %v13908_v34  ;;  %v10531_v34 = vld [vmem:[%s15717_s12 + $0xc8] sm:$0xf]  ;;  %v5616_v1 = vadd.f32 %v13919_v35, %v5597_v13  ;;  %v10565_v13 = vld [vmem:[%s15717_s12 + $0x128] sm:$0xf0] }
 0x5f7   :  { %v13991_v53 = vpop.f32.mrf.mxu1  ;;  %6449 = vmatpush.bf16.msrb.mxu3 %v11656_v10  ;;  %v11651_v28 = vld [vmem:[%s15716_s10 + $0x88] sm:$0xff] }
 0x5f8   :  { %6435 = vmatpush.bf16.msrb.mxu0 %v11643_v57  ;;  %v11653_v57 = vld [vmem:[%s15716_s10 + $0x98] sm:$0xff]  ;;  %v11707_v10 = vld [vmem:[%s15717_s12 + $0xcc] sm:$0xf] }
 0x5fc   :  { %6436 = vmatpush.bf16.msrb.mxu0 %v11642_v19 }
 0x5fd   :  { %v5634_v12 = vpop.f32.mrf.mxu3 }
 0x5fe   :  { %v5635_v54 = vadd.f32 %v5634_v12, %v5616_v1 }
 0x5ff   :  { %v5646_v60 = vpop.f32.mrf.mxu0 }
 0x600   :  { %v5647_v2 = vadd.f32 %v5646_v60, %v5628_v59  ;;  %v5842_v47 = vpop.f32.mrf.mxu1  ;;  %v11631_v59 = vld [vmem:[%s15715_s2 + $0x48] sm:$0xff] }
 0x601   :  { %v5843_v41 = vadd.f32 %v14030_v58, %v5842_v47 }
 0x602   :  { %v14022_v52 = vadd.f32 %v13932_v50, %v5647_v2  ;;  %v10627_v50 = vld [vmem:[%s15717_s12 + $0x188] sm:$0xf]  ;;  %v10532_v2 = vor.u32 %v11711_v0, %v10531_v34  ;;  %v11715_v0 = vld [vmem:[%s15717_s12 + $0x10c] sm:$0xf] }
 0x603   :  { %10229 = vmatmul.msk.bf16.gmra.mxu1 %vm240_vm0, %v11630_v61  ;;  %v10628_v29 = vor.u32 %v11735_v55, %v10627_v50  ;;  %v5902_v44 = vmax.f32 %v5843_v41, 0.0  ;;  %v11655_v50 = vld [vmem:[%s15716_s10 + $0xa8] sm:$0xff]  ;;  %v10468_v55 = vor.u32 %v11695_v38, %v10467_v37 }
 0x604   :  { %6450 = vmatpush.bf16.msrb.mxu3 %v11655_v50  ;;  %v10501_v37 = vld [vmem:[%s15717_s12 + $0xa8] sm:$0xf0] }
 0x605   :  { %7815 = vmatpush.bf16.msra.mxu1 %v10628_v29  ;;  %v5926_v15 = vpack.c.bf16 %v5902_v44, %v5902_v44  ;;  %v5684_v25 = vpop.f32.mrf.mxu3  ;;  %v11687_v29 = vld [vmem:[%s15717_s12 + $0x24] sm:$0xf0] }
 0x606   :  { %v10436_v44 = vor.u32 %v11687_v29, %v10435_v51  ;;  %v5685_v23 = vadd.f32 %v5684_v25, %v14022_v52  ;;  %v11723_v52 = vld [vmem:[%s15717_s12 + $0x14c] sm:$0xf] }
 0x607   :  { %v5648_v11 = vpop.f32.mrf.mxu0  ;;  %v5954_v33 = vunpack.c.l.b16 %v5926_v15  ;;  %v11731_v15 = vld [vmem:[%s15717_s12 + $0x18c] sm:$0xf] }
 0x608   :  { %v5649_v7 = vadd.f32 %v5648_v11, %v5630_v22  ;;  %v5844_v39 = vpop.f32.mrf.mxu1 }
 0x609   :  { %v5845_v62 = vadd.f32 %v14030_v58, %v5844_v39  ;;  %7816 = vmatpush.bf16.msra.mxu1 %v10596_v8  ;;  %v11632_v39 = vld [vmem:[%s15715_s2 + $0x50] sm:$0xff]  ;;  %v10664_v8 = vor.u32 %v11739_v21, %v10661_v31  ;;  %v10437_v21 = vld [vmem:[%s15717_s12 + $0x28] sm:$0xf0]  ;;  %v11662_v31 = vld [vmem:[%s15716_s10 + $0xe0] sm:$0xff] }
 0x60a   :  { %v14056_v18 = vadd.f32 %v13953_v63, %v5649_v7  ;;  %v11719_v63 = vld [vmem:[%s15717_s12 + $0x124] sm:$0xf0] }
 0x60b   :  { %v5903_v56 = vmax.f32 %v5845_v62, 0.0  ;;  %v10564_v17 = vor.u32 %v11719_v63, %v10563_v6  ;;  %v11652_v6 = vld [vmem:[%s15716_s10 + $0x90] sm:$0xff] }
 0x60d   :  { %v5927_v20 = vpack.c.bf16 %v5903_v56, %v5903_v56  ;;  %7817 = vmatpush.bf16.msra.mxu1 %v10564_v17  ;;  %v5686_v11 = vpop.f32.mrf.mxu3  ;;  %v10629_v56 = vld [vmem:[%s15717_s12 + $0x1a8] sm:$0xf0] }
 0x60e   :  { %v10632_v63 = vor.u32 %v11731_v15, %v10629_v56 }
 0x60f   :  { %v5955_v3 = vunpack.c.l.b16 %v5927_v20  ;;  %v5651_v24 = vpop.f32.mrf.mxu0  ;;  %v5687_v20 = vadd.f32 %v5686_v11, %v14056_v18  ;;  %v10597_v18 = vld [vmem:[%s15717_s12 + $0x168] sm:$0xf0] }
 0x610   :  { %v5652_v60 = vadd.f32 %v5651_v24, %v5633_v26  ;;  %v5847_v61 = vpop.f32.mrf.mxu1 }
 0x611   :  { %v5958_v32 = vpack.c.b16 %v5955_v3, %v5954_v33  ;;  %v5848_v47 = vadd.f32 %v14030_v58, %v5847_v61  ;;  %7818 = vmatpush.bf16.msra.mxu1 %v10532_v2  ;;  %v10568_v2 = vor.u32 %v11715_v0, %v10565_v13 }
 0x612   :  { %v14085_v36 = vadd.f32 %v13969_v27, %v5652_v60  ;;  %v10499_v27 = vld [vmem:[%s15717_s12 + $0x88] sm:$0xf]  ;;  %v10600_v60 = vor.u32 %v11723_v52, %v10597_v18 }
 0x613   :  { %10230 = vmatmul.msk.bf16.gmra.mxu1 %vm240_vm0, %v11631_v59  ;;  %6418 = vmatmul.bf16.vlgmr.msra.gmra.mxu3 %v5958_v32  ;;  %v10500_v42 = vor.u32 %v11703_v48, %v10499_v27  ;;  %v5904_v9 = vmax.f32 %v5848_v47, 0.0  ;;  %v11633_v27 = vld [vmem:[%s15715_s2 + $0x58] sm:$0xff] }
 0x615   :  { %7819 = vmatpush.bf16.msra.mxu1 %v10500_v42  ;;  %v5928_v43 = vpack.c.bf16 %v5904_v9, %v5904_v9  ;;  %v5689_v3 = vpop.f32.mrf.mxu3  ;;  %v10533_v42 = vld [vmem:[%s15717_s12 + $0xe8] sm:$0xf0]  ;;  %v11665_v9 = vld [vmem:[%s15716_s10 + $0xf8] sm:$0xff] }
 0x616   :  { %6467 = vmatpush.bf16.msra.mxu0 %v11665_v9  ;;  %v5690_v38 = vadd.f32 %v5689_v3, %v14085_v36  ;;  %v11691_v36 = vld [vmem:[%s15717_s12 + $0x4c] sm:$0xf]  ;;  %v11673_v9 = vld [vmem:[%s15716_s10 + $0x138] sm:$0xff] }
 0x617   :  { %v5653_v30 = vpop.f32.mrf.mxu0  ;;  %v5956_v49 = vunpack.c.l.b16 %v5928_v43 }
 0x618   :  { %v5654_v35 = vadd.f32 %v5653_v30, %v5635_v54  ;;  %v5849_v45 = vpop.f32.mrf.mxu1  ;;  %v10536_v30 = vor.u32 %v11707_v10, %v10533_v42  ;;  %v10539_v10 = vld [vmem:[%s15717_s12 + $0xd0] sm:$0xf] }
 0x619   :  { %v5850_v41 = vadd.f32 %v14030_v58, %v5849_v45  ;;  %7820 = vmatpush.bf16.msra.mxu1 %v10468_v55  ;;  %v11664_v55 = vld [vmem:[%s15716_s10 + $0xf0] sm:$0xff] }
 0x61a   :  { %v14110_v5 = vadd.f32 %v13991_v53, %v5654_v35  ;;  %v11654_v53 = vld [vmem:[%s15716_s10 + $0xa0] sm:$0xff]  ;;  %6468 = vmatpush.bf16.msra.mxu0 %v11664_v55  ;;  %v11712_v42 = vld [vmem:[%s15717_s12 + $0xec] sm:$0xf0] }
 0x61b   :  { %v5905_v4 = vmax.f32 %v5850_v41, 0.0  ;;  %6451 = vmatpush.bf16.msrb.mxu3 %v11654_v53  ;;  %v11699_v41 = vld [vmem:[%s15717_s12 + $0x8c] sm:$0xf] }
 0x61c   :  { %v10504_v43 = vor.u32 %v11699_v41, %v10501_v37  ;;  %v10507_v41 = vld [vmem:[%s15717_s12 + $0x90] sm:$0xf] }
 0x61d   :  { %v5929_v22 = vpack.c.bf16 %v5905_v4, %v5905_v4  ;;  %7821 = vmatpush.bf16.msra.mxu1 %v10436_v44  ;;  %v5691_v35 = vpop.f32.mrf.mxu3  ;;  %v11704_v37 = vld [vmem:[%s15717_s12 + $0xac] sm:$0xf0] }
 0x61e   :  { %v5692_v50 = vadd.f32 %v5691_v35, %v14110_v5  ;;  %v10469_v5 = vld [vmem:[%s15717_s12 + $0x68] sm:$0xf0] }
 0x61f   :  { %v5957_v14 = vunpack.c.l.b16 %v5929_v22  ;;  %v5703_v7 = vpop.f32.mrf.mxu0  ;;  %6452 = vmatpush.bf16.msrb.mxu3 %v11653_v57 }
 0x620   :  { %v5852_v62 = vpop.f32.mrf.mxu1  ;;  %v5704_v19 = vadd.f32 %v5703_v7, %v5685_v23  ;;  %v10667_v23 = vld [vmem:[%s15717_s12 + $0x1d0] sm:$0xf] }
 0x621   :  { %v5959_v40 = vpack.c.b16 %v5957_v14, %v5956_v49  ;;  %v5853_v12 = vadd.f32 %v14030_v58, %v5852_v62  ;;  %7871 = vmatpush.bf16.msrb.mxu1 %v10664_v8  ;;  %v11663_v49 = vld [vmem:[%s15716_s10 + $0xe8] sm:$0xff]  ;;  %v10472_v14 = vor.u32 %v11691_v36, %v10469_v5 }
 0x622   :  { %6469 = vmatpush.bf16.msra.mxu0 %v11663_v49  ;;  %v10443_v49 = vld [vmem:[%s15717_s12 + $0x10] sm:$0xf] }
 0x623   :  { %10231 = vmatmul.msk.bf16.gmra.mxu1 %vm240_vm0, %v11632_v39  ;;  %6423 = vmatmul.bf16.gmra.mxu3 %v5959_v40  ;;  %v5906_v16 = vmax.f32 %v5853_v12, 0.0  ;;  %v11683_v40 = vld [vmem:[%s15717_s12 + $0xc] sm:$0xf] }
 0x624   :  { %6453 = vmatpush.bf16.msrb.mxu3 %v11652_v6  ;;  %v10440_v57 = vor.u32 %v11683_v40, %v10437_v21  ;;  %v11661_v6 = vld [vmem:[%s15716_s10 + $0xd8] sm:$0xff] }
 0x625   :  { %7872 = vmatpush.bf16.msrb.mxu1 %v10632_v63  ;;  %v5930_v61 = vpack.c.bf16 %v5906_v16, %v5906_v16 }
 0x626   :  { %6470 = vmatpush.bf16.msra.mxu0 %v11662_v31 }
 0x627   :  { %v5705_v26 = vpop.f32.mrf.mxu0  ;;  %v5966_v47 = vunpack.c.l.b16 %v5930_v61  ;;  %v11659_v61 = vld [vmem:[%s15716_s10 + $0xc8] sm:$0xff] }
 0x628   :  { %v5706_v17 = vadd.f32 %v5705_v26, %v5687_v20  ;;  %v5854_v33 = vpop.f32.mrf.mxu1  ;;  %6454 = vmatpush.bf16.msrb.mxu3 %v11651_v28  ;;  %v11744_v20 = vld [vmem:[%s15717_s12 + $0x1ec] sm:$0xf0]  ;;  %v15749_v26 = vld [vmem:[#allocation3_spill] sm:$0xff] }
 0x629   :  { %v5855_v24 = vadd.f32 %v14030_v58, %v5854_v33  ;;  %7873 = vmatpush.bf16.msrb.mxu1 %v10600_v60  ;;  %v10668_v63 = vor.u32 %v11744_v20, %v10667_v23  ;;  %v11660_v33 = vld [vmem:[%s15716_s10 + $0xd0] sm:$0xff] }
 0x62a   :  { %v14156_v59 = vpack.c.bf16 %v5706_v17, %v5704_v19  ;;  %6471 = vmatpush.bf16.msra.mxu0 %v11661_v6  ;;  %v10635_v19 = vld [vmem:[%s15717_s12 + $0x190] sm:$0xf]  ;;  %v11732_v23 = vld [vmem:[%s15717_s12 + $0x194] sm:$0xf] }
 0x62b   :  { %v5907_v32 = vmax.f32 %v5855_v24, 0.0  ;;  %v11736_v17 = vld [vmem:[%s15717_s12 + $0x1ac] sm:$0xf0]  ;;  %v10637_v20 = vld [vmem:[%s15717_s12 + $0x1b0] sm:$0xf0] }
 0x62c   :  { %6455 = vmatpush.bf16.msrb.mxu3 %v11650_v46  ;;  %v10636_v3 = vor.u32 %v11736_v17, %v10635_v19  ;;  %v10603_v28 = vld [vmem:[%s15717_s12 + $0x150] sm:$0xf] }
 0x62d   :  { %v5931_v34 = vpack.c.bf16 %v5907_v32, %v5907_v32  ;;  %7874 = vmatpush.bf16.msrb.mxu1 %v10568_v2  ;;  %v11728_v60 = vld [vmem:[%s15717_s12 + $0x16c] sm:$0xf0] }
 0x62e   :  { %6472 = vmatpush.bf16.msra.mxu0 %v11660_v33  ;;  %v10604_v32 = vor.u32 %v11728_v60, %v10603_v28  ;;  %v10571_v46 = vld [vmem:[%s15717_s12 + $0x110] sm:$0xf]  ;;  %v11724_v33 = vld [vmem:[%s15717_s12 + $0x154] sm:$0xf] }
 0x62f   :  { %v5967_v1 = vunpack.c.l.b16 %v5931_v34  ;;  %v5708_v25 = vpop.f32.mrf.mxu0  ;;  %v11720_v2 = vld [vmem:[%s15717_s12 + $0x12c] sm:$0xf0] }
 0x630   :  { %v5857_v48 = vpop.f32.mrf.mxu1  ;;  %v5709_v51 = vadd.f32 %v5708_v25, %v5690_v38  ;;  %6486 = vmatpush.bf16.msra.mxu3 %v11673_v9  ;;  %v11672_v38 = vld [vmem:[%s15716_s10 + $0x130] sm:$0xff] }
 0x631   :  { %v5970_v54 = vpack.c.b16 %v5967_v1, %v5966_v47  ;;  %v5858_v45 = vadd.f32 %v14030_v58, %v5857_v48  ;;  %7875 = vmatpush.bf16.msrb.mxu1 %v10536_v30  ;;  %v11658_v47 = vld [vmem:[%s15716_s10 + $0xc0] sm:$0xff]  ;;  %v10572_v1 = vor.u32 %v11720_v2, %v10571_v46  ;;  %v10540_v30 = vor.u32 %v11712_v42, %v10539_v10  ;;  %v11668_v6 = vld [vmem:[%s15716_s10 + $0x110] sm:$0xff] }
 0x632   :  { %6473 = vmatpush.bf16.msra.mxu0 %v11659_v61  ;;  %v11716_v61 = vld [vmem:[%s15717_s12 + $0x114] sm:$0xf] }
 0x633   :  { %10232 = vmatmul.msk.bf16.gmra.mxu1 %vm240_vm0, %v11633_v27  ;;  %6437 = vmatmul.bf16.vlgmr.msrb.gmra.mxu0 %v5970_v54  ;;  %v5908_v4 = vmax.f32 %v5858_v45, 0.0  ;;  %v15750_v45 = vld [vmem:[#allocation4_spill] sm:$0xff]  ;;  %v10541_v10 = vld [vmem:[%s15717_s12 + $0xf0] sm:$0xf0] }
 0x634   :  { %6487 = vmatpush.bf16.msra.mxu3 %v11672_v38  ;;  %v11700_v38 = vld [vmem:[%s15717_s12 + $0x94] sm:$0xf] }
 0x635   :  { %7876 = vmatpush.bf16.msrb.mxu1 %v10504_v43  ;;  %v5932_v7 = vpack.c.bf16 %v5908_v4, %v5908_v4 }
 0x636   :  { %6474 = vmatpush.bf16.msra.mxu0 %v11658_v47 }
 0x637   :  { %v5710_v22 = vpop.f32.mrf.mxu0  ;;  %v5968_v8 = vunpack.c.l.b16 %v5932_v7  ;;  %v11670_v7 = vld [vmem:[%s15716_s10 + $0x120] sm:$0xff] }
 0x638   :  { %v5711_v29 = vadd.f32 %v5710_v22, %v5692_v50  ;;  %v5859_v53 = vpop.f32.mrf.mxu1  ;;  %v10508_v50 = vor.u32 %v11704_v37, %v10507_v41  ;;  %v10475_v22 = vld [vmem:[%s15717_s12 + $0x50] sm:$0xf] }
 0x639   :  { %v5860_v44 = vadd.f32 %v14030_v58, %v5859_v53  ;;  %7877 = vmatpush.bf16.msrb.mxu1 %v10472_v14  ;;  %v11688_v14 = vld [vmem:[%s15717_s12 + $0x2c] sm:$0xf0] }
 0x63a   :  { %v14202_v11 = vpack.c.bf16 %v5711_v29, %v5709_v51  ;;  %v11696_v51 = vld [vmem:[%s15717_s12 + $0x6c] sm:$0xf0]  ;;  %v11671_v29 = vld [vmem:[%s15716_s10 + $0x128] sm:$0xff] }
 0x63b   :  { %v5909_v39 = vmax.f32 %v5860_v44, 0.0  ;;  %v10476_v53 = vor.u32 %v11696_v51, %v10475_v22  ;;  %6488 = vmatpush.bf16.msra.mxu3 %v11671_v29  ;;  %v11680_v41 = vld [vmem:[%s15716_s10 + $0x170] sm:$0xff]  ;;  %v10587_v51 = vld [vmem:[%s15717_s12 + $0x140] sm:$0xf] }
 0x63c   :  { %v11726_v29 = vld [vmem:[%s15717_s12 + $0x15c] sm:$0xf0] }
 0x63d   :  { %v5933_v62 = vpack.c.bf16 %v5909_v39, %v5909_v39  ;;  %7878 = vmatpush.bf16.msrb.mxu1 %v10440_v57  ;;  %v10444_v39 = vor.u32 %v11688_v14, %v10443_v49  ;;  %v11740_v57 = vld [vmem:[%s15717_s12 + $0x1d4] sm:$0xf] }
 0x63f   :  { %v5969_v12 = vunpack.c.l.b16 %v5933_v62  ;;  %6489 = vmatpush.bf16.msra.mxu3 %v11670_v7 }
 0x640   :  { %v5862_v15 = vpop.f32.mrf.mxu1 }
 0x641   :  { %v5971_v56 = vpack.c.b16 %v5969_v12, %v5968_v8  ;;  %v5863_v16 = vadd.f32 %v14030_v58, %v5862_v15  ;;  %v10669_v8 = vld [vmem:[%s15717_s12 + $0x1f0] sm:$0xf0]  ;;  %v11669_v12 = vld [vmem:[%s15716_s10 + $0x118] sm:$0xff] }
 0x642   :  { %v10672_v15 = vor.u32 %v11740_v57, %v10669_v8  ;;  %v10445_v8 = vld [vmem:[%s15717_s12 + $0x30] sm:$0xf0] }
 0x643   :  { %6442 = vmatmul.bf16.gmra.mxu0 %v5971_v56  ;;  %7822 = vmatmul.bf16.vlgmr.msra.gmra.mxu1 %v15749_v26  ;;  %v5910_v24 = vmax.f32 %v5863_v16, 0.0 }
 0x644   :  { %7928 = vmatpush.bf16.msra.mxu1 %v10668_v63  ;;  %6490 = vmatpush.bf16.msra.mxu3 %v11669_v12  ;;  %v10640_v63 = vor.u32 %v11732_v23, %v10637_v20 }
 0x645   :  { %v5934_v34 = vpack.c.bf16 %v5910_v24, %v5910_v24  ;;  %v11667_v24 = vld [vmem:[%s15716_s10 + $0x108] sm:$0xff] }
 0x647   :  { %v5978_v25 = vunpack.c.l.b16 %v5934_v34  ;;  %v11666_v34 = vld [vmem:[%s15716_s10 + $0x100] sm:$0xff] }
 0x648   :  { %v5864_v52 = vpop.f32.mrf.mxu1  ;;  %7929 = vmatpush.bf16.msra.mxu1 %v10636_v3  ;;  %6491 = vmatpush.bf16.msra.mxu3 %v11668_v6  ;;  %v10605_v3 = vld [vmem:[%s15717_s12 + $0x170] sm:$0xf0]  ;;  %v10523_v6 = vld [vmem:[%s15717_s12 + $0xc0] sm:$0xf] }
 0x649   :  { %v5865_v18 = vadd.f32 %v14030_v58, %v5864_v52  ;;  %v10608_v52 = vor.u32 %v11724_v33, %v10605_v3  ;;  %v11745_v33 = vld [vmem:[%s15717_s12 + $0x1f4] sm:$0xf0] }
 0x64b   :  { %v5911_v0 = vmax.f32 %v5865_v18, 0.0 }
 0x64c   :  { %7930 = vmatpush.bf16.msra.mxu1 %v10604_v32  ;;  %6492 = vmatpush.bf16.msra.mxu3 %v11667_v24  ;;  %v10573_v32 = vld [vmem:[%s15717_s12 + $0x130] sm:$0xf0] }
 0x64d   :  { %v5935_v13 = vpack.c.bf16 %v5911_v0, %v5911_v0  ;;  %v10576_v0 = vor.u32 %v11716_v61, %v10573_v32  ;;  %v11737_v32 = vld [vmem:[%s15717_s12 + $0x1b4] sm:$0xf0] }
 0x64f   :  { %v5979_v27 = vunpack.c.l.b16 %v5935_v13 }
 0x650   :  { %v5867_v48 = vpop.f32.mrf.mxu1  ;;  %7931 = vmatpush.bf16.msra.mxu1 %v10572_v1  ;;  %6493 = vmatpush.bf16.msra.mxu3 %v11666_v34  ;;  %v10651_v1 = vld [vmem:[%s15717_s12 + $0x1c0] sm:$0xf] }
 0x651   :  { %v5982_v54 = vpack.c.b16 %v5979_v27, %v5978_v25  ;;  %v5868_v35 = vadd.f32 %v14030_v58, %v5867_v48  ;;  %v11742_v25 = vld [vmem:[%s15717_s12 + $0x1dc] sm:$0xf0]  ;;  %v11708_v27 = vld [vmem:[%s15717_s12 + $0xd4] sm:$0xf]  ;;  %v11681_v48 = vld [vmem:[%s15716_s10 + $0x178] sm:$0xff] }
 0x652   :  { %v10544_v9 = vor.u32 %v11708_v27, %v10541_v10  ;;  %6505 = vmatpush.bf16.msrb.mxu0 %v11681_v48  ;;  %v11729_v48 = vld [vmem:[%s15717_s12 + $0x174] sm:$0xf0] }
 0x653   :  { %6456 = vmatmul.bf16.vlgmr.msrb.gmra.mxu3 %v5982_v54  ;;  %7827 = vmatmul.bf16.gmra.mxu1 %v15750_v45  ;;  %v5912_v55 = vmax.f32 %v5868_v35, 0.0  ;;  %v10652_v54 = vor.u32 %v11742_v25, %v10651_v1  ;;  %v11734_v35 = vld [vmem:[%s15717_s12 + $0x19c] sm:$0xf0]  ;;  %v10611_v1 = vld [vmem:[%s15717_s12 + $0x158] sm:$0xf]  ;;  %v11675_v25 = vld [vmem:[%s15716_s10 + $0x148] sm:$0xff] }
 0x654   :  { %7932 = vmatpush.bf16.msra.mxu1 %v10540_v30  ;;  %v10619_v30 = vld [vmem:[%s15717_s12 + $0x180] sm:$0xf] }
 0x655   :  { %v5936_v44 = vpack.c.bf16 %v5912_v55, %v5912_v55  ;;  %7700 = vmatpush.bf16.msrb.mxu3 %v10652_v54  ;;  %v10620_v37 = vor.u32 %v11734_v35, %v10619_v30  ;;  %v10427_v30 = vld [vmem:[%s15717_s12] sm:$0xf] }
 0x656   :  { %6506 = vmatpush.bf16.msrb.mxu0 %v11680_v41  ;;  %v11686_v35 = vld [vmem:[%s15717_s12 + $0x1c] sm:$0xf0]  ;;  %v10579_v41 = vld [vmem:[%s15717_s12 + $0x118] sm:$0xf] }
 0x657   :  { %v5980_v62 = vunpack.c.l.b16 %v5936_v44  ;;  %v11679_v44 = vld [vmem:[%s15716_s10 + $0x168] sm:$0xff] }
 0x658   :  { %v5869_v43 = vpop.f32.mrf.mxu1  ;;  %7933 = vmatpush.bf16.msra.mxu1 %v10508_v50  ;;  %v10509_v50 = vld [vmem:[%s15717_s12 + $0xb0] sm:$0xf0] }
 0x659   :  { %v5870_v4 = vadd.f32 %v14030_v58, %v5869_v43  ;;  %v10512_v43 = vor.u32 %v11700_v38, %v10509_v50  ;;  %7701 = vmatpush.bf16.msrb.mxu3 %v10620_v37  ;;  %v11674_v37 = vld [vmem:[%s15716_s10 + $0x140] sm:$0xff]  ;;  %v10428_v38 = vor.u32 %v11686_v35, %v10427_v30  ;;  %v11721_v50 = vld [vmem:[%s15717_s12 + $0x134] sm:$0xf0] }
 0x65a   :  { %6507 = vmatpush.bf16.msrb.mxu0 %v11679_v44  ;;  %v10547_v44 = vld [vmem:[%s15717_s12 + $0xd8] sm:$0xf] }
 0x65b   :  { %v5913_v36 = vmax.f32 %v5870_v4, 0.0 }
 0x65c   :  { %7934 = vmatpush.bf16.msra.mxu1 %v10476_v53  ;;  %v11692_v53 = vld [vmem:[%s15717_s12 + $0x54] sm:$0xf] }
 0x65d   :  { %v5937_v5 = vpack.c.bf16 %v5913_v36, %v5913_v36  ;;  %v10588_v36 = vor.u32 %v11726_v29, %v10587_v51  ;;  %v10907_v29 = vld [vmem:[%s15717_s12 + $0x3c0] sm:$0xf] }
 0x65f   :  { %v5981_v40 = vunpack.c.l.b16 %v5937_v5  ;;  %v10477_v5 = vld [vmem:[%s15717_s12 + $0x70] sm:$0xf0]  ;;  %7702 = vmatpush.bf16.msrb.mxu3 %v10588_v36 }
 0x660   :  { %v5872_v21 = vpop.f32.mrf.mxu1  ;;  %7935 = vmatpush.bf16.msra.mxu1 %v10444_v39  ;;  %v10480_v7 = vor.u32 %v11692_v53, %v10477_v5  ;;  %v11806_v53 = vld [vmem:[%s15717_s12 + $0x3dc] sm:$0xf0] }
 0x661   :  { %v5983_v31 = vpack.c.b16 %v5981_v40, %v5980_v62  ;;  %v5873_v56 = vadd.f32 %v14030_v58, %v5872_v21  ;;  %v10555_v62 = vld [vmem:[%s15717_s12 + $0x100] sm:$0xf]  ;;  %v11684_v21 = vld [vmem:[%s15717_s12 + $0x14] sm:$0xf]  ;;  %v10908_v5 = vor.u32 %v11806_v53, %v10907_v29 }
 0x662   :  { %v11718_v40 = vld [vmem:[%s15717_s12 + $0x11c] sm:$0xf0] }
 0x663   :  { %6461 = vmatmul.bf16.gmra.mxu3 %v5983_v31  ;;  %7879 = vmatmul.bf16.vlgmr.msrb.gmra.mxu1 %v15749_v26  ;;  %v5914_v16 = vmax.f32 %v5873_v56, 0.0  ;;  %v11678_v31 = vld [vmem:[%s15716_s10 + $0x160] sm:$0xff]  ;;  %v10556_v57 = vor.u32 %v11718_v40, %v10555_v62  ;;  %v10448_v56 = vor.u32 %v11684_v21, %v10445_v8  ;;  %v10515_v62 = vld [vmem:[%s15717_s12 + $0x98] sm:$0xf] }
 0x664   :  { %7985 = vmatpush.bf16.msrb.mxu1 %v10672_v15  ;;  %6508 = vmatpush.bf16.msrb.mxu0 %v11678_v31  ;;  %v11705_v31 = vld [vmem:[%s15717_s12 + $0xb4] sm:$0xf0]  ;;  %v14558_v29 = vld [vmem:[%s15718_s11] ss:$0 sm:$0xff] }
 0x665   :  { %v5938_v18 = vpack.c.bf16 %v5914_v16, %v5914_v16  ;;  %7703 = vmatpush.bf16.msrb.mxu3 %v10556_v57  ;;  %v10675_v16 = vld [vmem:[%s15717_s12 + $0x1d8] sm:$0xf]  ;;  %v10516_v8 = vor.u32 %v11705_v31, %v10515_v62 }
 0x666   :  { %v10676_v24 = vor.u32 %v11745_v33, %v10675_v16  ;;  %v11697_v16 = vld [vmem:[%s15717_s12 + $0x74] sm:$0xf0]  ;;  %v10811_v33 = vld [vmem:[%s15717_s12 + $0x300] sm:$0xf] }
 0x667   :  { %v5990_v13 = vunpack.c.l.b16 %v5938_v18  ;;  %v11702_v18 = vld [vmem:[%s15717_s12 + $0x9c] sm:$0xf0] }
 0x668   :  { %v5874_v19 = vpop.f32.mrf.mxu1  ;;  %7986 = vmatpush.bf16.msrb.mxu1 %v10640_v63  ;;  %v11710_v63 = vld [vmem:[%s15717_s12 + $0xdc] sm:$0xf0] }
 0x669   :  { %v5875_v17 = vadd.f32 %v14030_v58, %v5874_v19  ;;  %v11677_v19 = vld [vmem:[%s15716_s10 + $0x158] sm:$0xff] }
 0x66a   :  { %6509 = vmatpush.bf16.msrb.mxu0 %v11677_v19 }
 0x66b   :  { %v5915_v28 = vmax.f32 %v5875_v17, 0.0  ;;  %v10524_v17 = vor.u32 %v11710_v63, %v10523_v6 }
 0x66c   :  { %7987 = vmatpush.bf16.msrb.mxu1 %v10608_v52  ;;  %v10491_v52 = vld [vmem:[%s15717_s12 + $0x80] sm:$0xf] }
 0x66d   :  { %v5939_v60 = vpack.c.bf16 %v5915_v28, %v5915_v28  ;;  %7704 = vmatpush.bf16.msrb.mxu3 %v10524_v17  ;;  %v10643_v28 = vld [vmem:[%s15717_s12 + $0x198] sm:$0xf]  ;;  %v10492_v61 = vor.u32 %v11702_v18, %v10491_v52 }
 0x66f   :  { %v5991_v46 = vunpack.c.l.b16 %v5939_v60  ;;  %v11676_v60 = vld [vmem:[%s15716_s10 + $0x150] sm:$0xff] }
 0x670   :  { %v5877_v2 = vpop.f32.mrf.mxu1  ;;  %7988 = vmatpush.bf16.msrb.mxu1 %v10576_v0  ;;  %v10644_v0 = vor.u32 %v11737_v32, %v10643_v28  ;;  %6510 = vmatpush.bf16.msrb.mxu0 %v11676_v60  ;;  %v11689_v60 = vld [vmem:[%s15717_s12 + $0x34] sm:$0xf0] }
 0x671   :  { %v5994_v47 = vpack.c.b16 %v5991_v46, %v5990_v13  ;;  %v5878_v42 = vadd.f32 %v14030_v58, %v5877_v2  ;;  %7705 = vmatpush.bf16.msrb.mxu3 %v10492_v61  ;;  %v10459_v2 = vld [vmem:[%s15717_s12 + $0x40] sm:$0xf] }
 0x673   :  { %6475 = vmatmul.bf16.vlgmr.msra.gmra.mxu0 %v5994_v47  ;;  %7884 = vmatmul.bf16.gmra.mxu1 %v15750_v45  ;;  %v5916_v55 = vmax.f32 %v5878_v42, 0.0  ;;  %v11694_v47 = vld [vmem:[%s15717_s12 + $0x5c] sm:$0xf0]  ;;  %v10612_v42 = vor.u32 %v11729_v48, %v10611_v1  ;;  %v10677_v1 = vld [vmem:[%s15717_s12 + $0x1f8] sm:$0xf0] }
 0x674   :  { %7989 = vmatpush.bf16.msrb.mxu1 %v10544_v9  ;;  %v10460_v27 = vor.u32 %v11694_v47, %v10459_v2  ;;  %6511 = vmatpush.bf16.msrb.mxu0 %v11675_v25  ;;  %v11766_v48 = vld [vmem:[%s15717_s12 + $0x29c] sm:$0xf0] }
 0x675   :  { %v5940_v49 = vpack.c.bf16 %v5916_v55, %v5916_v55 }
 0x676   :  { %7706 = vmatpush.bf16.msrb.mxu3 %v10460_v27  ;;  %v10747_v27 = vld [vmem:[%s15717_s12 + $0x280] sm:$0xf] }
 0x677   :  { %v5992_v12 = vunpack.c.l.b16 %v5940_v49  ;;  %v11713_v49 = vld [vmem:[%s15717_s12 + $0xf4] sm:$0xf0] }
 0x678   :  { %v5879_v4 = vpop.f32.mrf.mxu1  ;;  %7990 = vmatpush.bf16.msrb.mxu1 %v10512_v43  ;;  %6512 = vmatpush.bf16.msrb.mxu0 %v11674_v37 }
 0x679   :  { %v5880_v22 = vadd.f32 %v14030_v58, %v5879_v4  ;;  %v10580_v4 = vor.u32 %v11721_v50, %v10579_v41  ;;  %v11758_v50 = vld [vmem:[%s15717_s12 + $0x25c] sm:$0xf0] }
 0x67a   :  { %7707 = vmatpush.bf16.msrb.mxu3 %v10428_v38  ;;  %v10715_v38 = vld [vmem:[%s15717_s12 + $0x240] sm:$0xf] }
 0x67b   :  { %v5917_v14 = vmax.f32 %v5880_v22, 0.0 }
 0x67c   :  { %7991 = vmatpush.bf16.msrb.mxu1 %v10480_v7  ;;  %7719 = vmatpush.bf16.msra.mxu0 %v10908_v5  ;;  %v10875_v7 = vld [vmem:[%s15717_s12 + $0x380] sm:$0xf] }
 0x67d   :  { %v5941_v39 = vpack.c.bf16 %v5917_v14, %v5917_v14  ;;  %v10548_v14 = vor.u32 %v11713_v49, %v10547_v44 }
 0x67f   :  { %v5993_v15 = vunpack.c.l.b16 %v5941_v39  ;;  %v11798_v39 = vld [vmem:[%s15717_s12 + $0x39c] sm:$0xf0] }
 0x680   :  { %v5882_v23 = vpop.f32.mrf.mxu1  ;;  %7992 = vmatpush.bf16.msrb.mxu1 %v10448_v56  ;;  %v10876_v21 = vor.u32 %v11798_v39, %v10875_v7  ;;  %v11790_v56 = vld [vmem:[%s15717_s12 + $0x35c] sm:$0xf0]  ;;  %v10581_v7 = vld [vmem:[%s15717_s12 + $0x138] sm:$0xf0] }
 0x681   :  { %v5995_v20 = vpack.c.b16 %v5993_v15, %v5992_v12  ;;  %v5883_v3 = vadd.f32 %v14030_v58, %v5882_v23  ;;  %v10843_v15 = vld [vmem:[%s15717_s12 + $0x340] sm:$0xf]  ;;  %v10483_v23 = vld [vmem:[%s15717_s12 + $0x58] sm:$0xf] }
 0x682   :  { %7720 = vmatpush.bf16.msra.mxu0 %v10876_v21  ;;  %v10844_v63 = vor.u32 %v11790_v56, %v10843_v15  ;;  %v10484_v19 = vor.u32 %v11697_v16, %v10483_v23  ;;  %v11738_v56 = vld [vmem:[%s15717_s12 + $0x1c4] sm:$0xf]  ;;  %v10549_v16 = vld [vmem:[%s15717_s12 + $0xf8] sm:$0xf0] }
 0x683   :  { %6480 = vmatmul.bf16.gmra.mxu0 %v5995_v20  ;;  %7936 = vmatmul.bf16.vlgmr.msra.gmra.mxu1 %v15749_v26  ;;  %v5918_v34 = vmax.f32 %v5883_v3, 0.0  ;;  %v11782_v3 = vld [vmem:[%s15717_s12 + $0x31c] sm:$0xf0]  ;;  %v10653_v23 = vld [vmem:[%s15717_s12 + $0x1e0] sm:$0xf0] }
 0x684   :  { %8042 = vmatpush.bf16.msra.mxu1 %v10676_v24  ;;  %v10451_v24 = vld [vmem:[%s15717_s12 + $0x18] sm:$0xf]  ;;  %v10812_v28 = vor.u32 %v11782_v3, %v10811_v33  ;;  %v11701_v33 = vld [vmem:[%s15717_s12 + $0x9c] sm:$0xf] }
 0x685   :  { %v5942_v54 = vpack.c.bf16 %v5918_v34, %v5918_v34  ;;  %v10452_v32 = vor.u32 %v11689_v60, %v10451_v24 }
 0x686   :  { %7721 = vmatpush.bf16.msra.mxu0 %v10844_v63  ;;  %v10656_v63 = vor.u32 %v11738_v56, %v10653_v23 }
 0x687   :  { %v6002_v55 = vunpack.c.l.b16 %v5942_v54  ;;  %v11733_v54 = vld [vmem:[%s15717_s12 + $0x19c] sm:$0xf] }
 0x688   :  { %v5884_v13 = vpop.f32.mrf.mxu1  ;;  %8043 = vmatpush.bf16.msra.mxu1 %v10644_v0  ;;  %v10779_v0 = vld [vmem:[%s15717_s12 + $0x2c0] sm:$0xf] }
 0x689   :  { %v5885_v46 = vadd.f32 %v14030_v58, %v5884_v13  ;;  %v11774_v13 = vld [vmem:[%s15717_s12 + $0x2dc] sm:$0xf0] }
 0x68a   :  { %7722 = vmatpush.bf16.msra.mxu0 %v10812_v28  ;;  %v10780_v47 = vor.u32 %v11774_v13, %v10779_v0  ;;  %v10589_v0 = vld [vmem:[%s15717_s12 + $0x160] sm:$0xf0]  ;;  %v11693_v13 = vld [vmem:[%s15717_s12 + $0x5c] sm:$0xf] }
 0x68b   :  { %v5919_v10 = vmax.f32 %v5885_v46, 0.0  ;;  %v11741_v46 = vld [vmem:[%s15717_s12 + $0x1dc] sm:$0xf] }
 0x68c   :  { %8044 = vmatpush.bf16.msra.mxu1 %v10612_v42  ;;  %v10680_v25 = vor.u32 %v11741_v46, %v10677_v1  ;;  %v10748_v42 = vor.u32 %v11766_v48, %v10747_v27 }
 0x68d   :  { %v5943_v9 = vpack.c.bf16 %v5919_v10, %v5919_v10 }
 0x68e   :  { %7723 = vmatpush.bf16.msra.mxu0 %v10780_v47 }
 0x68f   :  { %v6003_v43 = vunpack.c.l.b16 %v5943_v9  ;;  %v10645_v9 = vld [vmem:[%s15717_s12 + $0x1b8] sm:$0xf0] }
 0x690   :  { %v5887_v22 = vpop.f32.mrf.mxu1  ;;  %8045 = vmatpush.bf16.msra.mxu1 %v10580_v4  ;;  %v10648_v41 = vor.u32 %v11733_v54, %v10645_v9  ;;  %v10613_v4 = vld [vmem:[%s15717_s12 + $0x178] sm:$0xf0]  ;;  %v11714_v54 = vld [vmem:[%s15717_s12 + $0x104] sm:$0xf] }
 0x691   :  { %v6006_v51 = vpack.c.b16 %v6003_v43, %v6002_v55  ;;  %v5888_v36 = vadd.f32 %v14030_v58, %v5887_v22  ;;  %v11725_v55 = vld [vmem:[%s15717_s12 + $0x15c] sm:$0xf]  ;;  %v10716_v43 = vor.u32 %v11758_v50, %v10715_v38  ;;  %v10683_v22 = vld [vmem:[%s15717_s12 + $0x200] sm:$0xf] }
 0x692   :  { %7724 = vmatpush.bf16.msra.mxu0 %v10748_v42  ;;  %v11685_v42 = vld [vmem:[%s15717_s12 + $0x1c] sm:$0xf] }
 0x693   :  { %6494 = vmatmul.bf16.vlgmr.msra.gmra.mxu3 %v6006_v51  ;;  %7941 = vmatmul.bf16.gmra.mxu1 %v15750_v45  ;;  %v5920_v40 = vmax.f32 %v5888_v36, 0.0  ;;  %v11750_v51 = vld [vmem:[%s15717_s12 + $0x21c] sm:$0xf0]  ;;  %v10616_v36 = vor.u32 %v11725_v55, %v10613_v4 }
 0x694   :  { %8046 = vmatpush.bf16.msra.mxu1 %v10548_v14  ;;  %v10684_v49 = vor.u32 %v11750_v51, %v10683_v22  ;;  %v11717_v14 = vld [vmem:[%s15717_s12 + $0x11c] sm:$0xf]  ;;  %v11706_v22 = vld [vmem:[%s15717_s12 + $0xc4] sm:$0xf] }
 0x695   :  { %v5944_v20 = vpack.c.bf16 %v5920_v40, %v5920_v40  ;;  %v10584_v21 = vor.u32 %v11717_v14, %v10581_v7  ;;  %v10525_v51 = vld [vmem:[%s15717_s12 + $0xe0] sm:$0xf0] }
 0x696   :  { %v6419_v30 = vpop.f32.mrf.mxu3  ;;  %7725 = vmatpush.bf16.msra.mxu0 %v10716_v43  ;;  %v11690_v14 = vld [vmem:[%s15717_s12 + $0x44] sm:$0xf] }
 0x697   :  { %v6004_v52 = vunpack.c.l.b16 %v5944_v20  ;;  %v6420_v39 = vadd.f32 %v14558_v29, %v6419_v30  ;;  %v11709_v20 = vld [vmem:[%s15717_s12 + $0xdc] sm:$0xf]  ;;  %v10461_v7 = vld [vmem:[%s15717_s12 + $0x60] sm:$0xf0] }
 0x698   :  { %v5889_v57 = vpop.f32.mrf.mxu1  ;;  %8047 = vmatpush.bf16.msra.mxu1 %v10516_v8 }
 0x699   :  { %v5890_v12 = vadd.f32 %v14030_v58, %v5889_v57 }
 0x69a   :  { %7726 = vmatpush.bf16.msra.mxu0 %v10684_v49 }
 0x69b   :  { %v5921_v6 = vmax.f32 %v5890_v12, 0.0 }
 0x69c   :  { %8048 = vmatpush.bf16.msra.mxu1 %v10484_v19  ;;  %v10552_v19 = vor.u32 %v11709_v20, %v10549_v16 }
 0x69d   :  { %v5945_v17 = vpack.c.bf16 %v5921_v6, %v5921_v6 }
 0x69e   :  { %v14569_v15 = vpop.f32.mrf.mxu3 }
 0x69f   :  { %v6005_v18 = vunpack.c.l.b16 %v5945_v17  ;;  %v11730_v17 = vld [vmem:[%s15717_s12 + $0x184] sm:$0xf] }
 0x6a0   :  { %v5892_v61 = vpop.f32.mrf.mxu1  ;;  %8049 = vmatpush.bf16.msra.mxu1 %v10452_v32 }
 0x6a1   :  { %v6007_v34 = vpack.c.b16 %v6005_v18, %v6004_v52  ;;  %v5893_v2 = vadd.f32 %v14030_v58, %v5892_v61  ;;  %v10517_v52 = vld [vmem:[%s15717_s12 + $0xb8] sm:$0xf0]  ;;  %v11926_v61 = vld [vmem:[%s15708_s5] ss:$0 sm:$0xff] }
 0x6a2   :  { %v10520_v60 = vor.u32 %v11701_v33, %v10517_v52  ;;  %v11163_v33 = vld [vmem:[%s15717_s12 + $0x5c0] sm:$0xf]  ;;  %v11866_v52 = vld [vmem:[%s15717_s12 + $0x5c4] sm:$0xf] }
 0x6a3   :  { %6499 = vmatmul.bf16.gmra.mxu3 %v6007_v34  ;;  %7993 = vmatmul.bf16.vlgmr.msrb.gmra.mxu1 %v15749_v26  ;;  %v5922_v10 = vmax.f32 %v5893_v2, 0.0  ;;  %v11722_v34 = vld [vmem:[%s15717_s12 + $0x144] sm:$0xf]  ;;  %v10485_v2 = vld [vmem:[%s15717_s12 + $0x78] sm:$0xf0] }
 0x6a4   :  { %8099 = vmatpush.bf16.msrb.mxu1 %v10680_v25  ;;  %v10592_v46 = vor.u32 %v11722_v34, %v10589_v0  ;;  %v10488_v25 = vor.u32 %v11693_v13, %v10485_v2  ;;  %v11862_v34 = vld [vmem:[%s15717_s12 + $0x59c] sm:$0xf0]  ;;  %v11858_v0 = vld [vmem:[%s15717_s12 + $0x584] sm:$0xf] }
 0x6a5   :  { %v5946_v53 = vpack.c.bf16 %v5922_v10, %v5922_v10  ;;  %v10557_v10 = vld [vmem:[%s15717_s12 + $0x120] sm:$0xf0]  ;;  %v11099_v2 = vld [vmem:[%s15717_s12 + $0x540] sm:$0xf] }
 0x6a6   :  { %v6424_v27 = vpop.f32.mrf.mxu3 }
 0x6a7   :  { %v6014_v62 = vunpack.c.l.b16 %v5946_v53  ;;  %v6425_v9 = vadd.f32 %v14558_v29, %v6424_v27  ;;  %v10528_v53 = vor.u32 %v11706_v22, %v10525_v51 }
 0x6a8   :  { %v5894_v35 = vpop.f32.mrf.mxu1  ;;  %8100 = vmatpush.bf16.msrb.mxu1 %v10648_v41  ;;  %v10560_v41 = vor.u32 %v11714_v54, %v10557_v10  ;;  %v11850_v54 = vld [vmem:[%s15717_s12 + $0x544] sm:$0xf] }
 0x6a9   :  { %v5895_v37 = vadd.f32 %v14030_v58, %v5894_v35  ;;  %v11101_v10 = vld [vmem:[%s15717_s12 + $0x560] sm:$0xf0] }
 0x6ab   :  { %v5923_v44 = vmax.f32 %v5895_v37, 0.0  ;;  %v10453_v37 = vld [vmem:[%s15717_s12 + $0x38] sm:$0xf0] }
 0x6ac   :  { %8101 = vmatpush.bf16.msrb.mxu1 %v10616_v36  ;;  %v10456_v55 = vor.u32 %v11685_v42, %v10453_v37  ;;  %v10493_v36 = vld [vmem:[%s15717_s12 + $0xa0] sm:$0xf0]  ;;  %v11104_v42 = vor.u32 %v11850_v54, %v11101_v10 }
 0x6ad   :  { %v5947_v5 = vpack.c.bf16 %v5923_v44, %v5923_v44  ;;  %v11698_v44 = vld [vmem:[%s15717_s12 + $0x84] sm:$0xf] }
 0x6ae   :  { %v14683_v16 = vpop.f32.mrf.mxu3  ;;  %v11069_v37 = vld [vmem:[%s15717_s12 + $0x520] sm:$0xf0] }
 0x6af   :  { %v6015_v40 = vunpack.c.l.b16 %v5947_v5  ;;  %v10496_v5 = vor.u32 %v11698_v44, %v10493_v36  ;;  %v11037_v44 = vld [vmem:[%s15717_s12 + $0x4e0] sm:$0xf0] }
 0x6b0   :  { %v5897_v31 = vpop.f32.mrf.mxu1  ;;  %v6438_v57 = vpop.f32.mrf.mxu0  ;;  %8102 = vmatpush.bf16.msrb.mxu1 %v10584_v21  ;;  %v11802_v10 = vld [vmem:[%s15717_s12 + $0x3c4] sm:$0xf] }
 0x6b1   :  { %v6018_v8 = vpack.c.b16 %v6015_v40, %v6014_v62  ;;  %v14567_v12 = vadd.f32 %v6438_v57, %v6420_v39  ;;  %v5898_v6 = vadd.f32 %v14030_v58, %v5897_v31  ;;  %v10621_v58 = vld [vmem:[%s15717_s12 + $0x1a0] sm:$0xf0]  ;;  %v10464_v39 = vor.u32 %v11690_v14, %v10461_v7  ;;  %v11003_v7 = vld [vmem:[%s15717_s12 + $0x480] sm:$0xf] }
 0x6b2   :  { %v10624_v24 = vor.u32 %v11730_v17, %v10621_v58  ;;  %v11682_v62 = vld [vmem:[%s15717_s12 + $0x4] sm:$0xf] }
 0x6b3   :  { %6513 = vmatmul.bf16.vlgmr.msrb.gmra.mxu0 %v6018_v8  ;;  %7708 = vmatmul.bf16.vlgmr.msrb.gmra.mxu3 %v15749_v26  ;;  %v5924_v3 = vmax.f32 %v5898_v6, 0.0  ;;  %v10429_v40 = vld [vmem:[%s15717_s12 + $0x20] sm:$0xf0] }
 0x6b4   :  { %7998 = vmatmul.bf16.gmra.mxu1 %v15750_v45  ;;  %7757 = vmatpush.bf16.msrb.mxu0 %v10656_v63  ;;  %v10432_v21 = vor.u32 %v11682_v62, %v10429_v40  ;;  %v14666_v57 = vld [vmem:[%s15719_s13] sm:$0xff] }
 0x6b5   :  { %8103 = vmatpush.bf16.msrb.mxu1 %v10552_v19  ;;  %v5948_v47 = vpack.c.bf16 %v5924_v3, %v5924_v3  ;;  %v14670_v8 = vperm.slane %v14666_v57, 2  ;;  %v14688_v19 = vperm.slane %v14666_v57, 3  ;;  %v11870_v3 = vld [vmem:[%s15717_s12 + $0x5dc] sm:$0xf0]  ;;  %v11826_v62 = vld [vmem:[%s15717_s12 + $0x484] sm:$0xf] }
 0x6b7   :  { %v6016_v30 = vunpack.c.l.b16 %v5948_v47  ;;  %v11854_v47 = vld [vmem:[%s15717_s12 + $0x55c] sm:$0xf0] }
 0x6b8   :  { %v5899_v18 = vpop.f32.mrf.mxu1  ;;  %v14598_v28 = vpop.f32.mrf.mxu0  ;;  %7758 = vmatpush.bf16.msrb.mxu0 %v10624_v24  ;;  %v11100_v27 = vor.u32 %v11854_v47, %v11099_v2  ;;  %v11810_v2 = vld [vmem:[%s15717_s12 + $0x404] sm:$0xf] }
 0x6b9   :  { %v5900_v32 = vadd.f32 %v11926_v61, %v5899_v18  ;;  %8104 = vmatpush.bf16.msrb.mxu1 %v10520_v60  ;;  %v11165_v18 = vld [vmem:[%s15717_s12 + $0x5e0] sm:$0xf0] }
 0x6ba   :  { %v11168_v60 = vor.u32 %v11866_v52, %v11165_v18  ;;  %v11818_v52 = vld [vmem:[%s15717_s12 + $0x444] sm:$0xf] }
 0x6bb   :  { %v5925_v1 = vmax.f32 %v5900_v32, 0.0  ;;  %v11131_v32 = vld [vmem:[%s15717_s12 + $0x580] sm:$0xf]  ;;  %v10973_v18 = vld [vmem:[%s15717_s12 + $0x460] sm:$0xf0] }
 0x6bc   :  { %7759 = vmatpush.bf16.msrb.mxu0 %v10592_v46  ;;  %v11132_v13 = vor.u32 %v11862_v34, %v11131_v32  ;;  %v11133_v46 = vld [vmem:[%s15717_s12 + $0x5a0] sm:$0xf0]  ;;  %v14797_v32 = vperm.slane %v14666_v57, 4 }
 0x6bd   :  { %v5949_v48 = vpack.c.bf16 %v5925_v1, %v5925_v1  ;;  %8105 = vmatpush.bf16.msrb.mxu1 %v10488_v25  ;;  %v11136_v25 = vor.u32 %v11858_v0, %v11133_v46  ;;  %v11814_v46 = vld [vmem:[%s15717_s12 + $0x41c] sm:$0xf0] }
 0x6bf   :  { %v6017_v35 = vunpack.c.l.b16 %v5949_v48 }
 0x6c0   :  { %v6443_v38 = vpop.f32.mrf.mxu0  ;;  %v14628_v50 = vpop.f32.mrf.mxu1  ;;  %7760 = vmatpush.bf16.msrb.mxu0 %v10560_v41 }
 0x6c1   :  { %v14630_v43 = vadd.f32 %v6443_v38, %v6425_v9  ;;  %v6019_v4 = vpack.c.b16 %v6017_v35, %v6016_v30  ;;  %8106 = vmatpush.bf16.msrb.mxu1 %v10456_v55  ;;  %v11846_v30 = vld [vmem:[%s15717_s12 + $0x51c] sm:$0xf0]  ;;  %v11842_v35 = vld [vmem:[%s15717_s12 + $0x504] sm:$0xf] }
 0x6c2   :  { %v11035_v38 = vld [vmem:[%s15717_s12 + $0x4c0] sm:$0xf]  ;;  %v11072_v22 = vor.u32 %v11842_v35, %v11069_v37  ;;  %v11871_v35 = vld [vmem:[%s15717_s12 + $0x5e4] sm:$0xf0] }
 0x6c3   :  { %6518 = vmatmul.bf16.gmra.mxu0 %v6019_v4  ;;  %7713 = vmatmul.bf16.gmra.mxu3 %v15750_v45  ;;  %v11838_v55 = vld [vmem:[%s15717_s12 + $0x4dc] sm:$0xf0] }
 0x6c4   :  { %8050 = vmatmul.bf16.vlgmr.msra.gmra.mxu1 %v15749_v26  ;;  %7761 = vmatpush.bf16.msrb.mxu0 %v10528_v53  ;;  %v11036_v51 = vor.u32 %v11838_v55, %v11035_v38  ;;  %v11834_v53 = vld [vmem:[%s15717_s12 + $0x4c4] sm:$0xf] }
 0x6c5   :  { %v11040_v36 = vor.u32 %v11834_v53, %v11037_v44  ;;  %v11794_v55 = vld [vmem:[%s15717_s12 + $0x384] sm:$0xf]  ;;  %v11139_v53 = vld [vmem:[%s15717_s12 + $0x588] sm:$0xf] }
 0x6c6   :  { %v11863_v44 = vld [vmem:[%s15717_s12 + $0x5a4] sm:$0xf0] }
 0x6c8   :  { %v14646_v49 = vpop.f32.mrf.mxu1  ;;  %7762 = vmatpush.bf16.msrb.mxu0 %v10496_v5  ;;  %v14727_v1 = vpop.f32.mrf.mxu0 }
 0x6cc   :  { %7763 = vmatpush.bf16.msrb.mxu0 %v10464_v39  ;;  %v11830_v39 = vld [vmem:[%s15717_s12 + $0x49c] sm:$0xf0] }
 0x6cd   :  { %v11004_v40 = vor.u32 %v11830_v39, %v11003_v7  ;;  %v11786_v7 = vld [vmem:[%s15717_s12 + $0x344] sm:$0xf] }
 0x6ce   :  { %v10845_v39 = vld [vmem:[%s15717_s12 + $0x360] sm:$0xf0] }
 0x6d0   :  { %v14660_v31 = vpop.f32.mrf.mxu1  ;;  %7764 = vmatpush.bf16.msrb.mxu0 %v10432_v21  ;;  %v11005_v21 = vld [vmem:[%s15717_s12 + $0x4a0] sm:$0xf0] }
 0x6d3   :  { %7727 = vmatmul.bf16.vlgmr.msra.gmra.mxu0 %v14156_v59 }
 0x6d4   :  { %8055 = vmatmul.bf16.gmra.mxu1 %v15750_v45  ;;  %7795 = vmatpush.bf16.msra.mxu0 %v11168_v60  ;;  %v10976_v60 = vor.u32 %v11818_v52, %v10973_v18  ;;  %v11075_v52 = vld [vmem:[%s15717_s12 + $0x508] sm:$0xf] }
 0x6d6   :  { %v14699_v24 = vpop.f32.mrf.mxu3 }
 0x6d8   :  { %v7830_v56 = vpop.f32.mrf.mxu1  ;;  %7796 = vmatpush.bf16.msra.mxu0 %v11136_v25 }
 0x6d9   :  { %v14673_v23 = vadd.f32 %v7830_v56, %v14670_v8  ;;  %v11008_v56 = vor.u32 %v11826_v62, %v11005_v21  ;;  %v10848_v62 = vor.u32 %v11786_v7, %v10845_v39  ;;  %v11855_v21 = vld [vmem:[%s15717_s12 + $0x564] sm:$0xf0]  ;;  %v6458_v7 = vadd.f32 %v14699_v24, %v14567_v12 }
 0x6dc   :  { %7797 = vmatpush.bf16.msra.mxu0 %v11104_v42  ;;  %v10909_v42 = vld [vmem:[%s15717_s12 + $0x3e0] sm:$0xf0] }
 0x6de   :  { %v14730_v48 = vpop.f32.mrf.mxu3 }
 0x6e0   :  { %v14675_v20 = vpop.f32.mrf.mxu1  ;;  %7798 = vmatpush.bf16.msra.mxu0 %v11072_v22  ;;  %v10877_v22 = vld [vmem:[%s15717_s12 + $0x3a0] sm:$0xf0] }
 0x6e3   :  { %7732 = vmatmul.bf16.gmra.mxu0 %v14202_v11 }
 0x6e4   :  { %8107 = vmatmul.bf16.vlgmr.msrb.gmra.mxu1 %v15749_v26  ;;  %7799 = vmatpush.bf16.msra.mxu0 %v11040_v36  ;;  %v11140_v36 = vor.u32 %v11863_v44, %v11139_v53  ;;  %v14900_v53 = vld [vmem:[%s15720_s3] sm:$0xff] }
 0x6e6   :  { %v14766_v5 = vpop.f32.mrf.mxu3 }
 0x6e8   :  { %v14679_v6 = vpop.f32.mrf.mxu1  ;;  %7800 = vmatpush.bf16.msra.mxu0 %v11008_v56 }
 0x6ec   :  { %7801 = vmatpush.bf16.msra.mxu0 %v10976_v60  ;;  %v11847_v60 = vld [vmem:[%s15717_s12 + $0x524] sm:$0xf0] }
 0x6ee   :  { %v14799_v34 = vpop.f32.mrf.mxu3 }
 0x6f0   :  { %v14681_v63 = vpop.f32.mrf.mxu1  ;;  %v14758_v4 = vpop.f32.mrf.mxu0 }
 0x6f3   :  { %7765 = vmatmul.bf16.vlgmr.msrb.gmra.mxu0 %v15749_v26  ;;  %v11164_v26 = vor.u32 %v11870_v3, %v11163_v33  ;;  %v11822_v33 = vld [vmem:[%s15717_s12 + $0x45c] sm:$0xf0] }
 0x6f4   :  { %8112 = vmatmul.bf16.gmra.mxu1 %v15750_v45 }
 0x6f5   :  { %7738 = vmatpush.bf16.msra.mxu3 %v11164_v26 }
 0x6f8   :  { %v7887_v17 = vpop.f32.mrf.mxu1  ;;  %v14788_v26 = vpop.f32.mrf.mxu0 }
 0x6f9   :  { %v14691_v58 = vadd.f32 %v7887_v17, %v14688_v19  ;;  %7739 = vmatpush.bf16.msra.mxu3 %v11132_v13  ;;  %v10971_v17 = vld [vmem:[%s15717_s12 + $0x440] sm:$0xf] }
 0x6fa   :  { %v10972_v3 = vor.u32 %v11822_v33, %v10971_v17  ;;  %v10939_v13 = vld [vmem:[%s15717_s12 + $0x400] sm:$0xf]  ;;  %v11778_v33 = vld [vmem:[%s15717_s12 + $0x304] sm:$0xf] }
 0x6fb   :  { %v10940_v25 = vor.u32 %v11814_v46, %v10939_v13  ;;  %v11076_v13 = vor.u32 %v11847_v60, %v11075_v52  ;;  %v11770_v46 = vld [vmem:[%s15717_s12 + $0x2c4] sm:$0xf] }
 0x6fc   :  { %v10685_v60 = vld [vmem:[%s15717_s12 + $0x220] sm:$0xf0] }
 0x6fd   :  { %7740 = vmatpush.bf16.msra.mxu3 %v11100_v27  ;;  %v10941_v27 = vld [vmem:[%s15717_s12 + $0x420] sm:$0xf0] }
 0x6fe   :  { %v10944_v54 = vor.u32 %v11810_v2, %v10941_v27  ;;  %v10781_v2 = vld [vmem:[%s15717_s12 + $0x2e0] sm:$0xf0] }
 0x6ff   :  { %v10784_v27 = vor.u32 %v11770_v46, %v10781_v2 }
 0x700   :  { %v14707_v61 = vpop.f32.mrf.mxu1  ;;  %7802 = vmatpush.bf16.msra.mxu0 %v10944_v54  ;;  %v11839_v54 = vld [vmem:[%s15717_s12 + $0x4e4] sm:$0xf0] }
 0x703   :  { %7770 = vmatmul.bf16.gmra.mxu0 %v15750_v45  ;;  %v11067_v45 = vld [vmem:[%s15717_s12 + $0x500] sm:$0xf] }
 0x704   :  { %v11068_v41 = vor.u32 %v11846_v30, %v11067_v45  ;;  %v11171_v45 = vld [vmem:[%s15717_s12 + $0x5c8] sm:$0xf]  ;;  %v10912_v30 = vor.u32 %v11802_v10, %v10909_v42  ;;  %v6422_v42 = vadd.f32 %v14558_v29, %v14569_v15 }
 0x705   :  { %v11172_v37 = vor.u32 %v11871_v35, %v11171_v45  ;;  %v10749_v35 = vld [vmem:[%s15717_s12 + $0x2a0] sm:$0xf0]  ;;  %v11831_v15 = vld [vmem:[%s15717_s12 + $0x4a4] sm:$0xf0] }
 0x706   :  { %7741 = vmatpush.bf16.msra.mxu3 %v11068_v41  ;;  %v14828_v41 = vpop.f32.mrf.mxu0 }
 0x707   :  { %7852 = vmatpush.bf16.msrb.mxu0 %v11172_v37  ;;  %v11011_v37 = vld [vmem:[%s15717_s12 + $0x488] sm:$0xf] }
 0x708   :  { %v14738_v9 = vpop.f32.mrf.mxu1  ;;  %v11012_v44 = vor.u32 %v11831_v15, %v11011_v37  ;;  %v6427_v37 = vadd.f32 %v14558_v29, %v14683_v16  ;;  %v11799_v15 = vld [vmem:[%s15717_s12 + $0x3a4] sm:$0xf0]  ;;  %v11141_v29 = vld [vmem:[%s15717_s12 + $0x5a8] sm:$0xf0]  ;;  %v14973_v16 = vld [vmem:[%s15720_s3 + $0x10] sm:$0xff] }
 0x70a   :  { %7742 = vmatpush.bf16.msra.mxu3 %v11036_v51  ;;  %v10880_v51 = vor.u32 %v11794_v55, %v10877_v22  ;;  %v6441_v55 = vadd.f32 %v14598_v28, %v6422_v42  ;;  %v10717_v28 = vld [vmem:[%s15717_s12 + $0x260] sm:$0xf0] }
 0x70b   :  { %7853 = vmatpush.bf16.msrb.mxu0 %v11140_v36  ;;  %v11754_v36 = vld [vmem:[%s15717_s12 + $0x244] sm:$0xf] }
 0x70c   :  { %v6460_v39 = vadd.f32 %v14730_v48, %v6441_v55 }
 0x70e   :  { %7743 = vmatpush.bf16.msra.mxu3 %v11004_v40  ;;  %v11107_v40 = vld [vmem:[%s15717_s12 + $0x548] sm:$0xf]  ;;  %v14856_v17 = vpop.f32.mrf.mxu0  ;;  %v6479_v12 = vadd.f32 %v14788_v26, %v6460_v39  ;;  %v6463_v39 = vadd.f32 %v14766_v5, %v14630_v43 }
 0x70f   :  { %v11108_v56 = vor.u32 %v11855_v21, %v11107_v40  ;;  %v10979_v40 = vld [vmem:[%s15717_s12 + $0x448] sm:$0xf] }
 0x710   :  { %v14768_v14 = vpop.f32.mrf.mxu1  ;;  %v11823_v21 = vld [vmem:[%s15717_s12 + $0x464] sm:$0xf0] }
 0x711   :  { %7854 = vmatpush.bf16.msrb.mxu0 %v11108_v56 }
 0x712   :  { %7744 = vmatpush.bf16.msra.mxu3 %v10972_v3  ;;  %v10813_v3 = vld [vmem:[%s15717_s12 + $0x320] sm:$0xf0] }
 0x713   :  { %v10816_v18 = vor.u32 %v11778_v33, %v10813_v3  ;;  %v10980_v33 = vor.u32 %v11823_v21, %v10979_v40  ;;  %v6477_v3 = vadd.f32 %v14758_v4, %v6458_v7  ;;  %v10947_v4 = vld [vmem:[%s15717_s12 + $0x408] sm:$0xf]  ;;  %v11851_v21 = vld [vmem:[%s15717_s12 + $0x54c] sm:$0xf] }
 0x714   :  { %v10851_v7 = vld [vmem:[%s15717_s12 + $0x348] sm:$0xf] }
 0x715   :  { %7855 = vmatpush.bf16.msrb.mxu0 %v11076_v13 }
 0x716   :  { %7745 = vmatpush.bf16.msra.mxu3 %v10940_v25  ;;  %v14830_v38 = vpop.f32.mrf.mxu3  ;;  %v11043_v25 = vld [vmem:[%s15717_s12 + $0x4c8] sm:$0xf] }
 0x717   :  { %v11044_v10 = vor.u32 %v11839_v54, %v11043_v25  ;;  %v6496_v24 = vadd.f32 %v14830_v38, %v6477_v3  ;;  %v11815_v38 = vld [vmem:[%s15717_s12 + $0x424] sm:$0xf0] }
 0x718   :  { %v7944_v0 = vpop.f32.mrf.mxu1  ;;  %v10948_v2 = vor.u32 %v11815_v38, %v10947_v4  ;;  %v11807_v54 = vld [vmem:[%s15717_s12 + $0x3e4] sm:$0xf0]  ;;  %v11077_v4 = vld [vmem:[%s15717_s12 + $0x528] sm:$0xf0] }
 0x719   :  { %v14811_v47 = vadd.f32 %v7944_v0, %v14797_v32  ;;  %7856 = vmatpush.bf16.msrb.mxu0 %v11044_v10  ;;  %v11867_v10 = vld [vmem:[%s15717_s12 + $0x5cc] sm:$0xf] }
 0x71a   :  { %7776 = vmatpush.bf16.msrb.mxu3 %v10912_v30  ;;  %v11762_v30 = vld [vmem:[%s15717_s12 + $0x284] sm:$0xf] }
 0x71b   :  { %v10752_v22 = vor.u32 %v11762_v30, %v10749_v35 }
 0x71d   :  { %7857 = vmatpush.bf16.msrb.mxu0 %v11012_v44 }
 0x71e   :  { %7777 = vmatpush.bf16.msrb.mxu3 %v10880_v51  ;;  %v6497_v0 = vpop.f32.mrf.mxu3  ;;  %v11928_v51 = vmov 0  }
 0x71f   :  { %11889 = vset.pattern.permute.xlu0 %v11928_v51  ;;  %11890 = vset.pattern.permute.xlu1 %v11928_v51  ;;  %v6498_v48 = vadd.f32 %v6497_v0, %v6479_v12  ;;  %v14936_v0 = vld [vmem:[%s15720_s3 + $0x8] sm:$0xff]  ;;  %v6446_v51 = vadd.f32 %v14727_v1, %v6427_v37  ;;  %v6482_v12 = vadd.f32 %v14828_v41, %v6463_v39 }
 0x720   :  { %8190 = vperm.xlu0 %11889, %v14900_v53   ;;  %v11791_v1 = vld [vmem:[%s15717_s12 + $0x364] sm:$0xf0]  ;;  %8200 = vperm.xlu1 %11890, %v14973_v16   ;;  %v11843_v41 = vld [vmem:[%s15717_s12 + $0x50c] sm:$0xf] }
 0x721   :  { %7858 = vmatpush.bf16.msrb.mxu0 %v10980_v33  ;;  %v10852_v40 = vor.u32 %v11791_v1, %v10851_v7  ;;  %v11109_v33 = vld [vmem:[%s15717_s12 + $0x568] sm:$0xf0]  ;;  %v11767_v37 = vld [vmem:[%s15717_s12 + $0x2a4] sm:$0xf0] }
 0x722   :  { %7778 = vmatpush.bf16.msrb.mxu3 %v10848_v62  ;;  %v10720_v62 = vor.u32 %v11754_v36, %v10717_v28  ;;  %v11859_v36 = vld [vmem:[%s15717_s12 + $0x58c] sm:$0xf]  ;;  %v11112_v3 = vor.u32 %v11851_v21, %v11109_v33  ;;  %v10691_v21 = vld [vmem:[%s15717_s12 + $0x208] sm:$0xf] }
 0x723   :  { %v11144_v28 = vor.u32 %v11859_v36, %v11141_v29  ;;  %v10723_v29 = vld [vmem:[%s15717_s12 + $0x248] sm:$0xf]  ;;  %v11819_v7 = vld [vmem:[%s15717_s12 + $0x44c] sm:$0xf] }
 0x724   :  { %v10981_v39 = vld [vmem:[%s15717_s12 + $0x468] sm:$0xf0]  ;;  %v11751_v33 = vld [vmem:[%s15717_s12 + $0x224] sm:$0xf0] }
 0x725   :  { %7859 = vmatpush.bf16.msrb.mxu0 %v10948_v2  ;;  %v10787_v2 = vld [vmem:[%s15717_s12 + $0x2c8] sm:$0xf] }
 0x726   :  { %7779 = vmatpush.bf16.msrb.mxu3 %v10816_v18  ;;  %v6500_v56 = vpop.f32.mrf.mxu3  ;;  %v11746_v18 = vld [vmem:[%s15717_s12 + $0x204] sm:$0xf] }
 0x727   :  { %v10688_v46 = vor.u32 %v11746_v18, %v10685_v60  ;;  %v6501_v5 = vadd.f32 %v6500_v56, %v6482_v12  ;;  %v11783_v18 = vld [vmem:[%s15717_s12 + $0x324] sm:$0xf0]  ;;  %v10692_v12 = vor.u32 %v11751_v33, %v10691_v21  ;;  %v11051_v21 = vld [vmem:[%s15717_s12 + $0x4d0] sm:$0xf] }
 0x728   :  { %8195 = vperm.xlu0 %11889, %v14936_v0  }
 0x72a   :  { %7780 = vmatpush.bf16.msrb.mxu3 %v10784_v27  ;;  %v10915_v27 = vld [vmem:[%s15717_s12 + $0x3c8] sm:$0xf] }
 0x72b   :  { %v10916_v42 = vor.u32 %v11807_v54, %v10915_v27  ;;  %v11775_v27 = vld [vmem:[%s15717_s12 + $0x2e4] sm:$0xf0]  ;;  %v11835_v54 = vld [vmem:[%s15717_s12 + $0x4cc] sm:$0xf] }
 0x72e   :  { %7781 = vmatpush.bf16.msrb.mxu3 %v10752_v22  ;;  %v6502_v30 = vpop.f32.mrf.mxu3  ;;  %v10883_v22 = vld [vmem:[%s15717_s12 + $0x388] sm:$0xf] }
 0x72f   :  { %v10884_v44 = vor.u32 %v11799_v15, %v10883_v22 }
 0x730   :  { %v6514_v45 = vpop.f32.mrf.mxu0 }
 0x731   :  { %v6515_v13 = vadd.f32 %v6514_v45, %v6496_v24  ;;  %v11173_v45 = vld [vmem:[%s15717_s12 + $0x5e8] sm:$0xf0] }
 0x732   :  { %7782 = vmatpush.bf16.msrb.mxu3 %v10720_v62  ;;  %v11176_v35 = vor.u32 %v11867_v10, %v11173_v45  ;;  %v6465_v62 = vadd.f32 %v14799_v34, %v6446_v51  ;;  %v11045_v10 = vld [vmem:[%s15717_s12 + $0x4e8] sm:$0xf0] }
 0x733   :  { %v11013_v51 = vld [vmem:[%s15717_s12 + $0x4a8] sm:$0xf0] }
 0x734   :  { %v6484_v43 = vadd.f32 %v14856_v17, %v6465_v62  ;;  %v10984_v62 = vor.u32 %v11819_v7, %v10981_v39  ;;  %v11848_v7 = vld [vmem:[%s15717_s12 + $0x52c] sm:$0xf0]  ;;  %v11771_v39 = vld [vmem:[%s15717_s12 + $0x2cc] sm:$0xf] }
 0x736   :  { %7783 = vmatpush.bf16.msrb.mxu3 %v10688_v46  ;;  %v6503_v34 = vadd.f32 %v6502_v30, %v6484_v43  ;;  %v7709_v24 = vpop.f32.mrf.mxu3  ;;  %v15011_v46 = vperm.slane %v14666_v57, 0  ;;  %v10788_v57 = vor.u32 %v11775_v27, %v10787_v2  ;;  %v10949_v43 = vld [vmem:[%s15717_s12 + $0x428] sm:$0xf0]  ;;  %v11147_v2 = vld [vmem:[%s15717_s12 + $0x590] sm:$0xf] }
 0x738   :  { %v6516_v52 = vpop.f32.mrf.mxu0  ;;  %v7710_v45 = vadd.f32 %v7709_v24, %v15011_v46  ;;  %v11803_v24 = vld [vmem:[%s15717_s12 + $0x3cc] sm:$0xf] }
 0x739   :  { %v6517_v26 = vadd.f32 %v6516_v52, %v6498_v48  ;;  %v10819_v52 = vld [vmem:[%s15717_s12 + $0x308] sm:$0xf] }
 0x73a   :  { %v10820_v56 = vor.u32 %v11783_v18, %v10819_v52  ;;  %v11179_v52 = vld [vmem:[%s15717_s12 + $0x5d0] sm:$0xf] }
 0x73b   :  { %v14938_v25 = vpack.c.bf16 %v6517_v26, %v6515_v13  ;;  %v15008_v13 = vld [vmem:[%s15720_s3 + $0x18] sm:$0xff]  ;;  %v11080_v26 = vor.u32 %v11843_v41, %v11077_v4  ;;  %v11872_v41 = vld [vmem:[%s15717_s12 + $0x5ec] sm:$0xf0]  ;;  %v11795_v4 = vld [vmem:[%s15717_s12 + $0x38c] sm:$0xf] }
 0x73c   :  { %8205 = vperm.xlu1 %11890, %v15008_v13  }
 0x73d   :  { %7746 = vmatmul.bf16.vlgmr.msra.gmra.mxu3 %v14938_v25  ;;  %7803 = vmatmul.bf16.vlgmr.msra.gmra.mxu0 %v14938_v25 }
 0x73e   :  { %7833 = vmatpush.bf16.msra.mxu3 %v10916_v42  ;;  %7909 = vmatpush.bf16.msra.mxu0 %v11176_v35  ;;  %v11048_v42 = vor.u32 %v11835_v54, %v11045_v10  ;;  %v10755_v35 = vld [vmem:[%s15717_s12 + $0x288] sm:$0xf]  ;;  %v11787_v10 = vld [vmem:[%s15717_s12 + $0x34c] sm:$0xf] }
 0x73f   :  { %v10756_v15 = vor.u32 %v11767_v37, %v10755_v35  ;;  %v11115_v35 = vld [vmem:[%s15717_s12 + $0x550] sm:$0xf] }
 0x740   :  { %v6519_v55 = vpop.f32.mrf.mxu0  ;;  %v11856_v37 = vld [vmem:[%s15717_s12 + $0x56c] sm:$0xf0] }
 0x741   :  { %v6520_v60 = vadd.f32 %v6519_v55, %v6501_v5  ;;  %v11827_v55 = vld [vmem:[%s15717_s12 + $0x48c] sm:$0xf] }
 0x742   :  { %7834 = vmatpush.bf16.msra.mxu3 %v10884_v44  ;;  %7910 = vmatpush.bf16.msra.mxu0 %v11144_v28  ;;  %v15045_v44 = vpop.f32.mrf.mxu3  ;;  %v11016_v36 = vor.u32 %v11827_v55, %v11013_v51  ;;  %v11759_v28 = vld [vmem:[%s15717_s12 + $0x264] sm:$0xf0]  ;;  %v11779_v51 = vld [vmem:[%s15717_s12 + $0x30c] sm:$0xf] }
 0x743   :  { %v10724_v1 = vor.u32 %v11759_v28, %v10723_v29  ;;  %v11083_v29 = vld [vmem:[%s15717_s12 + $0x510] sm:$0xf] }
 0x746   :  { %7835 = vmatpush.bf16.msra.mxu3 %v10852_v40  ;;  %7911 = vmatpush.bf16.msra.mxu0 %v11112_v3  ;;  %v11811_v3 = vld [vmem:[%s15717_s12 + $0x40c] sm:$0xf] }
 0x747   :  { %v10952_v5 = vor.u32 %v11811_v3, %v10949_v43  ;;  %v11840_v3 = vld [vmem:[%s15717_s12 + $0x4ec] sm:$0xf0]  ;;  %v10757_v43 = vld [vmem:[%s15717_s12 + $0x2a8] sm:$0xf0] }
 0x748   :  { %v6521_v48 = vpop.f32.mrf.mxu0 }
 0x749   :  { %v6522_v17 = vadd.f32 %v6521_v48, %v6503_v34  ;;  %v10917_v48 = vld [vmem:[%s15717_s12 + $0x3e8] sm:$0xf0] }
 0x74a   :  { %7836 = vmatpush.bf16.msra.mxu3 %v10820_v56  ;;  %7912 = vmatpush.bf16.msra.mxu0 %v11080_v26  ;;  %v7714_v34 = vpop.f32.mrf.mxu3  ;;  %v10920_v18 = vor.u32 %v11803_v24, %v10917_v48  ;;  %v10885_v26 = vld [vmem:[%s15717_s12 + $0x3a8] sm:$0xf0]  ;;  %v11832_v24 = vld [vmem:[%s15717_s12 + $0x4ac] sm:$0xf0] }
 0x74b   :  { %v15013_v38 = vpack.c.bf16 %v6522_v17, %v6520_v60  ;;  %v11180_v60 = vor.u32 %v11872_v41, %v11179_v52  ;;  %v7715_v17 = vadd.f32 %v7714_v34, %v15011_v46  ;;  %v10888_v54 = vor.u32 %v11795_v4, %v10885_v26  ;;  %v11019_v34 = vld [vmem:[%s15717_s12 + $0x490] sm:$0xf]  ;;  %v10725_v41 = vld [vmem:[%s15717_s12 + $0x268] sm:$0xf0] }
 0x74c   :  { %v11020_v52 = vor.u32 %v11832_v24, %v11019_v34  ;;  %v11784_v34 = vld [vmem:[%s15717_s12 + $0x32c] sm:$0xf0]  ;;  %v11844_v24 = vld [vmem:[%s15717_s12 + $0x514] sm:$0xf] }
 0x74d   :  { %7751 = vmatmul.bf16.gmra.mxu3 %v15013_v38  ;;  %7808 = vmatmul.bf16.gmra.mxu0 %v15013_v38 }
 0x74e   :  { %7837 = vmatpush.bf16.msra.mxu3 %v10788_v57  ;;  %7913 = vmatpush.bf16.msra.mxu0 %v11048_v42  ;;  %v11864_v57 = vld [vmem:[%s15717_s12 + $0x5ac] sm:$0xf0] }
 0x74f   :  { %v11148_v42 = vor.u32 %v11864_v57, %v11147_v2  ;;  %v11747_v2 = vld [vmem:[%s15717_s12 + $0x20c] sm:$0xf]  ;;  %v10955_v57 = vld [vmem:[%s15717_s12 + $0x410] sm:$0xf] }
 0x750   :  { %v7728_v30 = vpop.f32.mrf.mxu0 }
 0x751   :  { %v15040_v22 = vadd.f32 %v7728_v30, %v7710_v45  ;;  %v11929_v45 = vmov 1   ;;  %v10853_v30 = vld [vmem:[%s15717_s12 + $0x368] sm:$0xf0] }
 0x752   :  { %7838 = vmatpush.bf16.msra.mxu3 %v10756_v15  ;;  %7914 = vmatpush.bf16.msra.mxu0 %v11016_v36  ;;  %v10856_v55 = vor.u32 %v11787_v10, %v10853_v30  ;;  %v11116_v15 = vor.u32 %v11856_v37, %v11115_v35  ;;  %v10821_v36 = vld [vmem:[%s15717_s12 + $0x328] sm:$0xf0]  ;;  %v11816_v10 = vld [vmem:[%s15717_s12 + $0x42c] sm:$0xf0]  ;;  %v11868_v37 = vld [vmem:[%s15717_s12 + $0x5d4] sm:$0xf] }
 0x753   :  { %11892 = vset.pattern.permute.xlu0 %v11929_v45  ;;  %11891 = vset.pattern.permute.xlu2 %v11929_v45  ;;  %v10824_v28 = vor.u32 %v11779_v51, %v10821_v36  ;;  %v10923_v30 = vld [vmem:[%s15717_s12 + $0x3d0] sm:$0xf] }
 0x754   :  { %8225 = vperm.xlu0 %11892, %v14973_v16   ;;  %11893 = vset.pattern.permute.xlu1 %v11929_v45  ;;  %v10956_v45 = vor.u32 %v11816_v10, %v10955_v57  ;;  %v11808_v35 = vld [vmem:[%s15717_s12 + $0x3ec] sm:$0xf0]  ;;  %v11828_v10 = vld [vmem:[%s15717_s12 + $0x494] sm:$0xf] }
 0x755   :  { %8229 = vperm.xlu1 %11893, %v15008_v13   ;;  %8217 = vperm.xlu2 %11891, %v14900_v53   ;;  %v10891_v51 = vld [vmem:[%s15717_s12 + $0x390] sm:$0xf] }
 0x756   :  { %7839 = vmatpush.bf16.msra.mxu3 %v10724_v1  ;;  %7915 = vmatpush.bf16.msra.mxu0 %v10984_v62  ;;  %v11084_v1 = vor.u32 %v11848_v7, %v11083_v29  ;;  %v10789_v62 = vld [vmem:[%s15717_s12 + $0x2e8] sm:$0xf0]  ;;  %v11800_v36 = vld [vmem:[%s15717_s12 + $0x3ac] sm:$0xf0]  ;;  %v11149_v7 = vld [vmem:[%s15717_s12 + $0x5b0] sm:$0xf0] }
 0x757   :  { %v10792_v33 = vor.u32 %v11771_v39, %v10789_v62  ;;  %v10859_v62 = vld [vmem:[%s15717_s12 + $0x350] sm:$0xf] }
 0x758   :  { %v15059_v40 = vpop.f32.mrf.mxu0 }
 0x75a   :  { %7840 = vmatpush.bf16.msra.mxu3 %v10692_v12  ;;  %7916 = vmatpush.bf16.msra.mxu0 %v10952_v5  ;;  %v11763_v12 = vld [vmem:[%s15717_s12 + $0x28c] sm:$0xf]  ;;  %v11052_v5 = vor.u32 %v11840_v3, %v11051_v21  ;;  %v11792_v21 = vld [vmem:[%s15717_s12 + $0x36c] sm:$0xf0]  ;;  %v11117_v3 = vld [vmem:[%s15717_s12 + $0x570] sm:$0xf0] }
 0x75b   :  { %v10760_v48 = vor.u32 %v11763_v12, %v10757_v43  ;;  %v10860_v12 = vor.u32 %v11792_v21, %v10859_v62  ;;  %v11812_v62 = vld [vmem:[%s15717_s12 + $0x414] sm:$0xf] }
 0x75c   :  { %v10957_v21 = vld [vmem:[%s15717_s12 + $0x430] sm:$0xf0] }
 0x75d   :  { %7784 = vmatmul.bf16.vlgmr.msrb.gmra.mxu3 %v14156_v59  ;;  %7860 = vmatmul.bf16.vlgmr.msrb.gmra.mxu0 %v14938_v25 }
 0x75e   :  { %7890 = vmatpush.bf16.msrb.mxu3 %v10920_v18  ;;  %7966 = vmatpush.bf16.msrb.mxu0 %v11180_v60  ;;  %v11755_v18 = vld [vmem:[%s15717_s12 + $0x24c] sm:$0xf]  ;;  %v10987_v60 = vld [vmem:[%s15717_s12 + $0x450] sm:$0xf] }
 0x75f   :  { %8221 = vperm.xlu2 %11891, %v14936_v0   ;;  %v10728_v4 = vor.u32 %v11755_v18, %v10725_v41 }
 0x760   :  { %v7733_v56 = vpop.f32.mrf.mxu0 }
 0x761   :  { %v15097_v27 = vadd.f32 %v7733_v56, %v7715_v17  ;;  %v11824_v17 = vld [vmem:[%s15717_s12 + $0x46c] sm:$0xf0]  ;;  %v11930_v56 = vmov 2  }
 0x762   :  { %7891 = vmatpush.bf16.msrb.mxu3 %v10888_v54  ;;  %7967 = vmatpush.bf16.msrb.mxu0 %v11148_v42  ;;  %v10988_v26 = vor.u32 %v11824_v17, %v10987_v60  ;;  %v10693_v54 = vld [vmem:[%s15717_s12 + $0x228] sm:$0xf0]  ;;  %v10795_v60 = vld [vmem:[%s15717_s12 + $0x2d0] sm:$0xf] }
 0x763   :  { %11895 = vset.pattern.permute.xlu1 %v11930_v56  ;;  %11896 = vset.pattern.permute.xlu0 %v11930_v56  ;;  %v10696_v42 = vor.u32 %v11747_v2, %v10693_v54  ;;  %v11776_v17 = vld [vmem:[%s15717_s12 + $0x2ec] sm:$0xf0] }
 0x764   :  { %8245 = vperm.xlu1 %11895, %v14936_v0   ;;  %8253 = vperm.xlu0 %11896, %v15008_v13   ;;  %v10763_v2 = vld [vmem:[%s15717_s12 + $0x290] sm:$0xf] }
 0x765   :  { %v11768_v54 = vld [vmem:[%s15717_s12 + $0x2ac] sm:$0xf0] }
 0x766   :  { %7892 = vmatpush.bf16.msrb.mxu3 %v10856_v55  ;;  %7968 = vmatpush.bf16.msrb.mxu0 %v11116_v15  ;;  %v10924_v55 = vor.u32 %v11808_v35, %v10923_v30  ;;  %v11181_v15 = vld [vmem:[%s15717_s12 + $0x5f0] sm:$0xf0]  ;;  %v11931_v30 = vmov 3  }
 0x767   :  { %11894 = vset.pattern.permute.xlu2 %v11930_v56  ;;  %v11184_v29 = vor.u32 %v11868_v37, %v11181_v15  ;;  %v11836_v56 = vld [vmem:[%s15717_s12 + $0x4d4] sm:$0xf]  ;;  %v10731_v37 = vld [vmem:[%s15717_s12 + $0x250] sm:$0xf] }
 0x768   :  { %8241 = vperm.xlu2 %11894, %v14900_v53   ;;  %v15234_v41 = vpop.f32.mrf.mxu0  ;;  %v11820_v15 = vld [vmem:[%s15717_s12 + $0x454] sm:$0xf] }
 0x76a   :  { %7893 = vmatpush.bf16.msrb.mxu3 %v10824_v28  ;;  %7969 = vmatpush.bf16.msrb.mxu0 %v11084_v1  ;;  %v11860_v28 = vld [vmem:[%s15717_s12 + $0x594] sm:$0xf]  ;;  %v10892_v1 = vor.u32 %v11800_v36, %v10891_v51 }
 0x76b   :  { %v11152_v39 = vor.u32 %v11860_v28, %v11149_v7  ;;  %v10989_v51 = vld [vmem:[%s15717_s12 + $0x470] sm:$0xf0]  ;;  %v10699_v7 = vld [vmem:[%s15717_s12 + $0x210] sm:$0xf] }
 0x76c   :  { %11897 = vset.pattern.permute.xlu1 %v11931_v30  ;;  %v10992_v28 = vor.u32 %v11820_v15, %v10989_v51  ;;  %v11849_v15 = vld [vmem:[%s15717_s12 + $0x534] sm:$0xf0] }
 0x76d   :  { %7789 = vmatmul.bf16.gmra.mxu3 %v14202_v11  ;;  %7865 = vmatmul.bf16.gmra.mxu0 %v15013_v38 }
 0x76e   :  { %7894 = vmatpush.bf16.msrb.mxu3 %v10792_v33  ;;  %7970 = vmatpush.bf16.msrb.mxu0 %v11052_v5  ;;  %v11852_v33 = vld [vmem:[%s15717_s12 + $0x554] sm:$0xf]  ;;  %v10827_v5 = vld [vmem:[%s15717_s12 + $0x310] sm:$0xf] }
 0x76f   :  { %v11120_v43 = vor.u32 %v11852_v33, %v11117_v3  ;;  %8265 = vperm.xlu1 %11897, %v14900_v53   ;;  %v10960_v33 = vor.u32 %v11812_v62, %v10957_v21  ;;  %v11804_v3 = vld [vmem:[%s15717_s12 + $0x3d4] sm:$0xf] }
 0x770   :  { %8249 = vperm.xlu2 %11894, %v14973_v16   ;;  %v11764_v21 = vld [vmem:[%s15717_s12 + $0x294] sm:$0xf] }
 0x772   :  { %7895 = vmatpush.bf16.msrb.mxu3 %v10760_v48  ;;  %7971 = vmatpush.bf16.msrb.mxu0 %v11020_v52  ;;  %v11085_v48 = vld [vmem:[%s15717_s12 + $0x530] sm:$0xf0]  ;;  %v10828_v52 = vor.u32 %v11784_v34, %v10827_v5  ;;  %v11873_v34 = vld [vmem:[%s15717_s12 + $0x5f4] sm:$0xf0] }
 0x773   :  { %v11088_v18 = vor.u32 %v11844_v24, %v11085_v48 }
 0x776   :  { %7896 = vmatpush.bf16.msrb.mxu3 %v10728_v4  ;;  %7972 = vmatpush.bf16.msrb.mxu0 %v10988_v26  ;;  %v10796_v4 = vor.u32 %v11776_v17, %v10795_v60  ;;  %v11053_v26 = vld [vmem:[%s15717_s12 + $0x4f0] sm:$0xf0]  ;;  %v11155_v60 = vld [vmem:[%s15717_s12 + $0x598] sm:$0xf] }
 0x777   :  { %v11056_v57 = vor.u32 %v11836_v56, %v11053_v26  ;;  %8273 = vperm.xlu1 %11897, %v14973_v16   ;;  %v11865_v56 = vld [vmem:[%s15717_s12 + $0x5b4] sm:$0xf0]  ;;  %v11788_v26 = vld [vmem:[%s15717_s12 + $0x354] sm:$0xf] }
 0x778   :  { %11898 = vset.pattern.permute.xlu2 %v11931_v30  ;;  %v11780_v30 = vld [vmem:[%s15717_s12 + $0x314] sm:$0xf] }
 0x779   :  { %8269 = vperm.xlu2 %11898, %v14936_v0  }
 0x77a   :  { %7897 = vmatpush.bf16.msrb.mxu3 %v10696_v42  ;;  %7973 = vmatpush.bf16.msrb.mxu0 %v10956_v45  ;;  %v11021_v42 = vld [vmem:[%s15717_s12 + $0x4b0] sm:$0xf0]  ;;  %v10764_v45 = vor.u32 %v11768_v54, %v10763_v2  ;;  %v11123_v54 = vld [vmem:[%s15717_s12 + $0x558] sm:$0xf] }
 0x77b   :  { %v11024_v35 = vor.u32 %v11828_v10, %v11021_v42  ;;  %v10861_v2 = vld [vmem:[%s15717_s12 + $0x370] sm:$0xf0]  ;;  %v11857_v10 = vld [vmem:[%s15717_s12 + $0x574] sm:$0xf0] }
 0x77c   :  { %v11124_v42 = vor.u32 %v11857_v10, %v11123_v54  ;;  %v10963_v54 = vld [vmem:[%s15717_s12 + $0x418] sm:$0xf] }
 0x77d   :  { %7841 = vmatmul.bf16.vlgmr.msra.gmra.mxu3 %v14156_v59  ;;  %7917 = vmatmul.bf16.vlgmr.msra.gmra.mxu0 %v14938_v25 }
 0x77e   :  { %7947 = vmatpush.bf16.msra.mxu3 %v10924_v55  ;;  %8023 = vmatpush.bf16.msra.mxu0 %v11184_v29  ;;  %v11760_v55 = vld [vmem:[%s15717_s12 + $0x26c] sm:$0xf0]  ;;  %v15276_v29 = vpop.f32.mrf.mxu0 }
 0x77f   :  { %v10732_v36 = vor.u32 %v11760_v55, %v10731_v37  ;;  %v11091_v37 = vld [vmem:[%s15717_s12 + $0x518] sm:$0xf] }
 0x780   :  { %v11092_v51 = vor.u32 %v11849_v15, %v11091_v37 }
 0x781   :  { %8277 = vperm.xlu2 %11898, %v15008_v13  }
 0x782   :  { %7948 = vmatpush.bf16.msra.mxu3 %v10892_v1  ;;  %8024 = vmatpush.bf16.msra.mxu0 %v11152_v39  ;;  %v11752_v1 = vld [vmem:[%s15717_s12 + $0x22c] sm:$0xf0] }
 0x783   :  { %v10700_v39 = vor.u32 %v11752_v1, %v10699_v7  ;;  %v11059_v7 = vld [vmem:[%s15717_s12 + $0x4d8] sm:$0xf] }
 0x786   :  { %7949 = vmatpush.bf16.msra.mxu3 %v10860_v12  ;;  %8025 = vmatpush.bf16.msra.mxu0 %v11120_v43  ;;  %v10925_v12 = vld [vmem:[%s15717_s12 + $0x3f0] sm:$0xf0]  ;;  %v11187_v43 = vld [vmem:[%s15717_s12 + $0x5d8] sm:$0xf]  ;;  %v15306_v24 = vpop.f32.mrf.mxu0 }
 0x787   :  { %v10928_v5 = vor.u32 %v11804_v3, %v10925_v12  ;;  %v11188_v48 = vor.u32 %v11873_v34, %v11187_v43  ;;  %v11027_v3 = vld [vmem:[%s15717_s12 + $0x498] sm:$0xf] }
 0x788   :  { %v11833_v43 = vld [vmem:[%s15717_s12 + $0x4b4] sm:$0xf0] }
 0x789   :  { %v11028_v34 = vor.u32 %v11833_v43, %v11027_v3  ;;  %v10867_v3 = vld [vmem:[%s15717_s12 + $0x358] sm:$0xf]  ;;  %v11853_v43 = vld [vmem:[%s15717_s12 + $0x55c] sm:$0xf] }
 0x78a   :  { %7950 = vmatpush.bf16.msra.mxu3 %v10828_v52  ;;  %8026 = vmatpush.bf16.msra.mxu0 %v11088_v18  ;;  %v11796_v52 = vld [vmem:[%s15717_s12 + $0x394] sm:$0xf] }
 0x78b   :  { %v10893_v18 = vld [vmem:[%s15717_s12 + $0x3b0] sm:$0xf0] }
 0x78c   :  { %v10896_v17 = vor.u32 %v11796_v52, %v10893_v18  ;;  %v11756_v52 = vld [vmem:[%s15717_s12 + $0x254] sm:$0xf] }
 0x78d   :  { %7846 = vmatmul.bf16.gmra.mxu3 %v14202_v11  ;;  %7922 = vmatmul.bf16.gmra.mxu0 %v15013_v38  ;;  %v10733_v18 = vld [vmem:[%s15717_s12 + $0x270] sm:$0xf0] }
 0x78e   :  { %7951 = vmatpush.bf16.msra.mxu3 %v10796_v4  ;;  %8027 = vmatpush.bf16.msra.mxu0 %v11056_v57  ;;  %v11156_v4 = vor.u32 %v11865_v56, %v11155_v60  ;;  %v10864_v57 = vor.u32 %v11788_v26, %v10861_v2  ;;  %v10995_v60 = vld [vmem:[%s15717_s12 + $0x458] sm:$0xf]  ;;  %v15389_v26 = vpop.f32.mrf.mxu3  ;;  %v10701_v2 = vld [vmem:[%s15717_s12 + $0x230] sm:$0xf0] }
 0x78f   :  { %v11825_v56 = vld [vmem:[%s15717_s12 + $0x474] sm:$0xf0] }
 0x792   :  { %7952 = vmatpush.bf16.msra.mxu3 %v10764_v45  ;;  %8028 = vmatpush.bf16.msra.mxu0 %v11024_v35  ;;  %v15332_v45 = vpop.f32.mrf.mxu0  ;;  %v10829_v35 = vld [vmem:[%s15717_s12 + $0x330] sm:$0xf0] }
 0x793   :  { %v10832_v55 = vor.u32 %v11780_v30, %v10829_v35  ;;  %v11809_v30 = vld [vmem:[%s15717_s12 + $0x3f4] sm:$0xf0]  ;;  %v11869_v35 = vld [vmem:[%s15717_s12 + $0x5dc] sm:$0xf] }
 0x796   :  { %7953 = vmatpush.bf16.msra.mxu3 %v10732_v36  ;;  %8029 = vmatpush.bf16.msra.mxu0 %v10992_v28  ;;  %v11772_v36 = vld [vmem:[%s15717_s12 + $0x2d4] sm:$0xf] }
 0x797   :  { %v10797_v28 = vld [vmem:[%s15717_s12 + $0x2f0] sm:$0xf0] }
 0x798   :  { %v10800_v1 = vor.u32 %v11772_v36, %v10797_v28  ;;  %v15420_v36 = vpop.permute.xlu0 %8190  ;;  %v10899_v28 = vld [vmem:[%s15717_s12 + $0x398] sm:$0xf] }
 0x79a   :  { %7954 = vmatpush.bf16.msra.mxu3 %v10700_v39  ;;  %8030 = vmatpush.bf16.msra.mxu0 %v10960_v33  ;;  %v11841_v39 = vld [vmem:[%s15717_s12 + $0x4f4] sm:$0xf0]  ;;  %v10765_v33 = vld [vmem:[%s15717_s12 + $0x2b0] sm:$0xf0] }
 0x79b   :  { %v11060_v62 = vor.u32 %v11841_v39, %v11059_v7  ;;  %v10768_v12 = vor.u32 %v11764_v21, %v10765_v33  ;;  %v11801_v7 = vld [vmem:[%s15717_s12 + $0x3b4] sm:$0xf0] }
 0x79d   :  { %7898 = vmatmul.bf16.vlgmr.msrb.gmra.mxu3 %v14156_v59  ;;  %7974 = vmatmul.bf16.vlgmr.msrb.gmra.mxu0 %v14938_v25 }
 0x79e   :  { %8004 = vmatpush.bf16.msrb.mxu3 %v10928_v5  ;;  %8080 = vmatpush.bf16.msrb.mxu0 %v11188_v48  ;;  %v15372_v5 = vpop.f32.mrf.mxu0  ;;  %v11932_v48 = vmov 4  }
 0x79f   :  { %11899 = vset.pattern.permute.xlu0 %v11932_v48  ;;  %11900 = vset.pattern.permute.xlu1 %v11932_v48 }
 0x7a0   :  { %8289 = vperm.xlu0 %11899, %v14900_v53   ;;  %8293 = vperm.xlu1 %11900, %v14936_v0   ;;  %v11748_v53 = vld [vmem:[%s15717_s12 + $0x214] sm:$0xf] }
 0x7a1   :  { %11901 = vset.pattern.permute.xlu2 %v11932_v48  ;;  %v10704_v0 = vor.u32 %v11748_v53, %v10701_v2  ;;  %v7712_v48 = vadd.f32 %v15045_v44, %v15011_v46 }
 0x7a2   :  { %8005 = vmatpush.bf16.msrb.mxu3 %v10896_v17  ;;  %8081 = vmatpush.bf16.msrb.mxu0 %v11156_v4  ;;  %v10736_v17 = vor.u32 %v11756_v52, %v10733_v18  ;;  %v10996_v4 = vor.u32 %v11825_v56, %v10995_v60  ;;  %v11785_v56 = vld [vmem:[%s15717_s12 + $0x334] sm:$0xf0] }
 0x7a3   :  { %8297 = vperm.xlu2 %11901, %v14973_v16   ;;  %v11817_v16 = vld [vmem:[%s15717_s12 + $0x434] sm:$0xf0]  ;;  %v7731_v18 = vadd.f32 %v15059_v40, %v7712_v48  ;;  %v11093_v40 = vld [vmem:[%s15717_s12 + $0x538] sm:$0xf0] }
 0x7a4   :  { %v10964_v10 = vor.u32 %v11817_v16, %v10963_v54  ;;  %v8196_v54 = vpop.permute.xlu0 %8195  ;;  %v11761_v48 = vld [vmem:[%s15717_s12 + $0x274] sm:$0xf0] }
 0x7a6   :  { %8006 = vmatpush.bf16.msrb.mxu3 %v10864_v57  ;;  %8082 = vmatpush.bf16.msrb.mxu0 %v11124_v42  ;;  %v10931_v42 = vld [vmem:[%s15717_s12 + $0x3d8] sm:$0xf] }
 0x7a7   :  { %v10932_v37 = vor.u32 %v11809_v30, %v10931_v42  ;;  %v11777_v42 = vld [vmem:[%s15717_s12 + $0x2f4] sm:$0xf0]  ;;  %v11837_v30 = vld [vmem:[%s15717_s12 + $0x4dc] sm:$0xf] }
 0x7a8   :  { %8301 = vperm.xlu1 %11900, %v15008_v13   ;;  %v10900_v13 = vor.u32 %v11801_v7, %v10899_v28  ;;  %v8201_v28 = vpop.permute.xlu1 %8200  ;;  %v10771_v7 = vld [vmem:[%s15717_s12 + $0x298] sm:$0xf] }
 0x7aa   :  { %8007 = vmatpush.bf16.msrb.mxu3 %v10832_v55  ;;  %8083 = vmatpush.bf16.msrb.mxu0 %v11092_v51  ;;  %v11189_v55 = vld [vmem:[%s15717_s12 + $0x5f8] sm:$0xf0] }
 0x7ab   :  { %v11192_v15 = vor.u32 %v11869_v35, %v11189_v55  ;;  %v11061_v55 = vld [vmem:[%s15717_s12 + $0x4f8] sm:$0xf0] }
 0x7ad   :  { %7903 = vmatmul.bf16.gmra.mxu3 %v14202_v11  ;;  %7979 = vmatmul.bf16.gmra.mxu0 %v15013_v38 }
 0x7ae   :  { %8008 = vmatpush.bf16.msrb.mxu3 %v10800_v1  ;;  %8084 = vmatpush.bf16.msrb.mxu0 %v11060_v62  ;;  %v11861_v1 = vld [vmem:[%s15717_s12 + $0x59c] sm:$0xf] }
 0x7af   :  { %v11157_v62 = vld [vmem:[%s15717_s12 + $0x5b8] sm:$0xf0] }
 0x7b0   :  { %v11160_v33 = vor.u32 %v11861_v1, %v11157_v62  ;;  %v11769_v1 = vld [vmem:[%s15717_s12 + $0x2b4] sm:$0xf0] }
 0x7b2   :  { %8009 = vmatpush.bf16.msrb.mxu3 %v10768_v12  ;;  %8085 = vmatpush.bf16.msrb.mxu0 %v11028_v34  ;;  %v11793_v12 = vld [vmem:[%s15717_s12 + $0x374] sm:$0xf0]  ;;  %v11125_v34 = vld [vmem:[%s15717_s12 + $0x578] sm:$0xf0] }
 0x7b3   :  { %v11128_v52 = vor.u32 %v11853_v43, %v11125_v34  ;;  %v10739_v34 = vld [vmem:[%s15717_s12 + $0x258] sm:$0xf] }
 0x7b6   :  { %8010 = vmatpush.bf16.msrb.mxu3 %v10736_v17  ;;  %8086 = vmatpush.bf16.msrb.mxu0 %v10996_v4  ;;  %v10835_v17 = vld [vmem:[%s15717_s12 + $0x318] sm:$0xf]  ;;  %v11845_v4 = vld [vmem:[%s15717_s12 + $0x51c] sm:$0xf] }
 0x7b7   :  { %v10836_v44 = vor.u32 %v11785_v56, %v10835_v17 }
 0x7ba   :  { %v15403_v57 = vpop.f32.mrf.mxu0  ;;  %8011 = vmatpush.bf16.msrb.mxu3 %v10704_v0  ;;  %8087 = vmatpush.bf16.msrb.mxu0 %v10964_v10  ;;  %v11096_v0 = vor.u32 %v11845_v4, %v11093_v40  ;;  %v10803_v10 = vld [vmem:[%s15717_s12 + $0x2d8] sm:$0xf] }
 0x7bb   :  { %v11753_v40 = vld [vmem:[%s15717_s12 + $0x234] sm:$0xf0] }
 0x7bd   :  { %7955 = vmatmul.bf16.vlgmr.msra.gmra.mxu3 %v14156_v59  ;;  %8031 = vmatmul.bf16.vlgmr.msra.gmra.mxu0 %v14938_v25 }
 0x7be   :  { %8061 = vmatpush.bf16.msra.mxu3 %v10932_v37  ;;  %8137 = vmatpush.bf16.msra.mxu0 %v11192_v15  ;;  %v10804_v37 = vor.u32 %v11777_v42, %v10803_v10  ;;  %v11064_v15 = vor.u32 %v11837_v30, %v11061_v55  ;;  %v15533_v42 = vld [vmem:[%s15719_s13] sm:$0xff]  ;;  %v11805_v55 = vld [vmem:[%s15717_s12 + $0x3dc] sm:$0xf] }
 0x7bf   :  { %v15536_v30 = vperm.slane %v15533_v42, 1 }
 0x7c0   :  { %v7747_v51 = vpop.f32.mrf.mxu3 }
 0x7c1   :  { %v15432_v39 = vadd.f32 %v7747_v51, %v15040_v22  ;;  %v10868_v22 = vor.u32 %v11793_v12, %v10867_v3  ;;  %v11029_v3 = vld [vmem:[%s15717_s12 + $0x4b8] sm:$0xf0] }
 0x7c2   :  { %v15437_v21 = vpop.f32.mrf.mxu0  ;;  %8062 = vmatpush.bf16.msra.mxu3 %v10900_v13  ;;  %8138 = vmatpush.bf16.msra.mxu0 %v11160_v33  ;;  %v11829_v13 = vld [vmem:[%s15717_s12 + $0x49c] sm:$0xf]  ;;  %v10772_v33 = vor.u32 %v11769_v1, %v10771_v7  ;;  %v7767_v7 = vadd.f32 %v15276_v29, %v15536_v30 }
 0x7c3   :  { %v11789_v29 = vld [vmem:[%s15717_s12 + $0x35c] sm:$0xf] }
 0x7c6   :  { %8063 = vmatpush.bf16.msra.mxu3 %v10868_v22  ;;  %8139 = vmatpush.bf16.msra.mxu0 %v11128_v52  ;;  %v11032_v22 = vor.u32 %v11829_v13, %v11029_v3  ;;  %v11821_v52 = vld [vmem:[%s15717_s12 + $0x45c] sm:$0xf] }
 0x7c7   :  { %v11797_v13 = vld [vmem:[%s15717_s12 + $0x39c] sm:$0xf] }
 0x7c8   :  { %v7749_v60 = vpop.f32.mrf.mxu3 }
 0x7c9   :  { %v7750_v53 = vadd.f32 %v7749_v60, %v7731_v18  ;;  %v10997_v18 = vld [vmem:[%s15717_s12 + $0x478] sm:$0xf0]  ;;  %v7717_v60 = vadd.f32 %v15389_v26, %v15011_v46 }
 0x7ca   :  { %v15466_v2 = vpop.f32.mrf.mxu0  ;;  %8064 = vmatpush.bf16.msra.mxu3 %v10836_v44  ;;  %8140 = vmatpush.bf16.msra.mxu0 %v11096_v0  ;;  %v11000_v56 = vor.u32 %v11821_v52, %v10997_v18  ;;  %v10707_v44 = vld [vmem:[%s15717_s12 + $0x218] sm:$0xf]  ;;  %v11813_v46 = vld [vmem:[%s15717_s12 + $0x41c] sm:$0xf] }
 0x7cb   :  { %v8161_v16 = vand.u32 2147483647, %v7750_v53  ;;  %v7736_v4 = vadd.f32 %v15234_v41, %v7717_v60  ;;  %v10965_v41 = vld [vmem:[%s15717_s12 + $0x438] sm:$0xf0]  ;;  %v7769_v60 = vadd.f32 %v15306_v24, %v15536_v30 }
 0x7cc   :  { %v10968_v10 = vor.u32 %v11813_v46, %v10965_v41  ;;  %v10805_v41 = vld [vmem:[%s15717_s12 + $0x2f8] sm:$0xf0] }
 0x7cd   :  { %v15477_v35 = vmul.f32 %v8196_v54, %v8161_v16  ;;  %7960 = vmatmul.bf16.gmra.mxu3 %v14202_v11  ;;  %8036 = vmatmul.bf16.gmra.mxu0 %v15013_v38  ;;  %v10708_v54 = vor.u32 %v11753_v40, %v10707_v44  ;;  %v8206_v16 = vpop.permute.xlu1 %8205 }
 0x7ce   :  { %8065 = vmatpush.bf16.msra.mxu3 %v10804_v37  ;;  %8141 = vmatpush.bf16.msra.mxu0 %v11064_v15  ;;  %v10933_v15 = vld [vmem:[%s15717_s12 + $0x3f8] sm:$0xf0] }
 0x7d0   :  { %v7752_v51 = vpop.f32.mrf.mxu3 }
 0x7d1   :  { %v7753_v62 = vadd.f32 %v7752_v51, %v15097_v27  ;;  %v10740_v27 = vor.u32 %v11761_v48, %v10739_v34  ;;  %v8156_v34 = vand.u32 2147483647, %v15432_v39 }
 0x7d2   :  { %v15497_v12 = vpop.f32.mrf.mxu0  ;;  %8066 = vmatpush.bf16.msra.mxu3 %v10772_v33  ;;  %8142 = vmatpush.bf16.msra.mxu0 %v11032_v22 }
 0x7d3   :  { %v8166_v43 = vand.u32 2147483647, %v7753_v62  ;;  %v10901_v62 = vld [vmem:[%s15717_s12 + $0x3b8] sm:$0xf0] }
 0x7d4   :  { %v10904_v3 = vor.u32 %v11797_v13, %v10901_v62 }
 0x7d5   :  { %v15513_v17 = vmul.f32 %v8201_v28, %v8166_v43  ;;  %v10936_v28 = vor.u32 %v11805_v55, %v10933_v15  ;;  %v8218_v43 = vpop.permute.xlu2 %8217  ;;  %v11765_v15 = vld [vmem:[%s15717_s12 + $0x29c] sm:$0xf] }
 0x7d6   :  { %8067 = vmatpush.bf16.msra.mxu3 %v10740_v27  ;;  %8143 = vmatpush.bf16.msra.mxu0 %v11000_v56  ;;  %v10869_v27 = vld [vmem:[%s15717_s12 + $0x378] sm:$0xf0]  ;;  %v8208_v56 = vmul.f32 %v15420_v36, %v8156_v34 }
 0x7d7   :  { %v10872_v52 = vor.u32 %v11789_v29, %v10869_v27 }
 0x7d8   :  { %v7754_v53 = vpop.f32.mrf.mxu3 }
 0x7d9   :  { %v7755_v26 = vadd.f32 %v7754_v53, %v7736_v4  ;;  %v10837_v53 = vld [vmem:[%s15717_s12 + $0x338] sm:$0xf0] }
 0x7da   :  { %v15528_v0 = vpop.f32.mrf.mxu0  ;;  %8068 = vmatpush.bf16.msra.mxu3 %v10708_v54  ;;  %8144 = vmatpush.bf16.msra.mxu0 %v10968_v10  ;;  %v11773_v54 = vld [vmem:[%s15717_s12 + $0x2dc] sm:$0xf] }
 0x7db   :  { %v8171_v37 = vand.u32 2147483647, %v7755_v26  ;;  %v10808_v10 = vor.u32 %v11773_v54, %v10805_v41  ;;  %v7826_v41 = vadd.f32 %v14646_v49, %v14670_v8 }
 0x7dd   :  { %v15544_v51 = vmul.f32 %v8206_v16, %v8171_v37  ;;  %8012 = vmatmul.bf16.vlgmr.msrb.gmra.mxu3 %v14156_v59  ;;  %8088 = vmatmul.bf16.vlgmr.msrb.gmra.mxu0 %v14938_v25  ;;  %v8222_v36 = vpop.permute.xlu2 %8221  ;;  %v7772_v37 = vadd.f32 %v15332_v45, %v15536_v30  ;;  %v11757_v45 = vld [vmem:[%s15717_s12 + $0x25c] sm:$0xf] }
 0x7de   :  { %8118 = vmatpush.bf16.msrb.mxu3 %v10936_v28  ;;  %v10773_v28 = vld [vmem:[%s15717_s12 + $0x2b8] sm:$0xf0] }
 0x7df   :  { %v10776_v13 = vor.u32 %v11765_v15, %v10773_v28 }
 0x7e0   :  { %v7785_v1 = vpop.f32.mrf.mxu3 }
 0x7e1   :  { %v7786_v33 = vadd.f32 %v7785_v1, %v7767_v7 }
 0x7e2   :  { %v15556_v22 = vpop.f32.mrf.mxu0  ;;  %8119 = vmatpush.bf16.msrb.mxu3 %v10904_v3  ;;  %v10741_v3 = vld [vmem:[%s15717_s12 + $0x278] sm:$0xf0] }
 0x7e3   :  { %v7805_v48 = vadd.f32 %v15403_v57, %v7786_v33  ;;  %v11781_v57 = vld [vmem:[%s15717_s12 + $0x31c] sm:$0xf]  ;;  %v10744_v34 = vor.u32 %v11757_v45, %v10741_v3 }
 0x7e4   :  { %v10840_v46 = vor.u32 %v11781_v57, %v10837_v53  ;;  %v7824_v57 = vadd.f32 %v14628_v50, %v14670_v8 }
 0x7e5   :  { %v8157_v18 = vand.u32 2147483647, %v7805_v48 }
 0x7e6   :  { %8120 = vmatpush.bf16.msrb.mxu3 %v10872_v52  ;;  %v10709_v52 = vld [vmem:[%s15717_s12 + $0x238] sm:$0xf0] }
 0x7e7   :  { %v8232_v4 = vmul.f32 %v8218_v43, %v8157_v18  ;;  %v8226_v43 = vpop.permute.xlu0 %8225 }
 0x7e8   :  { %v7787_v39 = vpop.f32.mrf.mxu3 }
 0x7e9   :  { %v8236_v44 = vadd.f32 %v8232_v4, %v8208_v56  ;;  %v7788_v40 = vadd.f32 %v7787_v39, %v7769_v60 }
 0x7ea   :  { %v15575_v26 = vpop.f32.mrf.mxu0  ;;  %8121 = vmatpush.bf16.msrb.mxu3 %v10840_v46 }
 0x7eb   :  { %v7807_v24 = vadd.f32 %v15437_v21, %v7788_v40 }
 0x7ed   :  { %8017 = vmatmul.bf16.gmra.mxu3 %v14202_v11  ;;  %8093 = vmatmul.bf16.gmra.mxu0 %v15013_v38  ;;  %v8162_v16 = vand.u32 2147483647, %v7807_v24 }
 0x7ee   :  { %8122 = vmatpush.bf16.msrb.mxu3 %v10808_v10 }
 0x7ef   :  { %v8233_v21 = vmul.f32 %v8222_v36, %v8162_v16  ;;  %v8242_v36 = vpop.permute.xlu2 %8241 }
 0x7f0   :  { %v7790_v55 = vpop.f32.mrf.mxu3 }
 0x7f1   :  { %v8237_v7 = vadd.f32 %v8233_v21, %v15477_v35  ;;  %v7791_v1 = vadd.f32 %v7790_v55, %v7772_v37  ;;  %v7774_v35 = vadd.f32 %v15372_v5, %v15536_v30  ;;  %v8230_v5 = vpop.permute.xlu1 %8229 }
 0x7f2   :  { %v7868_v62 = vpop.f32.mrf.mxu0  ;;  %8123 = vmatpush.bf16.msrb.mxu3 %v10776_v13 }
 0x7f3   :  { %v7810_v33 = vadd.f32 %v15466_v2, %v7791_v1  ;;  %v11749_v2 = vld [vmem:[%s15717_s12 + $0x21c] sm:$0xf] }
 0x7f4   :  { %v10712_v56 = vor.u32 %v11749_v2, %v10709_v52 }
 0x7f5   :  { %v8167_v48 = vand.u32 2147483647, %v7810_v33 }
 0x7f6   :  { %8124 = vmatpush.bf16.msrb.mxu3 %v10744_v34 }
 0x7f7   :  { %v8234_v29 = vmul.f32 %v8226_v43, %v8167_v48  ;;  %v8254_v48 = vpop.permute.xlu0 %8253 }
 0x7f8   :  { %v7792_v27 = vpop.f32.mrf.mxu3 }
 0x7f9   :  { %v8238_v18 = vadd.f32 %v8234_v29, %v15513_v17  ;;  %v7793_v60 = vadd.f32 %v7792_v27, %v7774_v35  ;;  %v8246_v50 = vpop.permute.xlu1 %8245 }
 0x7fa   :  { %8125 = vmatpush.bf16.msrb.mxu3 %v10712_v56  ;;  %v7918_v39 = vpop.f32.mrf.mxu0 }
 0x7fb   :  { %v7812_v4 = vadd.f32 %v15497_v12, %v7793_v60 }
 0x7fd   :  { %8069 = vmatmul.bf16.vlgmr.msra.gmra.mxu3 %v14156_v59  ;;  %8145 = vmatmul.bf16.vlgmr.msra.gmra.mxu0 %v14938_v25  ;;  %v8172_v30 = vand.u32 2147483647, %v7812_v4 }
 0x7ff   :  { %v8235_v53 = vmul.f32 %v8230_v5, %v8172_v30 }
 0x800   :  { %v7842_v40 = vpop.f32.mrf.mxu3 }
 0x801   :  { %v8239_v46 = vadd.f32 %v8235_v53, %v15544_v51  ;;  %v7843_v17 = vadd.f32 %v7842_v40, %v7824_v57  ;;  %v8266_v52 = vpop.permute.xlu1 %8265 }
 0x802   :  { %v7920_v54 = vpop.f32.mrf.mxu0 }
 0x803   :  { %v7862_v24 = vadd.f32 %v15528_v0, %v7843_v17  ;;  %v7829_v0 = vadd.f32 %v14660_v31, %v14670_v8  ;;  %v7881_v8 = vadd.f32 %v14675_v20, %v14688_v19 }
 0x805   :  { %v8158_v12 = vand.u32 2147483647, %v7862_v24 }
 0x807   :  { %v8256_v16 = vmul.f32 %v8242_v36, %v8158_v12 }
 0x808   :  { %v7844_v10 = vpop.f32.mrf.mxu3 }
 0x809   :  { %v8260_v25 = vadd.f32 %v8256_v16, %v8236_v44  ;;  %v7845_v37 = vadd.f32 %v7844_v10, %v7826_v41  ;;  %v8250_v44 = vpop.permute.xlu2 %8249 }
 0x80a   :  { %v7923_v15 = vpop.f32.mrf.mxu0 }
 0x80b   :  { %v7864_v21 = vadd.f32 %v15556_v22, %v7845_v37 }
 0x80d   :  { %8074 = vmatmul.bf16.gmra.mxu3 %v14202_v11  ;;  %8150 = vmatmul.bf16.gmra.mxu0 %v15013_v38  ;;  %v8163_v51 = vand.u32 2147483647, %v7864_v21 }
 0x80f   :  { %v8257_v55 = vmul.f32 %v8246_v50, %v8163_v51  ;;  %v7940_v51 = vadd.f32 %v14738_v9, %v14797_v32 }
 0x810   :  { %v7847_v28 = vpop.f32.mrf.mxu3 }
 0x811   :  { %v8261_v1 = vadd.f32 %v8257_v55, %v8237_v7  ;;  %v7848_v49 = vadd.f32 %v7847_v28, %v7829_v0  ;;  %v8270_v5 = vpop.permute.xlu2 %8269 }
 0x812   :  { %v7925_v34 = vpop.f32.mrf.mxu0 }
 0x813   :  { %v7867_v13 = vadd.f32 %v15575_v26, %v7848_v49 }
 0x815   :  { %v8168_v33 = vand.u32 2147483647, %v7867_v13 }
 0x817   :  { %v8258_v45 = vmul.f32 %v8250_v44, %v8168_v33 }
 0x818   :  { %v7849_v22 = vpop.f32.mrf.mxu3 }
 0x819   :  { %v8262_v3 = vadd.f32 %v8258_v45, %v8238_v18  ;;  %v7850_v43 = vadd.f32 %v7849_v22, %v14673_v23  ;;  %v7883_v23 = vadd.f32 %v14679_v6, %v14688_v19  ;;  %v8274_v6 = vpop.permute.xlu1 %8273 }
 0x81a   :  { %v15630_v2 = vpop.f32.mrf.mxu0 }
 0x81b   :  { %v7869_v38 = vadd.f32 %v7868_v62, %v7850_v43 }
 0x81d   :  { %8126 = vmatmul.bf16.vlgmr.msrb.gmra.mxu3 %v14156_v59  ;;  %v8173_v31 = vand.u32 2147483647, %v7869_v38 }
 0x81f   :  { %v8259_v7 = vmul.f32 %v8254_v48, %v8173_v31  ;;  %v7938_v31 = vadd.f32 %v14707_v61, %v14797_v32 }
 0x820   :  { %v7899_v35 = vpop.f32.mrf.mxu3 }
 0x821   :  { %v8263_v29 = vadd.f32 %v8259_v7, %v8239_v46  ;;  %v7900_v26 = vadd.f32 %v7899_v35, %v7881_v8 }
 0x822   :  { %v7977_v30 = vpop.f32.mrf.mxu0 }
 0x823   :  { %v7919_v27 = vadd.f32 %v7918_v39, %v7900_v26  ;;  %v7886_v39 = vadd.f32 %v14681_v63, %v14688_v19  ;;  %v7994_v19 = vpop.f32.mrf.mxu1 }
 0x825   :  { %v8159_v18 = vand.u32 2147483647, %v7919_v27 }
 0x827   :  { %v8280_v62 = vmul.f32 %v8266_v52, %v8159_v18  ;;  %v6729_v52 = vperm.slane %v15533_v42, 5 }
 0x828   :  { %v7901_v60 = vpop.f32.mrf.mxu3 }
 0x829   :  { %v15634_v56 = vadd.f32 %v8280_v62, %v8260_v25  ;;  %v7902_v59 = vadd.f32 %v7901_v60, %v7883_v23  ;;  %v7995_v61 = vadd.f32 %v7994_v19, %v6729_v52 }
 0x82a   :  { %v7980_v12 = vpop.f32.mrf.mxu0 }
 0x82b   :  { %v7921_v4 = vadd.f32 %v7920_v54, %v7902_v59  ;;  %v15644_v44 = vpop.f32.mrf.mxu1 }
 0x82d   :  { %8131 = vmatmul.bf16.gmra.mxu3 %v14202_v11  ;;  %v8164_v20 = vand.u32 2147483647, %v7921_v4  ;;  %v8278_v11 = vpop.permute.xlu2 %8277 }
 0x82f   :  { %v8281_v57 = vmul.f32 %v8270_v5, %v8164_v20  ;;  %v8290_v5 = vpop.permute.xlu0 %8289 }
 0x830   :  { %v7904_v53 = vpop.f32.mrf.mxu3 }
 0x831   :  { %v8285_v40 = vadd.f32 %v8281_v57, %v8261_v1  ;;  %v7905_v46 = vadd.f32 %v7904_v53, %v7886_v39  ;;  %v8294_v1 = vpop.permute.xlu1 %8293 }
 0x832   :  { %v7982_v63 = vpop.f32.mrf.mxu0 }
 0x833   :  { %v7924_v17 = vadd.f32 %v7923_v15, %v7905_v46  ;;  %v15655_v7 = vpop.f32.mrf.mxu1 }
 0x835   :  { %v8169_v24 = vand.u32 2147483647, %v7924_v17  ;;  %v8298_v43 = vpop.permute.xlu2 %8297 }
 0x837   :  { %v8282_v36 = vmul.f32 %v8274_v6, %v8169_v24 }
 0x838   :  { %v7906_v41 = vpop.f32.mrf.mxu3 }
 0x839   :  { %v8286_v16 = vadd.f32 %v8282_v36, %v8262_v3  ;;  %v7907_v54 = vadd.f32 %v7906_v41, %v14691_v58  ;;  %v7943_v58 = vadd.f32 %v14768_v14, %v14797_v32  ;;  %v8302_v26 = vpop.permute.xlu1 %8301 }
 0x83a   :  { %v8032_v28 = vpop.f32.mrf.mxu0 }
 0x83b   :  { %v7926_v10 = vadd.f32 %v7925_v34, %v7907_v54  ;;  %v8001_v4 = vpop.f32.mrf.mxu1  ;;  %v15663_v54 = vperm.slane %v15533_v42, 6 }
 0x83c   :  { %v8002_v36 = vadd.f32 %v8001_v4, %v6729_v52 }
 0x83d   :  { %v8174_v25 = vand.u32 2147483647, %v7926_v10 }
 0x83f   :  { %v8283_v37 = vmul.f32 %v8278_v11, %v8174_v25 }
 0x840   :  { %v7956_v21 = vpop.f32.mrf.mxu3 }
 0x841   :  { %v8287_v50 = vadd.f32 %v8283_v37, %v8263_v29  ;;  %v7957_v35 = vadd.f32 %v7956_v21, %v7938_v31 }
 0x842   :  { %v15648_v9 = vpop.f32.mrf.mxu0 }
 0x843   :  { %v7976_v18 = vadd.f32 %v15630_v2, %v7957_v35  ;;  %v8051_v46 = vpop.f32.mrf.mxu1 }
 0x845   :  { %v8160_v32 = vand.u32 2147483647, %v7976_v18 }
 0x847   :  { %v8304_v20 = vmul.f32 %v8290_v5, %v8160_v32 }
 0x848   :  { %v7958_v0 = vpop.f32.mrf.mxu3 }
 0x849   :  { %v7959_v55 = vadd.f32 %v7958_v0, %v7940_v51  ;;  %v8308_v53 = vadd.f32 %v8304_v20, %v15634_v56  ;;  %v8052_v56 = vadd.f32 %v8051_v46, %v15663_v54 }
 0x84a   :  { %v15659_v62 = vpop.f32.mrf.mxu0 }
 0x84b   :  { %v7978_v15 = vadd.f32 %v7977_v30, %v7959_v55 }
 0x84d   :  { %v8165_v49 = vand.u32 2147483647, %v7978_v15 }
 0x84f   :  { %v8305_v13 = vmul.f32 %v8294_v1, %v8165_v49 }
 0x850   :  { %v7961_v33 = vpop.f32.mrf.mxu3 }
 0x851   :  { %v15646_v45 = vadd.f32 %v8305_v13, %v8285_v40  ;;  %v7962_v22 = vadd.f32 %v7961_v33, %v7943_v58 }
 0x852   :  { %v8039_v57 = vpop.f32.mrf.mxu0 }
 0x853   :  { %v7981_v3 = vadd.f32 %v7980_v12, %v7962_v22  ;;  %v8053_v12 = vpop.f32.mrf.mxu1 }
 0x855   :  { %v8170_v34 = vand.u32 2147483647, %v7981_v3  ;;  %v7997_v3 = vadd.f32 %v15644_v44, %v6729_v52 }
 0x857   :  { %v8306_v38 = vmul.f32 %v8298_v43, %v8170_v34 }
 0x858   :  { %v7963_v48 = vpop.f32.mrf.mxu3 }
 0x859   :  { %v15652_v8 = vadd.f32 %v8306_v38, %v8286_v16  ;;  %v7964_v14 = vadd.f32 %v7963_v48, %v14811_v47 }
 0x85a   :  { %v8089_v6 = vpop.f32.mrf.mxu0 }
 0x85b   :  { %v7983_v29 = vadd.f32 %v7982_v63, %v7964_v14  ;;  %v15668_v63 = vpop.f32.mrf.mxu1 }
 0x85d   :  { %v8175_v27 = vand.u32 2147483647, %v7983_v29 }
 0x85f   :  { %v8307_v23 = vmul.f32 %v8302_v26, %v8175_v27  ;;  %v8000_v26 = vadd.f32 %v15655_v7, %v6729_v52  ;;  %v6731_v27 = vperm.slane %v15533_v42, 7  ;;  %v11906_v42 = vld [vmem:[%s15721_s14] ss:$0 sm:$0xff] }
 0x860   :  { %v8013_v60 = vpop.f32.mrf.mxu3 }
 0x861   :  { %v8311_v59 = vadd.f32 %v8307_v23, %v8287_v50  ;;  %v8014_v47 = vadd.f32 %v8013_v60, %v7995_v61 }
 0x862   :  { %v15665_v25 = vpop.f32.mrf.mxu0 }
 0x863   :  { %v8033_v39 = vadd.f32 %v8032_v28, %v8014_v47  ;;  %v8058_v58 = vpop.f32.mrf.mxu1 }
 0x864   :  { %v8059_v48 = vadd.f32 %v8058_v58, %v15663_v54 }
 0x865   :  { %v8312_v40 = vadd.f32 %v8308_v53, %v8033_v39 }
 0x867   :  { %v8320_v2 = vmin.f32 %v8312_v40, 0.0  ;;  %vm8316_vm1 = vcmp.gt.f32.partialorder %v8312_v40, 0.0 }
 0x868   :  { %v8015_v30 = vpop.f32.mrf.mxu3 }
 0x869   :  { %v8324_v24 = vmul.f32 1.442695, %v8320_v2  ;;  %v8016_v43 = vadd.f32 %v8015_v30, %v7997_v3 }
 0x86a   :  { %v15670_v28 = vpop.f32.mrf.mxu0 }
 0x86b   :  { %11908 = vpow2.f32 %v8324_v24  ;;  %v8108_v34 = vpop.f32.mrf.mxu1  ;;  %v8035_v14 = vadd.f32 %v15648_v9, %v8016_v43 }
 0x86c   :  { %v8109_v32 = vadd.f32 %v8108_v34, %v6731_v27 }
 0x86d   :  { %v8313_v60 = vadd.f32 %v15646_v45, %v8035_v14 }
 0x86f   :  { %v8321_v20 = vmin.f32 %v8313_v60, 0.0  ;;  %vm8317_vm3 = vcmp.gt.f32.partialorder %v8313_v60, 0.0 }
 0x870   :  { %v8018_v17 = vpop.f32.mrf.mxu3 }
 0x871   :  { %v11909_v37 = vpop.eup %11908  ;;  %v8326_v52 = vmul.f32 1.442695, %v8321_v20 }
 0x872   :  { %v11193_v19 = vadd.f32 -1.0, %v11909_v37  ;;  %v8096_v22 = vpop.f32.mrf.mxu0 }
 0x873   :  { %v8110_v5 = vpop.f32.mrf.mxu1 }
 0x874   :  { %v8336_v55 = vsel %vm8316_vm1, %v8312_v40, %v11193_v19  ;;  %v8111_v53 = vadd.f32 %v8110_v5, %v6731_v27 }
 0x878   :  { %v8020_v41 = vpop.f32.mrf.mxu3 }
 0x879   :  { %v8021_v16 = vadd.f32 %v8020_v41, %v8002_v36 }
 0x87a   :  { %v8146_v23 = vpop.f32.mrf.mxu0 }
 0x87b   :  { %v8040_v10 = vadd.f32 %v8039_v57, %v8021_v16 }
 0x87d   :  { %v8315_v11 = vadd.f32 %v8311_v59, %v8040_v10  ;;  %v8019_v59 = vadd.f32 %v8018_v17, %v8000_v26  ;;  %v8054_v17 = vadd.f32 %v8053_v12, %v15663_v54 }
 0x87f   :  { %v8323_v49 = vmin.f32 %v8315_v11, 0.0  ;;  %vm8319_vm2 = vcmp.gt.f32.partialorder %v8315_v11, 0.0  ;;  %v8038_v9 = vadd.f32 %v15659_v62, %v8019_v59  ;;  %v8113_v62 = vpop.f32.mrf.mxu1 }
 0x880   :  { %v8070_v21 = vpop.f32.mrf.mxu3 }
 0x881   :  { %v8071_v50 = vadd.f32 %v8070_v21, %v8052_v56  ;;  %v8330_v13 = vmul.f32 1.442695, %v8323_v49  ;;  %v8314_v7 = vadd.f32 %v15652_v8, %v8038_v9 }
 0x882   :  { %v8148_v57 = vpop.f32.mrf.mxu0 }
 0x883   :  { %v8090_v51 = vadd.f32 %v8089_v6, %v8071_v50  ;;  %11910 = vpow2.f32 %v8330_v13  ;;  %v8322_v2 = vmin.f32 %v8314_v7, 0.0  ;;  %v8057_v50 = vadd.f32 %v15668_v63, %v15663_v54 }
 0x884   :  { %11912 = vpow2.f32 %v8326_v52  ;;  %vm8318_vm4 = vcmp.gt.f32.partialorder %v8314_v7, 0.0 }
 0x885   :  { %v8176_v0 = vand.u32 2147483647, %v8090_v51  ;;  %v8328_v16 = vmul.f32 1.442695, %v8322_v2 }
 0x887   :  { %v8364_v15 = vmul.f32 %v8336_v55, %v8176_v0  ;;  %11914 = vpow2.f32 %v8328_v16 }
 0x888   :  { %v8072_v1 = vpop.f32.mrf.mxu3 }
 0x889   :  { %8368 = vadd.xlane.f32.xlu2 %v8364_v15  ;;  %v11911_v38 = vpop.eup %11910  ;;  %v8073_v24 = vadd.f32 %v8072_v1, %v8054_v17  ;;  %v8115_v15 = vpop.f32.mrf.mxu1 }
 0x88a   :  { %v11196_v29 = vadd.f32 -1.0, %v11911_v38  ;;  %v11913_v10 = vpop.eup %11912  ;;  %v8151_v56 = vpop.f32.mrf.mxu0  ;;  %v8116_v13 = vadd.f32 %v8115_v15, %v6731_v27 }
 0x88b   :  { %v8092_v8 = vadd.f32 %v15665_v25, %v8073_v24  ;;  %v11194_v19 = vadd.f32 -1.0, %v11913_v10 }
 0x88c   :  { %v8339_v61 = vsel %vm8319_vm2, %v8315_v11, %v11196_v29  ;;  %v8114_v11 = vadd.f32 %v8113_v62, %v6731_v27 }
 0x88d   :  { %v8177_v51 = vand.u32 2147483647, %v8092_v8  ;;  %v8337_v49 = vsel %vm8317_vm3, %v8313_v60, %v11194_v19  ;;  %v11915_v58 = vpop.eup %11914 }
 0x88e   :  { %v11195_v63 = vadd.f32 -1.0, %v11915_v58 }
 0x88f   :  { %v8365_v3 = vmul.f32 %v8337_v49, %v8177_v51 }
 0x890   :  { %v8075_v33 = vpop.f32.mrf.mxu3 }
 0x891   :  { %v8076_v0 = vadd.f32 %v8075_v33, %v8057_v50 }
 0x892   :  { %v8153_v54 = vpop.f32.mrf.mxu0 }
 0x893   :  { %v8095_v25 = vadd.f32 %v15670_v28, %v8076_v0  ;;  %v21_v28 = vstv %s15722_s15 }
 0x894   :  { %22 = vst [vmem:[#allocation2] sm:$0x1] %v21_v28 }
 0x895   :  { %v8178_v38 = vand.u32 2147483647, %v8095_v25 }
 0x898   :  { %v8077_v31 = vpop.f32.mrf.mxu3 }
 0x899   :  { %v8078_v35 = vadd.f32 %v8077_v31, %v8059_v48  ;;  %v8338_v31 = vsel %vm8318_vm4, %v8314_v7, %v11195_v63 }
 0x89a   :  { %v8366_v14 = vmul.f32 %v8338_v31, %v8178_v38 }
 0x89b   :  { %v8097_v18 = vadd.f32 %v8096_v22, %v8078_v35  ;;  %v11907_v26 = vld [vmem:[#allocation2] ss:$0 sm:$0xff] }
 0x89d   :  { %v8179_v44 = vand.u32 2147483647, %v8097_v18 }
 0x89f   :  { %v8367_v4 = vmul.f32 %v8339_v61, %v8179_v44 }
 0x8a0   :  { %v8127_v47 = vpop.f32.mrf.mxu3 }
 0x8a1   :  { %v8128_v30 = vadd.f32 %v8127_v47, %v8109_v32 }
 0x8a3   :  { %v8147_v39 = vadd.f32 %v8146_v23, %v8128_v30 }
 0x8a5   :  { %v8180_v45 = vmax.f32 %v8147_v39, 0.0 }
 0x8a7   :  { %v8344_v40 = vmul.f32 %v11906_v42, %v8180_v45 }
 0x8a8   :  { %v8129_v46 = vpop.f32.mrf.mxu3 }
 0x8a9   :  { %v8130_v6 = vadd.f32 %v8129_v46, %v8111_v53  ;;  %8348 = vadd.xlane.f32.xlu2 %v8344_v40 }
 0x8ab   :  { %v8149_v36 = vadd.f32 %v8148_v57, %v8130_v6 }
 0x8ad   :  { %v8181_v41 = vmax.f32 %v8149_v36, 0.0 }
 0x8af   :  { %v8345_v37 = vmul.f32 %v11906_v42, %v8181_v41 }
 0x8b0   :  { %v8132_v21 = vpop.f32.mrf.mxu3 }
 0x8b1   :  { %v8133_v12 = vadd.f32 %v8132_v21, %v8114_v11  ;;  %8350 = vadd.xlane.f32.xlu0 %v8345_v37 }
 0x8b3   :  { %v8152_v55 = vadd.f32 %v8151_v56, %v8133_v12 }
 0x8b5   :  { %v8182_v1 = vmax.f32 %v8152_v55, 0.0 }
 0x8b7   :  { %v8346_v22 = vmul.f32 %v11906_v42, %v8182_v1 }
 0x8b8   :  { %v8134_v43 = vpop.f32.mrf.mxu3 }
 0x8b9   :  { %v8135_v34 = vadd.f32 %v8134_v43, %v8116_v13  ;;  %8352 = vadd.xlane.f32.xlu1 %v8346_v22  ;;  %8370 = vadd.xlane.f32.xlu0 %v8365_v3 }
 0x8bb   :  { %v8154_v48 = vadd.f32 %v8153_v54, %v8135_v34 }
 0x8bd   :  { %v8183_v33 = vmax.f32 %v8154_v48, 0.0 }
 0x8bf   :  { %v8347_v35 = vmul.f32 %v11906_v42, %v8183_v33 }
 0x8c1   :  { %8372 = vadd.xlane.f32.xlu1 %v8366_v14  ;;  %8354 = vadd.xlane.f32.xlu2 %v8347_v35 }
 0x8c9   :  { %8374 = vadd.xlane.f32.xlu2 %v8367_v4 }
 0x8fc   :  { %v8369_v29 = vpop.xlane.xlu2 %8368 }
 0x91c   :  { %v8349_v27 = vpop.xlane.xlu2 %8348 }
 0x91d   :  { %v8360_v18 = vadd.f32 %v11907_v26, %v8349_v27 }
 0x91f   :  { %v8376_v23 = vadd.f32 %v8369_v29, %v8360_v18 }
 0x921   :  { %8381 = vst.msk [vmem:[%s15723_s16] sm:$0xff] %vm8380_vm5, %v8376_v23 }
 0x924   :  { %v8351_v60 = vpop.xlane.xlu0 %8350 }
 0x925   :  { %v8361_v59 = vadd.f32 %v11907_v26, %v8351_v60 }
 0x92c   :  { %v8353_v44 = vpop.xlane.xlu1 %8352  ;;  %v8371_v61 = vpop.xlane.xlu0 %8370 }
 0x92d   :  { %v8377_v32 = vadd.f32 %v8371_v61, %v8361_v59  ;;  %v8362_v4 = vadd.f32 %v11907_v26, %v8353_v44 }
 0x92f   :  { %8382 = vst.msk [vmem:[%s15723_s16 + $0x8] sm:$0xff] %vm8380_vm5, %v8377_v32 }
 0x934   :  { %v8373_v5 = vpop.xlane.xlu1 %8372  ;;  %v8355_v47 = vpop.xlane.xlu2 %8354 }
 0x935   :  { %v8378_v20 = vadd.f32 %v8373_v5, %v8362_v4  ;;  %v8363_v9 = vadd.f32 %v11907_v26, %v8355_v47 }
 0x937   :  { %8383 = vst.msk [vmem:[%s15723_s16 + $0x10] sm:$0xff] %vm8380_vm5, %v8378_v20 }
 0x93c   :  { %v8375_v30 = vpop.xlane.xlu2 %8374 }
 0x93d   :  { %v8379_v39 = vadd.f32 %v8375_v30, %v8363_v9 }
 0x93f   :  { %8384 = vst.msk [vmem:[%s15723_s16 + $0x18] sm:$0xff] %vm8380_vm5, %v8379_v39 }

</bundles_post_ra>
